<compile_context>
chip_gen: v7x
topology: tpu7x:2x2x1
jax: 0.10.0
libtpu: 0.0.40
codegen_flags: <defaults>
</compile_context>

<pallas_src>
import jax
import jax.numpy as jnp
from jax import lax
from jax.experimental import pallas as pl
from jax.experimental.pallas import tpu as pltpu

D_CLIP = 1024                                  # fixed by nn.Linear(1024 * 2, 256)
SHARED_DIM = 128                               # UnimodalDetection hidden dim
PRIME_DIM = 64                                 # UnimodalDetection prime dim
CROSS_DIM = 256
FUSED1_DIM = 2 * SHARED_DIM + CROSS_DIM        # 512 fused first-layer width
BN_EPS = 1e-5
COS_EPS = 1e-8


def _cos_rows(a, b):
    """Row-wise cosine similarity (torch.cosine_similarity semantics)."""
    dot = jnp.sum(a * b, axis=-1, keepdims=True)
    sa = jnp.sum(a * a, axis=-1, keepdims=True)
    sb = jnp.sum(b * b, axis=-1, keepdims=True)
    eps2 = jnp.float32(COS_EPS * COS_EPS)
    # rsqrt runs on the EUP slot; equals dot / (max(||a||,eps)*max(||b||,eps)).
    return dot * lax.rsqrt(jnp.maximum(sa, eps2)) * lax.rsqrt(jnp.maximum(sb, eps2))


def clip_multimodal_kernel(img_ref, txt_ref,
                           w1i_ref, w1t_ref, b1_ref, w2_ref, b2_ref,
                           cross_ref, muti_ref, sims_ref):
    img = img_ref[...]                       # (TB, 1024) f32
    txt = txt_ref[...]                       # (TB, 1024) f32

    # similarity = my_cos_sim(imageclip, textclip)  (full f32 precision)
    sim = _cos_rows(img, txt)                # (TB, 1)

    # --- fused first layer + cross branch (BN folded, bf16 MXU, f32 acc) ---
    #   columns [0:128]   image_uni layer-1
    #   columns [128:256] text_uni  layer-1
    #   columns [256:512] uni_clip Linear(2048,256) (concat replaced by 2 accumulated matmuls)
    h = jnp.dot(img.astype(jnp.bfloat16), w1i_ref[...],
                preferred_element_type=jnp.float32)
    h = h + jnp.dot(txt.astype(jnp.bfloat16), w1t_ref[...],
                    preferred_element_type=jnp.float32)
    h = jnp.maximum(h + b1_ref[...], 0.0)    # (TB, 512)

    # cross_fea = ReLU(BN(Linear(cat(img, txt))));
    # TODO(synk): nn.Dropout() implemented as eval-mode identity (no RNG masking).
    cross_ref[...] = h[:, 2 * SHARED_DIM:FUSED1_DIM]

    # --- fused second layer: [image_hidden | text_hidden] @ W2 -> muti_fea ---
    # W2 is block-anti-diagonal so the output is directly
    # cat(text_prime, image_prime) in the module's ordering.
    hidden = h[:, 0:2 * SHARED_DIM]          # (TB, 256)
    m = jnp.dot(hidden.astype(jnp.bfloat16), w2_ref[...],
                preferred_element_type=jnp.float32)
    muti = jnp.maximum(m + b2_ref[...], 0.0) # (TB, 128)
    muti_ref[...] = muti

    text_prime = muti[:, 0:PRIME_DIM]
    image_prime = muti[:, PRIME_DIM:2 * PRIME_DIM]
    psim = _cos_rows(text_prime, image_prime)  # (TB, 1)

    # Pack both (TB,1) similarities into one lane-dense (TB,128) slab so the
    # writeback is a single full-width unmasked store.
    lane = lax.broadcasted_iota(jnp.int32, sims_ref.shape, 1)
    sims_ref[...] = jnp.where(lane == 0, sim, jnp.where(lane == 1, psim, 0.0))
    # TODO(synk): BatchNorm1d uses eval-mode running stats (folded), not
    # train-mode batch statistics.


# ------------------------------ wrapper --------------------------------------
def _round_up(x, m):
    return (x + m - 1) // m * m


def clip_multimodal(imageclip, textclip, fused_params, *, block_b=128):
    """block_b = batch rows per grid step. 128 fills the v5e MXU; use 256 on
    v6e/v7x for full 256-row MXU passes. Weights stay VMEM-resident across
    grid steps via constant index_maps."""
    w1i, w1t, b1, w2, b2 = fused_params
    B = imageclip.shape[0]

    TB = min(block_b, _round_up(B, 8))
    Bp = _round_up(B, TB)
    if Bp != B:
        pad = ((0, Bp - B), (0, 0))
        imageclip = jnp.pad(imageclip, pad)
        textclip = jnp.pad(textclip, pad)

    grid = (Bp // TB,)

    out_shape = (
        jax.ShapeDtypeStruct((Bp, CROSS_DIM), jnp.float32),      # cross_fea
        jax.ShapeDtypeStruct((Bp, 2 * PRIME_DIM), jnp.float32),  # muti_fea
        jax.ShapeDtypeStruct((Bp, 128), jnp.float32),            # [sim|psim|0..]
    )
    in_specs = [
        pl.BlockSpec((TB, D_CLIP), lambda i: (i, 0)),            # imageclip tile
        pl.BlockSpec((TB, D_CLIP), lambda i: (i, 0)),            # textclip tile
        pl.BlockSpec((D_CLIP, FUSED1_DIM), lambda i: (0, 0)),    # W1_img (resident)
        pl.BlockSpec((D_CLIP, FUSED1_DIM), lambda i: (0, 0)),    # W1_txt (resident)
        pl.BlockSpec((1, FUSED1_DIM), lambda i: (0, 0)),         # b1
        pl.BlockSpec((2 * SHARED_DIM, 2 * PRIME_DIM), lambda i: (0, 0)),  # W2
        pl.BlockSpec((1, 2 * PRIME_DIM), lambda i: (0, 0)),      # b2
    ]
    out_specs = [
        pl.BlockSpec((TB, CROSS_DIM), lambda i: (i, 0)),
        pl.BlockSpec((TB, 2 * PRIME_DIM), lambda i: (i, 0)),
        pl.BlockSpec((TB, 128), lambda i: (i, 0)),
    ]

    cross, muti, sims = pl.pallas_call(
        clip_multimodal_kernel,
        out_shape=out_shape,
        grid_spec=pltpu.PrefetchScalarGridSpec(
            num_scalar_prefetch=0,
            grid=grid,
            in_specs=in_specs,
            out_specs=out_specs),
        compiler_params=pltpu.CompilerParams(
            dimension_semantics=("parallel",),        # lets v7x use both TCs
            vmem_limit_bytes=32 * 1024 * 1024),       # explicit, v7x-safe
    )(imageclip, textclip, w1i, w1t, b1, w2, b2)

    return cross[:B], muti[:B], sims[:B, 0], sims[:B, 1]


# --------------------------- parameter handling -------------------------------
def init_raw_params(key):
    """Original-module parameters (Linear weights pre-transposed to (in,out));
    BatchNorm stats are deterministic synthetic eval-mode running stats."""
    ks = jax.random.split(key, 10)

    def linear(k, din, dout):
        kw, kb = jax.random.split(k)
        w = jax.random.normal(kw, (din, dout), jnp.float32) / jnp.sqrt(din)
        b = 0.01 * jax.random.normal(kb, (dout,), jnp.float32)
        return w, b

    def bn(k, dim):
        k1, k2, k3, k4 = jax.random.split(k, 4)
        gamma = 1.0 + 0.1 * jax.random.normal(k1, (dim,), jnp.float32)
        beta = 0.1 * jax.random.normal(k2, (dim,), jnp.float32)
        mean = 0.1 * jax.random.normal(k3, (dim,), jnp.float32)
        var = jnp.abs(jax.random.normal(k4, (dim,), jnp.float32)) + 0.5
        return gamma, beta, mean, var

    return dict(
        text1=linear(ks[0], D_CLIP, SHARED_DIM),   bn_t1=bn(ks[1], SHARED_DIM),
        text2=linear(ks[2], SHARED_DIM, PRIME_DIM), bn_t2=bn(ks[3], PRIME_DIM),
        img1=linear(ks[4], D_CLIP, SHARED_DIM),    bn_i1=bn(ks[5], SHARED_DIM),
        img2=linear(ks[6], SHARED_DIM, PRIME_DIM), bn_i2=bn(ks[7], PRIME_DIM),
        cross=linear(ks[8], 2 * D_CLIP, CROSS_DIM), bn_c=bn(ks[9], CROSS_DIM),
    )


def _fold_bn_into_linear(w, b, bn):
    gamma, beta, mean, var = bn
    scale = gamma / jnp.sqrt(var + BN_EPS)
    return w * scale[None, :], b * scale + (beta - mean * scale)


def fuse_params(raw):
    """Fold BN into Linear, build the fused/zero-padded matmul weights, cast
    matmul operands to bf16 (biases stay f32)."""
    w1t, b1t = _fold_bn_into_linear(*raw["text1"], raw["bn_t1"])
    w2t, b2t = _fold_bn_into_linear(*raw["text2"], raw["bn_t2"])
    w1i, b1i = _fold_bn_into_linear(*raw["img1"], raw["bn_i1"])
    w2i, b2i = _fold_bn_into_linear(*raw["img2"], raw["bn_i2"])
    wc, bc = _fold_bn_into_linear(*raw["cross"], raw["bn_c"])
    wc_img, wc_txt = wc[:D_CLIP], wc[D_CLIP:]     # cat(img, txt) row order

    zero1 = jnp.zeros((D_CLIP, SHARED_DIM), jnp.float32)
    W1_img = jnp.concatenate([w1i, zero1, wc_img], axis=1)   # (1024, 512)
    W1_txt = jnp.concatenate([zero1, w1t, wc_txt], axis=1)   # (1024, 512)
    b1 = jnp.concatenate([b1i, b1t, bc])[None, :]            # (1, 512)

    zero2 = jnp.zeros((SHARED_DIM, PRIME_DIM), jnp.float32)
    W2 = jnp.concatenate([
        jnp.concatenate([zero2, w2i], axis=1),   # rows 0:128   (image_hidden)
        jnp.concatenate([w2t, zero2], axis=1),   # rows 128:256 (text_hidden)
    ], axis=0)                                   # (256, 128) -> [text_prime|image_prime]
    b2 = jnp.concatenate([b2t, b2i])[None, :]    # (1, 128)

    return (W1_img.astype(jnp.bfloat16), W1_txt.astype(jnp.bfloat16),
            b1.astype(jnp.float32),
            W2.astype(jnp.bfloat16), b2.astype(jnp.float32))


# ------------------------------ references -----------------------------------
def reference_module(imageclip, textclip, raw):
    """Original module semantics (eval-mode BN, Dropout identity), pure f32."""
    def cos(a, b):
        dot = jnp.sum(a * b, axis=-1)
        na = jnp.sqrt(jnp.sum(a * a, axis=-1))
        nb = jnp.sqrt(jnp.sum(b * b, axis=-1))
        return dot / jnp.maximum(na * nb, COS_EPS)

    def lin_bn_relu(x, wb, bn):
        w, b = wb
        gamma, beta, mean, var = bn
        y = x @ w + b
        y = (y - mean) / jnp.sqrt(var + BN_EPS) * gamma + beta
        return jnp.maximum(y, 0.0)

    similarity = cos(imageclip, textclip)
    th = lin_bn_relu(textclip, raw["text1"], raw["bn_t1"])
    text_prime = lin_bn_relu(th, raw["text2"], raw["bn_t2"])
    ih = lin_bn_relu(imageclip, raw["img1"], raw["bn_i1"])
    image_prime = lin_bn_relu(ih, raw["img2"], raw["bn_i2"])
    project_sim = cos(text_prime, image_prime)
    muti_fea = jnp.concatenate([text_prime, image_prime], axis=1)
    cross_fea = lin_bn_relu(jnp.concatenate([imageclip, textclip], axis=1),
                            raw["cross"], raw["bn_c"])
    return cross_fea, muti_fea, similarity, project_sim


def reference_fused(imageclip, textclip, fused):
    """Exactly the kernel's math path (bf16 matmul operands, f32 accumulate)."""
    w1i, w1t, b1, w2, b2 = fused

    def cos(a, b):
        dot = jnp.sum(a * b, axis=-1)
        sa = jnp.sum(a * a, axis=-1)
        sb = jnp.sum(b * b, axis=-1)
        eps2 = COS_EPS * COS_EPS
        return dot * lax.rsqrt(jnp.maximum(sa, eps2)) * lax.rsqrt(jnp.maximum(sb, eps2))

    sim = cos(imageclip, textclip)
    h = (jnp.dot(imageclip.astype(jnp.bfloat16), w1i, preferred_element_type=jnp.float32)
         + jnp.dot(textclip.astype(jnp.bfloat16), w1t, preferred_element_type=jnp.float32))
    h = jnp.maximum(h + b1, 0.0)
    cross = h[:, 2 * SHARED_DIM:]
    hidden = h[:, :2 * SHARED_DIM]
    muti = jnp.maximum(
        jnp.dot(hidden.astype(jnp.bfloat16), w2, preferred_element_type=jnp.float32) + b2,
        0.0)
    psim = cos(muti[:, :PRIME_DIM], muti[:, PRIME_DIM:])
    return cross, muti, sim, psim


if __name__ == "__main__":
    key = jax.random.PRNGKey(0)
    k_img, k_txt, k_param = jax.random.split(key, 3)

    B = 256                                   # feature dim is fixed at 1024 by the module
    imageclip = jax.random.normal(k_img, (B, D_CLIP), jnp.float32)
    textclip = jax.random.normal(k_txt, (B, D_CLIP), jnp.float32)

    raw = init_raw_params(k_param)
    fused = fuse_params(raw)

    cross_fea, muti_fea, similarity, project_sim = jax.block_until_ready(
        clip_multimodal(imageclip, textclip, fused, block_b=128))

    assert cross_fea.shape == (B, CROSS_DIM)
    assert muti_fea.shape == (B, 2 * PRIME_DIM)
    assert similarity.shape == (B,) and project_sim.shape == (B,)

    # Tight check: kernel vs an identical-math JAX reference (bf16 operands).
    f_cross, f_muti, f_sim, f_psim = reference_fused(imageclip, textclip, fused)
    for got, want in ((cross_fea, f_cross), (muti_fea, f_muti),
                      (similarity, f_sim), (project_sim, f_psim)):
        assert jnp.allclose(got, want, rtol=1e-3, atol=1e-3), "mismatch vs fused reference"

    # Loose check: kernel vs the original-module f32 semantics (difference is
    # bounded by the bf16 weight quantization of the mixed-precision matmuls).
    r_cross, r_muti, r_sim, r_psim = reference_module(imageclip, textclip, raw)
    for got, want in ((cross_fea, r_cross), (muti_fea, r_muti),
                      (similarity, r_sim), (project_sim, r_psim)):
        assert jnp.allclose(got, want, rtol=5e-2, atol=5e-2), "mismatch vs module reference"

    print("KERNEL_OK")
</pallas_src>

<mosaic_0001>
module attributes {stable_mosaic.version = 11 : i64} {
  func.func @clip_multimodal_kernel(%arg0: i32, %arg1: memref<128x1024xf32, #tpu.memory_space<vmem>>, %arg2: memref<128x1024xf32, #tpu.memory_space<vmem>>, %arg3: memref<1024x512xbf16, #tpu.memory_space<vmem>>, %arg4: memref<1024x512xbf16, #tpu.memory_space<vmem>>, %arg5: memref<1x512xf32, #tpu.memory_space<vmem>>, %arg6: memref<256x128xbf16, #tpu.memory_space<vmem>>, %arg7: memref<1x128xf32, #tpu.memory_space<vmem>>, %arg8: memref<128x256xf32, #tpu.memory_space<vmem>>, %arg9: memref<128x128xf32, #tpu.memory_space<vmem>>, %arg10: memref<128x128xf32, #tpu.memory_space<vmem>>) attributes {dimension_semantics = [#tpu.dimension_semantics<parallel>], iteration_bounds = array<i64: 2>, scalar_prefetch = 0 : i64, scratch_operands = 0 : i64, tpu.core_type = #tpu.core_type<tc>, window_params = [{transform_indices = @transform_0, window_bounds = array<i64: 128, 1024>}, {transform_indices = @transform_1, window_bounds = array<i64: 128, 1024>}, {pipeline_mode = #tpu.pipeline_mode<synchronous>, transform_indices = @transform_2, window_bounds = array<i64: 1024, 512>}, {pipeline_mode = #tpu.pipeline_mode<synchronous>, transform_indices = @transform_3, window_bounds = array<i64: 1024, 512>}, {pipeline_mode = #tpu.pipeline_mode<synchronous>, transform_indices = @transform_4, window_bounds = array<i64: 1, 512>}, {pipeline_mode = #tpu.pipeline_mode<synchronous>, transform_indices = @transform_5, window_bounds = array<i64: 256, 128>}, {pipeline_mode = #tpu.pipeline_mode<synchronous>, transform_indices = @transform_6, window_bounds = array<i64: 1, 128>}, {transform_indices = @transform_7, window_bounds = array<i64: 128, 256>}, {transform_indices = @transform_8, window_bounds = array<i64: 128, 128>}, {transform_indices = @transform_9, window_bounds = array<i64: 128, 128>}]} {
    %c0 = arith.constant 0 : index
    %c0_0 = arith.constant 0 : index
    %0 = vector.load %arg1[%c0, %c0_0] : memref<128x1024xf32, #tpu.memory_space<vmem>>, vector<128x1024xf32>
    %c0_1 = arith.constant 0 : index
    %c0_2 = arith.constant 0 : index
    %1 = vector.load %arg2[%c0_1, %c0_2] : memref<128x1024xf32, #tpu.memory_space<vmem>>, vector<128x1024xf32>
    %2 = arith.mulf %0, %1 : vector<128x1024xf32>
    %cst = arith.constant dense<0.000000e+00> : vector<128xf32>
    %3 = vector.multi_reduction <add>, %2, %cst [1] : vector<128x1024xf32> to vector<128xf32>
    %4 = vector.shape_cast %3 : vector<128xf32> to vector<128x1xf32>
    %5 = arith.mulf %0, %0 : vector<128x1024xf32>
    %cst_3 = arith.constant dense<0.000000e+00> : vector<128xf32>
    %6 = vector.multi_reduction <add>, %5, %cst_3 [1] : vector<128x1024xf32> to vector<128xf32>
    %7 = vector.shape_cast %6 : vector<128xf32> to vector<128x1xf32>
    %8 = arith.mulf %1, %1 : vector<128x1024xf32>
    %cst_4 = arith.constant dense<0.000000e+00> : vector<128xf32>
    %9 = vector.multi_reduction <add>, %8, %cst_4 [1] : vector<128x1024xf32> to vector<128xf32>
    %10 = vector.shape_cast %9 : vector<128xf32> to vector<128x1xf32>
    %cst_5 = arith.constant 1.000000e-16 : f32
    %11 = vector.broadcast %cst_5 : f32 to vector<128x1xf32>
    %12 = arith.maximumf %7, %11 : vector<128x1xf32>
    %13 = math.rsqrt %12 : vector<128x1xf32>
    %14 = arith.mulf %4, %13 : vector<128x1xf32>
    %cst_6 = arith.constant 1.000000e-16 : f32
    %15 = vector.broadcast %cst_6 : f32 to vector<128x1xf32>
    %16 = arith.maximumf %10, %15 : vector<128x1xf32>
    %17 = math.rsqrt %16 : vector<128x1xf32>
    %18 = arith.mulf %14, %17 : vector<128x1xf32>
    %19 = arith.truncf %0 : vector<128x1024xf32> to vector<128x1024xbf16>
    %c0_7 = arith.constant 0 : index
    %c0_8 = arith.constant 0 : index
    %20 = vector.load %arg3[%c0_7, %c0_8] : memref<1024x512xbf16, #tpu.memory_space<vmem>>, vector<1024x512xbf16>
    %cst_9 = arith.constant dense<0.000000e+00> : vector<128x512xf32>
    %21 = tpu.matmul %19, %20, %cst_9 {dimension_numbers = #tpu.dot_dimension_numbers<[1], [0], [0], [1], [0, 0, 1, 1], [], []>} : vector<128x1024xbf16>, vector<1024x512xbf16>, vector<128x512xf32> -> vector<128x512xf32>
    %22 = arith.truncf %1 : vector<128x1024xf32> to vector<128x1024xbf16>
    %c0_10 = arith.constant 0 : index
    %c0_11 = arith.constant 0 : index
    %23 = vector.load %arg4[%c0_10, %c0_11] : memref<1024x512xbf16, #tpu.memory_space<vmem>>, vector<1024x512xbf16>
    %cst_12 = arith.constant dense<0.000000e+00> : vector<128x512xf32>
    %24 = tpu.matmul %22, %23, %cst_12 {dimension_numbers = #tpu.dot_dimension_numbers<[1], [0], [0], [1], [0, 0, 1, 1], [], []>} : vector<128x1024xbf16>, vector<1024x512xbf16>, vector<128x512xf32> -> vector<128x512xf32>
    %25 = arith.addf %21, %24 : vector<128x512xf32>
    %c0_13 = arith.constant 0 : index
    %c0_14 = arith.constant 0 : index
    %26 = vector.load %arg5[%c0_13, %c0_14] : memref<1x512xf32, #tpu.memory_space<vmem>>, vector<1x512xf32>
    %27 = vector.broadcast %26 : vector<1x512xf32> to vector<128x512xf32>
    %28 = arith.addf %25, %27 : vector<128x512xf32>
    %cst_15 = arith.constant 0.000000e+00 : f32
    %29 = vector.broadcast %cst_15 : f32 to vector<128x512xf32>
    %30 = arith.maximumf %28, %29 : vector<128x512xf32>
    %31 = vector.extract_strided_slice %30 {offsets = [0, 256], sizes = [128, 256], strides = [1, 1]} : vector<128x512xf32> to vector<128x256xf32>
    %c0_16 = arith.constant 0 : index
    %c0_17 = arith.constant 0 : index
    %32 = vector.load %arg8[%c0_16, %c0_17] : memref<128x256xf32, #tpu.memory_space<vmem>>, vector<128x256xf32>
    tpu.vector_store %arg8[%c0_16, %c0_17], %31 {strides = array<i32>} : memref<128x256xf32, #tpu.memory_space<vmem>>, vector<128x256xf32>,
    %33 = vector.extract_strided_slice %30 {offsets = [0, 0], sizes = [128, 256], strides = [1, 1]} : vector<128x512xf32> to vector<128x256xf32>
    %34 = arith.truncf %33 : vector<128x256xf32> to vector<128x256xbf16>
    %c0_18 = arith.constant 0 : index
    %c0_19 = arith.constant 0 : index
    %35 = vector.load %arg6[%c0_18, %c0_19] : memref<256x128xbf16, #tpu.memory_space<vmem>>, vector<256x128xbf16>
    %cst_20 = arith.constant dense<0.000000e+00> : vector<128x128xf32>
    %36 = tpu.matmul %34, %35, %cst_20 {dimension_numbers = #tpu.dot_dimension_numbers<[1], [0], [0], [1], [0, 0, 1, 1], [], []>} : vector<128x256xbf16>, vector<256x128xbf16>, vector<128x128xf32> -> vector<128x128xf32>
    %c0_21 = arith.constant 0 : index
    %c0_22 = arith.constant 0 : index
    %37 = vector.load %arg7[%c0_21, %c0_22] : memref<1x128xf32, #tpu.memory_space<vmem>>, vector<1x128xf32>
    %38 = vector.broadcast %37 : vector<1x128xf32> to vector<128x128xf32>
    %39 = arith.addf %36, %38 : vector<128x128xf32>
    %cst_23 = arith.constant 0.000000e+00 : f32
    %40 = vector.broadcast %cst_23 : f32 to vector<128x128xf32>
    %41 = arith.maximumf %39, %40 : vector<128x128xf32>
    %c0_24 = arith.constant 0 : index
    %c0_25 = arith.constant 0 : index
    %42 = vector.load %arg9[%c0_24, %c0_25] : memref<128x128xf32, #tpu.memory_space<vmem>>, vector<128x128xf32>
    tpu.vector_store %arg9[%c0_24, %c0_25], %41 {strides = array<i32>} : memref<128x128xf32, #tpu.memory_space<vmem>>, vector<128x128xf32>,
    %43 = vector.extract_strided_slice %41 {offsets = [0, 0], sizes = [128, 64], strides = [1, 1]} : vector<128x128xf32> to vector<128x64xf32>
    %44 = vector.extract_strided_slice %41 {offsets = [0, 64], sizes = [128, 64], strides = [1, 1]} : vector<128x128xf32> to vector<128x64xf32>
    %45 = arith.mulf %43, %44 : vector<128x64xf32>
    %cst_26 = arith.constant dense<0.000000e+00> : vector<128xf32>
    %46 = vector.multi_reduction <add>, %45, %cst_26 [1] : vector<128x64xf32> to vector<128xf32>
    %47 = vector.shape_cast %46 : vector<128xf32> to vector<128x1xf32>
    %48 = arith.mulf %43, %43 : vector<128x64xf32>
    %cst_27 = arith.constant dense<0.000000e+00> : vector<128xf32>
    %49 = vector.multi_reduction <add>, %48, %cst_27 [1] : vector<128x64xf32> to vector<128xf32>
    %50 = vector.shape_cast %49 : vector<128xf32> to vector<128x1xf32>
    %51 = arith.mulf %44, %44 : vector<128x64xf32>
    %cst_28 = arith.constant dense<0.000000e+00> : vector<128xf32>
    %52 = vector.multi_reduction <add>, %51, %cst_28 [1] : vector<128x64xf32> to vector<128xf32>
    %53 = vector.shape_cast %52 : vector<128xf32> to vector<128x1xf32>
    %cst_29 = arith.constant 1.000000e-16 : f32
    %54 = vector.broadcast %cst_29 : f32 to vector<128x1xf32>
    %55 = arith.maximumf %50, %54 : vector<128x1xf32>
    %56 = math.rsqrt %55 : vector<128x1xf32>
    %57 = arith.mulf %47, %56 : vector<128x1xf32>
    %cst_30 = arith.constant 1.000000e-16 : f32
    %58 = vector.broadcast %cst_30 : f32 to vector<128x1xf32>
    %59 = arith.maximumf %53, %58 : vector<128x1xf32>
    %60 = math.rsqrt %59 : vector<128x1xf32>
    %61 = arith.mulf %57, %60 : vector<128x1xf32>
    %62 = tpu.iota {dimensions = array<i32: 1>} : vector<128x128xi32>
    %c0_i32 = arith.constant 0 : i32
    %63 = vector.broadcast %c0_i32 : i32 to vector<128x128xi32>
    %64 = arith.cmpi eq, %62, %63 : vector<128x128xi32>
    %c1_i32 = arith.constant 1 : i32
    %65 = vector.broadcast %c1_i32 : i32 to vector<128x128xi32>
    %66 = arith.cmpi eq, %62, %65 : vector<128x128xi32>
    %cst_31 = arith.constant 0.000000e+00 : f32
    %67 = vector.shape_cast %61 : vector<128x1xf32> to vector<128x1xf32>
    %68 = vector.broadcast %67 : vector<128x1xf32> to vector<128x128xf32>
    %69 = vector.broadcast %cst_31 : f32 to vector<128x128xf32>
    %70 = arith.select %66, %68, %69 : vector<128x128xi1>, vector<128x128xf32>
    %71 = vector.shape_cast %18 : vector<128x1xf32> to vector<128x1xf32>
    %72 = vector.broadcast %71 : vector<128x1xf32> to vector<128x128xf32>
    %73 = arith.select %64, %72, %70 : vector<128x128xi1>, vector<128x128xf32>
    %c0_32 = arith.constant 0 : index
    %c0_33 = arith.constant 0 : index
    %74 = vector.load %arg10[%c0_32, %c0_33] : memref<128x128xf32, #tpu.memory_space<vmem>>, vector<128x128xf32>
    tpu.vector_store %arg10[%c0_32, %c0_33], %73 {strides = array<i32>} : memref<128x128xf32, #tpu.memory_space<vmem>>, vector<128x128xf32>,
    return
  }
  func.func @transform_0(%arg0: i32) -> (i32, i32) {
    %c0_i32 = arith.constant 0 : i32
    %c0_i32_0 = arith.constant 0 : i32
    return %arg0, %c0_i32 : i32, i32
  }
  func.func @transform_1(%arg0: i32) -> (i32, i32) {
    %c0_i32 = arith.constant 0 : i32
    %c0_i32_0 = arith.constant 0 : i32
    return %arg0, %c0_i32 : i32, i32
  }
  func.func @transform_2(%arg0: i32) -> (i32, i32) {
    %c0_i32 = arith.constant 0 : i32
    %c0_i32_0 = arith.constant 0 : i32
    %c0_i32_1 = arith.constant 0 : i32
    return %c0_i32, %c0_i32_0 : i32, i32
  }
  func.func @transform_3(%arg0: i32) -> (i32, i32) {
    %c0_i32 = arith.constant 0 : i32
    %c0_i32_0 = arith.constant 0 : i32
    %c0_i32_1 = arith.constant 0 : i32
    return %c0_i32, %c0_i32_0 : i32, i32
  }
  func.func @transform_4(%arg0: i32) -> (i32, i32) {
    %c0_i32 = arith.constant 0 : i32
    %c0_i32_0 = arith.constant 0 : i32
    %c0_i32_1 = arith.constant 0 : i32
    return %c0_i32, %c0_i32_0 : i32, i32
  }
  func.func @transform_5(%arg0: i32) -> (i32, i32) {
    %c0_i32 = arith.constant 0 : i32
    %c0_i32_0 = arith.constant 0 : i32
    %c0_i32_1 = arith.constant 0 : i32
    return %c0_i32, %c0_i32_0 : i32, i32
  }
  func.func @transform_6(%arg0: i32) -> (i32, i32) {
    %c0_i32 = arith.constant 0 : i32
    %c0_i32_0 = arith.constant 0 : i32
    %c0_i32_1 = arith.constant 0 : i32
    return %c0_i32, %c0_i32_0 : i32, i32
  }
  func.func @transform_7(%arg0: i32) -> (i32, i32) {
    %c0_i32 = arith.constant 0 : i32
    %c0_i32_0 = arith.constant 0 : i32
    return %arg0, %c0_i32 : i32, i32
  }
  func.func @transform_8(%arg0: i32) -> (i32, i32) {
    %c0_i32 = arith.constant 0 : i32
    %c0_i32_0 = arith.constant 0 : i32
    return %arg0, %c0_i32 : i32, i32
  }
  func.func @transform_9(%arg0: i32) -> (i32, i32) {
    %c0_i32 = arith.constant 0 : i32
    %c0_i32_0 = arith.constant 0 : i32
    return %arg0, %c0_i32 : i32, i32
  }
}

</mosaic_0001>

<bundles_post_ra>
// kernel: tpu_custom_call.1
= control target key start
LH: loop header
LB: loop body
LE: loop exit
PB: predicated region body
PF: predicated region fallthrough
CT: control target
= control target key end

     0   :  { %s13567_s0 = inlined_call_operand.hbm [shape: f32[256,1024], index: 0, kind: input, shape index: {}]   ;;  %s13568_s1 = inlined_call_operand.hbm [shape: f32[256,1024], index: 1, kind: input, shape index: {}]   ;;  %s13569_s2 = inlined_call_operand.hbm [shape: bf16[1024,512], index: 2, kind: input, shape index: {}]   ;;  %s13570_s3 = inlined_call_operand.hbm [shape: bf16[1024,512], index: 3, kind: input, shape index: {}]   ;;  %s13571_s4 = inlined_call_operand.vmem [shape: f32[1,512], index: 4, kind: input, shape index: {}]   ;;  %s13572_s5 = inlined_call_operand.hbm [shape: bf16[256,128], index: 5, kind: input, shape index: {}]   ;;  %s13573_s6 = inlined_call_operand.vmem [shape: f32[1,128], index: 6, kind: input, shape index: {}]   ;;  %s13574_s7 = inlined_call_operand.hbm [shape: f32[256,256], index: 7, kind: output, shape index: {0}]   ;;  %s13575_s8 = inlined_call_operand.hbm [shape: f32[256,128], index: 8, kind: output, shape index: {1}]   ;;  %s13576_s9 = inlined_call_operand.hbm [shape: f32[256,128], index: 9, kind: output, shape index: {2}]  }
   0x1   :  { %13713 = sst [smem:[#allocation180_spill]] %s13567_s0 }
   0x2   :  { %13714 = sst [smem:[#allocation181_spill]] %s13569_s2 }
   0x3   :  { %13715 = sst [smem:[#allocation182_spill]] %s13570_s3 }
   0x4   :  { %13716 = sst [smem:[#allocation183_spill]] %s13576_s9 }
   0x5   :  { %15 = vsyncpa [#allocation3], 0 }
   0x6   :  { %17 = vsyncpa [#allocation3 + $0x1], 0 }
   0x7   :  { %18 = vsyncpa [#allocation6], 0 }
   0x8   :  { %20 = vsyncpa [#allocation6 + $0x1], 0 }
   0x9   :  { %21 = vsyncpa [#allocation9], 0 }
   0xa   :  { %22 = vsyncpa [#allocation4], 0 }
   0xb   :  { %24 = vsyncpa [#allocation4 + $0x1], 0 }
   0xc   :  { %25 = vsyncpa [#allocation13], 0 }
   0xd   :  { %27 = vsyncpa [#allocation13 + $0x1], 0  ;;  %s10469_s30 = smov 0   ;;  %s10471_s10 = smov 0  }
   0xe   :  { %s10473_s11 = smov 0   ;;  %s10475_s12 = smov 0  }
   0xf LB: > { %13717 = sst [smem:[#allocation21_spill]] %s10387_s30  ;;  %s10490_s13 = sadd.s32 4294967295, %s10399_s12   ;;  %s10399_s12 = sphi %s10475_s12, %s14196_s12   ;;  %s10395_s11 = sphi %s10473_s11, %s14195_s11   ;;  %s10391_s10 = sphi %s10471_s10, %s14194_s10   ;;  %s10387_s30 = sphi %s10469_s30, %s14193_s30  }
  0x10   : > { %s13578_s14 = sadd.s32 4294967294, %s10399_s12   ;;  %p53_p0 = scmp.ne.s32.totalorder %s10391_s10, %s10387_s30 }
  0x11   : > { %p13577_p1 = scmp.eq.s32.totalorder %s10490_s13, 0  ;;  %p214_p3 = scmp.eq.s32.totalorder %s13578_s14, 1 }
  0x12   : > { %p7794_p5 = scmp.ge.s32.totalorder %s10399_s12, 1  ;;  %p273_p7 = scmp.lt.s32.totalorder %s10399_s12, 3 }
  0x13   : > { %p10501_p4 = por %p13577_p1, %p53_p0  ;;  %p10506_p6 = por %p214_p3, %p53_p0 }
  0x14   : > { %p10511_p8 = pnand %p7794_p5, %p273_p7  ;;  %s10401_s18 = smov [#allocation7]  }
  0x15   : > { %s13718_s15 = scalar_select %p10501_p4, 1, 0 }
  0x16   : > { %s13719_s16 = scalar_select %p10506_p6, 1, 0 }
  0x17   : > { %s13721_s17 = scalar_select %p10511_p8, 1, 0 }
  0x18   : > { %13720 = sst [smem:[#allocation22_spill]] %s13719_s16  ;;  %s285_s19 = sshll.u32 %s10401_s18, 4  ;;  %s10515_s19 = int_to_ptr.vmem [resolvable:$true] %s285_s19 }
  0x19   : > { %p8915_p9 = pneg %p10511_p8  ;;  %s10402_s21 = smov [#allocation8]  }
  0x1a   : > { %s298_s22 = sshll.u32 %s10402_s21, 4  ;;  %s10403_s23 = smov [#allocation10]   ;;  %s10526_s22 = int_to_ptr.vmem [resolvable:$true] %s298_s22 }
  0x1b   : > { %p10522_p11 = pnand %p8915_p9, %p13577_p1  ;;  %s10528_s24 = sshll.u32 %s10403_s23, 4  ;;  %s315_s24 = int_to_ptr.vmem [resolvable:$true] %s10528_s24 }
  0x1c   : > { %s13723_s2 = sld [smem:[#allocation181_spill]] }
  0x1d   : > { %p10538_p13 = pneg %p10522_p11 }
  0x22   : > { %s10117_s27 = scalar_lea.hbm %s13723_s2, 32768 }
  0x23   : > { %p10118_p12 = scmp.ne.s32.totalorder %s13723_s2, %s10117_s27  ;;  %p10124_p5 = scmp.lt.u32.totalorder %s10117_s27, %s13723_s2 }
  0x25   : > { %p10120_p0 = pnand %p10538_p13, %p10118_p12 }
  0x27   : > { %p10121_p3 = pneg %p10120_p0 }
  0x29   : > { %p10126_p7 = pnand %p10124_p5, %p10121_p3 }
  0x2b   : > { %10129 = shalt.err (!%p10126_p7)
}
  0x2c   : > { %s10130_s25 = scalar_lea.vmem %s10515_s19, 32768  ;;  %p10138_p2 = scmp.lt.s32.totalorder %s10515_s19, %s10515_s19 }
  0x2d   : > { %p10131_p9 = scmp.ne.s32.totalorder %s10515_s19, %s10130_s25  ;;  %p10139_p6 = scmp.lt.s32.totalorder %s10130_s25, %s10130_s25 }
  0x2f   : > { %p10133_p10 = pnand %p10131_p9, %p10538_p13  ;;  %p10140_p12 = por %p10139_p6, %p10138_p2 }
  0x31   : > { %p10134_p1 = pneg %p10133_p10 }
  0x33   : > { %p10141_p0 = pnand %p10140_p12, %p10134_p1 }
  0x35   : > { %10144 = shalt.err (!%p10141_p0)
}
  0x36   : > { %s10404_s26 = smov 256   ;;  %s10405_s27 = smov 16  }
  0x37   : > { %8918 = dma.hbm_to_vmem [thread:$0]  (!%p10522_p11), %s13723_s2, 32768, %s10515_s19, [#allocation6], %s10404_s26, %s10404_s26, %s10405_s27  }
  0x38   : > { %s13725_s3 = sld [smem:[#allocation182_spill]] }
  0x3e   : > { %s10145_s14 = scalar_lea.hbm %s13725_s3, 32768 }
  0x3f   : > { %p10146_p2 = scmp.ne.s32.totalorder %s13725_s3, %s10145_s14  ;;  %p10152_p10 = scmp.lt.u32.totalorder %s10145_s14, %s13725_s3 }
  0x41   : > { %p10148_p1 = pnand %p10146_p2, %p10538_p13 }
  0x43   : > { %p10149_p6 = pneg %p10148_p1 }
  0x45   : > { %p10154_p3 = pnand %p10152_p10, %p10149_p6 }
  0x47   : > { %10157 = shalt.err (!%p10154_p3)
}
  0x48   : > { %s10158_s19 = scalar_lea.vmem %s10526_s22, 32768  ;;  %p10166_p12 = scmp.lt.s32.totalorder %s10526_s22, %s10526_s22 }
  0x49   : > { %p10159_p5 = scmp.ne.s32.totalorder %s10526_s22, %s10158_s19  ;;  %p10167_p0 = scmp.lt.s32.totalorder %s10158_s19, %s10158_s19 }
  0x4b   : > { %p10161_p7 = pnand %p10159_p5, %p10538_p13  ;;  %p10168_p2 = por %p10167_p0, %p10166_p12 }
  0x4d   : > { %p10162_p9 = pneg %p10161_p7 }
  0x4f   : > { %p10169_p1 = pnand %p10168_p2, %p10162_p9 }
  0x51   : > { %10172 = shalt.err (!%p10169_p1)
}
  0x52   : > { %8921 = dma.hbm_to_vmem [thread:$0]  (!%p10522_p11), %s13725_s3, 32768, %s10526_s22, [#allocation9], %s10404_s26, %s10404_s26, %s10405_s27  }
  0x53   : > { %s10173_s28 = scalar_lea.hbm %s13572_s5, 2048 }
  0x54   : > { %p10174_p6 = scmp.ne.s32.totalorder %s13572_s5, %s10173_s28  ;;  %p10180_p5 = scmp.lt.u32.totalorder %s10173_s28, %s13572_s5 }
  0x56   : > { %p10176_p10 = pnand %p10174_p6, %p10538_p13 }
  0x58   : > { %p10177_p3 = pneg %p10176_p10 }
  0x5a   : > { %p10182_p7 = pnand %p10180_p5, %p10177_p3 }
  0x5c   : > { %10185 = shalt.err (!%p10182_p7)
}
  0x5d   : > { %s10186_s19 = scalar_lea.vmem %s315_s24, 2048  ;;  %p10194_p2 = scmp.lt.s32.totalorder %s315_s24, %s315_s24 }
  0x5e   : > { %p10187_p9 = scmp.ne.s32.totalorder %s315_s24, %s10186_s19  ;;  %p10195_p1 = scmp.lt.s32.totalorder %s10186_s19, %s10186_s19 }
  0x60   : > { %p10189_p12 = pnand %p10187_p9, %p10538_p13  ;;  %p10196_p4 = por %p10195_p1, %p10194_p2 }
  0x62   : > { %p10190_p0 = pneg %p10189_p12 }
  0x64   : > { %p10197_p8 = pnand %p10196_p4, %p10190_p0 }
  0x66   : > { %10200 = shalt.err (!%p10197_p8)
}
  0x67   : > { %s10406_s22 = smov 64   ;;  %s10407_s18 = smov 4  }
  0x68   : > { %8924 = dma.hbm_to_vmem [thread:$0]  (!%p10522_p11), %s13572_s5, 2048, %s315_s24, [#allocation9], %s10406_s22, %s10406_s22, %s10407_s18  }
  0x69   : > { %s10604_s9 = sadd.s32 1, %s10399_s12   ;;  %s40_s14 = sadd.s32 1, %s10395_s11 }
  0x6a   : > { %s37_s30 = ssub.s32 %s10399_s12, %s10604_s9  ;;  %p47_p8 = scmp.ne.s32.totalorder %s10395_s11, %s10391_s10 }
  0x6b   : > { %p38_p4 = scmp.eq.s32.totalorder %s37_s30, 0  ;;  %p48_p13 = scmp.eq.s32.totalorder %s10399_s12, 0 }
  0x6c   : > { %p8945_p6 = scmp.lt.s32.totalorder %s10399_s12, 2  ;;  %p13726_p3 = scmp.eq.s32.totalorder %s10490_s13, 1 }
  0x6d   : > { %s10614_s16 = scalar_select %p38_p4, %s10395_s11, %s40_s14  }
  0x6e   : > { %p49_p10 = por %p48_p13, %p47_p8  ;;  %p10618_p5 = por %p13726_p3, %p47_p8 }
  0x6f   : > { %s331_s28 = sand.u32 1, %s10395_s11   ;;  %s13584_s29 = sshll.u32 %s10399_s12, 14 }
  0x70   : > { %s10624_s24 = sshll.u32 %s331_s28, 10  ;;  %s13728_s0 = sld [smem:[#allocation180_spill]] }
  0x71   : > { %s335_s19 = scalar_lea.vmem [#allocation2], %s10624_s24  ;;  %p10634_p11 = pnand %p8945_p6, %p49_p10 }
  0x72   : > { %s343_s18 = sshll.u32 %s335_s19, 4  ;;  %s10640_s27 = scalar_lea.sflag [#allocation3], %s331_s28  ;;  %s10638_s18 = int_to_ptr.vmem [resolvable:$true] %s343_s18 }
  0x73   : > { %p10203_p9 = pneg %p10634_p11 }
  0x76   : > { %s10631_s25 = scalar_lea.hbm %s13728_s0, %s13584_s29  ;;  %s10206_s23 = scalar_lea.hbm %s13728_s0, 32768 }
  0x77   : > { %s10201_s30 = scalar_lea.hbm %s10631_s25, 16384  ;;  %p10207_p2 = scmp.lt.u32.totalorder %s10631_s25, %s13728_s0 }
  0x78   : > { %p10202_p7 = scmp.ne.s32.totalorder %s10631_s25, %s10201_s30  ;;  %p10208_p1 = scmp.lt.u32.totalorder %s10206_s23, %s10201_s30 }
  0x79   : > { %p10210_p8 = scmp.lt.u32.totalorder %s10201_s30, %s10631_s25 }
  0x7a   : > { %p10204_p12 = pnand %p10203_p9, %p10202_p7  ;;  %p10209_p4 = por %p10208_p1, %p10207_p2 }
  0x7c   : > { %p10205_p0 = pneg %p10204_p12  ;;  %p10211_p13 = por %p10210_p8, %p10209_p4 }
  0x7e   : > { %p10212_p6 = pnand %p10211_p13, %p10205_p0 }
  0x80   : > { %10215 = shalt.err (!%p10212_p6)
}
  0x81   : > { %s10216_s28 = scalar_lea.vmem %s10638_s18, 16384  ;;  %s10408_s14 = smov [#allocation2]  }
  0x82   : > { %p10217_p10 = scmp.ne.s32.totalorder %s10638_s18, %s10216_s28  ;;  %s10221_s21 = sshll.u32 %s10408_s14, 4  ;;  %s10222_s21 = int_to_ptr.vmem [resolvable:$false] %s10221_s21 }
  0x83   : > { %s10223_s29 = scalar_lea.vmem %s10222_s21, 32768  ;;  %p10224_p12 = scmp.lt.s32.totalorder %s10638_s18, %s10222_s21 }
  0x84   : > { %p10219_p3 = pnand %p10217_p10, %p10203_p9  ;;  %p10225_p2 = scmp.lt.s32.totalorder %s10223_s29, %s10216_s28 }
  0x86   : > { %p10220_p7 = pneg %p10219_p3  ;;  %p10226_p1 = por %p10225_p2, %p10224_p12 }
  0x88   : > { %p10227_p4 = pnand %p10226_p1, %p10220_p7 }
  0x8a   : > { %10230 = shalt.err (!%p10227_p4)
}
  0x8b   : > { %s10409_s30 = smov 1024   ;;  %s13730_s23 = sshll.u32 %s10399_s12, 14 }
  0x8c   : > { %8928 = dma.hbm_to_vmem [thread:$0]  (!%p10634_p11), %s10631_s25, 16384, %s10638_s18, %s10640_s27, %s10409_s30, %s10409_s30, %s10406_s22  }
  0x8d   : > { %s10676_s14 = scalar_lea.hbm %s13568_s1, %s13730_s23  ;;  %s357_s21 = scalar_lea.vmem [#allocation5], %s10624_s24 }
  0x8e   : > { %s365_s29 = sshll.u32 %s357_s21, 4  ;;  %s353_s0 = sand.u32 1, %s10399_s12   ;;  %s10679_s29 = int_to_ptr.vmem [resolvable:$true] %s365_s29 }
  0x8f   : > { %s10682_s2 = scalar_lea.sflag [#allocation6], %s353_s0  ;;  %s10231_s3 = scalar_lea.hbm %s10676_s14, 16384 }
  0x90   : > { %p10232_p0 = scmp.ne.s32.totalorder %s10676_s14, %s10231_s3  ;;  %s10236_s27 = scalar_lea.hbm %s13568_s1, 32768 }
  0x91   : > { %p10237_p6 = scmp.lt.u32.totalorder %s10676_s14, %s13568_s1  ;;  %p10238_p10 = scmp.lt.u32.totalorder %s10236_s27, %s10231_s3 }
  0x92   : > { %p10234_p8 = pnand %p10232_p0, %p10203_p9  ;;  %p10240_p7 = scmp.lt.u32.totalorder %s10231_s3, %s10676_s14 }
  0x93   : > { %p10239_p3 = por %p10238_p10, %p10237_p6 }
  0x94   : > { %p10235_p13 = pneg %p10234_p8 }
  0x95   : > { %p10241_p12 = por %p10240_p7, %p10239_p3 }
  0x97   : > { %p10242_p2 = pnand %p10241_p12, %p10235_p13 }
  0x99   : > { %10245 = shalt.err (!%p10242_p2)
}
  0x9a   : > { %s10246_s0 = scalar_lea.vmem %s10679_s29, 16384  ;;  %s10410_s24 = smov [#allocation5]  }
  0x9b   : > { %p10247_p1 = scmp.ne.s32.totalorder %s10679_s29, %s10246_s0  ;;  %s10251_s28 = sshll.u32 %s10410_s24, 4  ;;  %s10252_s28 = int_to_ptr.vmem [resolvable:$false] %s10251_s28 }
  0x9c   : > { %s10253_s21 = scalar_lea.vmem %s10252_s28, 32768  ;;  %p10254_p8 = scmp.lt.s32.totalorder %s10679_s29, %s10252_s28 }
  0x9d   : > { %p10249_p4 = pnand %p10247_p1, %p10203_p9  ;;  %p10255_p6 = scmp.lt.s32.totalorder %s10253_s21, %s10246_s0 }
  0x9f   : > { %p10250_p0 = pneg %p10249_p4  ;;  %p10256_p10 = por %p10255_p6, %p10254_p8 }
  0xa1   : > { %p10257_p3 = pnand %p10256_p10, %p10250_p0 }
  0xa3   : > { %10260 = shalt.err (!%p10257_p3)
}
  0xa4   : > { %8931 = dma.hbm_to_vmem [thread:$0]  (!%p10634_p11), %s10676_s14, 16384, %s10679_s29, %s10682_s2, %s10409_s30, %s10409_s30, %s10406_s22  }
  0xa5   : > { %p13731_p9 = scmp.ne.s32.totalorder %s13721_s17, 0 }
  0xa7   : > { %377 = sbr.rel (%p13731_p9) target bundleno = 1879 (0x757), region = 48 }
  0xae   : > { %s10714_s3 = sand.u32 1, %s10391_s10   ;;  %p13732_p13 = scmp.ne.s32.totalorder %s13718_s15, 0 }
  0xaf   : > { %s7808_s25 = sshll.u32 %s10714_s3, 10  ;;  %s380_s18 = scalar_lea.sflag [#allocation3], %s10714_s3 }
  0xb0   : > { %s10718_s27 = scalar_lea.vmem [#allocation2], %s7808_s25 }
  0xb1   : > { %10362 = dma.done.wait (%p13732_p13), %s380_s18, 16384  }
  0xb2   : > { %10364 = vsyncadd (%p13732_p13), %s380_s18, 4294950912  ;;  %s388_s2 = sand.u32 1, %s10490_s13   ;;  %s10727_s22 = scalar_lea.vmem [#allocation5], %s7808_s25 }
  0xb3   : > { %s389_s17 = scalar_lea.sflag [#allocation6], %s388_s2 }
  0xb4   : > { %10366 = dma.done.wait (%p13732_p13), %s389_s17, 16384  }
  0xb5   : > { %10368 = vsyncadd (%p13732_p13), %s389_s17, 4294950912  ;;  %p13733_p11 = scmp.eq.s32.totalorder %s10490_s13, 0 }
  0xb7   : > { %10370 = dma.done.wait (%p13733_p11), [#allocation6], 32768   ;;  %p13734_p7 = pmov %p13733_p11 }
  0xb9   : > { %10372 = vsyncadd (%p13734_p7), [#allocation6], 4294934528  ;;  %p13735_p12 = pmov %p13734_p7 }
  0xba   : > { %p13736_p2 = pmov %p13734_p7 }
  0xbb   : > { %10374 = dma.done.wait (%p13735_p12), [#allocation9], 34816  }
  0xbc   : > { %10376 = vsyncadd (%p13736_p2), [#allocation9], 4294932480  ;;  %v8995_v0 = vld [vmem:[#allocation8 + $0x4] ss:$16 sps:$4 sm:$0xff]   ;;  %v8997_v1 = vld [vmem:[#allocation8 + $0xc] ss:$16 sps:$4 sm:$0xff]  }
  0xbd   : > { %3548 = vmatprep.subr.bf16.mxu0 %v8995_v0  ;;  %v8999_v2 = vld [vmem:[#allocation8] ss:$16 sps:$4 sm:$0xff]   ;;  %v9000_v3 = vld [vmem:[#allocation8 + $0x8] ss:$16 sps:$4 sm:$0xff]   ;;  %4000 = vmatprep.subr.bf16.mxu1 %v8997_v1  ;;  %v9001_v4 = vld [vmem:[#allocation8 + $0x24] ss:$16 sps:$4 sm:$0xff]  }
  0xbe   : > { %3549 = vmatpush1.bf16.msra.mxu0 %v8999_v2  ;;  %4001 = vmatpush1.bf16.msra.mxu1 %v9000_v3  ;;  %v9003_v5 = vld [vmem:[#allocation8 + $0x2c] ss:$16 sps:$4 sm:$0xff]   ;;  %v9005_v6 = vld [vmem:[#allocation8 + $0x20] ss:$16 sps:$4 sm:$0xff]   ;;  %v9006_v7 = vld [vmem:[#allocation8 + $0x28] ss:$16 sps:$4 sm:$0xff]  }
  0xbf   : > { %3550 = vmatprep.subr.bf16.mxu0 %v9001_v4  ;;  %4002 = vmatprep.subr.bf16.mxu1 %v9003_v5  ;;  %v9007_v8 = vld [vmem:[#allocation8 + $0x44] ss:$16 sps:$4 sm:$0xff]   ;;  %v9009_v9 = vld [vmem:[#allocation8 + $0x4c] ss:$16 sps:$4 sm:$0xff]   ;;  %v9011_v10 = vld [vmem:[#allocation8 + $0x40] ss:$16 sps:$4 sm:$0xff]  }
  0xc0   : > { %v9012_v11 = vld [vmem:[#allocation8 + $0x48] ss:$16 sps:$4 sm:$0xff]   ;;  %v9013_v12 = vld [vmem:[#allocation8 + $0x64] ss:$16 sps:$4 sm:$0xff]   ;;  %v9015_v13 = vld [vmem:[#allocation8 + $0x6c] ss:$16 sps:$4 sm:$0xff]  }
  0xc1   : > { %v9017_v14 = vld [vmem:[#allocation8 + $0x60] ss:$16 sps:$4 sm:$0xff]   ;;  %v9018_v15 = vld [vmem:[#allocation8 + $0x68] ss:$16 sps:$4 sm:$0xff]   ;;  %v9019_v16 = vld [vmem:[#allocation8 + $0x84] ss:$16 sps:$4 sm:$0xff]  }
  0xc2   : > { %3551 = vmatpush1.bf16.msra.mxu0 %v9005_v6  ;;  %4003 = vmatpush1.bf16.msra.mxu1 %v9006_v7  ;;  %v9021_v17 = vld [vmem:[#allocation8 + $0x8c] ss:$16 sps:$4 sm:$0xff]   ;;  %v9023_v18 = vld [vmem:[#allocation8 + $0x80] ss:$16 sps:$4 sm:$0xff]   ;;  %v9024_v19 = vld [vmem:[#allocation8 + $0x88] ss:$16 sps:$4 sm:$0xff]  }
  0xc3   : > { %3552 = vmatprep.subr.bf16.mxu0 %v9007_v8  ;;  %4004 = vmatprep.subr.bf16.mxu1 %v9009_v9  ;;  %v9025_v20 = vld [vmem:[#allocation8 + $0xa4] ss:$16 sps:$4 sm:$0xff]   ;;  %v9027_v21 = vld [vmem:[#allocation8 + $0xac] ss:$16 sps:$4 sm:$0xff]   ;;  %v9029_v22 = vld [vmem:[#allocation8 + $0xa0] ss:$16 sps:$4 sm:$0xff]  }
  0xc4   : > { %v9030_v23 = vld [vmem:[#allocation8 + $0xa8] ss:$16 sps:$4 sm:$0xff]   ;;  %v9031_v24 = vld [vmem:[#allocation8 + $0xc4] ss:$16 sps:$4 sm:$0xff]   ;;  %v9033_v25 = vld [vmem:[#allocation8 + $0xcc] ss:$16 sps:$4 sm:$0xff]  }
  0xc5   : > { %v9035_v26 = vld [vmem:[#allocation8 + $0xc0] ss:$16 sps:$4 sm:$0xff]   ;;  %v9036_v27 = vld [vmem:[#allocation8 + $0xc8] ss:$16 sps:$4 sm:$0xff]   ;;  %v9037_v28 = vld [vmem:[#allocation8 + $0xe4] ss:$16 sps:$4 sm:$0xff]  }
  0xc6   : > { %3553 = vmatpush1.bf16.msra.mxu0 %v9011_v10  ;;  %4005 = vmatpush1.bf16.msra.mxu1 %v9012_v11  ;;  %v9039_v29 = vld [vmem:[#allocation8 + $0xec] ss:$16 sps:$4 sm:$0xff]   ;;  %v9041_v30 = vld [vmem:[#allocation8 + $0xe0] ss:$16 sps:$4 sm:$0xff]   ;;  %v9042_v31 = vld [vmem:[#allocation8 + $0xe8] ss:$16 sps:$4 sm:$0xff]  }
  0xc7   : > { %3554 = vmatprep.subr.bf16.mxu0 %v9013_v12  ;;  %4006 = vmatprep.subr.bf16.mxu1 %v9015_v13  ;;  %v9043_v32 = vld [vmem:[#allocation8 + $0x104] ss:$16 sps:$4 sm:$0xff]   ;;  %v9045_v33 = vld [vmem:[#allocation8 + $0x10c] ss:$16 sps:$4 sm:$0xff]   ;;  %v9047_v34 = vld [vmem:[#allocation8 + $0x100] ss:$16 sps:$4 sm:$0xff]  }
  0xc8   : > { %v9048_v35 = vld [vmem:[#allocation8 + $0x108] ss:$16 sps:$4 sm:$0xff]   ;;  %v9049_v36 = vld [vmem:[#allocation8 + $0x124] ss:$16 sps:$4 sm:$0xff]   ;;  %v9051_v37 = vld [vmem:[#allocation8 + $0x12c] ss:$16 sps:$4 sm:$0xff]  }
  0xc9   : > { %v9053_v38 = vld [vmem:[#allocation8 + $0x120] ss:$16 sps:$4 sm:$0xff]   ;;  %v9054_v39 = vld [vmem:[#allocation8 + $0x128] ss:$16 sps:$4 sm:$0xff]   ;;  %v9055_v40 = vld [vmem:[#allocation8 + $0x144] ss:$16 sps:$4 sm:$0xff]  }
  0xca   : > { %3555 = vmatpush1.bf16.msra.mxu0 %v9017_v14  ;;  %4007 = vmatpush1.bf16.msra.mxu1 %v9018_v15  ;;  %v9057_v41 = vld [vmem:[#allocation8 + $0x14c] ss:$16 sps:$4 sm:$0xff]   ;;  %v9059_v42 = vld [vmem:[#allocation8 + $0x140] ss:$16 sps:$4 sm:$0xff]   ;;  %v9060_v43 = vld [vmem:[#allocation8 + $0x148] ss:$16 sps:$4 sm:$0xff]  }
  0xcb   : > { %3556 = vmatprep.subr.bf16.mxu0 %v9019_v16  ;;  %4008 = vmatprep.subr.bf16.mxu1 %v9021_v17  ;;  %v9061_v44 = vld [vmem:[#allocation8 + $0x164] ss:$16 sps:$4 sm:$0xff]   ;;  %v9063_v45 = vld [vmem:[#allocation8 + $0x16c] ss:$16 sps:$4 sm:$0xff]   ;;  %v9065_v46 = vld [vmem:[#allocation8 + $0x160] ss:$16 sps:$4 sm:$0xff]  }
  0xcc   : > { %v9066_v47 = vld [vmem:[#allocation8 + $0x168] ss:$16 sps:$4 sm:$0xff]   ;;  %v9067_v49 = vld [vmem:[#allocation8 + $0x184] ss:$16 sps:$4 sm:$0xff]   ;;  %v9069_v50 = vld [vmem:[#allocation8 + $0x18c] ss:$16 sps:$4 sm:$0xff]  }
  0xcd   : > { %v461_v48 = vld [vmem:[%s10718_s27 + $0x8] sm:$0xff]  ;;  %v460_v56 = vld [vmem:[%s10718_s27] sm:$0xff]  ;;  %s7813_s30 = sshll.u32 %s10714_s3, 8  ;;  %s7814_s19 = sshll.u32 %s10714_s3, 7  ;;  %vm7178_vm0 = vcmask 523264  }
  0xce   : > { %3557 = vmatpush1.bf16.msra.mxu0 %v9023_v18  ;;  %4009 = vmatpush1.bf16.msra.mxu1 %v9024_v19  ;;  %v469_v51 = vld [vmem:[%s10718_s27 + $0x48] sm:$0xff]  ;;  %v468_v57 = vld [vmem:[%s10718_s27 + $0x40] sm:$0xff]  ;;  %s12778_s14 = scalar_lea.vmem [#allocation11], %s7813_s30  ;;  %s12947_s0 = scalar_lea.vmem [#allocation12], %s7814_s19 }
  0xcf   : > { %3558 = vmatprep.subr.bf16.mxu0 %v9025_v20  ;;  %4010 = vmatprep.subr.bf16.mxu1 %v9027_v21  ;;  %v589_v52 = vld [vmem:[%s10727_s22 + $0x8] sm:$0xff]  ;;  %v588_v58 = vld [vmem:[%s10727_s22] sm:$0xff]  ;;  %s10411_s24 = smov 64   ;;  %s13302_s28 = scalar_lea.vmem [#allocation14], %s7814_s19 }
  0xd0   : > { %v597_v53 = vld [vmem:[%s10727_s22 + $0x48] sm:$0xff]  ;;  %v717_v54 = vmul.f32 %v589_v52, %v461_v48  ;;  %v1261_v59 = vmul.f32 %v589_v52, %v589_v52  ;;  %v596_v62 = vld [vmem:[%s10727_s22 + $0x40] sm:$0xff]  ;;  %v716_v63 = vmul.f32 %v588_v58, %v460_v56  ;;  %v1260_v3 = vmul.f32 %v588_v58, %v588_v58  ;;  %s8363_s21 = sshll.u32 %s10490_s13, 11  ;;  %s7592_s25 = sshll.u32 %s12947_s0, 4  ;;  %s13351_s25 = int_to_ptr.vmem [resolvable:$true] %s7592_s25 }
  0xd1   : > { %v725_v55 = vmul.f32 %v597_v53, %v469_v51  ;;  %v1269_v60 = vmul.f32 %v597_v53, %v597_v53  ;;  %v1949_v61 = vpack.c.bf16 %v597_v53, %v589_v52  ;;  %v724_v0 = vmul.f32 %v596_v62, %v468_v57  ;;  %v9071_v1 = vld [vmem:[#allocation8 + $0x180] ss:$16 sps:$4 sm:$0xff]   ;;  %v9072_v2 = vld [vmem:[#allocation8 + $0x188] ss:$16 sps:$4 sm:$0xff]   ;;  %v9073_v5 = vld [vmem:[#allocation8 + $0x1a4] ss:$16 sps:$4 sm:$0xff]   ;;  %s13349_s17 = scalar_lea.hbm %s13575_s8, %s8363_s21 }
  0xd2   : > { %3559 = vmatpush1.bf16.msra.mxu0 %v9029_v22  ;;  %4011 = vmatpush1.bf16.msra.mxu1 %v9030_v23  ;;  %v1268_v4 = vmul.f32 %v596_v62, %v596_v62  ;;  %v10749_v6 = vadd.f32 %v717_v54, %v716_v63  ;;  %v9075_v8 = vld [vmem:[#allocation8 + $0x1ac] ss:$16 sps:$4 sm:$0xff]   ;;  %v10753_v9 = vadd.f32 %v1261_v59, %v1260_v3  ;;  %v9077_v11 = vld [vmem:[#allocation8 + $0x1a0] ss:$16 sps:$4 sm:$0xff]   ;;  %v9078_v12 = vld [vmem:[#allocation8 + $0x1a8] ss:$16 sps:$4 sm:$0xff]  }
  0xd3   : > { %3560 = vmatprep.subr.bf16.mxu0 %v9031_v24  ;;  %4012 = vmatprep.subr.bf16.mxu1 %v9033_v25  ;;  %v10751_v7 = vadd.f32 %v725_v55, %v724_v0  ;;  %v9079_v13 = vld [vmem:[#allocation8 + $0x1c4] ss:$16 sps:$4 sm:$0xff]   ;;  %v9081_v14 = vld [vmem:[#allocation8 + $0x1cc] ss:$16 sps:$4 sm:$0xff]   ;;  %v9083_v15 = vld [vmem:[#allocation8 + $0x1c0] ss:$16 sps:$4 sm:$0xff]   ;;  %v1948_v23 = vpack.c.bf16 %v596_v62, %v588_v58 }
  0xd4   : > { %3580 = vmatprep.mubr.bf16.mxu0 %v1949_v61  ;;  %4032 = vmatprep.mubr.bf16.mxu1 %v1949_v61  ;;  %13737 = vst [vmem:[#allocation23_spill] sm:$0xff] %v10749_v6  ;;  %13739 = vst [vmem:[#allocation25_spill] sm:$0xff] %v10753_v9  ;;  %v10755_v10 = vadd.f32 %v1269_v60, %v1268_v4  ;;  %v9084_v16 = vld [vmem:[#allocation8 + $0x1c8] ss:$16 sps:$4 sm:$0xff]   ;;  %v9085_v17 = vld [vmem:[#allocation8 + $0x1e4] ss:$16 sps:$4 sm:$0xff]  }
  0xd5   : > { %13738 = vst [vmem:[#allocation24_spill] sm:$0xff] %v10751_v7  ;;  %v9087_v18 = vld [vmem:[#allocation8 + $0x1ec] ss:$16 sps:$4 sm:$0xff]   ;;  %v9089_v19 = vld [vmem:[#allocation8 + $0x1e0] ss:$16 sps:$4 sm:$0xff]   ;;  %s10261_s15 = scalar_lea.vmem %s13351_s25, 2048 }
  0xd6   : > { %3561 = vmatpush1.bf16.msra.mxu0 %v9035_v26  ;;  %4013 = vmatpush1.bf16.msra.mxu1 %v9036_v27  ;;  %13740 = vst [vmem:[#allocation26_spill] sm:$0xff] %v10755_v10  ;;  %v9090_v20 = vld [vmem:[#allocation8 + $0x1e8] ss:$16 sps:$4 sm:$0xff]   ;;  %v9093_v21 = vld [vmem:[#allocation8 + $0x204] ss:$16 sps:$4 sm:$0xff]   ;;  %p10262_p1 = scmp.ne.s32.totalorder %s13351_s25, %s10261_s15  ;;  %s10412_s26 = smov [#allocation12]  }
  0xd7   : > { %3562 = vmatprep.subr.bf16.mxu0 %v9037_v28  ;;  %4014 = vmatprep.subr.bf16.mxu1 %v9039_v29  ;;  %v9096_v22 = vld [vmem:[#allocation8 + $0x20c] ss:$16 sps:$4 sm:$0xff]   ;;  %v9091_v26 = vld [vmem:[#allocation8 + $0x200] ss:$16 sps:$4 sm:$0xff]   ;;  %v9094_v27 = vld [vmem:[#allocation8 + $0x208] ss:$16 sps:$4 sm:$0xff]  }
  0xd8   : > { %v605_v24 = vld [vmem:[%s10727_s22 + $0x88] sm:$0xff]  ;;  %v9099_v28 = vld [vmem:[#allocation8 + $0x224] ss:$16 sps:$4 sm:$0xff]   ;;  %v9115_v51 = vld [vmem:[#allocation8 + $0x280] ss:$16 sps:$4 sm:$0xff]   ;;  %p10263_p4 = pnand %p10262_p1, %p10618_p5  ;;  %s10265_s30 = sshll.u32 %s10412_s26, 4  ;;  %s10266_s30 = int_to_ptr.vmem [resolvable:$false] %s10265_s30 }
  0xd9   : > { %v613_v25 = vld [vmem:[%s10727_s22 + $0xc8] sm:$0xff]  ;;  %v628_v48 = vld [vmem:[%s10727_s22 + $0x140] sm:$0xff]  ;;  %s10267_s29 = scalar_lea.vmem %s10266_s30, 4096  ;;  %p10268_p8 = scmp.lt.s32.totalorder %s13351_s25, %s10266_s30 }
  0xda   : > { %3563 = vmatpush1.bf16.msra.mxu0 %v9041_v30  ;;  %4015 = vmatpush1.bf16.msra.mxu1 %v9042_v31  ;;  %v9102_v29 = vld [vmem:[#allocation8 + $0x22c] ss:$16 sps:$4 sm:$0xff]   ;;  %v9097_v30 = vld [vmem:[#allocation8 + $0x220] ss:$16 sps:$4 sm:$0xff]   ;;  %v9100_v31 = vld [vmem:[#allocation8 + $0x228] ss:$16 sps:$4 sm:$0xff]   ;;  %p10264_p0 = pneg %p10263_p4  ;;  %p10269_p6 = scmp.lt.s32.totalorder %s10267_s29, %s10261_s15 }
  0xdb   : > { %3564 = vmatprep.subr.bf16.mxu0 %v9043_v32  ;;  %4016 = vmatprep.subr.bf16.mxu1 %v9045_v33  ;;  %v1957_v32 = vpack.c.bf16 %v613_v25, %v605_v24  ;;  %v604_v33 = vld [vmem:[%s10727_s22 + $0x80] sm:$0xff]  ;;  %v9118_v52 = vld [vmem:[#allocation8 + $0x288] ss:$16 sps:$4 sm:$0xff]   ;;  %v9126_v57 = vld [vmem:[#allocation8 + $0x2ac] ss:$16 sps:$4 sm:$0xff]  }
  0xdc   : > { %v637_v54 = vld [vmem:[%s10727_s22 + $0x188] sm:$0xff]  ;;  %v9123_v56 = vld [vmem:[#allocation8 + $0x2a4] ss:$16 sps:$4 sm:$0xff]   ;;  %v9121_v59 = vld [vmem:[#allocation8 + $0x2a0] ss:$16 sps:$4 sm:$0xff]   ;;  %p10270_p10 = por %p10269_p6, %p10268_p8 }
  0xdd   : > { %v645_v55 = vld [vmem:[%s10727_s22 + $0x1c8] sm:$0xff]  ;;  %v636_v61 = vld [vmem:[%s10727_s22 + $0x180] sm:$0xff] }
  0xde   : > { %3565 = vmatpush1.bf16.msra.mxu0 %v9047_v34  ;;  %4017 = vmatpush1.bf16.msra.mxu1 %v9048_v35  ;;  %v612_v34 = vld [vmem:[%s10727_s22 + $0xc0] sm:$0xff]  ;;  %v1973_v58 = vpack.c.bf16 %v645_v55, %v637_v54  ;;  %v9124_v60 = vld [vmem:[#allocation8 + $0x2a8] ss:$16 sps:$4 sm:$0xff]   ;;  %v9132_v0 = vld [vmem:[#allocation8 + $0x2cc] ss:$16 sps:$4 sm:$0xff]   ;;  %p10271_p3 = pnand %p10270_p10, %p10264_p0 }
  0xdf   : > { %3566 = vmatprep.subr.bf16.mxu0 %v9049_v36  ;;  %4018 = vmatprep.subr.bf16.mxu1 %v9051_v37  ;;  %v9105_v35 = vld [vmem:[#allocation8 + $0x244] ss:$16 sps:$4 sm:$0xff]   ;;  %v9108_v36 = vld [vmem:[#allocation8 + $0x24c] ss:$16 sps:$4 sm:$0xff]   ;;  %v9103_v37 = vld [vmem:[#allocation8 + $0x240] ss:$16 sps:$4 sm:$0xff]  }
  0xe0   : > { %v644_v62 = vld [vmem:[%s10727_s22 + $0x1c0] sm:$0xff]  ;;  %v653_v4 = vld [vmem:[%s10727_s22 + $0x208] sm:$0xff] }
  0xe1   : > { %v9129_v63 = vld [vmem:[#allocation8 + $0x2c4] ss:$16 sps:$4 sm:$0xff]   ;;  %v1972_v3 = vpack.c.bf16 %v644_v62, %v636_v61  ;;  %v9150_v25 = vld [vmem:[#allocation8 + $0x32c] ss:$16 sps:$4 sm:$0xff]   ;;  %v9169_v54 = vld [vmem:[#allocation8 + $0x3a0] ss:$16 sps:$4 sm:$0xff]  }
  0xe2   : > { %3567 = vmatpush1.bf16.msra.mxu0 %v9053_v38  ;;  %4019 = vmatpush1.bf16.msra.mxu1 %v9054_v39  ;;  %v1956_v38 = vpack.c.bf16 %v612_v34, %v604_v33  ;;  %v9106_v39 = vld [vmem:[#allocation8 + $0x248] ss:$16 sps:$4 sm:$0xff]   ;;  %v9147_v24 = vld [vmem:[#allocation8 + $0x324] ss:$16 sps:$4 sm:$0xff]   ;;  %v9175_v61 = vld [vmem:[#allocation8 + $0x3c0] ss:$16 sps:$4 sm:$0xff]  }
  0xe3   : > { %3568 = vmatprep.subr.bf16.mxu0 %v9055_v40  ;;  %4020 = vmatprep.subr.bf16.mxu1 %v9057_v41  ;;  %v621_v40 = vld [vmem:[%s10727_s22 + $0x108] sm:$0xff]  ;;  %v9930_v7 = vld [vmem:[%s10727_s22 + $0x340] sm:$0xff] }
  0xe4   : > { %v629_v41 = vld [vmem:[%s10727_s22 + $0x148] sm:$0xff] }
  0xe5   : > { %v685_v34 = vld [vmem:[%s10727_s22 + $0x308] sm:$0xff] }
  0xe6   : > { %3569 = vmatpush1.bf16.msra.mxu0 %v9059_v42  ;;  %4021 = vmatpush1.bf16.msra.mxu1 %v9060_v43  ;;  %v9111_v42 = vld [vmem:[#allocation8 + $0x264] ss:$16 sps:$4 sm:$0xff]   ;;  %v9114_v43 = vld [vmem:[#allocation8 + $0x26c] ss:$16 sps:$4 sm:$0xff]   ;;  %v9178_v62 = vld [vmem:[#allocation8 + $0x3c8] ss:$16 sps:$4 sm:$0xff]  }
  0xe7   : > { %3570 = vmatprep.subr.bf16.mxu0 %v9061_v44  ;;  %4022 = vmatprep.subr.bf16.mxu1 %v9063_v45  ;;  %v9109_v44 = vld [vmem:[#allocation8 + $0x260] ss:$16 sps:$4 sm:$0xff]   ;;  %v1965_v45 = vpack.c.bf16 %v629_v41, %v621_v40  ;;  %v9160_v41 = vld [vmem:[#allocation8 + $0x368] ss:$16 sps:$4 sm:$0xff]  }
  0xe8   : > { %v9157_v40 = vld [vmem:[#allocation8 + $0x360] ss:$16 sps:$4 sm:$0xff]  }
  0xea   : > { %3571 = vmatpush1.bf16.msra.mxu0 %v9065_v46  ;;  %4023 = vmatpush1.bf16.msra.mxu1 %v9066_v47  ;;  %v9112_v46 = vld [vmem:[#allocation8 + $0x268] ss:$16 sps:$4 sm:$0xff]   ;;  %v620_v47 = vld [vmem:[%s10727_s22 + $0x100] sm:$0xff] }
  0xeb   : > { %3572 = vmatprep.subr.bf16.mxu0 %v9067_v49  ;;  %4024 = vmatprep.subr.bf16.mxu1 %v9069_v50  ;;  %v9117_v49 = vld [vmem:[#allocation8 + $0x284] ss:$16 sps:$4 sm:$0xff]   ;;  %v9120_v50 = vld [vmem:[#allocation8 + $0x28c] ss:$16 sps:$4 sm:$0xff]   ;;  %v1964_v53 = vpack.c.bf16 %v628_v48, %v620_v47  ;;  %v9163_v47 = vld [vmem:[#allocation8 + $0x380] ss:$16 sps:$4 sm:$0xff]  }
  0xee   : > { %3573 = vmatpush1.bf16.msra.mxu0 %v9071_v1  ;;  %4025 = vmatpush1.bf16.msra.mxu1 %v9072_v2  ;;  %v9127_v1 = vld [vmem:[#allocation8 + $0x2c0] ss:$16 sps:$4 sm:$0xff]   ;;  %v9130_v2 = vld [vmem:[#allocation8 + $0x2c8] ss:$16 sps:$4 sm:$0xff]  }
  0xef   : > { %3574 = vmatprep.subr.bf16.mxu0 %v9073_v5  ;;  %4026 = vmatprep.subr.bf16.mxu1 %v9075_v8  ;;  %v661_v5 = vld [vmem:[%s10727_s22 + $0x248] sm:$0xff]  ;;  %v9135_v8 = vld [vmem:[#allocation8 + $0x2e4] ss:$16 sps:$4 sm:$0xff]  }
  0xf2   : > { %3575 = vmatpush1.bf16.msra.mxu0 %v9077_v11  ;;  %4027 = vmatpush1.bf16.msra.mxu1 %v9078_v12  ;;  %v9138_v11 = vld [vmem:[#allocation8 + $0x2ec] ss:$16 sps:$4 sm:$0xff]   ;;  %v9133_v12 = vld [vmem:[#allocation8 + $0x2e0] ss:$16 sps:$4 sm:$0xff]  }
  0xf3   : > { %3576 = vmatprep.subr.bf16.mxu0 %v9079_v13  ;;  %4028 = vmatprep.subr.bf16.mxu1 %v9081_v14  ;;  %v1981_v13 = vpack.c.bf16 %v661_v5, %v653_v4  ;;  %v9136_v14 = vld [vmem:[#allocation8 + $0x2e8] ss:$16 sps:$4 sm:$0xff]   ;;  %v9181_v5 = vld [vmem:[#allocation8 + $0x3e0] ss:$16 sps:$4 sm:$0xff]  }
  0xf6   : > { %3577 = vmatpush1.bf16.msra.mxu0 %v9083_v15  ;;  %4029 = vmatpush1.bf16.msra.mxu1 %v9084_v16  ;;  %v652_v15 = vld [vmem:[%s10727_s22 + $0x200] sm:$0xff] }
  0xf7   : > { %3578 = vmatprep.subr.bf16.mxu0 %v9085_v17  ;;  %4030 = vmatprep.subr.bf16.mxu1 %v9087_v18  ;;  %v660_v16 = vld [vmem:[%s10727_s22 + $0x240] sm:$0xff]  ;;  %v9144_v18 = vld [vmem:[#allocation8 + $0x30c] ss:$16 sps:$4 sm:$0xff]  }
  0xf8   : > { %v9141_v17 = vld [vmem:[#allocation8 + $0x304] ss:$16 sps:$4 sm:$0xff]  }
  0xfa   : > { %3579 = vmatpush1.bf16.msra.mxu0 %v9089_v19  ;;  %4031 = vmatpush1.bf16.msra.mxu1 %v9090_v20  ;;  %v9139_v19 = vld [vmem:[#allocation8 + $0x300] ss:$16 sps:$4 sm:$0xff]   ;;  %v1980_v20 = vpack.c.bf16 %v660_v16, %v652_v15  ;;  %v9190_v16 = vld [vmem:[#allocation8 + $0x408] ss:$16 sps:$4 sm:$0xff]  }
  0xfb   : > { %3661 = vmatprep.subr.bf16.mxu0 %v9093_v21  ;;  %4113 = vmatprep.subr.bf16.mxu1 %v9096_v22  ;;  %v669_v21 = vld [vmem:[%s10727_s22 + $0x288] sm:$0xff]  ;;  %v9187_v15 = vld [vmem:[#allocation8 + $0x400] ss:$16 sps:$4 sm:$0xff]  }
  0xfc   : > { %v677_v22 = vld [vmem:[%s10727_s22 + $0x2c8] sm:$0xff] }
  0xfd   : > { %3581 = vmatmul.mubr.bf16.vlgmr.msra.gmra.mrb[0].mxu0 %v1948_v23  ;;  %4033 = vmatmul.mubr.bf16.vlgmr.msra.gmra.mrb[0].mxu1 %v1948_v23  ;;  %v9142_v23 = vld [vmem:[#allocation8 + $0x308] ss:$16 sps:$4 sm:$0xff]  }
  0xfe   : > { %3662 = vmatpush1.bf16.msra.mxu0 %v9091_v26  ;;  %4114 = vmatpush1.bf16.msra.mxu1 %v9094_v27  ;;  %v9145_v26 = vld [vmem:[#allocation8 + $0x320] ss:$16 sps:$4 sm:$0xff]   ;;  %v9148_v27 = vld [vmem:[#allocation8 + $0x328] ss:$16 sps:$4 sm:$0xff]  }
  0xff   : > { %3663 = vmatprep.subr.bf16.mxu0 %v9099_v28  ;;  %4115 = vmatprep.subr.bf16.mxu1 %v9102_v29  ;;  %v1989_v28 = vpack.c.bf16 %v677_v22, %v669_v21  ;;  %v668_v29 = vld [vmem:[%s10727_s22 + $0x280] sm:$0xff]  ;;  %v9198_v21 = vld [vmem:[#allocation8 + $0x42c] ss:$16 sps:$4 sm:$0xff]  }
 0x100   : > { %3590 = vmatprep.mubr.bf16.mxu0 %v1957_v32  ;;  %4042 = vmatprep.mubr.bf16.mxu1 %v1957_v32  ;;  %v9156_v32 = vld [vmem:[#allocation8 + $0x34c] ss:$16 sps:$4 sm:$0xff]   ;;  %v9193_v22 = vld [vmem:[#allocation8 + $0x420] ss:$16 sps:$4 sm:$0xff]  }
 0x102   : > { %3664 = vmatpush1.bf16.msra.mxu0 %v9097_v30  ;;  %4116 = vmatpush1.bf16.msra.mxu1 %v9100_v31  ;;  %v676_v30 = vld [vmem:[%s10727_s22 + $0x2c0] sm:$0xff] }
 0x103   : > { %3665 = vmatprep.subr.bf16.mxu0 %v9105_v35  ;;  %4117 = vmatprep.subr.bf16.mxu1 %v9108_v36  ;;  %v9153_v31 = vld [vmem:[#allocation8 + $0x344] ss:$16 sps:$4 sm:$0xff]   ;;  %v1988_v33 = vpack.c.bf16 %v676_v30, %v668_v29  ;;  %v693_v35 = vld [vmem:[%s10727_s22 + $0x348] sm:$0xff]  ;;  %v9151_v36 = vld [vmem:[#allocation8 + $0x340] ss:$16 sps:$4 sm:$0xff]  }
 0x104   : > { %v9199_v29 = vld [vmem:[#allocation8 + $0x440] ss:$16 sps:$4 sm:$0xff]  }
 0x105   : > { %3591 = vmatmul.mubr.bf16.gmra.mrb[4].mxu0 %v1956_v38  ;;  %4043 = vmatmul.mubr.bf16.gmra.mrb[4].mxu1 %v1956_v38  ;;  %v9159_v38 = vld [vmem:[#allocation8 + $0x364] ss:$16 sps:$4 sm:$0xff]  }
 0x106   : > { %3666 = vmatpush1.bf16.msra.mxu0 %v9103_v37  ;;  %4118 = vmatpush1.bf16.msra.mxu1 %v9106_v39  ;;  %v9154_v37 = vld [vmem:[#allocation8 + $0x348] ss:$16 sps:$4 sm:$0xff]   ;;  %v9162_v39 = vld [vmem:[#allocation8 + $0x36c] ss:$16 sps:$4 sm:$0xff]  }
 0x107   : > { %3667 = vmatprep.subr.bf16.mxu0 %v9111_v42  ;;  %4119 = vmatprep.subr.bf16.mxu1 %v9114_v43  ;;  %v1997_v42 = vpack.c.bf16 %v693_v35, %v685_v34  ;;  %v684_v43 = vld [vmem:[%s10727_s22 + $0x300] sm:$0xff]  ;;  %v9210_v35 = vld [vmem:[#allocation8 + $0x46c] ss:$16 sps:$4 sm:$0xff]  }
 0x108   : > { %3600 = vmatprep.mubr.bf16.mxu0 %v1965_v45  ;;  %4052 = vmatprep.mubr.bf16.mxu1 %v1965_v45  ;;  %v9165_v45 = vld [vmem:[#allocation8 + $0x384] ss:$16 sps:$4 sm:$0xff]  }
 0x109   : > { %v9207_v34 = vld [vmem:[#allocation8 + $0x464] ss:$16 sps:$4 sm:$0xff]  }
 0x10a   : > { %3668 = vmatpush1.bf16.msra.mxu0 %v9109_v44  ;;  %4120 = vmatpush1.bf16.msra.mxu1 %v9112_v46  ;;  %v692_v44 = vld [vmem:[%s10727_s22 + $0x340] sm:$0xff]  ;;  %v9168_v46 = vld [vmem:[#allocation8 + $0x38c] ss:$16 sps:$4 sm:$0xff]  }
 0x10b   : > { %3669 = vmatprep.subr.bf16.mxu0 %v9117_v49  ;;  %4121 = vmatprep.subr.bf16.mxu1 %v9120_v50  ;;  %v1996_v48 = vpack.c.bf16 %v692_v44, %v684_v43  ;;  %v9166_v49 = vld [vmem:[#allocation8 + $0x388] ss:$16 sps:$4 sm:$0xff]  }
 0x10c   : > { %v701_v50 = vld [vmem:[%s10727_s22 + $0x388] sm:$0xff]  ;;  %v639_v44 = vld [vmem:[%s10727_s22 + $0x198] sm:$0xff] }
 0x10d   : > { %3601 = vmatmul.mubr.bf16.gmra.mrb[8].mxu0 %v1964_v53  ;;  %4053 = vmatmul.mubr.bf16.gmra.mrb[8].mxu1 %v1964_v53  ;;  %v9174_v53 = vld [vmem:[#allocation8 + $0x3ac] ss:$16 sps:$4 sm:$0xff]  }
 0x10e   : > { %3670 = vmatpush1.bf16.msra.mxu0 %v9115_v51  ;;  %4122 = vmatpush1.bf16.msra.mxu1 %v9118_v52  ;;  %v709_v51 = vld [vmem:[%s10727_s22 + $0x3c8] sm:$0xff]  ;;  %v9171_v52 = vld [vmem:[#allocation8 + $0x3a4] ss:$16 sps:$4 sm:$0xff]  }
 0x10f   : > { %3671 = vmatprep.subr.bf16.mxu0 %v9123_v56  ;;  %4123 = vmatprep.subr.bf16.mxu1 %v9126_v57  ;;  %v2005_v55 = vpack.c.bf16 %v709_v51, %v701_v50  ;;  %v9172_v56 = vld [vmem:[#allocation8 + $0x3a8] ss:$16 sps:$4 sm:$0xff]   ;;  %v700_v57 = vld [vmem:[%s10727_s22 + $0x380] sm:$0xff] }
 0x110   : > { %3610 = vmatprep.mubr.bf16.mxu0 %v1973_v58  ;;  %4062 = vmatprep.mubr.bf16.mxu1 %v1973_v58  ;;  %v708_v58 = vld [vmem:[%s10727_s22 + $0x3c0] sm:$0xff]  ;;  %v9220_v51 = vld [vmem:[#allocation8 + $0x4a8] ss:$16 sps:$4 sm:$0xff]  }
 0x111   : > { %v9217_v50 = vld [vmem:[#allocation8 + $0x4a0] ss:$16 sps:$4 sm:$0xff]  }
 0x112   : > { %3672 = vmatpush1.bf16.msra.mxu0 %v9121_v59  ;;  %4124 = vmatpush1.bf16.msra.mxu1 %v9124_v60  ;;  %v9177_v59 = vld [vmem:[#allocation8 + $0x3c4] ss:$16 sps:$4 sm:$0xff]   ;;  %v9180_v60 = vld [vmem:[#allocation8 + $0x3cc] ss:$16 sps:$4 sm:$0xff]  }
 0x113   : > { %3673 = vmatprep.subr.bf16.mxu0 %v9129_v63  ;;  %4125 = vmatprep.subr.bf16.mxu1 %v9132_v0  ;;  %v2004_v63 = vpack.c.bf16 %v708_v58, %v700_v57  ;;  %v591_v0 = vld [vmem:[%s10727_s22 + $0x18] sm:$0xff]  ;;  %v9223_v57 = vld [vmem:[#allocation8 + $0x4c0] ss:$16 sps:$4 sm:$0xff]  }
 0x115   : > { %3611 = vmatmul.mubr.bf16.gmra.mrb[12].mxu0 %v1972_v3  ;;  %4063 = vmatmul.mubr.bf16.gmra.mrb[12].mxu1 %v1972_v3  ;;  %v9186_v3 = vld [vmem:[#allocation8 + $0x3ec] ss:$16 sps:$4 sm:$0xff]  }
 0x116   : > { %3674 = vmatpush1.bf16.msra.mxu0 %v9127_v1  ;;  %4126 = vmatpush1.bf16.msra.mxu1 %v9130_v2  ;;  %v599_v1 = vld [vmem:[%s10727_s22 + $0x58] sm:$0xff]  ;;  %v9183_v2 = vld [vmem:[#allocation8 + $0x3e4] ss:$16 sps:$4 sm:$0xff]  }
 0x117   : > { %3675 = vmatprep.subr.bf16.mxu0 %v9135_v8  ;;  %4127 = vmatprep.subr.bf16.mxu1 %v9138_v11  ;;  %v1951_v4 = vpack.c.bf16 %v599_v1, %v591_v0  ;;  %v9184_v8 = vld [vmem:[#allocation8 + $0x3e8] ss:$16 sps:$4 sm:$0xff]   ;;  %v590_v11 = vld [vmem:[%s10727_s22 + $0x10] sm:$0xff] }
 0x118   : > { %3620 = vmatprep.mubr.bf16.mxu0 %v1981_v13  ;;  %4072 = vmatprep.mubr.bf16.mxu1 %v1981_v13  ;;  %v9189_v13 = vld [vmem:[#allocation8 + $0x404] ss:$16 sps:$4 sm:$0xff]   ;;  %v9229_v0 = vld [vmem:[#allocation8 + $0x4e0] ss:$16 sps:$4 sm:$0xff]  }
 0x11a   : > { %3676 = vmatpush1.bf16.msra.mxu0 %v9133_v12  ;;  %4128 = vmatpush1.bf16.msra.mxu1 %v9136_v14  ;;  %v598_v12 = vld [vmem:[%s10727_s22 + $0x50] sm:$0xff]  ;;  %v9192_v14 = vld [vmem:[#allocation8 + $0x40c] ss:$16 sps:$4 sm:$0xff]  }
 0x11b   : > { %3677 = vmatprep.subr.bf16.mxu0 %v9141_v17  ;;  %4129 = vmatprep.subr.bf16.mxu1 %v9144_v18  ;;  %v1950_v17 = vpack.c.bf16 %v598_v12, %v590_v11  ;;  %v607_v18 = vld [vmem:[%s10727_s22 + $0x98] sm:$0xff]  ;;  %v9235_v11 = vld [vmem:[#allocation8 + $0x500] ss:$16 sps:$4 sm:$0xff]  }
 0x11c   : > { %v9238_v12 = vld [vmem:[#allocation8 + $0x508] ss:$16 sps:$4 sm:$0xff]  }
 0x11d   : > { %3621 = vmatmul.mubr.bf16.gmra.mrb[16].mxu0 %v1980_v20  ;;  %4073 = vmatmul.mubr.bf16.gmra.mrb[16].mxu1 %v1980_v20  ;;  %v9195_v20 = vld [vmem:[#allocation8 + $0x424] ss:$16 sps:$4 sm:$0xff]  }
 0x11e   : > { %3678 = vmatpush1.bf16.msra.mxu0 %v9139_v19  ;;  %4130 = vmatpush1.bf16.msra.mxu1 %v9142_v23  ;;  %v615_v19 = vld [vmem:[%s10727_s22 + $0xd8] sm:$0xff] }
 0x11f   : > { %3679 = vmatprep.subr.bf16.mxu0 %v9147_v24  ;;  %4131 = vmatprep.subr.bf16.mxu1 %v9150_v25  ;;  %v1959_v23 = vpack.c.bf16 %v615_v19, %v607_v18  ;;  %v9196_v24 = vld [vmem:[#allocation8 + $0x428] ss:$16 sps:$4 sm:$0xff]   ;;  %v606_v25 = vld [vmem:[%s10727_s22 + $0x90] sm:$0xff] }
 0x120   : > { %3630 = vmatprep.mubr.bf16.mxu0 %v1989_v28  ;;  %4082 = vmatprep.mubr.bf16.mxu1 %v1989_v28  ;;  %v9204_v28 = vld [vmem:[#allocation8 + $0x44c] ss:$16 sps:$4 sm:$0xff]   ;;  %v9241_v19 = vld [vmem:[#allocation8 + $0x520] ss:$16 sps:$4 sm:$0xff]  }
 0x122   : > { %3680 = vmatpush1.bf16.msra.mxu0 %v9145_v26  ;;  %4132 = vmatpush1.bf16.msra.mxu1 %v9148_v27  ;;  %v614_v26 = vld [vmem:[%s10727_s22 + $0xd0] sm:$0xff] }
 0x123   : > { %3681 = vmatprep.subr.bf16.mxu0 %v9153_v31  ;;  %4133 = vmatprep.subr.bf16.mxu1 %v9156_v32  ;;  %v9201_v27 = vld [vmem:[#allocation8 + $0x444] ss:$16 sps:$4 sm:$0xff]   ;;  %v1958_v30 = vpack.c.bf16 %v614_v26, %v606_v25  ;;  %v623_v31 = vld [vmem:[%s10727_s22 + $0x118] sm:$0xff]  ;;  %v9247_v25 = vld [vmem:[#allocation8 + $0x540] ss:$16 sps:$4 sm:$0xff]  }
 0x124   : > { %v631_v32 = vld [vmem:[%s10727_s22 + $0x158] sm:$0xff] }
 0x125   : > { %3631 = vmatmul.mubr.bf16.gmra.mrb[20].mxu0 %v1988_v33  ;;  %4083 = vmatmul.mubr.bf16.gmra.mrb[20].mxu1 %v1988_v33  ;;  %v9202_v33 = vld [vmem:[#allocation8 + $0x448] ss:$16 sps:$4 sm:$0xff]  }
 0x126   : > { %3682 = vmatpush1.bf16.msra.mxu0 %v9151_v36  ;;  %4134 = vmatpush1.bf16.msra.mxu1 %v9154_v37  ;;  %v9205_v36 = vld [vmem:[#allocation8 + $0x460] ss:$16 sps:$4 sm:$0xff]   ;;  %v9208_v37 = vld [vmem:[#allocation8 + $0x468] ss:$16 sps:$4 sm:$0xff]  }
 0x127   : > { %3683 = vmatprep.subr.bf16.mxu0 %v9159_v38  ;;  %4135 = vmatprep.subr.bf16.mxu1 %v9162_v39  ;;  %v1967_v38 = vpack.c.bf16 %v631_v32, %v623_v31  ;;  %v622_v39 = vld [vmem:[%s10727_s22 + $0x110] sm:$0xff]  ;;  %v9250_v26 = vld [vmem:[#allocation8 + $0x548] ss:$16 sps:$4 sm:$0xff]   ;;  %v9258_v31 = vld [vmem:[#allocation8 + $0x56c] ss:$16 sps:$4 sm:$0xff]  }
 0x128   : > { %3640 = vmatprep.mubr.bf16.mxu0 %v1997_v42  ;;  %4092 = vmatprep.mubr.bf16.mxu1 %v1997_v42  ;;  %v9216_v42 = vld [vmem:[#allocation8 + $0x48c] ss:$16 sps:$4 sm:$0xff]   ;;  %v9253_v32 = vld [vmem:[#allocation8 + $0x560] ss:$16 sps:$4 sm:$0xff]  }
 0x12a   : > { %3684 = vmatpush1.bf16.msra.mxu0 %v9157_v40  ;;  %4136 = vmatpush1.bf16.msra.mxu1 %v9160_v41  ;;  %v630_v40 = vld [vmem:[%s10727_s22 + $0x150] sm:$0xff] }
 0x12b   : > { %3685 = vmatprep.subr.bf16.mxu0 %v9165_v45  ;;  %4137 = vmatprep.subr.bf16.mxu1 %v9168_v46  ;;  %v9213_v41 = vld [vmem:[#allocation8 + $0x484] ss:$16 sps:$4 sm:$0xff]   ;;  %v1966_v43 = vpack.c.bf16 %v630_v40, %v622_v39  ;;  %v647_v45 = vld [vmem:[%s10727_s22 + $0x1d8] sm:$0xff]  ;;  %v9211_v46 = vld [vmem:[#allocation8 + $0x480] ss:$16 sps:$4 sm:$0xff]  }
 0x12c   : > { %v9259_v39 = vld [vmem:[#allocation8 + $0x580] ss:$16 sps:$4 sm:$0xff]  }
 0x12d   : > { %3641 = vmatmul.mubr.bf16.gmra.mrb[24].mxu0 %v1996_v48  ;;  %4093 = vmatmul.mubr.bf16.gmra.mrb[24].mxu1 %v1996_v48  ;;  %v9219_v48 = vld [vmem:[#allocation8 + $0x4a4] ss:$16 sps:$4 sm:$0xff]  }
 0x12e   : > { %3686 = vmatpush1.bf16.msra.mxu0 %v9163_v47  ;;  %4138 = vmatpush1.bf16.msra.mxu1 %v9166_v49  ;;  %v9214_v47 = vld [vmem:[#allocation8 + $0x488] ss:$16 sps:$4 sm:$0xff]   ;;  %v9222_v49 = vld [vmem:[#allocation8 + $0x4ac] ss:$16 sps:$4 sm:$0xff]  }
 0x12f   : > { %3687 = vmatprep.subr.bf16.mxu0 %v9171_v52  ;;  %4139 = vmatprep.subr.bf16.mxu1 %v9174_v53  ;;  %v1975_v52 = vpack.c.bf16 %v647_v45, %v639_v44  ;;  %v638_v53 = vld [vmem:[%s10727_s22 + $0x190] sm:$0xff]  ;;  %v9270_v45 = vld [vmem:[#allocation8 + $0x5ac] ss:$16 sps:$4 sm:$0xff]  }
 0x130   : > { %3650 = vmatprep.mubr.bf16.mxu0 %v2005_v55  ;;  %4102 = vmatprep.mubr.bf16.mxu1 %v2005_v55  ;;  %v9225_v55 = vld [vmem:[#allocation8 + $0x4c4] ss:$16 sps:$4 sm:$0xff]  }
 0x131   : > { %v9267_v44 = vld [vmem:[#allocation8 + $0x5a4] ss:$16 sps:$4 sm:$0xff]  }
 0x132   : > { %3688 = vmatpush1.bf16.msra.mxu0 %v9169_v54  ;;  %4140 = vmatpush1.bf16.msra.mxu1 %v9172_v56  ;;  %v646_v54 = vld [vmem:[%s10727_s22 + $0x1d0] sm:$0xff]  ;;  %v9228_v56 = vld [vmem:[#allocation8 + $0x4cc] ss:$16 sps:$4 sm:$0xff]  }
 0x133   : > { %3689 = vmatprep.subr.bf16.mxu0 %v9177_v59  ;;  %4141 = vmatprep.subr.bf16.mxu1 %v9180_v60  ;;  %v1974_v58 = vpack.c.bf16 %v646_v54, %v638_v53  ;;  %v9226_v59 = vld [vmem:[#allocation8 + $0x4c8] ss:$16 sps:$4 sm:$0xff]  }
 0x134   : > { %v655_v60 = vld [vmem:[%s10727_s22 + $0x218] sm:$0xff]  ;;  %v593_v54 = vld [vmem:[%s10727_s22 + $0x28] sm:$0xff] }
 0x135   : > { %3651 = vmatmul.mubr.bf16.gmra.mrb[28].mxu0 %v2004_v63  ;;  %4103 = vmatmul.mubr.bf16.gmra.mrb[28].mxu1 %v2004_v63  ;;  %v9234_v63 = vld [vmem:[#allocation8 + $0x4ec] ss:$16 sps:$4 sm:$0xff]  }
 0x136   : > { %3690 = vmatpush1.bf16.msra.mxu0 %v9175_v61  ;;  %4142 = vmatpush1.bf16.msra.mxu1 %v9178_v62  ;;  %v663_v61 = vld [vmem:[%s10727_s22 + $0x258] sm:$0xff]  ;;  %v9231_v62 = vld [vmem:[#allocation8 + $0x4e4] ss:$16 sps:$4 sm:$0xff]  }
 0x137   : > { %3691 = vmatprep.subr.bf16.mxu0 %v9183_v2  ;;  %4143 = vmatprep.subr.bf16.mxu1 %v9186_v3  ;;  %v1983_v1 = vpack.c.bf16 %v663_v61, %v655_v60  ;;  %v9232_v2 = vld [vmem:[#allocation8 + $0x4e8] ss:$16 sps:$4 sm:$0xff]   ;;  %v654_v3 = vld [vmem:[%s10727_s22 + $0x210] sm:$0xff] }
 0x138   : > { %3693 = vmatprep.mubr.bf16.mxu0 %v1951_v4  ;;  %4145 = vmatprep.mubr.bf16.mxu1 %v1951_v4  ;;  %v662_v4 = vld [vmem:[%s10727_s22 + $0x250] sm:$0xff]  ;;  %v9280_v61 = vld [vmem:[#allocation8 + $0x5e8] ss:$16 sps:$4 sm:$0xff]  }
 0x139   : > { %v9277_v60 = vld [vmem:[#allocation8 + $0x5e0] ss:$16 sps:$4 sm:$0xff]  }
 0x13a   : > { %3692 = vmatpush1.bf16.msra.mxu0 %v9181_v5  ;;  %4144 = vmatpush1.bf16.msra.mxu1 %v9184_v8  ;;  %v9237_v5 = vld [vmem:[#allocation8 + $0x504] ss:$16 sps:$4 sm:$0xff]   ;;  %v9240_v8 = vld [vmem:[#allocation8 + $0x50c] ss:$16 sps:$4 sm:$0xff]  }
 0x13b   : > { %3774 = vmatprep.subr.bf16.mxu0 %v9189_v13  ;;  %4226 = vmatprep.subr.bf16.mxu1 %v9192_v14  ;;  %v1982_v13 = vpack.c.bf16 %v662_v4, %v654_v3  ;;  %v671_v14 = vld [vmem:[%s10727_s22 + $0x298] sm:$0xff]  ;;  %v9283_v3 = vld [vmem:[#allocation8 + $0x600] ss:$16 sps:$4 sm:$0xff]  }
 0x13d   : > { %3694 = vmatmul.mubr.bf16.vlgmr.msra.gmra.mrb[0].mxu0 %v1950_v17  ;;  %4146 = vmatmul.mubr.bf16.vlgmr.msra.gmra.mrb[0].mxu1 %v1950_v17  ;;  %v9246_v17 = vld [vmem:[#allocation8 + $0x52c] ss:$16 sps:$4 sm:$0xff]  }
 0x13e   : > { %3775 = vmatpush1.bf16.msra.mxu0 %v9187_v15  ;;  %4227 = vmatpush1.bf16.msra.mxu1 %v9190_v16  ;;  %v679_v15 = vld [vmem:[%s10727_s22 + $0x2d8] sm:$0xff]  ;;  %v9243_v16 = vld [vmem:[#allocation8 + $0x524] ss:$16 sps:$4 sm:$0xff]  }
 0x13f   : > { %3776 = vmatprep.subr.bf16.mxu0 %v9195_v20  ;;  %4228 = vmatprep.subr.bf16.mxu1 %v9198_v21  ;;  %v1991_v18 = vpack.c.bf16 %v679_v15, %v671_v14  ;;  %v9244_v20 = vld [vmem:[#allocation8 + $0x528] ss:$16 sps:$4 sm:$0xff]   ;;  %v670_v21 = vld [vmem:[%s10727_s22 + $0x290] sm:$0xff] }
 0x140   : > { %3703 = vmatprep.mubr.bf16.mxu0 %v1959_v23  ;;  %4155 = vmatprep.mubr.bf16.mxu1 %v1959_v23  ;;  %v9249_v23 = vld [vmem:[#allocation8 + $0x544] ss:$16 sps:$4 sm:$0xff]   ;;  %v9289_v14 = vld [vmem:[#allocation8 + $0x620] ss:$16 sps:$4 sm:$0xff]  }
 0x142   : > { %3777 = vmatpush1.bf16.msra.mxu0 %v9193_v22  ;;  %4229 = vmatpush1.bf16.msra.mxu1 %v9196_v24  ;;  %v678_v22 = vld [vmem:[%s10727_s22 + $0x2d0] sm:$0xff]  ;;  %v9252_v24 = vld [vmem:[#allocation8 + $0x54c] ss:$16 sps:$4 sm:$0xff]  }
 0x143   : > { %3778 = vmatprep.subr.bf16.mxu0 %v9201_v27  ;;  %4230 = vmatprep.subr.bf16.mxu1 %v9204_v28  ;;  %v1990_v27 = vpack.c.bf16 %v678_v22, %v670_v21  ;;  %v687_v28 = vld [vmem:[%s10727_s22 + $0x318] sm:$0xff]  ;;  %v9295_v21 = vld [vmem:[#allocation8 + $0x640] ss:$16 sps:$4 sm:$0xff]  }
 0x144   : > { %v9298_v22 = vld [vmem:[#allocation8 + $0x648] ss:$16 sps:$4 sm:$0xff]  }
 0x145   : > { %3704 = vmatmul.mubr.bf16.gmra.mrb[4].mxu0 %v1958_v30  ;;  %4156 = vmatmul.mubr.bf16.gmra.mrb[4].mxu1 %v1958_v30  ;;  %v9255_v30 = vld [vmem:[#allocation8 + $0x564] ss:$16 sps:$4 sm:$0xff]  }
 0x146   : > { %3779 = vmatpush1.bf16.msra.mxu0 %v9199_v29  ;;  %4231 = vmatpush1.bf16.msra.mxu1 %v9202_v33  ;;  %v695_v29 = vld [vmem:[%s10727_s22 + $0x358] sm:$0xff] }
 0x147   : > { %3780 = vmatprep.subr.bf16.mxu0 %v9207_v34  ;;  %4232 = vmatprep.subr.bf16.mxu1 %v9210_v35  ;;  %v1999_v33 = vpack.c.bf16 %v695_v29, %v687_v28  ;;  %v9256_v34 = vld [vmem:[#allocation8 + $0x568] ss:$16 sps:$4 sm:$0xff]   ;;  %v686_v35 = vld [vmem:[%s10727_s22 + $0x310] sm:$0xff] }
 0x148   : > { %3713 = vmatprep.mubr.bf16.mxu0 %v1967_v38  ;;  %4165 = vmatprep.mubr.bf16.mxu1 %v1967_v38  ;;  %v9264_v38 = vld [vmem:[#allocation8 + $0x58c] ss:$16 sps:$4 sm:$0xff]   ;;  %v9301_v29 = vld [vmem:[#allocation8 + $0x660] ss:$16 sps:$4 sm:$0xff]  }
 0x14a   : > { %3781 = vmatpush1.bf16.msra.mxu0 %v9205_v36  ;;  %4233 = vmatpush1.bf16.msra.mxu1 %v9208_v37  ;;  %v694_v36 = vld [vmem:[%s10727_s22 + $0x350] sm:$0xff] }
 0x14b   : > { %3782 = vmatprep.subr.bf16.mxu0 %v9213_v41  ;;  %4234 = vmatprep.subr.bf16.mxu1 %v9216_v42  ;;  %v9261_v37 = vld [vmem:[#allocation8 + $0x584] ss:$16 sps:$4 sm:$0xff]   ;;  %v1998_v40 = vpack.c.bf16 %v694_v36, %v686_v35  ;;  %v703_v41 = vld [vmem:[%s10727_s22 + $0x398] sm:$0xff]  ;;  %v9307_v35 = vld [vmem:[#allocation8 + $0x680] ss:$16 sps:$4 sm:$0xff]  }
 0x14c   : > { %v711_v42 = vld [vmem:[%s10727_s22 + $0x3d8] sm:$0xff] }
 0x14d   : > { %3714 = vmatmul.mubr.bf16.gmra.mrb[8].mxu0 %v1966_v43  ;;  %4166 = vmatmul.mubr.bf16.gmra.mrb[8].mxu1 %v1966_v43  ;;  %v9262_v43 = vld [vmem:[#allocation8 + $0x588] ss:$16 sps:$4 sm:$0xff]  }
 0x14e   : > { %3783 = vmatpush1.bf16.msra.mxu0 %v9211_v46  ;;  %4235 = vmatpush1.bf16.msra.mxu1 %v9214_v47  ;;  %v9265_v46 = vld [vmem:[#allocation8 + $0x5a0] ss:$16 sps:$4 sm:$0xff]   ;;  %v9268_v47 = vld [vmem:[#allocation8 + $0x5a8] ss:$16 sps:$4 sm:$0xff]  }
 0x14f   : > { %3784 = vmatprep.subr.bf16.mxu0 %v9219_v48  ;;  %4236 = vmatprep.subr.bf16.mxu1 %v9222_v49  ;;  %v2007_v48 = vpack.c.bf16 %v711_v42, %v703_v41  ;;  %v702_v49 = vld [vmem:[%s10727_s22 + $0x390] sm:$0xff]  ;;  %v9310_v36 = vld [vmem:[#allocation8 + $0x688] ss:$16 sps:$4 sm:$0xff]   ;;  %v9318_v41 = vld [vmem:[#allocation8 + $0x6ac] ss:$16 sps:$4 sm:$0xff]  }
 0x150   : > { %3723 = vmatprep.mubr.bf16.mxu0 %v1975_v52  ;;  %4175 = vmatprep.mubr.bf16.mxu1 %v1975_v52  ;;  %v9276_v52 = vld [vmem:[#allocation8 + $0x5cc] ss:$16 sps:$4 sm:$0xff]   ;;  %v9313_v42 = vld [vmem:[#allocation8 + $0x6a0] ss:$16 sps:$4 sm:$0xff]  }
 0x152   : > { %3785 = vmatpush1.bf16.msra.mxu0 %v9217_v50  ;;  %4237 = vmatpush1.bf16.msra.mxu1 %v9220_v51  ;;  %v710_v50 = vld [vmem:[%s10727_s22 + $0x3d0] sm:$0xff] }
 0x153   : > { %3786 = vmatprep.subr.bf16.mxu0 %v9225_v55  ;;  %4238 = vmatprep.subr.bf16.mxu1 %v9228_v56  ;;  %v9273_v51 = vld [vmem:[#allocation8 + $0x5c4] ss:$16 sps:$4 sm:$0xff]   ;;  %v2006_v53 = vpack.c.bf16 %v710_v50, %v702_v49  ;;  %v601_v55 = vld [vmem:[%s10727_s22 + $0x68] sm:$0xff]  ;;  %v9271_v56 = vld [vmem:[#allocation8 + $0x5c0] ss:$16 sps:$4 sm:$0xff]  }
 0x154   : > { %v9319_v49 = vld [vmem:[#allocation8 + $0x6c0] ss:$16 sps:$4 sm:$0xff]  }
 0x155   : > { %3724 = vmatmul.mubr.bf16.gmra.mrb[12].mxu0 %v1974_v58  ;;  %4176 = vmatmul.mubr.bf16.gmra.mrb[12].mxu1 %v1974_v58  ;;  %v9279_v58 = vld [vmem:[#allocation8 + $0x5e4] ss:$16 sps:$4 sm:$0xff]  }
 0x156   : > { %3787 = vmatpush1.bf16.msra.mxu0 %v9223_v57  ;;  %4239 = vmatpush1.bf16.msra.mxu1 %v9226_v59  ;;  %v9274_v57 = vld [vmem:[#allocation8 + $0x5c8] ss:$16 sps:$4 sm:$0xff]   ;;  %v9282_v59 = vld [vmem:[#allocation8 + $0x5ec] ss:$16 sps:$4 sm:$0xff]  }
 0x157   : > { %3788 = vmatprep.subr.bf16.mxu0 %v9231_v62  ;;  %4240 = vmatprep.subr.bf16.mxu1 %v9234_v63  ;;  %v1953_v62 = vpack.c.bf16 %v601_v55, %v593_v54  ;;  %v592_v63 = vld [vmem:[%s10727_s22 + $0x20] sm:$0xff]  ;;  %v9330_v55 = vld [vmem:[#allocation8 + $0x6ec] ss:$16 sps:$4 sm:$0xff]  }
 0x158   : > { %3733 = vmatprep.mubr.bf16.mxu0 %v1983_v1  ;;  %4185 = vmatprep.mubr.bf16.mxu1 %v1983_v1  ;;  %v9285_v1 = vld [vmem:[#allocation8 + $0x604] ss:$16 sps:$4 sm:$0xff]  }
 0x159   : > { %v9327_v54 = vld [vmem:[#allocation8 + $0x6e4] ss:$16 sps:$4 sm:$0xff]  }
 0x15a   : > { %3789 = vmatpush1.bf16.msra.mxu0 %v9229_v0  ;;  %4241 = vmatpush1.bf16.msra.mxu1 %v9232_v2  ;;  %v600_v0 = vld [vmem:[%s10727_s22 + $0x60] sm:$0xff]  ;;  %v9288_v2 = vld [vmem:[#allocation8 + $0x60c] ss:$16 sps:$4 sm:$0xff]  }
 0x15b   : > { %3790 = vmatprep.subr.bf16.mxu0 %v9237_v5  ;;  %4242 = vmatprep.subr.bf16.mxu1 %v9240_v8  ;;  %v1952_v4 = vpack.c.bf16 %v600_v0, %v592_v63  ;;  %v9286_v5 = vld [vmem:[#allocation8 + $0x608] ss:$16 sps:$4 sm:$0xff]  }
 0x15c   : > { %v609_v8 = vld [vmem:[%s10727_s22 + $0xa8] sm:$0xff] }
 0x15d   : > { %3734 = vmatmul.mubr.bf16.gmra.mrb[16].mxu0 %v1982_v13  ;;  %4186 = vmatmul.mubr.bf16.gmra.mrb[16].mxu1 %v1982_v13  ;;  %v9294_v13 = vld [vmem:[#allocation8 + $0x62c] ss:$16 sps:$4 sm:$0xff]  }
 0x15e   : > { %3791 = vmatpush1.bf16.msra.mxu0 %v9235_v11  ;;  %4243 = vmatpush1.bf16.msra.mxu1 %v9238_v12  ;;  %v617_v11 = vld [vmem:[%s10727_s22 + $0xe8] sm:$0xff]  ;;  %v9291_v12 = vld [vmem:[#allocation8 + $0x624] ss:$16 sps:$4 sm:$0xff]  }
 0x15f   : > { %3792 = vmatprep.subr.bf16.mxu0 %v9243_v16  ;;  %4244 = vmatprep.subr.bf16.mxu1 %v9246_v17  ;;  %v1961_v15 = vpack.c.bf16 %v617_v11, %v609_v8  ;;  %v9292_v16 = vld [vmem:[#allocation8 + $0x628] ss:$16 sps:$4 sm:$0xff]   ;;  %v608_v17 = vld [vmem:[%s10727_s22 + $0xa0] sm:$0xff] }
 0x160   : > { %3743 = vmatprep.mubr.bf16.mxu0 %v1991_v18  ;;  %4195 = vmatprep.mubr.bf16.mxu1 %v1991_v18  ;;  %v616_v18 = vld [vmem:[%s10727_s22 + $0xe0] sm:$0xff]  ;;  %v673_v0 = vld [vmem:[%s10727_s22 + $0x2a8] sm:$0xff] }
 0x161   : > { %v9337_v8 = vld [vmem:[#allocation8 + $0x720] ss:$16 sps:$4 sm:$0xff]   ;;  %v9340_v11 = vld [vmem:[#allocation8 + $0x728] ss:$16 sps:$4 sm:$0xff]  }
 0x162   : > { %3793 = vmatpush1.bf16.msra.mxu0 %v9241_v19  ;;  %4245 = vmatpush1.bf16.msra.mxu1 %v9244_v20  ;;  %v9297_v19 = vld [vmem:[#allocation8 + $0x644] ss:$16 sps:$4 sm:$0xff]   ;;  %v9300_v20 = vld [vmem:[#allocation8 + $0x64c] ss:$16 sps:$4 sm:$0xff]  }
 0x163   : > { %3794 = vmatprep.subr.bf16.mxu0 %v9249_v23  ;;  %4246 = vmatprep.subr.bf16.mxu1 %v9252_v24  ;;  %v1960_v23 = vpack.c.bf16 %v616_v18, %v608_v17  ;;  %v625_v24 = vld [vmem:[%s10727_s22 + $0x128] sm:$0xff]  ;;  %v9343_v17 = vld [vmem:[#allocation8 + $0x740] ss:$16 sps:$4 sm:$0xff]  }
 0x165   : > { %3744 = vmatmul.mubr.bf16.gmra.mrb[20].mxu0 %v1990_v27  ;;  %4196 = vmatmul.mubr.bf16.gmra.mrb[20].mxu1 %v1990_v27  ;;  %v9306_v27 = vld [vmem:[#allocation8 + $0x66c] ss:$16 sps:$4 sm:$0xff]  }
 0x166   : > { %3795 = vmatpush1.bf16.msra.mxu0 %v9247_v25  ;;  %4247 = vmatpush1.bf16.msra.mxu1 %v9250_v26  ;;  %v633_v25 = vld [vmem:[%s10727_s22 + $0x168] sm:$0xff]  ;;  %v9303_v26 = vld [vmem:[#allocation8 + $0x664] ss:$16 sps:$4 sm:$0xff]  }
 0x167   : > { %3796 = vmatprep.subr.bf16.mxu0 %v9255_v30  ;;  %4248 = vmatprep.subr.bf16.mxu1 %v9258_v31  ;;  %v1969_v28 = vpack.c.bf16 %v633_v25, %v625_v24  ;;  %v9304_v30 = vld [vmem:[#allocation8 + $0x668] ss:$16 sps:$4 sm:$0xff]   ;;  %v624_v31 = vld [vmem:[%s10727_s22 + $0x120] sm:$0xff] }
 0x168   : > { %3753 = vmatprep.mubr.bf16.mxu0 %v1999_v33  ;;  %4205 = vmatprep.mubr.bf16.mxu1 %v1999_v33  ;;  %v9309_v33 = vld [vmem:[#allocation8 + $0x684] ss:$16 sps:$4 sm:$0xff]   ;;  %v9349_v24 = vld [vmem:[#allocation8 + $0x760] ss:$16 sps:$4 sm:$0xff]  }
 0x16a   : > { %3797 = vmatpush1.bf16.msra.mxu0 %v9253_v32  ;;  %4249 = vmatpush1.bf16.msra.mxu1 %v9256_v34  ;;  %v632_v32 = vld [vmem:[%s10727_s22 + $0x160] sm:$0xff]  ;;  %v9312_v34 = vld [vmem:[#allocation8 + $0x68c] ss:$16 sps:$4 sm:$0xff]  }
 0x16b   : > { %3798 = vmatprep.subr.bf16.mxu0 %v9261_v37  ;;  %4250 = vmatprep.subr.bf16.mxu1 %v9264_v38  ;;  %v1968_v37 = vpack.c.bf16 %v632_v32, %v624_v31  ;;  %v641_v38 = vld [vmem:[%s10727_s22 + $0x1a8] sm:$0xff]  ;;  %v9355_v31 = vld [vmem:[#allocation8 + $0x780] ss:$16 sps:$4 sm:$0xff]  }
 0x16c   : > { %v9358_v32 = vld [vmem:[#allocation8 + $0x788] ss:$16 sps:$4 sm:$0xff]  }
 0x16d   : > { %3754 = vmatmul.mubr.bf16.gmra.mrb[24].mxu0 %v1998_v40  ;;  %4206 = vmatmul.mubr.bf16.gmra.mrb[24].mxu1 %v1998_v40  ;;  %v9315_v40 = vld [vmem:[#allocation8 + $0x6a4] ss:$16 sps:$4 sm:$0xff]  }
 0x16e   : > { %3799 = vmatpush1.bf16.msra.mxu0 %v9259_v39  ;;  %4251 = vmatpush1.bf16.msra.mxu1 %v9262_v43  ;;  %v649_v39 = vld [vmem:[%s10727_s22 + $0x1e8] sm:$0xff] }
 0x16f   : > { %3800 = vmatprep.subr.bf16.mxu0 %v9267_v44  ;;  %4252 = vmatprep.subr.bf16.mxu1 %v9270_v45  ;;  %v1977_v43 = vpack.c.bf16 %v649_v39, %v641_v38  ;;  %v9316_v44 = vld [vmem:[#allocation8 + $0x6a8] ss:$16 sps:$4 sm:$0xff]   ;;  %v640_v45 = vld [vmem:[%s10727_s22 + $0x1a0] sm:$0xff] }
 0x170   : > { %3763 = vmatprep.mubr.bf16.mxu0 %v2007_v48  ;;  %4215 = vmatprep.mubr.bf16.mxu1 %v2007_v48  ;;  %v9324_v48 = vld [vmem:[#allocation8 + $0x6cc] ss:$16 sps:$4 sm:$0xff]   ;;  %v9361_v39 = vld [vmem:[#allocation8 + $0x7a0] ss:$16 sps:$4 sm:$0xff]  }
 0x172   : > { %3801 = vmatpush1.bf16.msra.mxu0 %v9265_v46  ;;  %4253 = vmatpush1.bf16.msra.mxu1 %v9268_v47  ;;  %v648_v46 = vld [vmem:[%s10727_s22 + $0x1e0] sm:$0xff] }
 0x173   : > { %3802 = vmatprep.subr.bf16.mxu0 %v9273_v51  ;;  %4254 = vmatprep.subr.bf16.mxu1 %v9276_v52  ;;  %v9321_v47 = vld [vmem:[#allocation8 + $0x6c4] ss:$16 sps:$4 sm:$0xff]   ;;  %v1976_v50 = vpack.c.bf16 %v648_v46, %v640_v45  ;;  %v657_v51 = vld [vmem:[%s10727_s22 + $0x228] sm:$0xff]  ;;  %v9367_v45 = vld [vmem:[#allocation8 + $0x7c0] ss:$16 sps:$4 sm:$0xff]  }
 0x174   : > { %v665_v52 = vld [vmem:[%s10727_s22 + $0x268] sm:$0xff] }
 0x175   : > { %3764 = vmatmul.mubr.bf16.gmra.mrb[28].mxu0 %v2006_v53  ;;  %4216 = vmatmul.mubr.bf16.gmra.mrb[28].mxu1 %v2006_v53  ;;  %v9322_v53 = vld [vmem:[#allocation8 + $0x6c8] ss:$16 sps:$4 sm:$0xff]  }
 0x176   : > { %3803 = vmatpush1.bf16.msra.mxu0 %v9271_v56  ;;  %4255 = vmatpush1.bf16.msra.mxu1 %v9274_v57  ;;  %v9325_v56 = vld [vmem:[#allocation8 + $0x6e0] ss:$16 sps:$4 sm:$0xff]   ;;  %v9328_v57 = vld [vmem:[#allocation8 + $0x6e8] ss:$16 sps:$4 sm:$0xff]  }
 0x177   : > { %3804 = vmatprep.subr.bf16.mxu0 %v9279_v58  ;;  %4256 = vmatprep.subr.bf16.mxu1 %v9282_v59  ;;  %v1985_v58 = vpack.c.bf16 %v665_v52, %v657_v51  ;;  %v656_v59 = vld [vmem:[%s10727_s22 + $0x220] sm:$0xff]  ;;  %v9370_v46 = vld [vmem:[#allocation8 + $0x7c8] ss:$16 sps:$4 sm:$0xff]   ;;  %v9378_v51 = vld [vmem:[#allocation8 + $0x7ec] ss:$16 sps:$4 sm:$0xff]  }
 0x178   : > { %3806 = vmatprep.mubr.bf16.mxu0 %v1953_v62  ;;  %4258 = vmatprep.mubr.bf16.mxu1 %v1953_v62  ;;  %v9336_v62 = vld [vmem:[#allocation8 + $0x70c] ss:$16 sps:$4 sm:$0xff]   ;;  %v9373_v52 = vld [vmem:[#allocation8 + $0x7e0] ss:$16 sps:$4 sm:$0xff]  }
 0x17a   : > { %3805 = vmatpush1.bf16.msra.mxu0 %v9277_v60  ;;  %4257 = vmatpush1.bf16.msra.mxu1 %v9280_v61  ;;  %v664_v60 = vld [vmem:[%s10727_s22 + $0x260] sm:$0xff] }
 0x17b   : > { %3887 = vmatprep.subr.bf16.mxu0 %v9285_v1  ;;  %4339 = vmatprep.subr.bf16.mxu1 %v9288_v2  ;;  %v9333_v61 = vld [vmem:[#allocation8 + $0x704] ss:$16 sps:$4 sm:$0xff]   ;;  %v1984_v63 = vpack.c.bf16 %v664_v60, %v656_v59  ;;  %v681_v1 = vld [vmem:[%s10727_s22 + $0x2e8] sm:$0xff]  ;;  %v9331_v2 = vld [vmem:[#allocation8 + $0x700] ss:$16 sps:$4 sm:$0xff]  }
 0x17c   : > { %v9379_v59 = vld [vmem:[#allocation7] ss:$16 sps:$4 sm:$0xff]   ;;  %v9382_v60 = vld [vmem:[#allocation7 + $0x8] ss:$16 sps:$4 sm:$0xff]  }
 0x17d   : > { %3807 = vmatmul.mubr.bf16.vlgmr.msra.gmra.mrb[0].mxu0 %v1952_v4  ;;  %4259 = vmatmul.mubr.bf16.vlgmr.msra.gmra.mrb[0].mxu1 %v1952_v4  ;;  %v9339_v4 = vld [vmem:[#allocation8 + $0x724] ss:$16 sps:$4 sm:$0xff]  }
 0x17e   : > { %3888 = vmatpush1.bf16.msra.mxu0 %v9283_v3  ;;  %4340 = vmatpush1.bf16.msra.mxu1 %v9286_v5  ;;  %v9334_v3 = vld [vmem:[#allocation8 + $0x708] ss:$16 sps:$4 sm:$0xff]   ;;  %v9342_v5 = vld [vmem:[#allocation8 + $0x72c] ss:$16 sps:$4 sm:$0xff]  }
 0x17f   : > { %3889 = vmatprep.subr.bf16.mxu0 %v9291_v12  ;;  %4341 = vmatprep.subr.bf16.mxu1 %v9294_v13  ;;  %v1993_v12 = vpack.c.bf16 %v681_v1, %v673_v0  ;;  %v672_v13 = vld [vmem:[%s10727_s22 + $0x2a0] sm:$0xff]  ;;  %v9390_v1 = vld [vmem:[#allocation7 + $0x2c] ss:$16 sps:$4 sm:$0xff]  }
 0x180   : > { %3816 = vmatprep.mubr.bf16.mxu0 %v1961_v15  ;;  %4268 = vmatprep.mubr.bf16.mxu1 %v1961_v15  ;;  %v9345_v15 = vld [vmem:[#allocation8 + $0x744] ss:$16 sps:$4 sm:$0xff]  }
 0x181   : > { %v9387_v0 = vld [vmem:[#allocation7 + $0x24] ss:$16 sps:$4 sm:$0xff]  }
 0x182   : > { %3890 = vmatpush1.bf16.msra.mxu0 %v9289_v14  ;;  %4342 = vmatpush1.bf16.msra.mxu1 %v9292_v16  ;;  %v680_v14 = vld [vmem:[%s10727_s22 + $0x2e0] sm:$0xff]  ;;  %v9348_v16 = vld [vmem:[#allocation8 + $0x74c] ss:$16 sps:$4 sm:$0xff]  }
 0x183   : > { %3891 = vmatprep.subr.bf16.mxu0 %v9297_v19  ;;  %4343 = vmatprep.subr.bf16.mxu1 %v9300_v20  ;;  %v1992_v18 = vpack.c.bf16 %v680_v14, %v672_v13  ;;  %v9346_v19 = vld [vmem:[#allocation8 + $0x748] ss:$16 sps:$4 sm:$0xff]   ;;  %v9391_v13 = vld [vmem:[#allocation7 + $0x40] ss:$16 sps:$4 sm:$0xff]  }
 0x184   : > { %v689_v20 = vld [vmem:[%s10727_s22 + $0x328] sm:$0xff] }
 0x185   : > { %3817 = vmatmul.mubr.bf16.gmra.mrb[4].mxu0 %v1960_v23  ;;  %4269 = vmatmul.mubr.bf16.gmra.mrb[4].mxu1 %v1960_v23  ;;  %v9354_v23 = vld [vmem:[#allocation8 + $0x76c] ss:$16 sps:$4 sm:$0xff]   ;;  %v9394_v14 = vld [vmem:[#allocation7 + $0x48] ss:$16 sps:$4 sm:$0xff]  }
 0x186   : > { %3892 = vmatpush1.bf16.msra.mxu0 %v9295_v21  ;;  %4344 = vmatpush1.bf16.msra.mxu1 %v9298_v22  ;;  %v697_v21 = vld [vmem:[%s10727_s22 + $0x368] sm:$0xff]  ;;  %v9351_v22 = vld [vmem:[#allocation8 + $0x764] ss:$16 sps:$4 sm:$0xff]  }
 0x187   : > { %3893 = vmatprep.subr.bf16.mxu0 %v9303_v26  ;;  %4345 = vmatprep.subr.bf16.mxu1 %v9306_v27  ;;  %v2001_v25 = vpack.c.bf16 %v697_v21, %v689_v20  ;;  %v9352_v26 = vld [vmem:[#allocation8 + $0x768] ss:$16 sps:$4 sm:$0xff]   ;;  %v688_v27 = vld [vmem:[%s10727_s22 + $0x320] sm:$0xff] }
 0x188   : > { %3826 = vmatprep.mubr.bf16.mxu0 %v1969_v28  ;;  %4278 = vmatprep.mubr.bf16.mxu1 %v1969_v28  ;;  %v696_v28 = vld [vmem:[%s10727_s22 + $0x360] sm:$0xff]  ;;  %v10863_v20 = vld [vmem:[%s10718_s27 + $0xc8] sm:$0xff] }
 0x189   : > { %v9907_v21 = vld [vmem:[%s10727_s22 + $0x88] sm:$0xff] }
 0x18a   : > { %3894 = vmatpush1.bf16.msra.mxu0 %v9301_v29  ;;  %4346 = vmatpush1.bf16.msra.mxu1 %v9304_v30  ;;  %v9357_v29 = vld [vmem:[#allocation8 + $0x784] ss:$16 sps:$4 sm:$0xff]   ;;  %v9360_v30 = vld [vmem:[#allocation8 + $0x78c] ss:$16 sps:$4 sm:$0xff]  }
 0x18b   : > { %3895 = vmatprep.subr.bf16.mxu0 %v9309_v33  ;;  %4347 = vmatprep.subr.bf16.mxu1 %v9312_v34  ;;  %v2000_v33 = vpack.c.bf16 %v696_v28, %v688_v27  ;;  %v705_v34 = vld [vmem:[%s10727_s22 + $0x3a8] sm:$0xff]  ;;  %v1013_v27 = vmul.f32 %v10863_v20, %v10863_v20  ;;  %v10877_v28 = vld [vmem:[%s10718_s27 + $0xc0] sm:$0xff] }
 0x18d   : > { %3827 = vmatmul.mubr.bf16.gmra.mrb[8].mxu0 %v1968_v37  ;;  %4279 = vmatmul.mubr.bf16.gmra.mrb[8].mxu1 %v1968_v37  ;;  %v9366_v37 = vld [vmem:[#allocation8 + $0x7ac] ss:$16 sps:$4 sm:$0xff]  }
 0x18e   : > { %3896 = vmatpush1.bf16.msra.mxu0 %v9307_v35  ;;  %4348 = vmatpush1.bf16.msra.mxu1 %v9310_v36  ;;  %v713_v35 = vld [vmem:[%s10727_s22 + $0x3e8] sm:$0xff]  ;;  %v9363_v36 = vld [vmem:[#allocation8 + $0x7a4] ss:$16 sps:$4 sm:$0xff]  }
 0x18f   : > { %3897 = vmatprep.subr.bf16.mxu0 %v9315_v40  ;;  %4349 = vmatprep.subr.bf16.mxu1 %v9318_v41  ;;  %v2009_v38 = vpack.c.bf16 %v713_v35, %v705_v34  ;;  %v9364_v40 = vld [vmem:[#allocation8 + $0x7a8] ss:$16 sps:$4 sm:$0xff]   ;;  %v704_v41 = vld [vmem:[%s10727_s22 + $0x3a0] sm:$0xff] }
 0x190   : > { %3836 = vmatprep.mubr.bf16.mxu0 %v1977_v43  ;;  %4288 = vmatprep.mubr.bf16.mxu1 %v1977_v43  ;;  %v9369_v43 = vld [vmem:[#allocation8 + $0x7c4] ss:$16 sps:$4 sm:$0xff]   ;;  %v9397_v35 = vld [vmem:[#allocation7 + $0x60] ss:$16 sps:$4 sm:$0xff]  }
 0x192   : > { %3898 = vmatpush1.bf16.msra.mxu0 %v9313_v42  ;;  %4350 = vmatpush1.bf16.msra.mxu1 %v9316_v44  ;;  %v712_v42 = vld [vmem:[%s10727_s22 + $0x3e0] sm:$0xff]  ;;  %v9372_v44 = vld [vmem:[#allocation8 + $0x7cc] ss:$16 sps:$4 sm:$0xff]  }
 0x193   : > { %3899 = vmatprep.subr.bf16.mxu0 %v9321_v47  ;;  %4351 = vmatprep.subr.bf16.mxu1 %v9324_v48  ;;  %v2008_v47 = vpack.c.bf16 %v712_v42, %v704_v41  ;;  %v595_v48 = vld [vmem:[%s10727_s22 + $0x38] sm:$0xff] }
 0x195   : > { %3837 = vmatmul.mubr.bf16.gmra.mrb[12].mxu0 %v1976_v50  ;;  %4289 = vmatmul.mubr.bf16.gmra.mrb[12].mxu1 %v1976_v50  ;;  %v9375_v50 = vld [vmem:[#allocation8 + $0x7e4] ss:$16 sps:$4 sm:$0xff]  }
 0x196   : > { %3900 = vmatpush1.bf16.msra.mxu0 %v9319_v49  ;;  %4352 = vmatpush1.bf16.msra.mxu1 %v9322_v53  ;;  %v603_v49 = vld [vmem:[%s10727_s22 + $0x78] sm:$0xff] }
 0x197   : > { %3901 = vmatprep.subr.bf16.mxu0 %v9327_v54  ;;  %4353 = vmatprep.subr.bf16.mxu1 %v9330_v55  ;;  %v1955_v53 = vpack.c.bf16 %v603_v49, %v595_v48  ;;  %v9376_v54 = vld [vmem:[#allocation8 + $0x7e8] ss:$16 sps:$4 sm:$0xff]   ;;  %v594_v55 = vld [vmem:[%s10727_s22 + $0x30] sm:$0xff] }
 0x198   : > { %3846 = vmatprep.mubr.bf16.mxu0 %v1985_v58  ;;  %4298 = vmatprep.mubr.bf16.mxu1 %v1985_v58  ;;  %v9384_v58 = vld [vmem:[#allocation7 + $0xc] ss:$16 sps:$4 sm:$0xff]   ;;  %v9403_v49 = vld [vmem:[#allocation7 + $0x80] ss:$16 sps:$4 sm:$0xff]  }
 0x199   : > { %v10901_v48 = vld [vmem:[%s10718_s27 + $0x148] sm:$0xff] }
 0x19a   : > { %3902 = vmatpush1.bf16.msra.mxu0 %v9325_v56  ;;  %4354 = vmatpush1.bf16.msra.mxu1 %v9328_v57  ;;  %v602_v56 = vld [vmem:[%s10727_s22 + $0x70] sm:$0xff] }
 0x19b   : > { %3903 = vmatprep.subr.bf16.mxu0 %v9333_v61  ;;  %4355 = vmatprep.subr.bf16.mxu1 %v9336_v62  ;;  %v9381_v57 = vld [vmem:[#allocation7 + $0x4] ss:$16 sps:$4 sm:$0xff]   ;;  %v1954_v61 = vpack.c.bf16 %v602_v56, %v594_v55  ;;  %v611_v62 = vld [vmem:[%s10727_s22 + $0xb8] sm:$0xff] }
 0x19c   : > { %v10910_v56 = vld [vmem:[%s10718_s27 + $0x100] sm:$0xff] }
 0x19d   : > { %3847 = vmatmul.mubr.bf16.gmra.mrb[16].mxu0 %v1984_v63  ;;  %4299 = vmatmul.mubr.bf16.gmra.mrb[16].mxu1 %v1984_v63  ;;  %v619_v63 = vld [vmem:[%s10727_s22 + $0xf8] sm:$0xff] }
 0x19e   : > { %3904 = vmatpush1.bf16.msra.mxu0 %v9331_v2  ;;  %4356 = vmatpush1.bf16.msra.mxu1 %v9334_v3  ;;  %v9385_v2 = vld [vmem:[#allocation7 + $0x20] ss:$16 sps:$4 sm:$0xff]   ;;  %v9388_v3 = vld [vmem:[#allocation7 + $0x28] ss:$16 sps:$4 sm:$0xff]  }
 0x19f   : > { %3905 = vmatprep.subr.bf16.mxu0 %v9339_v4  ;;  %4357 = vmatprep.subr.bf16.mxu1 %v9342_v5  ;;  %v1963_v4 = vpack.c.bf16 %v619_v63, %v611_v62  ;;  %v610_v5 = vld [vmem:[%s10727_s22 + $0xb0] sm:$0xff]  ;;  %v9913_v62 = vld [vmem:[%s10727_s22 + $0x100] sm:$0xff] }
 0x1a0   : > { %3856 = vmatprep.mubr.bf16.mxu0 %v1993_v12  ;;  %4308 = vmatprep.mubr.bf16.mxu1 %v1993_v12  ;;  %v9396_v12 = vld [vmem:[#allocation7 + $0x4c] ss:$16 sps:$4 sm:$0xff]   ;;  %v748_v63 = vmul.f32 %v9913_v62, %v10910_v56 }
 0x1a2   : > { %3906 = vmatpush1.bf16.msra.mxu0 %v9337_v8  ;;  %4358 = vmatpush1.bf16.msra.mxu1 %v9340_v11  ;;  %v618_v8 = vld [vmem:[%s10727_s22 + $0xf0] sm:$0xff] }
 0x1a3   : > { %3907 = vmatprep.subr.bf16.mxu0 %v9345_v15  ;;  %4359 = vmatprep.subr.bf16.mxu1 %v9348_v16  ;;  %v9393_v11 = vld [vmem:[#allocation7 + $0x44] ss:$16 sps:$4 sm:$0xff]   ;;  %v627_v15 = vld [vmem:[%s10727_s22 + $0x138] sm:$0xff]  ;;  %v10859_v16 = vld [vmem:[%s10718_s27 + $0x88] sm:$0xff] }
 0x1a5   : > { %3857 = vmatmul.mubr.bf16.gmra.mrb[20].mxu0 %v1992_v18  ;;  %4309 = vmatmul.mubr.bf16.gmra.mrb[20].mxu1 %v1992_v18  ;;  %v9399_v18 = vld [vmem:[#allocation7 + $0x64] ss:$16 sps:$4 sm:$0xff]  }
 0x1a6   : > { %3908 = vmatpush1.bf16.msra.mxu0 %v9343_v17  ;;  %4360 = vmatpush1.bf16.msra.mxu1 %v9346_v19  ;;  %v1962_v17 = vpack.c.bf16 %v618_v8, %v610_v5  ;;  %v635_v19 = vld [vmem:[%s10727_s22 + $0x178] sm:$0xff] }
 0x1a7   : > { %3909 = vmatprep.subr.bf16.mxu0 %v9351_v22  ;;  %4361 = vmatprep.subr.bf16.mxu1 %v9354_v23  ;;  %v733_v22 = vmul.f32 %v9907_v21, %v10859_v16  ;;  %v1005_v23 = vmul.f32 %v10859_v16, %v10859_v16  ;;  %v9414_v5 = vld [vmem:[#allocation7 + $0xac] ss:$16 sps:$4 sm:$0xff]   ;;  %v9417_v21 = vld [vmem:[#allocation7 + $0xc4] ss:$16 sps:$4 sm:$0xff]  }
 0x1a8   : > { %3866 = vmatprep.mubr.bf16.mxu0 %v2001_v25  ;;  %4318 = vmatprep.mubr.bf16.mxu1 %v2001_v25  ;;  %v9908_v25 = vld [vmem:[%s10727_s22 + $0xc8] sm:$0xff] }
 0x1aa   : > { %3910 = vmatpush1.bf16.msra.mxu0 %v9349_v24  ;;  %4362 = vmatpush1.bf16.msra.mxu1 %v9352_v26  ;;  %v10870_v24 = vld [vmem:[%s10718_s27 + $0x80] sm:$0xff]  ;;  %v741_v26 = vmul.f32 %v9908_v25, %v10863_v20  ;;  %v10941_v25 = vld [vmem:[%s10718_s27 + $0x1c8] sm:$0xff] }
 0x1ab   : > { %3911 = vmatprep.subr.bf16.mxu0 %v9357_v29  ;;  %4363 = vmatprep.subr.bf16.mxu1 %v9360_v30  ;;  %v9402_v29 = vld [vmem:[#allocation7 + $0x6c] ss:$16 sps:$4 sm:$0xff]   ;;  %v9909_v30 = vld [vmem:[%s10727_s22 + $0x80] sm:$0xff]  ;;  %v1004_v34 = vmul.f32 %v10870_v24, %v10870_v24 }
 0x1ad   : > { %3867 = vmatmul.mubr.bf16.gmra.mrb[24].mxu0 %v2000_v33  ;;  %4319 = vmatmul.mubr.bf16.gmra.mrb[24].mxu1 %v2000_v33 }
 0x1ae   : > { %3912 = vmatpush1.bf16.msra.mxu0 %v9355_v31  ;;  %4364 = vmatpush1.bf16.msra.mxu1 %v9358_v32  ;;  %v732_v31 = vmul.f32 %v9909_v30, %v10870_v24  ;;  %v9910_v32 = vld [vmem:[%s10727_s22 + $0xc0] sm:$0xff] }
 0x1af   : > { %3913 = vmatprep.subr.bf16.mxu0 %v9363_v36  ;;  %4365 = vmatprep.subr.bf16.mxu1 %v9366_v37  ;;  %v740_v33 = vmul.f32 %v9910_v32, %v10877_v28  ;;  %v9400_v36 = vld [vmem:[#allocation7 + $0x68] ss:$16 sps:$4 sm:$0xff]   ;;  %v1971_v37 = vpack.c.bf16 %v635_v19, %v627_v15  ;;  %v642_v15 = vld [vmem:[%s10727_s22 + $0x1b0] sm:$0xff]  ;;  %v10950_v32 = vld [vmem:[%s10718_s27 + $0x180] sm:$0xff] }
 0x1b0   : > { %3876 = vmatprep.mubr.bf16.mxu0 %v2009_v38  ;;  %4328 = vmatprep.mubr.bf16.mxu1 %v2009_v38  ;;  %v1012_v38 = vmul.f32 %v10877_v28, %v10877_v28  ;;  %v10889_v41 = vadd.f32 %v733_v22, %v732_v31  ;;  %v650_v19 = vld [vmem:[%s10727_s22 + $0x1f0] sm:$0xff]  ;;  %v9420_v22 = vld [vmem:[#allocation7 + $0xcc] ss:$16 sps:$4 sm:$0xff]  }
 0x1b1   : > { %v10891_v42 = vadd.f32 %v741_v26, %v740_v33  ;;  %v9915_v26 = vld [vmem:[%s10727_s22 + $0x188] sm:$0xff]  ;;  %v9415_v33 = vld [vmem:[#allocation7 + $0xc0] ss:$16 sps:$4 sm:$0xff]  }
 0x1b2   : > { %3914 = vmatpush1.bf16.msra.mxu0 %v9361_v39  ;;  %4366 = vmatpush1.bf16.msra.mxu1 %v9364_v40  ;;  %v626_v39 = vld [vmem:[%s10727_s22 + $0x130] sm:$0xff]  ;;  %13741 = vst [vmem:[#allocation27_spill] sm:$0xff] %v10889_v41 }
 0x1b3   : > { %3915 = vmatprep.subr.bf16.mxu0 %v9369_v43  ;;  %4367 = vmatprep.subr.bf16.mxu1 %v9372_v44  ;;  %v634_v40 = vld [vmem:[%s10727_s22 + $0x170] sm:$0xff]  ;;  %v10893_v43 = vadd.f32 %v1005_v23, %v1004_v34  ;;  %v10938_v23 = vld [vmem:[%s10718_s27 + $0x188] sm:$0xff] }
 0x1b4   : > { %v9405_v44 = vld [vmem:[#allocation7 + $0x84] ss:$16 sps:$4 sm:$0xff]   ;;  %v1037_v31 = vmul.f32 %v10938_v23, %v10938_v23  ;;  %v9418_v34 = vld [vmem:[#allocation7 + $0xc8] ss:$16 sps:$4 sm:$0xff]  }
 0x1b5   : > { %3877 = vmatmul.mubr.bf16.gmra.mrb[28].mxu0 %v2008_v47  ;;  %4329 = vmatmul.mubr.bf16.gmra.mrb[28].mxu1 %v2008_v47  ;;  %v10898_v47 = vld [vmem:[%s10718_s27 + $0x108] sm:$0xff]  ;;  %v698_v41 = vld [vmem:[%s10727_s22 + $0x370] sm:$0xff] }
 0x1b6   : > { %3916 = vmatpush1.bf16.msra.mxu0 %v9367_v45  ;;  %4368 = vmatpush1.bf16.msra.mxu1 %v9370_v46  ;;  %v10895_v45 = vadd.f32 %v1013_v27, %v1012_v38  ;;  %v9408_v46 = vld [vmem:[#allocation7 + $0x8c] ss:$16 sps:$4 sm:$0xff]   ;;  %v1021_v55 = vmul.f32 %v10898_v47, %v10898_v47  ;;  %v765_v27 = vmul.f32 %v9915_v26, %v10938_v23  ;;  %v9921_v26 = vld [vmem:[%s10727_s22 + $0x200] sm:$0xff] }
 0x1b7   : > { %3917 = vmatprep.subr.bf16.mxu0 %v9375_v50  ;;  %4369 = vmatprep.subr.bf16.mxu1 %v9378_v51  ;;  %v9406_v50 = vld [vmem:[#allocation7 + $0x88] ss:$16 sps:$4 sm:$0xff]  }
 0x1b8   : > { %3919 = vmatprep.mubr.bf16.mxu0 %v1955_v53  ;;  %4371 = vmatprep.mubr.bf16.mxu1 %v1955_v53  ;;  %v9911_v51 = vld [vmem:[%s10727_s22 + $0x108] sm:$0xff] }
 0x1b9   : > { %v9912_v53 = vld [vmem:[%s10727_s22 + $0x148] sm:$0xff] }
 0x1ba   : > { %3918 = vmatpush1.bf16.msra.mxu0 %v9373_v52  ;;  %4370 = vmatpush1.bf16.msra.mxu1 %v9376_v54  ;;  %v749_v52 = vmul.f32 %v9911_v51, %v10898_v47  ;;  %v757_v54 = vmul.f32 %v9912_v53, %v10901_v48 }
 0x1bb   : > { %5732 = vmatprep.subr.bf16.mxu0 %v9381_v57  ;;  %6184 = vmatprep.subr.bf16.mxu1 %v9384_v58  ;;  %v10913_v57 = vld [vmem:[%s10718_s27 + $0x140] sm:$0xff]  ;;  %v1970_v58 = vpack.c.bf16 %v634_v40, %v626_v39  ;;  %v1978_v39 = vpack.c.bf16 %v650_v19, %v642_v15  ;;  %v659_v40 = vld [vmem:[%s10727_s22 + $0x238] sm:$0xff] }
 0x1bc   : > { %v10927_v8 = vadd.f32 %v749_v52, %v748_v63  ;;  %v9423_v52 = vld [vmem:[#allocation7 + $0xe4] ss:$16 sps:$4 sm:$0xff]  }
 0x1bd   : > { %3920 = vmatmul.mubr.bf16.vlgmr.msra.gmra.mrb[0].mxu0 %v1954_v61  ;;  %4372 = vmatmul.mubr.bf16.vlgmr.msra.gmra.mrb[0].mxu1 %v1954_v61  ;;  %v1029_v61 = vmul.f32 %v10901_v48, %v10901_v48  ;;  %v658_v63 = vld [vmem:[%s10727_s22 + $0x230] sm:$0xff] }
 0x1be   : > { %5733 = vmatpush1.bf16.msra.mxu0 %v9379_v59  ;;  %6185 = vmatpush1.bf16.msra.mxu1 %v9382_v60  ;;  %v643_v59 = vld [vmem:[%s10727_s22 + $0x1b8] sm:$0xff] }
 0x1bf   : > { %5734 = vmatprep.subr.bf16.mxu0 %v9387_v0  ;;  %6186 = vmatprep.subr.bf16.mxu1 %v9390_v1  ;;  %v651_v60 = vld [vmem:[%s10727_s22 + $0x1f8] sm:$0xff]  ;;  %v9914_v0 = vld [vmem:[%s10727_s22 + $0x140] sm:$0xff] }
 0x1c0   : > { %3929 = vmatprep.mubr.bf16.mxu0 %v1963_v4  ;;  %4381 = vmatprep.mubr.bf16.mxu1 %v1963_v4  ;;  %v756_v1 = vmul.f32 %v9914_v0, %v10913_v57  ;;  %v1028_v4 = vmul.f32 %v10913_v57, %v10913_v57  ;;  %v666_v0 = vld [vmem:[%s10727_s22 + $0x270] sm:$0xff] }
 0x1c2   : > { %5735 = vmatpush1.bf16.msra.mxu0 %v9385_v2  ;;  %6187 = vmatpush1.bf16.msra.mxu1 %v9388_v3  ;;  %v9411_v2 = vld [vmem:[#allocation7 + $0xa4] ss:$16 sps:$4 sm:$0xff]   ;;  %v1020_v3 = vmul.f32 %v10910_v56, %v10910_v56 }
 0x1c3   : > { %5736 = vmatprep.subr.bf16.mxu0 %v9393_v11  ;;  %6188 = vmatprep.subr.bf16.mxu1 %v9396_v12  ;;  %v10929_v11 = vadd.f32 %v757_v54, %v756_v1  ;;  %v9409_v12 = vld [vmem:[#allocation7 + $0xa0] ss:$16 sps:$4 sm:$0xff]   ;;  %v9426_v54 = vld [vmem:[#allocation7 + $0xec] ss:$16 sps:$4 sm:$0xff]  }
 0x1c4   : > { %v10978_v1 = vld [vmem:[%s10718_s27 + $0x208] sm:$0xff] }
 0x1c5   : > { %3930 = vmatmul.mubr.bf16.gmra.mrb[4].mxu0 %v1962_v17  ;;  %4382 = vmatmul.mubr.bf16.gmra.mrb[4].mxu1 %v1962_v17  ;;  %v10932_v17 = vadd.f32 %v1021_v55, %v1020_v3  ;;  %v10981_v3 = vld [vmem:[%s10718_s27 + $0x248] sm:$0xff] }
 0x1c6   : > { %5737 = vmatpush1.bf16.msra.mxu0 %v9391_v13  ;;  %6189 = vmatpush1.bf16.msra.mxu1 %v9394_v14  ;;  %v9412_v13 = vld [vmem:[#allocation7 + $0xa8] ss:$16 sps:$4 sm:$0xff]   ;;  %v1979_v14 = vpack.c.bf16 %v651_v60, %v643_v59  ;;  %v9421_v60 = vld [vmem:[#allocation7 + $0xe0] ss:$16 sps:$4 sm:$0xff]   ;;  %v1061_v19 = vmul.f32 %v10981_v3, %v10981_v3 }
 0x1c7   : > { %5738 = vmatprep.subr.bf16.mxu0 %v9399_v18  ;;  %6190 = vmatprep.subr.bf16.mxu1 %v9402_v29  ;;  %v10934_v18 = vadd.f32 %v1029_v61, %v1028_v4  ;;  %v9916_v29 = vld [vmem:[%s10727_s22 + $0x1c8] sm:$0xff] }
 0x1c8   : > { %3939 = vmatprep.mubr.bf16.mxu0 %v1971_v37  ;;  %4391 = vmatprep.mubr.bf16.mxu1 %v1971_v37  ;;  %v773_v30 = vmul.f32 %v9916_v29, %v10941_v25  ;;  %v9917_v37 = vld [vmem:[%s10727_s22 + $0x180] sm:$0xff]  ;;  %v9424_v61 = vld [vmem:[#allocation7 + $0xe8] ss:$16 sps:$4 sm:$0xff]  }
 0x1c9   : > { %v764_v38 = vmul.f32 %v9917_v37, %v10950_v32  ;;  %v9919_v4 = vld [vmem:[%s10727_s22 + $0x208] sm:$0xff]  ;;  %v9922_v29 = vld [vmem:[%s10727_s22 + $0x240] sm:$0xff]  ;;  %v1986_v37 = vpack.c.bf16 %v666_v0, %v658_v63 }
 0x1ca   : > { %5739 = vmatpush1.bf16.msra.mxu0 %v9397_v35  ;;  %6191 = vmatpush1.bf16.msra.mxu1 %v9400_v36  ;;  %v1045_v35 = vmul.f32 %v10941_v25, %v10941_v25  ;;  %v10955_v36 = vld [vmem:[%s10718_s27 + $0x1c0] sm:$0xff] }
 0x1cb   : > { %5740 = vmatprep.subr.bf16.mxu0 %v9405_v44  ;;  %6192 = vmatprep.subr.bf16.mxu1 %v9408_v46  ;;  %v667_v44 = vld [vmem:[%s10727_s22 + $0x278] sm:$0xff]  ;;  %v9918_v46 = vld [vmem:[%s10727_s22 + $0x1c0] sm:$0xff]  ;;  %v1044_v51 = vmul.f32 %v10955_v36, %v10955_v36  ;;  %v10967_v53 = vadd.f32 %v765_v27, %v764_v38 }
 0x1cc   : > { %v1987_v62 = vpack.c.bf16 %v667_v44, %v659_v40  ;;  %v9427_v38 = vld [vmem:[#allocation7 + $0x100] ss:$16 sps:$4 sm:$0xff]  }
 0x1cd   : > { %3940 = vmatmul.mubr.bf16.gmra.mrb[8].mxu0 %v1970_v58  ;;  %4392 = vmatmul.mubr.bf16.gmra.mrb[8].mxu1 %v1970_v58  ;;  %v10973_v59 = vadd.f32 %v1045_v35, %v1044_v51  ;;  %v9438_v51 = vld [vmem:[#allocation7 + $0x12c] ss:$16 sps:$4 sm:$0xff]   ;;  %v9433_v63 = vld [vmem:[#allocation7 + $0x120] ss:$16 sps:$4 sm:$0xff]  }
 0x1ce   : > { %5741 = vmatpush1.bf16.msra.mxu0 %v9403_v49  ;;  %6193 = vmatpush1.bf16.msra.mxu1 %v9406_v50  ;;  %v772_v49 = vmul.f32 %v9918_v46, %v10955_v36  ;;  %v1036_v50 = vmul.f32 %v10950_v32, %v10950_v32 }
 0x1cf   : > { %5742 = vmatprep.subr.bf16.mxu0 %v9411_v2  ;;  %6194 = vmatprep.subr.bf16.mxu1 %v9414_v5  ;;  %v9429_v2 = vld [vmem:[#allocation7 + $0x104] ss:$16 sps:$4 sm:$0xff]   ;;  %v781_v5 = vmul.f32 %v9919_v4, %v10978_v1  ;;  %v9924_v4 = vld [vmem:[%s10727_s22 + $0x2c8] sm:$0xff] }
 0x1d0   : > { %3949 = vmatprep.mubr.bf16.mxu0 %v1979_v14  ;;  %4401 = vmatprep.mubr.bf16.mxu1 %v1979_v14  ;;  %v10969_v55 = vadd.f32 %v773_v30, %v772_v49  ;;  %v10971_v58 = vadd.f32 %v1037_v31, %v1036_v50  ;;  %v9920_v14 = vld [vmem:[%s10727_s22 + $0x248] sm:$0xff]  ;;  %v9435_v49 = vld [vmem:[#allocation7 + $0x124] ss:$16 sps:$4 sm:$0xff]  }
 0x1d1   : > { %v789_v15 = vmul.f32 %v9920_v14, %v10981_v3  ;;  %v11030_v14 = vld [vmem:[%s10718_s27 + $0x280] sm:$0xff] }
 0x1d2   : > { %5743 = vmatpush1.bf16.msra.mxu0 %v9409_v12  ;;  %6195 = vmatpush1.bf16.msra.mxu1 %v9412_v13  ;;  %v1053_v12 = vmul.f32 %v10978_v1, %v10978_v1  ;;  %v10988_v13 = vld [vmem:[%s10718_s27 + $0x200] sm:$0xff]  ;;  %13743 = vst [vmem:[#allocation29_spill] sm:$0xff] %v11030_v14 }
 0x1d3   : > { %5744 = vmatprep.subr.bf16.mxu0 %v9417_v21  ;;  %6196 = vmatprep.subr.bf16.mxu1 %v9420_v22  ;;  %v10995_v21 = vld [vmem:[%s10718_s27 + $0x240] sm:$0xff]  ;;  %v9432_v22 = vld [vmem:[#allocation7 + $0x10c] ss:$16 sps:$4 sm:$0xff]   ;;  %v780_v27 = vmul.f32 %v9921_v26, %v10988_v13  ;;  %v1052_v31 = vmul.f32 %v10988_v13, %v10988_v13 }
 0x1d4   : > { %v788_v30 = vmul.f32 %v9922_v29, %v10995_v21  ;;  %v1060_v35 = vmul.f32 %v10995_v21, %v10995_v21  ;;  %v9925_v26 = vld [vmem:[%s10727_s22 + $0x280] sm:$0xff] }
 0x1d5   : > { %3950 = vmatmul.mubr.bf16.gmra.mrb[12].mxu0 %v1978_v39  ;;  %4402 = vmatmul.mubr.bf16.gmra.mrb[12].mxu1 %v1978_v39  ;;  %v9430_v39 = vld [vmem:[#allocation7 + $0x108] ss:$16 sps:$4 sm:$0xff]   ;;  %v11007_v40 = vadd.f32 %v781_v5, %v780_v27  ;;  %v11011_v46 = vadd.f32 %v1053_v12, %v1052_v31  ;;  %v796_v27 = vmul.f32 %v9925_v26, %v11030_v14  ;;  %v9926_v29 = vld [vmem:[%s10727_s22 + $0x2c0] sm:$0xff] }
 0x1d6   : > { %5745 = vmatpush1.bf16.msra.mxu0 %v9415_v33  ;;  %6197 = vmatpush1.bf16.msra.mxu1 %v9418_v34  ;;  %v675_v33 = vld [vmem:[%s10727_s22 + $0x2b8] sm:$0xff]  ;;  %v11009_v44 = vadd.f32 %v789_v15, %v788_v30  ;;  %v11013_v50 = vadd.f32 %v1061_v19, %v1060_v35  ;;  %v11033_v15 = vld [vmem:[%s10718_s27 + $0x2c0] sm:$0xff]  ;;  %v674_v19 = vld [vmem:[%s10727_s22 + $0x2b0] sm:$0xff] }
 0x1d7   : > { %5746 = vmatprep.subr.bf16.mxu0 %v9423_v52  ;;  %6198 = vmatprep.subr.bf16.mxu1 %v9426_v54  ;;  %v683_v34 = vld [vmem:[%s10727_s22 + $0x2f8] sm:$0xff]  ;;  %v11016_v54 = vld [vmem:[%s10718_s27 + $0x288] sm:$0xff]  ;;  %13744 = vst [vmem:[#allocation30_spill] sm:$0xff] %v11033_v15  ;;  %v804_v30 = vmul.f32 %v9926_v29, %v11033_v15  ;;  %v9441_v31 = vld [vmem:[#allocation7 + $0x144] ss:$16 sps:$4 sm:$0xff]  }
 0x1d8   : > { %3959 = vmatprep.mubr.bf16.mxu0 %v1987_v62  ;;  %4411 = vmatprep.mubr.bf16.mxu1 %v1987_v62  ;;  %v1995_v52 = vpack.c.bf16 %v683_v34, %v675_v33  ;;  %v11019_v62 = vld [vmem:[%s10718_s27 + $0x2c8] sm:$0xff]  ;;  %v1068_v33 = vmul.f32 %v11030_v14, %v11030_v14  ;;  %v1076_v34 = vmul.f32 %v11033_v15, %v11033_v15 }
 0x1d9   : > { %13742 = vst [vmem:[#allocation28_spill] sm:$0xff] %v11019_v62  ;;  %v805_v5 = vmul.f32 %v9924_v4, %v11019_v62  ;;  %v1077_v12 = vmul.f32 %v11019_v62, %v11019_v62  ;;  %v9444_v35 = vld [vmem:[#allocation7 + $0x14c] ss:$16 sps:$4 sm:$0xff]  }
 0x1da   : > { %5747 = vmatpush1.bf16.msra.mxu0 %v9421_v60  ;;  %6199 = vmatpush1.bf16.msra.mxu1 %v9424_v61  ;;  %v9436_v60 = vld [vmem:[#allocation7 + $0x128] ss:$16 sps:$4 sm:$0xff]   ;;  %v9450_v29 = vld [vmem:[#allocation7 + $0x16c] ss:$16 sps:$4 sm:$0xff]  }
 0x1db   : > { %5748 = vmatprep.subr.bf16.mxu0 %v9429_v2  ;;  %6200 = vmatprep.subr.bf16.mxu1 %v9432_v22  ;;  %v9923_v61 = vld [vmem:[%s10727_s22 + $0x288] sm:$0xff]  ;;  %v1069_v2 = vmul.f32 %v11016_v54, %v11016_v54  ;;  %v682_v22 = vld [vmem:[%s10727_s22 + $0x2f0] sm:$0xff]  ;;  %v11051_v26 = vadd.f32 %v1077_v12, %v1076_v34 }
 0x1dc   : > { %v797_v0 = vmul.f32 %v9923_v61, %v11016_v54  ;;  %v11047_v61 = vadd.f32 %v805_v5, %v804_v30  ;;  %v11056_v5 = vld [vmem:[%s10718_s27 + $0x308] sm:$0xff]  ;;  %v11062_v30 = vld [vmem:[%s10718_s27 + $0x300] sm:$0xff] }
 0x1dd   : > { %3960 = vmatmul.mubr.bf16.gmra.mrb[16].mxu0 %v1986_v37  ;;  %4412 = vmatmul.mubr.bf16.gmra.mrb[16].mxu1 %v1986_v37  ;;  %v11049_v4 = vadd.f32 %v1069_v2, %v1068_v33  ;;  %13745 = vst [vmem:[#allocation31_spill] sm:$0xff] %v11056_v5  ;;  %13747 = vst [vmem:[#allocation33_spill] sm:$0xff] %v11062_v30  ;;  %v9927_v2 = vld [vmem:[%s10727_s22 + $0x308] sm:$0xff]  ;;  %v9445_v33 = vld [vmem:[#allocation7 + $0x160] ss:$16 sps:$4 sm:$0xff]   ;;  %v1084_v6 = vmul.f32 %v11062_v30, %v11062_v30 }
 0x1de   : > { %5749 = vmatpush1.bf16.msra.mxu0 %v9427_v38  ;;  %6201 = vmatpush1.bf16.msra.mxu1 %v9430_v39  ;;  %v11045_v37 = vadd.f32 %v797_v0, %v796_v27  ;;  %v9439_v38 = vld [vmem:[#allocation7 + $0x140] ss:$16 sps:$4 sm:$0xff]   ;;  %v9442_v39 = vld [vmem:[#allocation7 + $0x148] ss:$16 sps:$4 sm:$0xff]   ;;  %v813_v12 = vmul.f32 %v9927_v2, %v11056_v5 }
 0x1df   : > { %5750 = vmatprep.subr.bf16.mxu0 %v9435_v49  ;;  %6202 = vmatprep.subr.bf16.mxu1 %v9438_v51  ;;  %v1994_v49 = vpack.c.bf16 %v682_v22, %v674_v19  ;;  %v9447_v51 = vld [vmem:[#allocation7 + $0x164] ss:$16 sps:$4 sm:$0xff]   ;;  %v691_v0 = vld [vmem:[%s10727_s22 + $0x338] sm:$0xff]  ;;  %v9928_v19 = vld [vmem:[%s10727_s22 + $0x348] sm:$0xff] }
 0x1e0   : > { %3969 = vmatprep.mubr.bf16.mxu0 %v1995_v52  ;;  %4421 = vmatprep.mubr.bf16.mxu1 %v1995_v52  ;;  %v699_v27 = vld [vmem:[%s10727_s22 + $0x378] sm:$0xff]  ;;  %v11059_v52 = vld [vmem:[%s10718_s27 + $0x348] sm:$0xff] }
 0x1e1   : > { %13746 = vst [vmem:[#allocation32_spill] sm:$0xff] %v11059_v52  ;;  %v821_v22 = vmul.f32 %v9928_v19, %v11059_v52  ;;  %v9448_v34 = vld [vmem:[#allocation7 + $0x168] ss:$16 sps:$4 sm:$0xff]   ;;  %v2003_v10 = vpack.c.bf16 %v699_v27, %v691_v0  ;;  %v690_v19 = vld [vmem:[%s10727_s22 + $0x330] sm:$0xff] }
 0x1e2   : > { %5751 = vmatpush1.bf16.msra.mxu0 %v9433_v63  ;;  %6203 = vmatpush1.bf16.msra.mxu1 %v9436_v60  ;;  %v1085_v63 = vmul.f32 %v11056_v5, %v11056_v5  ;;  %v11071_v60 = vld [vmem:[%s10718_s27 + $0x340] sm:$0xff]  ;;  %v9462_v5 = vld [vmem:[#allocation7 + $0x1ac] ss:$16 sps:$4 sm:$0xff]  }
 0x1e3   : > { %5752 = vmatprep.subr.bf16.mxu0 %v9441_v31  ;;  %6204 = vmatprep.subr.bf16.mxu1 %v9444_v35  ;;  %13748 = vst [vmem:[#allocation34_spill] sm:$0xff] %v11071_v60  ;;  %v1093_v31 = vmul.f32 %v11059_v52, %v11059_v52  ;;  %v9929_v35 = vld [vmem:[%s10727_s22 + $0x300] sm:$0xff]  ;;  %v820_v2 = vmul.f32 %v9930_v7, %v11071_v60 }
 0x1e4   : > { %v812_v9 = vmul.f32 %v9929_v35, %v11062_v30  ;;  %v1092_v0 = vmul.f32 %v11071_v60, %v11071_v60  ;;  %v9453_v27 = vld [vmem:[#allocation7 + $0x184] ss:$16 sps:$4 sm:$0xff]   ;;  %v11089_v30 = vadd.f32 %v1085_v63, %v1084_v6  ;;  %v9931_v6 = vld [vmem:[%s10727_s22 + $0x388] sm:$0xff] }
 0x1e5   : > { %3970 = vmatmul.mubr.bf16.gmra.mrb[20].mxu0 %v1994_v49  ;;  %4422 = vmatmul.mubr.bf16.gmra.mrb[20].mxu1 %v1994_v49  ;;  %v11087_v7 = vadd.f32 %v821_v22, %v820_v2  ;;  %v9456_v49 = vld [vmem:[#allocation7 + $0x18c] ss:$16 sps:$4 sm:$0xff]   ;;  %v2002_v22 = vpack.c.bf16 %v698_v41, %v690_v19  ;;  %v9459_v2 = vld [vmem:[#allocation7 + $0x1a4] ss:$16 sps:$4 sm:$0xff]  }
 0x1e6   : > { %5753 = vmatpush1.bf16.msra.mxu0 %v9439_v38  ;;  %6205 = vmatpush1.bf16.msra.mxu1 %v9442_v39  ;;  %v11085_v35 = vadd.f32 %v813_v12, %v812_v9  ;;  %13749 = vst [vmem:[#allocation35_spill] sm:$0xff] %v11089_v30  ;;  %v11091_v52 = vadd.f32 %v1093_v31, %v1092_v0  ;;  %v9451_v38 = vld [vmem:[#allocation7 + $0x180] ss:$16 sps:$4 sm:$0xff]   ;;  %v9454_v39 = vld [vmem:[#allocation7 + $0x188] ss:$16 sps:$4 sm:$0xff]  }
 0x1e7   : > { %5754 = vmatprep.subr.bf16.mxu0 %v9447_v51  ;;  %6206 = vmatprep.subr.bf16.mxu1 %v9450_v29  ;;  %v707_v9 = vld [vmem:[%s10727_s22 + $0x3b8] sm:$0xff]  ;;  %v11095_v12 = vld [vmem:[%s10718_s27 + $0x388] sm:$0xff]  ;;  %v11113_v19 = vld [vmem:[%s10718_s27 + $0x3c0] sm:$0xff] }
 0x1e8   : > { %13750 = vst [vmem:[#allocation36_spill] sm:$0xff] %v11091_v52  ;;  %3979 = vmatprep.mubr.bf16.mxu0 %v2003_v10  ;;  %4431 = vmatprep.mubr.bf16.mxu1 %v2003_v10  ;;  %13751 = vst [vmem:[#allocation37_spill] sm:$0xff] %v11095_v12  ;;  %v715_v51 = vld [vmem:[%s10727_s22 + $0x3f8] sm:$0xff]  ;;  %v11099_v29 = vld [vmem:[%s10718_s27 + $0x3c8] sm:$0xff]  ;;  %v829_v63 = vmul.f32 %v9931_v6, %v11095_v12  ;;  %v1101_v31 = vmul.f32 %v11095_v12, %v11095_v12 }
 0x1e9   : > { %13752 = vst [vmem:[#allocation38_spill] sm:$0xff] %v11099_v29  ;;  %v11106_v10 = vld [vmem:[%s10718_s27 + $0x380] sm:$0xff]  ;;  %v9932_v0 = vld [vmem:[%s10727_s22 + $0x3c8] sm:$0xff]  ;;  %v1109_v41 = vmul.f32 %v11099_v29, %v11099_v29  ;;  %v2011_v14 = vpack.c.bf16 %v715_v51, %v707_v9 }
 0x1ea   : > { %5755 = vmatpush1.bf16.msra.mxu0 %v9445_v33  ;;  %6207 = vmatpush1.bf16.msra.mxu1 %v9448_v34  ;;  %v837_v60 = vmul.f32 %v9932_v0, %v11099_v29  ;;  %v9933_v6 = vld [vmem:[%s10727_s22 + $0x380] sm:$0xff]  ;;  %v1100_v34 = vmul.f32 %v11106_v10, %v11106_v10  ;;  %v1108_v29 = vmul.f32 %v11113_v19, %v11113_v19  ;;  %v9468_v51 = vld [vmem:[#allocation7 + $0x1cc] ss:$16 sps:$4 sm:$0xff]  }
 0x1eb   : > { %5756 = vmatprep.subr.bf16.mxu0 %v9453_v27  ;;  %6208 = vmatprep.subr.bf16.mxu1 %v9456_v49  ;;  %v828_v15 = vmul.f32 %v9933_v6, %v11106_v10  ;;  %v9934_v12 = vld [vmem:[%s10727_s22 + $0x3c0] sm:$0xff]  ;;  %v9460_v27 = vld [vmem:[#allocation7 + $0x1a8] ss:$16 sps:$4 sm:$0xff]   ;;  %v706_v49 = vld [vmem:[%s10727_s22 + $0x3b0] sm:$0xff] }
 0x1ec   : > { %v836_v33 = vmul.f32 %v9934_v12, %v11113_v19  ;;  %v9457_v0 = vld [vmem:[#allocation7 + $0x1a0] ss:$16 sps:$4 sm:$0xff]   ;;  %v11128_v6 = vadd.f32 %v1101_v31, %v1100_v34  ;;  %v11131_v62 = vadd.f32 %v1109_v41, %v1108_v29  ;;  %v9465_v9 = vld [vmem:[#allocation7 + $0x1c4] ss:$16 sps:$4 sm:$0xff]   ;;  %v9936_v29 = vld [vmem:[%s10718_s27 + $0x48] sm:$0xff] }
 0x1ed   : > { %3980 = vmatmul.mubr.bf16.gmra.mrb[24].mxu0 %v2002_v22  ;;  %4432 = vmatmul.mubr.bf16.gmra.mrb[24].mxu1 %v2002_v22  ;;  %v11124_v52 = vadd.f32 %v829_v63, %v828_v15  ;;  %v714_v12 = vld [vmem:[%s10727_s22 + $0x3f0] sm:$0xff]  ;;  %v9466_v63 = vld [vmem:[#allocation7 + $0x1c8] ss:$16 sps:$4 sm:$0xff]   ;;  %v9480_v41 = vld [vmem:[#allocation7 + $0x20c] ss:$16 sps:$4 sm:$0xff]  }
 0x1ee   : > { %v11126_v30 = vadd.f32 %v837_v60, %v836_v33  ;;  %5757 = vmatpush1.bf16.msra.mxu0 %v9451_v38  ;;  %6209 = vmatpush1.bf16.msra.mxu1 %v9454_v39  ;;  %v2010_v22 = vpack.c.bf16 %v714_v12, %v706_v49  ;;  %v9463_v15 = vld [vmem:[#allocation7 + $0x1c0] ss:$16 sps:$4 sm:$0xff]   ;;  %v9471_v60 = vld [vmem:[#allocation7 + $0x1e4] ss:$16 sps:$4 sm:$0xff]   ;;  %v9474_v38 = vld [vmem:[#allocation7 + $0x1ec] ss:$16 sps:$4 sm:$0xff]  }
 0x1ef   : > { %5758 = vmatprep.subr.bf16.mxu0 %v9459_v2  ;;  %6210 = vmatprep.subr.bf16.mxu1 %v9462_v5  ;;  %v9935_v39 = vld [vmem:[%s10718_s27 + $0x8] sm:$0xff]  ;;  %v9477_v31 = vld [vmem:[#allocation7 + $0x204] ss:$16 sps:$4 sm:$0xff]   ;;  %v9475_v12 = vld [vmem:[#allocation7 + $0x200] ss:$16 sps:$4 sm:$0xff]  }
 0x1f0   : > { %3989 = vmatprep.mubr.bf16.mxu0 %v2011_v14  ;;  %4441 = vmatprep.mubr.bf16.mxu1 %v2011_v14  ;;  %v1629_v2 = vpack.c.bf16 %v9936_v29, %v9935_v39  ;;  %v9469_v14 = vld [vmem:[#allocation7 + $0x1e0] ss:$16 sps:$4 sm:$0xff]   ;;  %v9472_v5 = vld [vmem:[#allocation7 + $0x1e8] ss:$16 sps:$4 sm:$0xff]  }
 0x1f1   : > { %v11136_v33 = vld [vmem:[%s10718_s27 + $0x90] sm:$0xff] }
 0x1f2   : > { %5759 = vmatpush1.bf16.msra.mxu0 %v9457_v0  ;;  %6211 = vmatpush1.bf16.msra.mxu1 %v9460_v27  ;;  %v11139_v34 = vld [vmem:[%s10718_s27 + $0xd0] sm:$0xff]  ;;  %v9937_v0 = vld [vmem:[%s10718_s27] sm:$0xff] }
 0x1f3   : > { %5760 = vmatprep.subr.bf16.mxu0 %v9465_v9  ;;  %6212 = vmatprep.subr.bf16.mxu1 %v9468_v51  ;;  %v9938_v27 = vld [vmem:[%s10718_s27 + $0x40] sm:$0xff]  ;;  %v9478_v9 = vld [vmem:[#allocation7 + $0x208] ss:$16 sps:$4 sm:$0xff]   ;;  %v9939_v51 = vld [vmem:[%s10727_s22 + $0xd0] sm:$0xff] }
 0x1f4   : > { %v1628_v49 = vpack.c.bf16 %v9938_v27, %v9937_v0  ;;  %v9481_v0 = vld [vmem:[#allocation7 + $0x220] ss:$16 sps:$4 sm:$0xff]  }
 0x1f5   : > { %3990 = vmatmul.mubr.bf16.gmra.mrb[28].mxu0 %v2010_v22  ;;  %4442 = vmatmul.mubr.bf16.gmra.mrb[28].mxu1 %v2010_v22  ;;  %v742_v22 = vmul.f32 %v9939_v51, %v11139_v34  ;;  %v9941_v51 = vld [vmem:[%s10727_s22 + $0x150] sm:$0xff] }
 0x1f6   : > { %5761 = vmatpush1.bf16.msra.mxu0 %v9463_v15  ;;  %6213 = vmatpush1.bf16.msra.mxu1 %v9466_v63  ;;  %v1006_v15 = vmul.f32 %v11136_v33, %v11136_v33  ;;  %v1014_v63 = vmul.f32 %v11139_v34, %v11139_v34 }
 0x1f7   : > { %5762 = vmatprep.subr.bf16.mxu0 %v9471_v60  ;;  %6214 = vmatprep.subr.bf16.mxu1 %v9474_v38  ;;  %v9483_v60 = vld [vmem:[#allocation7 + $0x224] ss:$16 sps:$4 sm:$0xff]   ;;  %v9486_v38 = vld [vmem:[#allocation7 + $0x22c] ss:$16 sps:$4 sm:$0xff]   ;;  %v11150_v39 = vadd.f32 %v10891_v42, %v742_v22 }
 0x1f8   : > { %5764 = vmatprep.mubr.bf16.mxu0 %v1629_v2  ;;  %6216 = vmatprep.mubr.bf16.mxu1 %v1629_v2  ;;  %v11153_v29 = vadd.f32 %v10893_v43, %v1006_v15  ;;  %v11156_v2 = vadd.f32 %v10895_v45, %v1014_v63  ;;  %v11164_v42 = vld [vmem:[%s10718_s27 + $0x150] sm:$0xff]  ;;  %v9492_v43 = vld [vmem:[#allocation7 + $0x24c] ss:$16 sps:$4 sm:$0xff]  }
 0x1f9   : > { %v9940_v45 = vld [vmem:[%s10727_s22 + $0x110] sm:$0xff]  ;;  %v758_v22 = vmul.f32 %v9941_v51, %v11164_v42 }
 0x1fa   : > { %5763 = vmatpush1.bf16.msra.mxu0 %v9469_v14  ;;  %6215 = vmatpush1.bf16.msra.mxu1 %v9472_v5  ;;  %13753 = vst [vmem:[#allocation39_spill] sm:$0xff] %v11153_v29  ;;  %13754 = vst [vmem:[#allocation40_spill] sm:$0xff] %v11156_v2  ;;  %v1637_v14 = vpack.c.bf16 %v10863_v20, %v10859_v16  ;;  %v9484_v5 = vld [vmem:[#allocation7 + $0x228] ss:$16 sps:$4 sm:$0xff]   ;;  %v1030_v20 = vmul.f32 %v11164_v42, %v11164_v42 }
 0x1fb   : > { %5845 = vmatprep.subr.bf16.mxu0 %v9477_v31  ;;  %6297 = vmatprep.subr.bf16.mxu1 %v9480_v41  ;;  %v9489_v31 = vld [vmem:[#allocation7 + $0x244] ss:$16 sps:$4 sm:$0xff]   ;;  %v11180_v15 = vadd.f32 %v10929_v11, %v758_v22  ;;  %v9774_v2 = vld [vmem:[#allocation10 + $0x28] sm:$0xff]   ;;  %v11560_v29 = vld [vmem:[%s10718_s27 + $0x2b8] sm:$0xff] }
 0x1fc   : > { %v11161_v41 = vld [vmem:[%s10718_s27 + $0x110] sm:$0xff]  ;;  %13814 = vst [vmem:[#allocation78_spill] sm:$0xff] %v11560_v29 }
 0x1fd   : > { %5765 = vmatmul.mubr.bf16.vlgmr.msra.gmra.mrb[0].mxu0 %v1628_v49  ;;  %6217 = vmatmul.mubr.bf16.vlgmr.msra.gmra.mrb[0].mxu1 %v1628_v49  ;;  %v750_v27 = vmul.f32 %v9940_v45, %v11161_v41  ;;  %v1022_v16 = vmul.f32 %v11161_v41, %v11161_v41  ;;  %v1636_v49 = vpack.c.bf16 %v10877_v28, %v10870_v24  ;;  %v9495_v24 = vld [vmem:[#allocation7 + $0x264] ss:$16 sps:$4 sm:$0xff]   ;;  %v9498_v28 = vld [vmem:[#allocation7 + $0x26c] ss:$16 sps:$4 sm:$0xff]  }
 0x1fe   : > { %5846 = vmatpush1.bf16.msra.mxu0 %v9475_v12  ;;  %6298 = vmatpush1.bf16.msra.mxu1 %v9478_v9  ;;  %v9487_v12 = vld [vmem:[#allocation7 + $0x240] ss:$16 sps:$4 sm:$0xff]   ;;  %13755 = vst [vmem:[#allocation41_spill] sm:$0xff] %v11180_v15 }
 0x1ff   : > { %5847 = vmatprep.subr.bf16.mxu0 %v9483_v60  ;;  %6299 = vmatprep.subr.bf16.mxu1 %v9486_v38  ;;  %v11177_v9 = vadd.f32 %v10927_v8, %v750_v27  ;;  %v11183_v63 = vadd.f32 %v10932_v17, %v1022_v16  ;;  %v9490_v60 = vld [vmem:[#allocation7 + $0x248] ss:$16 sps:$4 sm:$0xff]   ;;  %v11186_v38 = vadd.f32 %v10934_v18, %v1030_v20  ;;  %v11191_v11 = vld [vmem:[%s10718_s27 + $0x190] sm:$0xff]  ;;  %v9504_v27 = vld [vmem:[#allocation7 + $0x28c] ss:$16 sps:$4 sm:$0xff]  }
 0x200   : > { %5774 = vmatprep.mubr.bf16.mxu0 %v1637_v14  ;;  %6226 = vmatprep.mubr.bf16.mxu1 %v1637_v14  ;;  %v1645_v8 = vpack.c.bf16 %v10901_v48, %v10898_v47  ;;  %v11194_v14 = vld [vmem:[%s10718_s27 + $0x1d0] sm:$0xff]  ;;  %v1038_v47 = vmul.f32 %v11191_v11, %v11191_v11 }
 0x201   : > { %13756 = vst [vmem:[#allocation42_spill] sm:$0xff] %v11183_v63  ;;  %13757 = vst [vmem:[#allocation43_spill] sm:$0xff] %v11186_v38  ;;  %v9493_v17 = vld [vmem:[#allocation7 + $0x260] ss:$16 sps:$4 sm:$0xff]   ;;  %v1046_v48 = vmul.f32 %v11194_v14, %v11194_v14  ;;  %v11544_v38 = vld [vmem:[%s10718_s27 + $0x238] sm:$0xff] }
 0x202   : > { %5848 = vmatpush1.bf16.msra.mxu0 %v9481_v0  ;;  %6300 = vmatpush1.bf16.msra.mxu1 %v9484_v5  ;;  %v9496_v0 = vld [vmem:[#allocation7 + $0x268] ss:$16 sps:$4 sm:$0xff]   ;;  %v9942_v5 = vld [vmem:[%s10727_s22 + $0x190] sm:$0xff]  ;;  %v11211_v16 = vadd.f32 %v10971_v58, %v1038_v47  ;;  %v1653_v58 = vpack.c.bf16 %v10941_v25, %v10938_v23  ;;  %13810 = vst [vmem:[#allocation74_spill] sm:$0xff] %v11544_v38 }
 0x203   : > { %5849 = vmatprep.subr.bf16.mxu0 %v9489_v31  ;;  %6301 = vmatprep.subr.bf16.mxu1 %v9492_v43  ;;  %v766_v45 = vmul.f32 %v9942_v5, %v11191_v11  ;;  %v9943_v18 = vld [vmem:[%s10727_s22 + $0x1d0] sm:$0xff]  ;;  %v11214_v20 = vadd.f32 %v10973_v59, %v1046_v48  ;;  %v11547_v63 = vld [vmem:[%s10718_s27 + $0x278] sm:$0xff] }
 0x204   : > { %v774_v31 = vmul.f32 %v9943_v18, %v11194_v14  ;;  %v9501_v43 = vld [vmem:[#allocation7 + $0x284] ss:$16 sps:$4 sm:$0xff]   ;;  %13760 = vst [vmem:[#allocation46_spill] sm:$0xff] %v11211_v16  ;;  %v9511_v48 = vld [vmem:[#allocation7 + $0x2c0] ss:$16 sps:$4 sm:$0xff]   ;;  %v9773_v16 = vld [vmem:[#allocation10 + $0x68] sm:$0xff]  }
 0x205   : > { %5775 = vmatmul.mubr.bf16.gmra.mrb[4].mxu0 %v1636_v49  ;;  %6227 = vmatmul.mubr.bf16.gmra.mrb[4].mxu1 %v1636_v49  ;;  %v11205_v51 = vadd.f32 %v10967_v53, %v766_v45  ;;  %13761 = vst [vmem:[#allocation47_spill] sm:$0xff] %v11214_v20  ;;  %v1644_v49 = vpack.c.bf16 %v10913_v57, %v10910_v56  ;;  %v9502_v53 = vld [vmem:[#allocation7 + $0x288] ss:$16 sps:$4 sm:$0xff]   ;;  %v9944_v59 = vld [vmem:[%s10727_s22 + $0x210] sm:$0xff]  ;;  %13811 = vst [vmem:[#allocation75_spill] sm:$0xff] %v11547_v63 }
 0x206   : > { %5850 = vmatpush1.bf16.msra.mxu0 %v9487_v12  ;;  %6302 = vmatpush1.bf16.msra.mxu1 %v9490_v60  ;;  %v11208_v22 = vadd.f32 %v10969_v55, %v774_v31  ;;  %v9499_v12 = vld [vmem:[#allocation7 + $0x280] ss:$16 sps:$4 sm:$0xff]   ;;  %v9507_v60 = vld [vmem:[#allocation7 + $0x2a4] ss:$16 sps:$4 sm:$0xff]   ;;  %v9510_v55 = vld [vmem:[#allocation7 + $0x2ac] ss:$16 sps:$4 sm:$0xff]  }
 0x207   : > { %5851 = vmatprep.subr.bf16.mxu0 %v9495_v24  ;;  %6303 = vmatprep.subr.bf16.mxu1 %v9498_v28  ;;  %13758 = vst [vmem:[#allocation44_spill] sm:$0xff] %v11205_v51  ;;  %v11219_v24 = vld [vmem:[%s10718_s27 + $0x210] sm:$0xff]  ;;  %v9516_v31 = vld [vmem:[#allocation7 + $0x2cc] ss:$16 sps:$4 sm:$0xff]  }
 0x208   : > { %13759 = vst [vmem:[#allocation45_spill] sm:$0xff] %v11208_v22  ;;  %5784 = vmatprep.mubr.bf16.mxu0 %v1645_v8  ;;  %6236 = vmatprep.mubr.bf16.mxu1 %v1645_v8  ;;  %v11222_v28 = vld [vmem:[%s10718_s27 + $0x250] sm:$0xff]  ;;  %v782_v8 = vmul.f32 %v9944_v59, %v11219_v24  ;;  %v9770_v20 = vld [vmem:[#allocation10 + $0x18] sm:$0xff]  }
 0x209   : > { %v9945_v5 = vld [vmem:[%s10727_s22 + $0x250] sm:$0xff]  ;;  %v1062_v45 = vmul.f32 %v11222_v28, %v11222_v28 }
 0x20a   : > { %5852 = vmatpush1.bf16.msra.mxu0 %v9493_v17  ;;  %6304 = vmatpush1.bf16.msra.mxu1 %v9496_v0  ;;  %v790_v56 = vmul.f32 %v9945_v5, %v11222_v28  ;;  %v9505_v57 = vld [vmem:[#allocation7 + $0x2a0] ss:$16 sps:$4 sm:$0xff]   ;;  %v9508_v17 = vld [vmem:[#allocation7 + $0x2a8] ss:$16 sps:$4 sm:$0xff]   ;;  %v1054_v0 = vmul.f32 %v11219_v24, %v11219_v24  ;;  %v9513_v23 = vld [vmem:[#allocation7 + $0x2c4] ss:$16 sps:$4 sm:$0xff]   ;;  %v11235_v25 = vadd.f32 %v11007_v40, %v782_v8 }
 0x20b   : > { %5853 = vmatprep.subr.bf16.mxu0 %v9501_v43  ;;  %6305 = vmatprep.subr.bf16.mxu1 %v9504_v27  ;;  %v11244_v47 = vadd.f32 %v11013_v50, %v1062_v45  ;;  %v1652_v40 = vpack.c.bf16 %v10955_v36, %v10950_v32  ;;  %v9514_v27 = vld [vmem:[#allocation7 + $0x2c8] ss:$16 sps:$4 sm:$0xff]   ;;  %v9946_v50 = vld [vmem:[%s10727_s22 + $0x290] sm:$0xff]  ;;  %v1661_v36 = vpack.c.bf16 %v10981_v3, %v10978_v1 }
 0x20c   : > { %13762 = vst [vmem:[#allocation48_spill] sm:$0xff] %v11235_v25  ;;  %v11238_v18 = vadd.f32 %v11009_v44, %v790_v56  ;;  %v11241_v43 = vadd.f32 %v11011_v46, %v1054_v0  ;;  %v9519_v44 = vld [vmem:[#allocation7 + $0x2e4] ss:$16 sps:$4 sm:$0xff]   ;;  %v9522_v46 = vld [vmem:[#allocation7 + $0x2ec] ss:$16 sps:$4 sm:$0xff]  }
 0x20d   : > { %5785 = vmatmul.mubr.bf16.gmra.mrb[8].mxu0 %v1644_v49  ;;  %6237 = vmatmul.mubr.bf16.gmra.mrb[8].mxu1 %v1644_v49  ;;  %13765 = vst [vmem:[#allocation51_spill] sm:$0xff] %v11244_v47  ;;  %v11249_v49 = vld [vmem:[%s10718_s27 + $0x290] sm:$0xff]  ;;  %v9520_v1 = vld [vmem:[#allocation7 + $0x2e8] ss:$16 sps:$4 sm:$0xff]  }
 0x20e   : > { %5854 = vmatpush1.bf16.msra.mxu0 %v9499_v12  ;;  %6306 = vmatpush1.bf16.msra.mxu1 %v9502_v53  ;;  %13763 = vst [vmem:[#allocation49_spill] sm:$0xff] %v11238_v18  ;;  %13764 = vst [vmem:[#allocation50_spill] sm:$0xff] %v11241_v43  ;;  %v11252_v12 = vld [vmem:[%s10718_s27 + $0x2d0] sm:$0xff]  ;;  %v798_v53 = vmul.f32 %v9946_v50, %v11249_v49  ;;  %v1070_v32 = vmul.f32 %v11249_v49, %v11249_v49  ;;  %v9526_v45 = vld [vmem:[#allocation7 + $0x308] ss:$16 sps:$4 sm:$0xff]  }
 0x20f   : > { %5855 = vmatprep.subr.bf16.mxu0 %v9507_v60  ;;  %6307 = vmatprep.subr.bf16.mxu1 %v9510_v55  ;;  %v9947_v60 = vld [vmem:[%s10727_s22 + $0x2d0] sm:$0xff]  ;;  %v13772_v50 = vld [vmem:[#allocation28_spill] sm:$0xff]  ;;  %v11528_v47 = vld [vmem:[%s10718_s27 + $0x1b8] sm:$0xff] }
 0x210   : > { %5794 = vmatprep.mubr.bf16.mxu0 %v1653_v58  ;;  %6246 = vmatprep.mubr.bf16.mxu1 %v1653_v58  ;;  %v806_v55 = vmul.f32 %v9947_v60, %v11252_v12  ;;  %v1078_v58 = vmul.f32 %v11252_v12, %v11252_v12  ;;  %v9517_v59 = vld [vmem:[#allocation7 + $0x2e0] ss:$16 sps:$4 sm:$0xff]   ;;  %v11265_v8 = vadd.f32 %v11045_v37, %v798_v53  ;;  %v11531_v43 = vld [vmem:[%s10718_s27 + $0x1f8] sm:$0xff]  ;;  %v9972_v18 = vld [vmem:[%s10727_s22 + $0x288] sm:$0xff] }
 0x211   : > { %v11271_v56 = vadd.f32 %v11049_v4, %v1070_v32  ;;  %v11277_v37 = vld [vmem:[%s10718_s27 + $0x310] sm:$0xff]  ;;  %v1660_v4 = vpack.c.bf16 %v10995_v21, %v10988_v13  ;;  %v9534_v13 = vld [vmem:[#allocation7 + $0x32c] ss:$16 sps:$4 sm:$0xff]   ;;  %v1669_v53 = vpack.c.bf16 %v13772_v50, %v11016_v54  ;;  %v13773_v60 = vld [vmem:[#allocation35_spill] sm:$0xff]  ;;  %13806 = vst [vmem:[#allocation70_spill] sm:$0xff] %v11528_v47 }
 0x212   : > { %5856 = vmatpush1.bf16.msra.mxu0 %v9505_v57  ;;  %6308 = vmatpush1.bf16.msra.mxu1 %v9508_v17  ;;  %13766 = vst [vmem:[#allocation52_spill] sm:$0xff] %v11265_v8  ;;  %v11268_v5 = vadd.f32 %v11047_v61, %v806_v55  ;;  %v11274_v3 = vadd.f32 %v11051_v26, %v1078_v58  ;;  %v9525_v57 = vld [vmem:[#allocation7 + $0x304] ss:$16 sps:$4 sm:$0xff]   ;;  %v9528_v17 = vld [vmem:[#allocation7 + $0x30c] ss:$16 sps:$4 sm:$0xff]   ;;  %13807 = vst [vmem:[#allocation71_spill] sm:$0xff] %v11531_v43 }
 0x213   : > { %5857 = vmatprep.subr.bf16.mxu0 %v9513_v23  ;;  %6309 = vmatprep.subr.bf16.mxu1 %v9516_v31  ;;  %13768 = vst [vmem:[#allocation54_spill] sm:$0xff] %v11271_v56  ;;  %v11280_v61 = vld [vmem:[%s10718_s27 + $0x350] sm:$0xff]  ;;  %v13775_v32 = vld [vmem:[#allocation36_spill] sm:$0xff]  ;;  %v9769_v56 = vld [vmem:[#allocation10 + $0x58] sm:$0xff]  }
 0x214   : > { %13767 = vst [vmem:[#allocation53_spill] sm:$0xff] %v11268_v5  ;;  %13769 = vst [vmem:[#allocation55_spill] sm:$0xff] %v11274_v3  ;;  %v9523_v0 = vld [vmem:[#allocation7 + $0x300] ss:$16 sps:$4 sm:$0xff]   ;;  %v9546_v50 = vld [vmem:[#allocation7 + $0x36c] ss:$16 sps:$4 sm:$0xff]  }
 0x215   : > { %5795 = vmatmul.mubr.bf16.gmra.mrb[12].mxu0 %v1652_v40  ;;  %6247 = vmatmul.mubr.bf16.gmra.mrb[12].mxu1 %v1652_v40  ;;  %v9948_v23 = vld [vmem:[%s10727_s22 + $0x310] sm:$0xff]  ;;  %v11515_v3 = vld [vmem:[%s10718_s27 + $0x178] sm:$0xff]  ;;  %v9964_v5 = vld [vmem:[%s10727_s22 + $0x188] sm:$0xff] }
 0x216   : > { %5858 = vmatpush1.bf16.msra.mxu0 %v9511_v48  ;;  %6310 = vmatpush1.bf16.msra.mxu1 %v9514_v27  ;;  %v814_v31 = vmul.f32 %v9948_v23, %v11277_v37  ;;  %v9949_v26 = vld [vmem:[%s10727_s22 + $0x350] sm:$0xff]  ;;  %v1086_v27 = vmul.f32 %v11277_v37, %v11277_v37  ;;  %13803 = vst [vmem:[#allocation67_spill] sm:$0xff] %v11515_v3  ;;  %v9971_v8 = vld [vmem:[%s10727_s22 + $0x240] sm:$0xff] }
 0x217   : > { %5859 = vmatprep.subr.bf16.mxu0 %v9519_v44  ;;  %6311 = vmatprep.subr.bf16.mxu1 %v9522_v46  ;;  %v822_v48 = vmul.f32 %v9949_v26, %v11280_v61  ;;  %v9531_v40 = vld [vmem:[#allocation7 + $0x324] ss:$16 sps:$4 sm:$0xff]   ;;  %v1094_v44 = vmul.f32 %v11280_v61, %v11280_v61  ;;  %v9529_v58 = vld [vmem:[#allocation7 + $0x320] ss:$16 sps:$4 sm:$0xff]   ;;  %v9538_v26 = vld [vmem:[#allocation7 + $0x348] ss:$16 sps:$4 sm:$0xff]  }
 0x218   : > { %5804 = vmatprep.mubr.bf16.mxu0 %v1661_v36  ;;  %6256 = vmatprep.mubr.bf16.mxu1 %v1661_v36  ;;  %v11293_v21 = vadd.f32 %v11085_v35, %v814_v31  ;;  %v11301_v55 = vadd.f32 %v13773_v60, %v1086_v27  ;;  %v9532_v35 = vld [vmem:[#allocation7 + $0x328] ss:$16 sps:$4 sm:$0xff]   ;;  %v11307_v54 = vld [vmem:[%s10718_s27 + $0x390] sm:$0xff] }
 0x219   : > { %v11296_v46 = vadd.f32 %v11087_v7, %v822_v48  ;;  %v11304_v36 = vadd.f32 %v13775_v32, %v1094_v44  ;;  %v9537_v7 = vld [vmem:[#allocation7 + $0x344] ss:$16 sps:$4 sm:$0xff]  }
 0x21a   : > { %5860 = vmatpush1.bf16.msra.mxu0 %v9517_v59  ;;  %6312 = vmatpush1.bf16.msra.mxu1 %v9520_v1  ;;  %13770 = vst [vmem:[#allocation56_spill] sm:$0xff] %v11293_v21  ;;  %13774 = vst [vmem:[#allocation28_spill] sm:$0xff] %v11301_v55  ;;  %v9540_v59 = vld [vmem:[#allocation7 + $0x34c] ss:$16 sps:$4 sm:$0xff]   ;;  %v11310_v1 = vld [vmem:[%s10718_s27 + $0x3d0] sm:$0xff] }
 0x21b   : > { %5861 = vmatprep.subr.bf16.mxu0 %v9525_v57  ;;  %6313 = vmatprep.subr.bf16.mxu1 %v9528_v17  ;;  %13771 = vst [vmem:[#allocation57_spill] sm:$0xff] %v11296_v46  ;;  %13776 = vst [vmem:[#allocation35_spill] sm:$0xff] %v11304_v36  ;;  %v9950_v57 = vld [vmem:[%s10727_s22 + $0x390] sm:$0xff]  ;;  %v1110_v27 = vmul.f32 %v11310_v1, %v11310_v1  ;;  %v9763_v36 = vld [vmem:[#allocation10 + $0x40] sm:$0xff]  }
 0x21c   : > { %v830_v17 = vmul.f32 %v9950_v57, %v11307_v54  ;;  %v13777_v23 = vld [vmem:[#allocation29_spill] sm:$0xff]  ;;  %v13783_v57 = vld [vmem:[#allocation31_spill] sm:$0xff]  ;;  %v11512_v55 = vld [vmem:[%s10718_s27 + $0x138] sm:$0xff] }
 0x21d   : > { %5805 = vmatmul.mubr.bf16.gmra.mrb[16].mxu0 %v1660_v4  ;;  %6257 = vmatmul.mubr.bf16.gmra.mrb[16].mxu1 %v1660_v4  ;;  %v13778_v4 = vld [vmem:[#allocation30_spill] sm:$0xff]  ;;  %v9543_v44 = vld [vmem:[#allocation7 + $0x364] ss:$16 sps:$4 sm:$0xff]   ;;  %v11332_v32 = vadd.f32 %v11131_v62, %v1110_v27  ;;  %v9547_v62 = vld [vmem:[#allocation7 + $0x380] ss:$16 sps:$4 sm:$0xff]   ;;  %13802 = vst [vmem:[#allocation66_spill] sm:$0xff] %v11512_v55 }
 0x21e   : > { %5862 = vmatpush1.bf16.msra.mxu0 %v9523_v0  ;;  %6314 = vmatpush1.bf16.msra.mxu1 %v9526_v45  ;;  %v1668_v31 = vpack.c.bf16 %v13778_v4, %v13777_v23  ;;  %v9535_v0 = vld [vmem:[#allocation7 + $0x340] ss:$16 sps:$4 sm:$0xff]   ;;  %v13784_v23 = vld [vmem:[#allocation32_spill] sm:$0xff] }
 0x21f   : > { %5863 = vmatprep.subr.bf16.mxu0 %v9531_v40  ;;  %6315 = vmatprep.subr.bf16.mxu1 %v9534_v13  ;;  %v9951_v45 = vld [vmem:[%s10727_s22 + $0x3d0] sm:$0xff]  ;;  %v1102_v40 = vmul.f32 %v11307_v54, %v11307_v54  ;;  %v11323_v13 = vadd.f32 %v11124_v52, %v830_v17  ;;  %13782 = vst [vmem:[#allocation58_spill] sm:$0xff] %v11332_v32  ;;  %v9544_v52 = vld [vmem:[#allocation7 + $0x368] ss:$16 sps:$4 sm:$0xff]   ;;  %v9963_v21 = vld [vmem:[%s10727_s22 + $0x140] sm:$0xff] }
 0x220   : > { %5814 = vmatprep.mubr.bf16.mxu0 %v1669_v53  ;;  %6266 = vmatprep.mubr.bf16.mxu1 %v1669_v53  ;;  %v838_v48 = vmul.f32 %v9951_v45, %v11310_v1  ;;  %v9550_v4 = vld [vmem:[#allocation7 + $0x388] ss:$16 sps:$4 sm:$0xff]   ;;  %v9558_v45 = vld [vmem:[#allocation7 + $0x3ac] ss:$16 sps:$4 sm:$0xff]   ;;  %v9757_v32 = vld [vmem:[#allocation7 + $0x7e0] ss:$16 sps:$4 sm:$0xff]  }
 0x221   : > { %13779 = vst [vmem:[#allocation36_spill] sm:$0xff] %v11323_v13  ;;  %v11329_v60 = vadd.f32 %v11128_v6, %v1102_v40  ;;  %v13785_v6 = vld [vmem:[#allocation33_spill] sm:$0xff]  ;;  %v9556_v27 = vld [vmem:[#allocation7 + $0x3a8] ss:$16 sps:$4 sm:$0xff]  }
 0x222   : > { %5864 = vmatpush1.bf16.msra.mxu0 %v9529_v58  ;;  %6316 = vmatpush1.bf16.msra.mxu1 %v9532_v35  ;;  %v11326_v53 = vadd.f32 %v11126_v30, %v838_v48  ;;  %v1677_v58 = vpack.c.bf16 %v13784_v23, %v13783_v57  ;;  %v9541_v35 = vld [vmem:[#allocation7 + $0x360] ss:$16 sps:$4 sm:$0xff]   ;;  %v9552_v30 = vld [vmem:[#allocation7 + $0x38c] ss:$16 sps:$4 sm:$0xff]   ;;  %v1684_v57 = vpack.c.bf16 %v11113_v19, %v11106_v10 }
 0x223   : > { %5865 = vmatprep.subr.bf16.mxu0 %v9537_v7  ;;  %6317 = vmatprep.subr.bf16.mxu1 %v9540_v59  ;;  %13781 = vst [vmem:[#allocation30_spill] sm:$0xff] %v11329_v60  ;;  %v9549_v7 = vld [vmem:[#allocation7 + $0x384] ss:$16 sps:$4 sm:$0xff]   ;;  %v13786_v59 = vld [vmem:[#allocation34_spill] sm:$0xff]  ;;  %v9553_v40 = vld [vmem:[#allocation7 + $0x3a0] ss:$16 sps:$4 sm:$0xff]  }
 0x224   : > { %13780 = vst [vmem:[#allocation29_spill] sm:$0xff] %v11326_v53  ;;  %v1676_v17 = vpack.c.bf16 %v13786_v59, %v13785_v6  ;;  %v463_v23 = vld [vmem:[%s10718_s27 + $0x18] sm:$0xff]  ;;  %v9565_v6 = vld [vmem:[#allocation7 + $0x3e0] ss:$16 sps:$4 sm:$0xff]  }
 0x225   : > { %5815 = vmatmul.mubr.bf16.gmra.mrb[20].mxu0 %v1668_v31  ;;  %6267 = vmatmul.mubr.bf16.gmra.mrb[20].mxu1 %v1668_v31  ;;  %v9555_v31 = vld [vmem:[#allocation7 + $0x3a4] ss:$16 sps:$4 sm:$0xff]   ;;  %v9568_v59 = vld [vmem:[#allocation7 + $0x3e8] ss:$16 sps:$4 sm:$0xff]  }
 0x226   : > { %5866 = vmatpush1.bf16.msra.mxu0 %v9535_v0  ;;  %6318 = vmatpush1.bf16.msra.mxu1 %v9538_v26  ;;  %v13787_v0 = vld [vmem:[#allocation37_spill] sm:$0xff]  ;;  %v13788_v26 = vld [vmem:[#allocation38_spill] sm:$0xff] }
 0x227   : > { %5867 = vmatprep.subr.bf16.mxu0 %v9543_v44  ;;  %6319 = vmatprep.subr.bf16.mxu1 %v9546_v50  ;;  %v1685_v48 = vpack.c.bf16 %v13788_v26, %v13787_v0  ;;  %v9561_v44 = vld [vmem:[#allocation7 + $0x3c4] ss:$16 sps:$4 sm:$0xff]   ;;  %v9564_v50 = vld [vmem:[#allocation7 + $0x3cc] ss:$16 sps:$4 sm:$0xff]   ;;  %v9574_v0 = vld [vmem:[#allocation7 + $0x408] ss:$16 sps:$4 sm:$0xff]  }
 0x228   : > { %5824 = vmatprep.mubr.bf16.mxu0 %v1677_v58  ;;  %6276 = vmatprep.mubr.bf16.mxu1 %v1677_v58  ;;  %v471_v58 = vld [vmem:[%s10718_s27 + $0x58] sm:$0xff]  ;;  %v462_v10 = vld [vmem:[%s10718_s27 + $0x10] sm:$0xff] }
 0x229   : > { %v470_v19 = vld [vmem:[%s10718_s27 + $0x50] sm:$0xff]  ;;  %v479_v26 = vld [vmem:[%s10718_s27 + $0x98] sm:$0xff] }
 0x22a   : > { %5868 = vmatpush1.bf16.msra.mxu0 %v9541_v35  ;;  %6320 = vmatpush1.bf16.msra.mxu1 %v9544_v52  ;;  %v9559_v35 = vld [vmem:[#allocation7 + $0x3c0] ss:$16 sps:$4 sm:$0xff]   ;;  %v9562_v52 = vld [vmem:[#allocation7 + $0x3c8] ss:$16 sps:$4 sm:$0xff]  }
 0x22b   : > { %5869 = vmatprep.subr.bf16.mxu0 %v9549_v7  ;;  %6321 = vmatprep.subr.bf16.mxu1 %v9552_v30  ;;  %v9567_v7 = vld [vmem:[#allocation7 + $0x3e4] ss:$16 sps:$4 sm:$0xff]   ;;  %v9570_v30 = vld [vmem:[#allocation7 + $0x3ec] ss:$16 sps:$4 sm:$0xff]   ;;  %v9760_v60 = vld [vmem:[#allocation7 + $0x7e8] ss:$16 sps:$4 sm:$0xff]  }
 0x22c   : > { %v11563_v53 = vld [vmem:[%s10718_s27 + $0x2f8] sm:$0xff] }
 0x22d   : > { %5825 = vmatmul.mubr.bf16.gmra.mrb[24].mxu0 %v1676_v17  ;;  %6277 = vmatmul.mubr.bf16.gmra.mrb[24].mxu1 %v1676_v17  ;;  %v1631_v17 = vpack.c.bf16 %v471_v58, %v463_v23  ;;  %v9585_v23 = vld [vmem:[#allocation7 + $0x444] ss:$16 sps:$4 sm:$0xff]   ;;  %v9588_v58 = vld [vmem:[#allocation7 + $0x44c] ss:$16 sps:$4 sm:$0xff]   ;;  %13815 = vst [vmem:[#allocation79_spill] sm:$0xff] %v11563_v53 }
 0x22e   : > { %5870 = vmatpush1.bf16.msra.mxu0 %v9547_v62  ;;  %6322 = vmatpush1.bf16.msra.mxu1 %v9550_v4  ;;  %v9573_v62 = vld [vmem:[#allocation7 + $0x404] ss:$16 sps:$4 sm:$0xff]   ;;  %v9576_v4 = vld [vmem:[#allocation7 + $0x40c] ss:$16 sps:$4 sm:$0xff]  }
 0x22f   : > { %5871 = vmatprep.subr.bf16.mxu0 %v9555_v31  ;;  %6323 = vmatprep.subr.bf16.mxu1 %v9558_v45  ;;  %v9571_v31 = vld [vmem:[#allocation7 + $0x400] ss:$16 sps:$4 sm:$0xff]   ;;  %v1630_v45 = vpack.c.bf16 %v470_v19, %v462_v10  ;;  %v11595_v13 = vld [vmem:[%s10718_s27 + $0x3f8] sm:$0xff] }
 0x230   : > { %5834 = vmatprep.mubr.bf16.mxu0 %v1685_v48  ;;  %6286 = vmatprep.mubr.bf16.mxu1 %v1685_v48  ;;  %v487_v48 = vld [vmem:[%s10718_s27 + $0xd8] sm:$0xff]  ;;  %v9589_v19 = vld [vmem:[#allocation7 + $0x460] ss:$16 sps:$4 sm:$0xff]   ;;  %13823 = vst [vmem:[#allocation87_spill] sm:$0xff] %v11595_v13 }
 0x232   : > { %5872 = vmatpush1.bf16.msra.mxu0 %v9553_v40  ;;  %6324 = vmatpush1.bf16.msra.mxu1 %v9556_v27  ;;  %v9579_v40 = vld [vmem:[#allocation7 + $0x424] ss:$16 sps:$4 sm:$0xff]   ;;  %v9582_v27 = vld [vmem:[#allocation7 + $0x42c] ss:$16 sps:$4 sm:$0xff]  }
 0x233   : > { %5873 = vmatprep.subr.bf16.mxu0 %v9561_v44  ;;  %6325 = vmatprep.subr.bf16.mxu1 %v9564_v50  ;;  %v1639_v44 = vpack.c.bf16 %v487_v48, %v479_v26  ;;  %v9577_v50 = vld [vmem:[#allocation7 + $0x420] ss:$16 sps:$4 sm:$0xff]   ;;  %v519_v26 = vld [vmem:[%s10718_s27 + $0x1d8] sm:$0xff]  ;;  %v9603_v48 = vld [vmem:[#allocation7 + $0x4a4] ss:$16 sps:$4 sm:$0xff]  }
 0x235   : > { %5835 = vmatmul.mubr.bf16.gmra.mrb[28].mxu0 %v1684_v57  ;;  %6287 = vmatmul.mubr.bf16.gmra.mrb[28].mxu1 %v1684_v57  ;;  %v9580_v57 = vld [vmem:[#allocation7 + $0x428] ss:$16 sps:$4 sm:$0xff]  }
 0x236   : > { %5874 = vmatpush1.bf16.msra.mxu0 %v9559_v35  ;;  %6326 = vmatpush1.bf16.msra.mxu1 %v9562_v52  ;;  %v9583_v35 = vld [vmem:[#allocation7 + $0x440] ss:$16 sps:$4 sm:$0xff]   ;;  %v9586_v52 = vld [vmem:[#allocation7 + $0x448] ss:$16 sps:$4 sm:$0xff]  }
 0x237   : > { %5875 = vmatprep.subr.bf16.mxu0 %v9567_v7  ;;  %6327 = vmatprep.subr.bf16.mxu1 %v9570_v30  ;;  %v1638_v7 = vpack.c.bf16 %v11139_v34, %v11136_v33  ;;  %v495_v30 = vld [vmem:[%s10718_s27 + $0x118] sm:$0xff]  ;;  %v9595_v34 = vld [vmem:[#allocation7 + $0x480] ss:$16 sps:$4 sm:$0xff]  }
 0x238   : > { %5877 = vmatprep.mubr.bf16.mxu0 %v1631_v17  ;;  %6329 = vmatprep.mubr.bf16.mxu1 %v1631_v17  ;;  %v9594_v17 = vld [vmem:[#allocation7 + $0x46c] ss:$16 sps:$4 sm:$0xff]  }
 0x239   : > { %v9600_v33 = vld [vmem:[#allocation7 + $0x48c] ss:$16 sps:$4 sm:$0xff]  }
 0x23a   : > { %5876 = vmatpush1.bf16.msra.mxu0 %v9565_v6  ;;  %6328 = vmatpush1.bf16.msra.mxu1 %v9568_v59  ;;  %v503_v6 = vld [vmem:[%s10718_s27 + $0x158] sm:$0xff]  ;;  %v9591_v59 = vld [vmem:[#allocation7 + $0x464] ss:$16 sps:$4 sm:$0xff]  }
 0x23b   : > { %5958 = vmatprep.subr.bf16.mxu0 %v9573_v62  ;;  %6410 = vmatprep.subr.bf16.mxu1 %v9576_v4  ;;  %v1647_v10 = vpack.c.bf16 %v503_v6, %v495_v30  ;;  %v9592_v62 = vld [vmem:[#allocation7 + $0x468] ss:$16 sps:$4 sm:$0xff]   ;;  %v9597_v4 = vld [vmem:[#allocation7 + $0x484] ss:$16 sps:$4 sm:$0xff]   ;;  %v9618_v30 = vld [vmem:[#allocation7 + $0x4ec] ss:$16 sps:$4 sm:$0xff]  }
 0x23d   : > { %5878 = vmatmul.mubr.bf16.vlgmr.msra.gmra.mrb[0].mxu0 %v1630_v45  ;;  %6330 = vmatmul.mubr.bf16.vlgmr.msra.gmra.mrb[0].mxu1 %v1630_v45  ;;  %v1646_v45 = vpack.c.bf16 %v11164_v42, %v11161_v41  ;;  %v9612_v41 = vld [vmem:[#allocation7 + $0x4cc] ss:$16 sps:$4 sm:$0xff]   ;;  %v9607_v42 = vld [vmem:[#allocation7 + $0x4c0] ss:$16 sps:$4 sm:$0xff]  }
 0x23e   : > { %5959 = vmatpush1.bf16.msra.mxu0 %v9571_v31  ;;  %6411 = vmatpush1.bf16.msra.mxu1 %v9574_v0  ;;  %v9598_v31 = vld [vmem:[#allocation7 + $0x488] ss:$16 sps:$4 sm:$0xff]  }
 0x23f   : > { %5960 = vmatprep.subr.bf16.mxu0 %v9579_v40  ;;  %6412 = vmatprep.subr.bf16.mxu1 %v9582_v27  ;;  %v511_v0 = vld [vmem:[%s10718_s27 + $0x198] sm:$0xff] }
 0x240   : > { %5887 = vmatprep.mubr.bf16.mxu0 %v1639_v44  ;;  %6339 = vmatprep.mubr.bf16.mxu1 %v1639_v44  ;;  %v9606_v40 = vld [vmem:[#allocation7 + $0x4ac] ss:$16 sps:$4 sm:$0xff]   ;;  %v1655_v27 = vpack.c.bf16 %v519_v26, %v511_v0  ;;  %v9601_v44 = vld [vmem:[#allocation7 + $0x4a0] ss:$16 sps:$4 sm:$0xff]   ;;  %v9628_v26 = vld [vmem:[#allocation7 + $0x528] ss:$16 sps:$4 sm:$0xff]  }
 0x241   : > { %v9625_v0 = vld [vmem:[#allocation7 + $0x520] ss:$16 sps:$4 sm:$0xff]  }
 0x242   : > { %5961 = vmatpush1.bf16.msra.mxu0 %v9577_v50  ;;  %6413 = vmatpush1.bf16.msra.mxu1 %v9580_v57  ;;  %v9604_v50 = vld [vmem:[#allocation7 + $0x4a8] ss:$16 sps:$4 sm:$0xff]   ;;  %v9609_v57 = vld [vmem:[#allocation7 + $0x4c4] ss:$16 sps:$4 sm:$0xff]  }
 0x243   : > { %5962 = vmatprep.subr.bf16.mxu0 %v9585_v23  ;;  %6414 = vmatprep.subr.bf16.mxu1 %v9588_v58  ;;  %v1654_v23 = vpack.c.bf16 %v11194_v14, %v11191_v11  ;;  %v527_v58 = vld [vmem:[%s10718_s27 + $0x218] sm:$0xff]  ;;  %v1662_v14 = vpack.c.bf16 %v11222_v28, %v11219_v24  ;;  %v9633_v24 = vld [vmem:[#allocation7 + $0x544] ss:$16 sps:$4 sm:$0xff]  }
 0x244   : > { %v9624_v11 = vld [vmem:[#allocation7 + $0x50c] ss:$16 sps:$4 sm:$0xff]  }
 0x245   : > { %5888 = vmatmul.mubr.bf16.gmra.mrb[4].mxu0 %v1638_v7  ;;  %6340 = vmatmul.mubr.bf16.gmra.mrb[4].mxu1 %v1638_v7  ;;  %v9615_v7 = vld [vmem:[#allocation7 + $0x4e4] ss:$16 sps:$4 sm:$0xff]   ;;  %v9636_v28 = vld [vmem:[#allocation7 + $0x54c] ss:$16 sps:$4 sm:$0xff]  }
 0x246   : > { %5963 = vmatpush1.bf16.msra.mxu0 %v9583_v35  ;;  %6415 = vmatpush1.bf16.msra.mxu1 %v9586_v52  ;;  %v535_v35 = vld [vmem:[%s10718_s27 + $0x258] sm:$0xff] }
 0x247   : > { %5964 = vmatprep.subr.bf16.mxu0 %v9591_v59  ;;  %6416 = vmatprep.subr.bf16.mxu1 %v9594_v17  ;;  %v9610_v52 = vld [vmem:[#allocation7 + $0x4c8] ss:$16 sps:$4 sm:$0xff]   ;;  %v1663_v6 = vpack.c.bf16 %v535_v35, %v527_v58  ;;  %v9613_v59 = vld [vmem:[#allocation7 + $0x4e0] ss:$16 sps:$4 sm:$0xff]   ;;  %v9645_v35 = vld [vmem:[#allocation7 + $0x584] ss:$16 sps:$4 sm:$0xff]  }
 0x248   : > { %5897 = vmatprep.mubr.bf16.mxu0 %v1647_v10  ;;  %6349 = vmatprep.mubr.bf16.mxu1 %v1647_v10  ;;  %v9616_v17 = vld [vmem:[#allocation7 + $0x4e8] ss:$16 sps:$4 sm:$0xff]   ;;  %v9621_v10 = vld [vmem:[#allocation7 + $0x504] ss:$16 sps:$4 sm:$0xff]  }
 0x249   : > { %v9640_v58 = vld [vmem:[#allocation7 + $0x568] ss:$16 sps:$4 sm:$0xff]  }
 0x24a   : > { %5965 = vmatpush1.bf16.msra.mxu0 %v9589_v19  ;;  %6417 = vmatpush1.bf16.msra.mxu1 %v9592_v62  ;;  %v543_v19 = vld [vmem:[%s10718_s27 + $0x298] sm:$0xff] }
 0x24b   : > { %5966 = vmatprep.subr.bf16.mxu0 %v9597_v4  ;;  %6418 = vmatprep.subr.bf16.mxu1 %v9600_v33  ;;  %v551_v62 = vld [vmem:[%s10718_s27 + $0x2d8] sm:$0xff]  ;;  %v9619_v4 = vld [vmem:[#allocation7 + $0x500] ss:$16 sps:$4 sm:$0xff]  }
 0x24c   : > { %v9622_v33 = vld [vmem:[#allocation7 + $0x508] ss:$16 sps:$4 sm:$0xff]  }
 0x24d   : > { %5898 = vmatmul.mubr.bf16.gmra.mrb[8].mxu0 %v1646_v45  ;;  %6350 = vmatmul.mubr.bf16.gmra.mrb[8].mxu1 %v1646_v45  ;;  %v1671_v45 = vpack.c.bf16 %v551_v62, %v543_v19  ;;  %v9657_v19 = vld [vmem:[#allocation7 + $0x5c4] ss:$16 sps:$4 sm:$0xff]   ;;  %v9660_v62 = vld [vmem:[#allocation7 + $0x5cc] ss:$16 sps:$4 sm:$0xff]  }
 0x24e   : > { %5967 = vmatpush1.bf16.msra.mxu0 %v9595_v34  ;;  %6419 = vmatpush1.bf16.msra.mxu1 %v9598_v31  ;;  %v9627_v34 = vld [vmem:[#allocation7 + $0x524] ss:$16 sps:$4 sm:$0xff]   ;;  %v9630_v31 = vld [vmem:[#allocation7 + $0x52c] ss:$16 sps:$4 sm:$0xff]  }
 0x24f   : > { %5968 = vmatprep.subr.bf16.mxu0 %v9603_v48  ;;  %6420 = vmatprep.subr.bf16.mxu1 %v9606_v40  ;;  %v9631_v48 = vld [vmem:[#allocation7 + $0x540] ss:$16 sps:$4 sm:$0xff]   ;;  %v9634_v40 = vld [vmem:[#allocation7 + $0x548] ss:$16 sps:$4 sm:$0xff]  }
 0x250   : > { %5907 = vmatprep.mubr.bf16.mxu0 %v1655_v27  ;;  %6359 = vmatprep.mubr.bf16.mxu1 %v1655_v27  ;;  %v1670_v27 = vpack.c.bf16 %v11252_v12, %v11249_v49  ;;  %v575_v49 = vld [vmem:[%s10718_s27 + $0x398] sm:$0xff] }
 0x251   : > { %v583_v12 = vld [vmem:[%s10718_s27 + $0x3d8] sm:$0xff] }
 0x252   : > { %5969 = vmatpush1.bf16.msra.mxu0 %v9601_v44  ;;  %6421 = vmatpush1.bf16.msra.mxu1 %v9604_v50  ;;  %v9639_v44 = vld [vmem:[#allocation7 + $0x564] ss:$16 sps:$4 sm:$0xff]   ;;  %v9642_v50 = vld [vmem:[#allocation7 + $0x56c] ss:$16 sps:$4 sm:$0xff]  }
 0x253   : > { %5970 = vmatprep.subr.bf16.mxu0 %v9609_v57  ;;  %6422 = vmatprep.subr.bf16.mxu1 %v9612_v41  ;;  %v559_v57 = vld [vmem:[%s10718_s27 + $0x318] sm:$0xff] }
 0x254   : > { %v567_v41 = vld [vmem:[%s10718_s27 + $0x358] sm:$0xff] }
 0x255   : > { %5908 = vmatmul.mubr.bf16.gmra.mrb[12].mxu0 %v1654_v23  ;;  %6360 = vmatmul.mubr.bf16.gmra.mrb[12].mxu1 %v1654_v23  ;;  %v9637_v23 = vld [vmem:[#allocation7 + $0x560] ss:$16 sps:$4 sm:$0xff]  }
 0x256   : > { %5971 = vmatpush1.bf16.msra.mxu0 %v9607_v42  ;;  %6423 = vmatpush1.bf16.msra.mxu1 %v9610_v52  ;;  %v1679_v42 = vpack.c.bf16 %v567_v41, %v559_v57  ;;  %v9648_v52 = vld [vmem:[#allocation7 + $0x58c] ss:$16 sps:$4 sm:$0xff]   ;;  %v9670_v57 = vld [vmem:[#allocation7 + $0x608] ss:$16 sps:$4 sm:$0xff]   ;;  %v9675_v41 = vld [vmem:[#allocation7 + $0x624] ss:$16 sps:$4 sm:$0xff]  }
 0x257   : > { %5972 = vmatprep.subr.bf16.mxu0 %v9615_v7  ;;  %6424 = vmatprep.subr.bf16.mxu1 %v9618_v30  ;;  %v9643_v7 = vld [vmem:[#allocation7 + $0x580] ss:$16 sps:$4 sm:$0xff]   ;;  %v9646_v30 = vld [vmem:[#allocation7 + $0x588] ss:$16 sps:$4 sm:$0xff]  }
 0x258   : > { %5917 = vmatprep.mubr.bf16.mxu0 %v1663_v6  ;;  %6369 = vmatprep.mubr.bf16.mxu1 %v1663_v6  ;;  %v1678_v6 = vpack.c.bf16 %v11280_v61, %v11277_v37  ;;  %v1686_v37 = vpack.c.bf16 %v11310_v1, %v11307_v54  ;;  %v465_v61 = vld [vmem:[%s10718_s27 + $0x28] sm:$0xff]  ;;  %v11377_v1 = vld [vmem:[%s10718_s27 + $0x20] sm:$0xff] }
 0x259   : > { %v9664_v54 = vld [vmem:[#allocation7 + $0x5e8] ss:$16 sps:$4 sm:$0xff]  }
 0x25a   : > { %5973 = vmatpush1.bf16.msra.mxu0 %v9613_v59  ;;  %6425 = vmatpush1.bf16.msra.mxu1 %v9616_v17  ;;  %v9651_v59 = vld [vmem:[#allocation7 + $0x5a4] ss:$16 sps:$4 sm:$0xff]   ;;  %v9654_v17 = vld [vmem:[#allocation7 + $0x5ac] ss:$16 sps:$4 sm:$0xff]  }
 0x25b   : > { %5974 = vmatprep.subr.bf16.mxu0 %v9621_v10  ;;  %6426 = vmatprep.subr.bf16.mxu1 %v9624_v11  ;;  %v1687_v10 = vpack.c.bf16 %v583_v12, %v575_v49  ;;  %v9649_v11 = vld [vmem:[#allocation7 + $0x5a0] ss:$16 sps:$4 sm:$0xff]   ;;  %v9681_v12 = vld [vmem:[#allocation7 + $0x644] ss:$16 sps:$4 sm:$0xff]  }
 0x25c   : > { %v11387_v49 = vld [vmem:[%s10718_s27 + $0xe0] sm:$0xff] }
 0x25d   : > { %5918 = vmatmul.mubr.bf16.gmra.mrb[16].mxu0 %v1662_v14  ;;  %6370 = vmatmul.mubr.bf16.gmra.mrb[16].mxu1 %v1662_v14  ;;  %v9652_v14 = vld [vmem:[#allocation7 + $0x5a8] ss:$16 sps:$4 sm:$0xff]  }
 0x25e   : > { %5975 = vmatpush1.bf16.msra.mxu0 %v9619_v4  ;;  %6427 = vmatpush1.bf16.msra.mxu1 %v9622_v33  ;;  %v473_v4 = vld [vmem:[%s10718_s27 + $0x68] sm:$0xff]  ;;  %v9655_v33 = vld [vmem:[#allocation7 + $0x5c0] ss:$16 sps:$4 sm:$0xff]  }
 0x25f   : > { %5976 = vmatprep.subr.bf16.mxu0 %v9627_v34  ;;  %6428 = vmatprep.subr.bf16.mxu1 %v9630_v31  ;;  %v9658_v34 = vld [vmem:[#allocation7 + $0x5c8] ss:$16 sps:$4 sm:$0xff]   ;;  %v9663_v31 = vld [vmem:[#allocation7 + $0x5e4] ss:$16 sps:$4 sm:$0xff]  }
 0x260   : > { %5927 = vmatprep.mubr.bf16.mxu0 %v1671_v45  ;;  %6379 = vmatprep.mubr.bf16.mxu1 %v1671_v45  ;;  %v9666_v45 = vld [vmem:[#allocation7 + $0x5ec] ss:$16 sps:$4 sm:$0xff]  }
 0x262   : > { %5977 = vmatpush1.bf16.msra.mxu0 %v9625_v0  ;;  %6429 = vmatpush1.bf16.msra.mxu1 %v9628_v26  ;;  %v1633_v0 = vpack.c.bf16 %v473_v4, %v465_v61  ;;  %v9661_v26 = vld [vmem:[#allocation7 + $0x5e0] ss:$16 sps:$4 sm:$0xff]  }
 0x263   : > { %5978 = vmatprep.subr.bf16.mxu0 %v9633_v24  ;;  %6430 = vmatprep.subr.bf16.mxu1 %v9636_v28  ;;  %v472_v24 = vld [vmem:[%s10718_s27 + $0x60] sm:$0xff] }
 0x264   : > { %v9669_v28 = vld [vmem:[#allocation7 + $0x604] ss:$16 sps:$4 sm:$0xff]  }
 0x265   : > { %5928 = vmatmul.mubr.bf16.gmra.mrb[20].mxu0 %v1670_v27  ;;  %6380 = vmatmul.mubr.bf16.gmra.mrb[20].mxu1 %v1670_v27  ;;  %v481_v27 = vld [vmem:[%s10718_s27 + $0xa8] sm:$0xff]  ;;  %v11397_v61 = vld [vmem:[%s10718_s27 + $0x120] sm:$0xff] }
 0x266   : > { %5979 = vmatpush1.bf16.msra.mxu0 %v9631_v48  ;;  %6431 = vmatpush1.bf16.msra.mxu1 %v9634_v40  ;;  %v9672_v48 = vld [vmem:[#allocation7 + $0x60c] ss:$16 sps:$4 sm:$0xff]   ;;  %v1632_v40 = vpack.c.bf16 %v472_v24, %v11377_v1  ;;  %v11400_v4 = vld [vmem:[%s10718_s27 + $0x160] sm:$0xff] }
 0x267   : > { %5980 = vmatprep.subr.bf16.mxu0 %v9639_v44  ;;  %6432 = vmatprep.subr.bf16.mxu1 %v9642_v50  ;;  %v489_v44 = vld [vmem:[%s10718_s27 + $0xe8] sm:$0xff]  ;;  %v9667_v50 = vld [vmem:[#allocation7 + $0x600] ss:$16 sps:$4 sm:$0xff]   ;;  %v9699_v24 = vld [vmem:[#allocation7 + $0x6a4] ss:$16 sps:$4 sm:$0xff]  }
 0x268   : > { %5937 = vmatprep.mubr.bf16.mxu0 %v1679_v42  ;;  %6389 = vmatprep.mubr.bf16.mxu1 %v1679_v42  ;;  %v9678_v42 = vld [vmem:[#allocation7 + $0x62c] ss:$16 sps:$4 sm:$0xff]  }
 0x26a   : > { %5981 = vmatpush1.bf16.msra.mxu0 %v9637_v23  ;;  %6433 = vmatpush1.bf16.msra.mxu1 %v9640_v58  ;;  %v1641_v23 = vpack.c.bf16 %v489_v44, %v481_v27  ;;  %v9673_v58 = vld [vmem:[#allocation7 + $0x620] ss:$16 sps:$4 sm:$0xff]   ;;  %v9700_v27 = vld [vmem:[#allocation7 + $0x6a8] ss:$16 sps:$4 sm:$0xff]  }
 0x26b   : > { %5982 = vmatprep.subr.bf16.mxu0 %v9645_v35  ;;  %6434 = vmatprep.subr.bf16.mxu1 %v9648_v52  ;;  %v9676_v35 = vld [vmem:[#allocation7 + $0x628] ss:$16 sps:$4 sm:$0xff]   ;;  %v11384_v52 = vld [vmem:[%s10718_s27 + $0xa0] sm:$0xff] }
 0x26c   : > { %v11410_v44 = vld [vmem:[%s10718_s27 + $0x1a0] sm:$0xff] }
 0x26d   : > { %5938 = vmatmul.mubr.bf16.gmra.mrb[24].mxu0 %v1678_v6  ;;  %6390 = vmatmul.mubr.bf16.gmra.mrb[24].mxu1 %v1678_v6  ;;  %v11392_v6 = vld [vmem:[%s10718_s27 + $0x128] sm:$0xff] }
 0x26e   : > { %5983 = vmatpush1.bf16.msra.mxu0 %v9643_v7  ;;  %6435 = vmatpush1.bf16.msra.mxu1 %v9646_v30  ;;  %v9684_v7 = vld [vmem:[#allocation7 + $0x64c] ss:$16 sps:$4 sm:$0xff]   ;;  %v1640_v30 = vpack.c.bf16 %v11387_v49, %v11384_v52  ;;  %13789 = vst [vmem:[#allocation31_spill] sm:$0xff] %v11392_v6 }
 0x26f   : > { %5984 = vmatprep.subr.bf16.mxu0 %v9651_v59  ;;  %6436 = vmatprep.subr.bf16.mxu1 %v9654_v17  ;;  %v505_v59 = vld [vmem:[%s10718_s27 + $0x168] sm:$0xff]  ;;  %v9679_v17 = vld [vmem:[#allocation7 + $0x640] ss:$16 sps:$4 sm:$0xff]  }
 0x270   : > { %5947 = vmatprep.mubr.bf16.mxu0 %v1687_v10  ;;  %6399 = vmatprep.mubr.bf16.mxu1 %v1687_v10  ;;  %v9682_v10 = vld [vmem:[#allocation7 + $0x648] ss:$16 sps:$4 sm:$0xff]  }
 0x272   : > { %5985 = vmatpush1.bf16.msra.mxu0 %v9649_v11  ;;  %6437 = vmatpush1.bf16.msra.mxu1 %v9652_v14  ;;  %v9687_v11 = vld [vmem:[#allocation7 + $0x664] ss:$16 sps:$4 sm:$0xff]   ;;  %v9690_v14 = vld [vmem:[#allocation7 + $0x66c] ss:$16 sps:$4 sm:$0xff]  }
 0x273   : > { %5986 = vmatprep.subr.bf16.mxu0 %v9657_v19  ;;  %6438 = vmatprep.subr.bf16.mxu1 %v9660_v62  ;;  %v1649_v19 = vpack.c.bf16 %v505_v59, %v11392_v6  ;;  %v9685_v62 = vld [vmem:[#allocation7 + $0x660] ss:$16 sps:$4 sm:$0xff]  }
 0x275   : > { %5948 = vmatmul.mubr.bf16.gmra.mrb[28].mxu0 %v1686_v37  ;;  %6400 = vmatmul.mubr.bf16.gmra.mrb[28].mxu1 %v1686_v37  ;;  %v9688_v37 = vld [vmem:[#allocation7 + $0x668] ss:$16 sps:$4 sm:$0xff]  }
 0x276   : > { %5987 = vmatpush1.bf16.msra.mxu0 %v9655_v33  ;;  %6439 = vmatpush1.bf16.msra.mxu1 %v9658_v34  ;;  %v9693_v33 = vld [vmem:[#allocation7 + $0x684] ss:$16 sps:$4 sm:$0xff]   ;;  %v9696_v34 = vld [vmem:[#allocation7 + $0x68c] ss:$16 sps:$4 sm:$0xff]  }
 0x277   : > { %5988 = vmatprep.subr.bf16.mxu0 %v9663_v31  ;;  %6440 = vmatprep.subr.bf16.mxu1 %v9666_v45  ;;  %v1648_v31 = vpack.c.bf16 %v11400_v4, %v11397_v61  ;;  %v11405_v45 = vld [vmem:[%s10718_s27 + $0x1a8] sm:$0xff] }
 0x278   : > { %5990 = vmatprep.mubr.bf16.mxu0 %v1633_v0  ;;  %6442 = vmatprep.mubr.bf16.mxu1 %v1633_v0  ;;  %13790 = vst [vmem:[#allocation32_spill] sm:$0xff] %v11405_v45  ;;  %v521_v0 = vld [vmem:[%s10718_s27 + $0x1e8] sm:$0xff] }
 0x27a   : > { %5989 = vmatpush1.bf16.msra.mxu0 %v9661_v26  ;;  %6441 = vmatpush1.bf16.msra.mxu1 %v9664_v54  ;;  %v9691_v26 = vld [vmem:[#allocation7 + $0x680] ss:$16 sps:$4 sm:$0xff]   ;;  %v9694_v54 = vld [vmem:[#allocation7 + $0x688] ss:$16 sps:$4 sm:$0xff]  }
 0x27b   : > { %6071 = vmatprep.subr.bf16.mxu0 %v9669_v28  ;;  %6523 = vmatprep.subr.bf16.mxu1 %v9672_v48  ;;  %v9702_v28 = vld [vmem:[#allocation7 + $0x6ac] ss:$16 sps:$4 sm:$0xff]   ;;  %v1657_v48 = vpack.c.bf16 %v521_v0, %v11405_v45  ;;  %v9718_v0 = vld [vmem:[#allocation7 + $0x708] ss:$16 sps:$4 sm:$0xff]  }
 0x27c   : > { %v9981_v45 = vld [vmem:[%s10727_s22 + $0x3c8] sm:$0xff] }
 0x27d   : > { %5991 = vmatmul.mubr.bf16.vlgmr.msra.gmra.mrb[0].mxu0 %v1632_v40  ;;  %6443 = vmatmul.mubr.bf16.vlgmr.msra.gmra.mrb[0].mxu1 %v1632_v40  ;;  %v9697_v40 = vld [vmem:[#allocation7 + $0x6a0] ss:$16 sps:$4 sm:$0xff]  }
 0x27e   : > { %6072 = vmatpush1.bf16.msra.mxu0 %v9667_v50  ;;  %6524 = vmatpush1.bf16.msra.mxu1 %v9670_v57  ;;  %v11413_v50 = vld [vmem:[%s10718_s27 + $0x1e0] sm:$0xff] }
 0x27f   : > { %6073 = vmatprep.subr.bf16.mxu0 %v9675_v41  ;;  %6525 = vmatprep.subr.bf16.mxu1 %v9678_v42  ;;  %v9705_v57 = vld [vmem:[#allocation7 + $0x6c4] ss:$16 sps:$4 sm:$0xff]   ;;  %v9708_v41 = vld [vmem:[#allocation7 + $0x6cc] ss:$16 sps:$4 sm:$0xff]   ;;  %v1656_v42 = vpack.c.bf16 %v11413_v50, %v11410_v44 }
 0x280   : > { %6000 = vmatprep.mubr.bf16.mxu0 %v1641_v23  ;;  %6452 = vmatprep.mubr.bf16.mxu1 %v1641_v23  ;;  %v11418_v23 = vld [vmem:[%s10718_s27 + $0x228] sm:$0xff] }
 0x281   : > { %13791 = vst [vmem:[#allocation33_spill] sm:$0xff] %v11418_v23 }
 0x282   : > { %6074 = vmatpush1.bf16.msra.mxu0 %v9673_v58  ;;  %6526 = vmatpush1.bf16.msra.mxu1 %v9676_v35  ;;  %v11421_v58 = vld [vmem:[%s10718_s27 + $0x268] sm:$0xff]  ;;  %v9703_v35 = vld [vmem:[#allocation7 + $0x6c0] ss:$16 sps:$4 sm:$0xff]  }
 0x283   : > { %6075 = vmatprep.subr.bf16.mxu0 %v9681_v12  ;;  %6527 = vmatprep.subr.bf16.mxu1 %v9684_v7  ;;  %13792 = vst [vmem:[#allocation34_spill] sm:$0xff] %v11421_v58  ;;  %v9706_v12 = vld [vmem:[#allocation7 + $0x6c8] ss:$16 sps:$4 sm:$0xff]   ;;  %v9711_v7 = vld [vmem:[#allocation7 + $0x6e4] ss:$16 sps:$4 sm:$0xff]   ;;  %v1665_v59 = vpack.c.bf16 %v11421_v58, %v11418_v23 }
 0x284   : > { %v9968_v58 = vld [vmem:[%s10727_s22 + $0x208] sm:$0xff]  ;;  %v9975_v23 = vld [vmem:[%s10727_s22 + $0x2c0] sm:$0xff] }
 0x285   : > { %6001 = vmatmul.mubr.bf16.gmra.mrb[4].mxu0 %v1640_v30  ;;  %6453 = vmatmul.mubr.bf16.gmra.mrb[4].mxu1 %v1640_v30  ;;  %v9714_v30 = vld [vmem:[#allocation7 + $0x6ec] ss:$16 sps:$4 sm:$0xff]  }
 0x286   : > { %6076 = vmatpush1.bf16.msra.mxu0 %v9679_v17  ;;  %6528 = vmatpush1.bf16.msra.mxu1 %v9682_v10  ;;  %v9709_v17 = vld [vmem:[#allocation7 + $0x6e0] ss:$16 sps:$4 sm:$0xff]   ;;  %v9712_v10 = vld [vmem:[#allocation7 + $0x6e8] ss:$16 sps:$4 sm:$0xff]  }
 0x287   : > { %6077 = vmatprep.subr.bf16.mxu0 %v9687_v11  ;;  %6529 = vmatprep.subr.bf16.mxu1 %v9690_v14  ;;  %v11426_v11 = vld [vmem:[%s10718_s27 + $0x220] sm:$0xff] }
 0x288   : > { %6010 = vmatprep.mubr.bf16.mxu0 %v1649_v19  ;;  %6462 = vmatprep.mubr.bf16.mxu1 %v1649_v19  ;;  %v11429_v14 = vld [vmem:[%s10718_s27 + $0x260] sm:$0xff] }
 0x289   : > { %v9717_v19 = vld [vmem:[#allocation7 + $0x704] ss:$16 sps:$4 sm:$0xff]  }
 0x28a   : > { %6078 = vmatpush1.bf16.msra.mxu0 %v9685_v62  ;;  %6530 = vmatpush1.bf16.msra.mxu1 %v9688_v37  ;;  %v9720_v62 = vld [vmem:[#allocation7 + $0x70c] ss:$16 sps:$4 sm:$0xff]   ;;  %v1664_v37 = vpack.c.bf16 %v11429_v14, %v11426_v11 }
 0x28b   : > { %6079 = vmatprep.subr.bf16.mxu0 %v9693_v33  ;;  %6531 = vmatprep.subr.bf16.mxu1 %v9696_v34  ;;  %v11434_v33 = vld [vmem:[%s10718_s27 + $0x2a8] sm:$0xff] }
 0x28c   : > { %13793 = vst [vmem:[#allocation37_spill] sm:$0xff] %v11434_v33  ;;  %v11437_v34 = vld [vmem:[%s10718_s27 + $0x2e8] sm:$0xff] }
 0x28d   : > { %6011 = vmatmul.mubr.bf16.gmra.mrb[8].mxu0 %v1648_v31  ;;  %6463 = vmatmul.mubr.bf16.gmra.mrb[8].mxu1 %v1648_v31  ;;  %13794 = vst [vmem:[#allocation38_spill] sm:$0xff] %v11437_v34  ;;  %v9715_v31 = vld [vmem:[#allocation7 + $0x700] ss:$16 sps:$4 sm:$0xff]  }
 0x28e   : > { %6080 = vmatpush1.bf16.msra.mxu0 %v9691_v26  ;;  %6532 = vmatpush1.bf16.msra.mxu1 %v9694_v54  ;;  %v9723_v26 = vld [vmem:[#allocation7 + $0x724] ss:$16 sps:$4 sm:$0xff]   ;;  %v9726_v54 = vld [vmem:[#allocation7 + $0x72c] ss:$16 sps:$4 sm:$0xff]  }
 0x28f   : > { %6081 = vmatprep.subr.bf16.mxu0 %v9699_v24  ;;  %6533 = vmatprep.subr.bf16.mxu1 %v9702_v28  ;;  %v1673_v24 = vpack.c.bf16 %v11437_v34, %v11434_v33  ;;  %v9721_v28 = vld [vmem:[#allocation7 + $0x720] ss:$16 sps:$4 sm:$0xff]  }
 0x290   : > { %6020 = vmatprep.mubr.bf16.mxu0 %v1657_v48  ;;  %6472 = vmatprep.mubr.bf16.mxu1 %v1657_v48  ;;  %v9724_v48 = vld [vmem:[#allocation7 + $0x728] ss:$16 sps:$4 sm:$0xff]   ;;  %v9967_v33 = vld [vmem:[%s10727_s22 + $0x1c0] sm:$0xff] }
 0x292   : > { %6082 = vmatpush1.bf16.msra.mxu0 %v9697_v40  ;;  %6534 = vmatpush1.bf16.msra.mxu1 %v9700_v27  ;;  %v11442_v40 = vld [vmem:[%s10718_s27 + $0x2a0] sm:$0xff] }
 0x293   : > { %6083 = vmatprep.subr.bf16.mxu0 %v9705_v57  ;;  %6535 = vmatprep.subr.bf16.mxu1 %v9708_v41  ;;  %v11445_v27 = vld [vmem:[%s10718_s27 + $0x2e0] sm:$0xff]  ;;  %v9732_v41 = vld [vmem:[#allocation7 + $0x74c] ss:$16 sps:$4 sm:$0xff]  }
 0x294   : > { %v9729_v57 = vld [vmem:[#allocation7 + $0x744] ss:$16 sps:$4 sm:$0xff]  }
 0x295   : > { %6021 = vmatmul.mubr.bf16.gmra.mrb[12].mxu0 %v1656_v42  ;;  %6473 = vmatmul.mubr.bf16.gmra.mrb[12].mxu1 %v1656_v42  ;;  %v1672_v42 = vpack.c.bf16 %v11445_v27, %v11442_v40 }
 0x296   : > { %6084 = vmatpush1.bf16.msra.mxu0 %v9703_v35  ;;  %6536 = vmatpush1.bf16.msra.mxu1 %v9706_v12  ;;  %v11450_v35 = vld [vmem:[%s10718_s27 + $0x328] sm:$0xff] }
 0x297   : > { %6085 = vmatprep.subr.bf16.mxu0 %v9711_v7  ;;  %6537 = vmatprep.subr.bf16.mxu1 %v9714_v30  ;;  %13795 = vst [vmem:[#allocation59_spill] sm:$0xff] %v11450_v35  ;;  %v11453_v12 = vld [vmem:[%s10718_s27 + $0x368] sm:$0xff]  ;;  %v9727_v7 = vld [vmem:[#allocation7 + $0x740] ss:$16 sps:$4 sm:$0xff]  }
 0x298   : > { %6030 = vmatprep.mubr.bf16.mxu0 %v1665_v59  ;;  %6482 = vmatprep.mubr.bf16.mxu1 %v1665_v59  ;;  %13796 = vst [vmem:[#allocation60_spill] sm:$0xff] %v11453_v12  ;;  %v9730_v30 = vld [vmem:[#allocation7 + $0x748] ss:$16 sps:$4 sm:$0xff]   ;;  %v9735_v59 = vld [vmem:[#allocation7 + $0x764] ss:$16 sps:$4 sm:$0xff]  }
 0x29a   : > { %6086 = vmatpush1.bf16.msra.mxu0 %v9709_v17  ;;  %6538 = vmatpush1.bf16.msra.mxu1 %v9712_v10  ;;  %v9738_v17 = vld [vmem:[#allocation7 + $0x76c] ss:$16 sps:$4 sm:$0xff]   ;;  %v1681_v10 = vpack.c.bf16 %v11453_v12, %v11450_v35 }
 0x29b   : > { %6087 = vmatprep.subr.bf16.mxu0 %v9717_v19  ;;  %6539 = vmatprep.subr.bf16.mxu1 %v9720_v62  ;;  %v9733_v19 = vld [vmem:[#allocation7 + $0x760] ss:$16 sps:$4 sm:$0xff]   ;;  %v9736_v62 = vld [vmem:[#allocation7 + $0x768] ss:$16 sps:$4 sm:$0xff]  }
 0x29d   : > { %6031 = vmatmul.mubr.bf16.gmra.mrb[16].mxu0 %v1664_v37  ;;  %6483 = vmatmul.mubr.bf16.gmra.mrb[16].mxu1 %v1664_v37  ;;  %v11458_v37 = vld [vmem:[%s10718_s27 + $0x320] sm:$0xff] }
 0x29e   : > { %6088 = vmatpush1.bf16.msra.mxu0 %v9715_v31  ;;  %6540 = vmatpush1.bf16.msra.mxu1 %v9718_v0  ;;  %v11461_v31 = vld [vmem:[%s10718_s27 + $0x360] sm:$0xff] }
 0x29f   : > { %6089 = vmatprep.subr.bf16.mxu0 %v9723_v26  ;;  %6541 = vmatprep.subr.bf16.mxu1 %v9726_v54  ;;  %v9741_v0 = vld [vmem:[#allocation7 + $0x784] ss:$16 sps:$4 sm:$0xff]   ;;  %v9744_v26 = vld [vmem:[#allocation7 + $0x78c] ss:$16 sps:$4 sm:$0xff]   ;;  %v1680_v54 = vpack.c.bf16 %v11461_v31, %v11458_v37 }
 0x2a0   : > { %6040 = vmatprep.mubr.bf16.mxu0 %v1673_v24  ;;  %6492 = vmatprep.mubr.bf16.mxu1 %v1673_v24  ;;  %v11466_v24 = vld [vmem:[%s10718_s27 + $0x3a8] sm:$0xff] }
 0x2a1   : > { %13797 = vst [vmem:[#allocation61_spill] sm:$0xff] %v11466_v24 }
 0x2a2   : > { %6090 = vmatpush1.bf16.msra.mxu0 %v9721_v28  ;;  %6542 = vmatpush1.bf16.msra.mxu1 %v9724_v48  ;;  %v11469_v28 = vld [vmem:[%s10718_s27 + $0x3e8] sm:$0xff]  ;;  %v9739_v48 = vld [vmem:[#allocation7 + $0x780] ss:$16 sps:$4 sm:$0xff]  }
 0x2a3   : > { %6091 = vmatprep.subr.bf16.mxu0 %v9729_v57  ;;  %6543 = vmatprep.subr.bf16.mxu1 %v9732_v41  ;;  %13798 = vst [vmem:[#allocation62_spill] sm:$0xff] %v11469_v28  ;;  %v9742_v57 = vld [vmem:[#allocation7 + $0x788] ss:$16 sps:$4 sm:$0xff]   ;;  %v9747_v41 = vld [vmem:[#allocation7 + $0x7a4] ss:$16 sps:$4 sm:$0xff]  }
 0x2a5   : > { %6041 = vmatmul.mubr.bf16.gmra.mrb[20].mxu0 %v1672_v42  ;;  %6493 = vmatmul.mubr.bf16.gmra.mrb[20].mxu1 %v1672_v42  ;;  %v9750_v42 = vld [vmem:[#allocation7 + $0x7ac] ss:$16 sps:$4 sm:$0xff]  }
 0x2a6   : > { %6092 = vmatpush1.bf16.msra.mxu0 %v9727_v7  ;;  %6544 = vmatpush1.bf16.msra.mxu1 %v9730_v30  ;;  %v1689_v7 = vpack.c.bf16 %v11469_v28, %v11466_v24  ;;  %v9745_v30 = vld [vmem:[#allocation7 + $0x7a0] ss:$16 sps:$4 sm:$0xff]   ;;  %v11576_v28 = vld [vmem:[%s10718_s27 + $0x338] sm:$0xff] }
 0x2a7   : > { %6093 = vmatprep.subr.bf16.mxu0 %v9735_v59  ;;  %6545 = vmatprep.subr.bf16.mxu1 %v9738_v17  ;;  %v9748_v59 = vld [vmem:[#allocation7 + $0x7a8] ss:$16 sps:$4 sm:$0xff]   ;;  %v11474_v17 = vld [vmem:[%s10718_s27 + $0x3a0] sm:$0xff]  ;;  %13818 = vst [vmem:[#allocation82_spill] sm:$0xff] %v11576_v28 }
 0x2a8   : > { %6050 = vmatprep.mubr.bf16.mxu0 %v1681_v10  ;;  %6502 = vmatprep.mubr.bf16.mxu1 %v1681_v10  ;;  %v11477_v10 = vld [vmem:[%s10718_s27 + $0x3e0] sm:$0xff] }
 0x2aa   : > { %6094 = vmatpush1.bf16.msra.mxu0 %v9733_v19  ;;  %6546 = vmatpush1.bf16.msra.mxu1 %v9736_v62  ;;  %v9753_v19 = vld [vmem:[#allocation7 + $0x7c4] ss:$16 sps:$4 sm:$0xff]   ;;  %v9756_v62 = vld [vmem:[#allocation7 + $0x7cc] ss:$16 sps:$4 sm:$0xff]  }
 0x2ab   : > { %6095 = vmatprep.subr.bf16.mxu0 %v9741_v0  ;;  %6547 = vmatprep.subr.bf16.mxu1 %v9744_v26  ;;  %v1688_v0 = vpack.c.bf16 %v11477_v10, %v11474_v17  ;;  %v11482_v26 = vld [vmem:[%s10718_s27 + $0x38] sm:$0xff] }
 0x2ad   : > { %6051 = vmatmul.mubr.bf16.gmra.mrb[24].mxu0 %v1680_v54  ;;  %6503 = vmatmul.mubr.bf16.gmra.mrb[24].mxu1 %v1680_v54  ;;  %v11485_v54 = vld [vmem:[%s10718_s27 + $0x78] sm:$0xff] }
 0x2ae   : > { %6096 = vmatpush1.bf16.msra.mxu0 %v9739_v48  ;;  %6548 = vmatpush1.bf16.msra.mxu1 %v9742_v57  ;;  %13799 = vst [vmem:[#allocation63_spill] sm:$0xff] %v11485_v54  ;;  %v9751_v48 = vld [vmem:[#allocation7 + $0x7c0] ss:$16 sps:$4 sm:$0xff]   ;;  %v9754_v57 = vld [vmem:[#allocation7 + $0x7c8] ss:$16 sps:$4 sm:$0xff]  }
 0x2af   : > { %6097 = vmatprep.subr.bf16.mxu0 %v9747_v41  ;;  %6549 = vmatprep.subr.bf16.mxu1 %v9750_v42  ;;  %v9759_v41 = vld [vmem:[#allocation7 + $0x7e4] ss:$16 sps:$4 sm:$0xff]   ;;  %v9762_v42 = vld [vmem:[#allocation7 + $0x7ec] ss:$16 sps:$4 sm:$0xff]  }
 0x2b0   : > { %6060 = vmatprep.mubr.bf16.mxu0 %v1689_v7  ;;  %6512 = vmatprep.mubr.bf16.mxu1 %v1689_v7  ;;  %v1635_v7 = vpack.c.bf16 %v11485_v54, %v11482_v26 }
 0x2b2   : > { %6098 = vmatpush1.bf16.msra.mxu0 %v9745_v30  ;;  %6550 = vmatpush1.bf16.msra.mxu1 %v9748_v59  ;;  %v11490_v30 = vld [vmem:[%s10718_s27 + $0x30] sm:$0xff] }
 0x2b3   : > { %6099 = vmatprep.subr.bf16.mxu0 %v9753_v19  ;;  %6551 = vmatprep.subr.bf16.mxu1 %v9756_v62  ;;  %v11493_v59 = vld [vmem:[%s10718_s27 + $0x70] sm:$0xff]  ;;  %v11496_v19 = vld [vmem:[%s10718_s27 + $0xb8] sm:$0xff] }
 0x2b4   : > { %v11499_v62 = vld [vmem:[%s10718_s27 + $0xf8] sm:$0xff] }
 0x2b5   : > { %6061 = vmatmul.mubr.bf16.gmra.mrb[28].mxu0 %v1688_v0  ;;  %6513 = vmatmul.mubr.bf16.gmra.mrb[28].mxu1 %v1688_v0  ;;  %13800 = vst [vmem:[#allocation64_spill] sm:$0xff] %v11499_v62  ;;  %v1634_v0 = vpack.c.bf16 %v11493_v59, %v11490_v30 }
 0x2b6   : > { %6100 = vmatpush1.bf16.msra.mxu0 %v9751_v48  ;;  %6552 = vmatpush1.bf16.msra.mxu1 %v9754_v57  ;;  %v1643_v48 = vpack.c.bf16 %v11499_v62, %v11496_v19  ;;  %v9764_v57 = vld [vmem:[#allocation10] sm:$0xff]  }
 0x2b7   : > { %6101 = vmatprep.subr.bf16.mxu0 %v9759_v41  ;;  %6553 = vmatprep.subr.bf16.mxu1 %v9762_v42  ;;  %v9765_v41 = vld [vmem:[#allocation10 + $0x48] sm:$0xff]   ;;  %v11506_v42 = vld [vmem:[%s10718_s27 + $0xb0] sm:$0xff] }
 0x2b8   : > { %6103 = vmatprep.mubr.bf16.mxu0 %v1635_v7  ;;  %6555 = vmatprep.mubr.bf16.mxu1 %v1635_v7  ;;  %v11509_v7 = vld [vmem:[%s10718_s27 + $0xf0] sm:$0xff] }
 0x2b9   : > { %13801 = vst [vmem:[#allocation65_spill] sm:$0xff] %v11509_v7 }
 0x2ba   : > { %6102 = vmatpush1.bf16.msra.mxu0 %v9757_v32  ;;  %6554 = vmatpush1.bf16.msra.mxu1 %v9760_v60  ;;  %v9766_v60 = vld [vmem:[#allocation10 + $0x8] sm:$0xff]   ;;  %v1642_v32 = vpack.c.bf16 %v11509_v7, %v11506_v42 }
 0x2bb   : > { %8365 = vmatprep.subr.bf16.mxu0 %v9763_v36  ;;  %8429 = vmatprep.subr.bf16.mxu1 %v9763_v36  ;;  %v9767_v36 = vld [vmem:[#allocation10 + $0x50] sm:$0xff]  }
 0x2bd   : > { %6104 = vmatmul.mubr.bf16.vlgmr.msra.gmra.mrb[0].mxu0 %v1634_v0  ;;  %6556 = vmatmul.mubr.bf16.vlgmr.msra.gmra.mrb[0].mxu1 %v1634_v0  ;;  %v1651_v0 = vpack.c.bf16 %v11515_v3, %v11512_v55  ;;  %v9977_v3 = vld [vmem:[%s10727_s22 + $0x348] sm:$0xff]  ;;  %v1381_v55 = vmul.f32 %v9981_v45, %v9981_v45 }
 0x2be   : > { %6113 = vmatprep.mubr.bf16.mxu0 %v1643_v48  ;;  %6565 = vmatprep.mubr.bf16.mxu1 %v1643_v48  ;;  %v9768_v48 = vld [vmem:[#allocation10 + $0x10] sm:$0xff]   ;;  %v1365_v25 = vmul.f32 %v9977_v3, %v9977_v3 }
 0x2bf   : > { %8366 = vmatpush3.bf16.msra.mxu0 %v9764_v57  ;;  %8437 = vmatpush3.bf16.msra.mxu1 %v9764_v57  ;;  %v11522_v57 = vld [vmem:[%s10718_s27 + $0x130] sm:$0xff] }
 0x2c0   : > { %8367 = vmatprep.subr.bf16.mxu0 %v9765_v41  ;;  %8430 = vmatprep.subr.bf16.mxu1 %v9765_v41  ;;  %13804 = vst [vmem:[#allocation68_spill] sm:$0xff] %v11522_v57  ;;  %v11525_v41 = vld [vmem:[%s10718_s27 + $0x170] sm:$0xff] }
 0x2c1   : > { %13805 = vst [vmem:[#allocation69_spill] sm:$0xff] %v11525_v41 }
 0x2c3   : > { %8368 = vmatpush3.bf16.msra.mxu0 %v9766_v60  ;;  %8438 = vmatpush3.bf16.msra.mxu1 %v9766_v60  ;;  %v9771_v60 = vld [vmem:[#allocation10 + $0x60] sm:$0xff]  }
 0x2c4   : > { %8369 = vmatprep.subr.bf16.mxu0 %v9767_v36  ;;  %8431 = vmatprep.subr.bf16.mxu1 %v9767_v36  ;;  %v1650_v36 = vpack.c.bf16 %v11525_v41, %v11522_v57  ;;  %v9980_v41 = vld [vmem:[%s10727_s22 + $0x388] sm:$0xff] }
 0x2c5   : > { %6114 = vmatmul.mubr.bf16.gmra.mrb[4].mxu0 %v1642_v32  ;;  %6566 = vmatmul.mubr.bf16.gmra.mrb[4].mxu1 %v1642_v32  ;;  %v1659_v32 = vpack.c.bf16 %v11531_v43, %v11528_v47  ;;  %v9970_v43 = vld [vmem:[%s10727_s22 + $0x200] sm:$0xff]  ;;  %v9976_v47 = vld [vmem:[%s10727_s22 + $0x308] sm:$0xff] }
 0x2c6   : > { %6123 = vmatprep.mubr.bf16.mxu0 %v1651_v0  ;;  %6575 = vmatprep.mubr.bf16.mxu1 %v1651_v0  ;;  %v9772_v0 = vld [vmem:[#allocation10 + $0x20] sm:$0xff]  }
 0x2c7   : > { %8370 = vmatpush3.bf16.msra.mxu0 %v9768_v48  ;;  %8439 = vmatpush3.bf16.msra.mxu1 %v9768_v48  ;;  %v11538_v48 = vld [vmem:[%s10718_s27 + $0x1b0] sm:$0xff] }
 0x2c8   : > { %8371 = vmatprep.subr.bf16.mxu0 %v9769_v56  ;;  %8432 = vmatprep.subr.bf16.mxu1 %v9769_v56  ;;  %13808 = vst [vmem:[#allocation72_spill] sm:$0xff] %v11538_v48  ;;  %v11541_v56 = vld [vmem:[%s10718_s27 + $0x1f0] sm:$0xff] }
 0x2c9   : > { %13809 = vst [vmem:[#allocation73_spill] sm:$0xff] %v11541_v56 }
 0x2cb   : > { %8372 = vmatpush3.bf16.msra.mxu0 %v9770_v20  ;;  %8440 = vmatpush3.bf16.msra.mxu1 %v9770_v20  ;;  %v9775_v20 = vld [vmem:[#allocation10 + $0x70] sm:$0xff]  }
 0x2cc   : > { %8373 = vmatprep.subr.bf16.mxu0 %v9771_v60  ;;  %8433 = vmatprep.subr.bf16.mxu1 %v9771_v60  ;;  %v1658_v60 = vpack.c.bf16 %v11541_v56, %v11538_v48  ;;  %v9974_v56 = vld [vmem:[%s10727_s22 + $0x280] sm:$0xff] }
 0x2cd   : > { %6124 = vmatmul.mubr.bf16.gmra.mrb[8].mxu0 %v1650_v36  ;;  %6576 = vmatmul.mubr.bf16.gmra.mrb[8].mxu1 %v1650_v36  ;;  %v1667_v36 = vpack.c.bf16 %v11547_v63, %v11544_v38  ;;  %v9969_v38 = vld [vmem:[%s10727_s22 + $0x248] sm:$0xff]  ;;  %v9979_v48 = vld [vmem:[%s10727_s22 + $0x340] sm:$0xff] }
 0x2ce   : > { %6133 = vmatprep.mubr.bf16.mxu0 %v1659_v32  ;;  %6585 = vmatprep.mubr.bf16.mxu1 %v1659_v32  ;;  %v9776_v32 = vld [vmem:[#allocation10 + $0x30] sm:$0xff]  }
 0x2cf   : > { %8374 = vmatpush3.bf16.msra.mxu0 %v9772_v0  ;;  %8441 = vmatpush3.bf16.msra.mxu1 %v9772_v0  ;;  %v11557_v0 = vld [vmem:[%s10718_s27 + $0x270] sm:$0xff] }
 0x2d0   : > { %8375 = vmatprep.subr.bf16.mxu0 %v9773_v16  ;;  %8434 = vmatprep.subr.bf16.mxu1 %v9773_v16  ;;  %v11554_v16 = vld [vmem:[%s10718_s27 + $0x230] sm:$0xff]  ;;  %13813 = vst [vmem:[#allocation77_spill] sm:$0xff] %v11557_v0 }
 0x2d1   : > { %13812 = vst [vmem:[#allocation76_spill] sm:$0xff] %v11554_v16 }
 0x2d3   : > { %8376 = vmatpush3.bf16.msra.mxu0 %v9774_v2  ;;  %8442 = vmatpush3.bf16.msra.mxu1 %v9774_v2  ;;  %v1666_v2 = vpack.c.bf16 %v11557_v0, %v11554_v16  ;;  %v9966_v0 = vld [vmem:[%s10727_s22 + $0x180] sm:$0xff]  ;;  %v9973_v16 = vld [vmem:[%s10727_s22 + $0x2c8] sm:$0xff] }
 0x2d4   : > { %8377 = vmatprep.subr.bf16.mxu0 %v9775_v20  ;;  %8435 = vmatprep.subr.bf16.mxu1 %v9775_v20  ;;  %v1675_v20 = vpack.c.bf16 %v11563_v53, %v11560_v29  ;;  %v11592_v53 = vld [vmem:[%s10718_s27 + $0x3b8] sm:$0xff]  ;;  %v9959_v29 = vld [vmem:[%s10727_s22 + $0xc0] sm:$0xff] }
 0x2d5   : > { %6134 = vmatmul.mubr.bf16.gmra.mrb[12].mxu0 %v1658_v60  ;;  %6586 = vmatmul.mubr.bf16.gmra.mrb[12].mxu1 %v1658_v60  ;;  %v11570_v60 = vld [vmem:[%s10718_s27 + $0x2b0] sm:$0xff]  ;;  %13822 = vst [vmem:[#allocation86_spill] sm:$0xff] %v11592_v53 }
 0x2d6   : > { %6143 = vmatprep.mubr.bf16.mxu0 %v1667_v36  ;;  %6595 = vmatprep.mubr.bf16.mxu1 %v1667_v36  ;;  %13816 = vst [vmem:[#allocation80_spill] sm:$0xff] %v11570_v60  ;;  %v11573_v36 = vld [vmem:[%s10718_s27 + $0x2f0] sm:$0xff] }
 0x2d7   : > { %8378 = vmatpush3.bf16.msra.mxu0 %v9776_v32  ;;  %8443 = vmatpush3.bf16.msra.mxu1 %v9776_v32  ;;  %13817 = vst [vmem:[#allocation81_spill] sm:$0xff] %v11573_v36  ;;  %v11579_v32 = vld [vmem:[%s10718_s27 + $0x378] sm:$0xff]  ;;  %v1674_v24 = vpack.c.bf16 %v11573_v36, %v11570_v60  ;;  %v9955_v36 = vld [vmem:[%s10718_s27 + $0x40] sm:$0xff]  ;;  %v9965_v60 = vld [vmem:[%s10727_s22 + $0x1c8] sm:$0xff] }
 0x2d8   : > { %13819 = vst [vmem:[#allocation83_spill] sm:$0xff] %v11579_v32  ;;  %v1683_v12 = vpack.c.bf16 %v11579_v32, %v11576_v28  ;;  %v1691_v32 = vpack.c.bf16 %v11595_v13, %v11592_v53  ;;  %v11619_v35 = vmul.f32 %v9955_v36, %v9955_v36  ;;  %v9962_v36 = vld [vmem:[%s10727_s22 + $0x100] sm:$0xff] }
 0x2da   : > { %13829 = vst [vmem:[#allocation93_spill] sm:$0xff] %v11619_v35  ;;  %v1292_v35 = vmul.f32 %v9962_v36, %v9962_v36  ;;  %v1333_v36 = vmul.f32 %v9969_v38, %v9969_v38  ;;  %v1357_v38 = vmul.f32 %v9976_v47, %v9976_v47 }
 0x2dd   : > { %6144 = vmatmul.mubr.bf16.gmra.mrb[16].mxu0 %v1666_v2  ;;  %6596 = vmatmul.mubr.bf16.gmra.mrb[16].mxu1 %v1666_v2  ;;  %v11586_v2 = vld [vmem:[%s10718_s27 + $0x330] sm:$0xff] }
 0x2de   : > { %6153 = vmatprep.mubr.bf16.mxu0 %v1675_v20  ;;  %6605 = vmatprep.mubr.bf16.mxu1 %v1675_v20  ;;  %13820 = vst [vmem:[#allocation84_spill] sm:$0xff] %v11586_v2  ;;  %v11589_v20 = vld [vmem:[%s10718_s27 + $0x370] sm:$0xff] }
 0x2df   : > { %13821 = vst [vmem:[#allocation85_spill] sm:$0xff] %v11589_v20  ;;  %v1682_v46 = vpack.c.bf16 %v11589_v20, %v11586_v2  ;;  %v9952_v20 = vld [vmem:[%s10718_s27 + $0x8] sm:$0xff] }
 0x2e0   : > { %v11610_v13 = vmul.f32 %v9952_v20, %v9952_v20  ;;  %v9958_v20 = vld [vmem:[%s10727_s22 + $0x80] sm:$0xff] }
 0x2e2   : > { %13826 = vst [vmem:[#allocation90_spill] sm:$0xff] %v11610_v13  ;;  %v1276_v13 = vmul.f32 %v9958_v20, %v9958_v20  ;;  %v1317_v20 = vmul.f32 %v9965_v60, %v9965_v60  ;;  %v1341_v60 = vmul.f32 %v9972_v18, %v9972_v18  ;;  %v1373_v18 = vmul.f32 %v9980_v41, %v9980_v41 }
 0x2e5   : > { %6154 = vmatmul.mubr.bf16.gmra.mrb[20].mxu0 %v1674_v24  ;;  %6606 = vmatmul.mubr.bf16.gmra.mrb[20].mxu1 %v1674_v24  ;;  %v11605_v24 = vld [vmem:[%s10718_s27 + $0x3f0] sm:$0xff] }
 0x2e6   : > { %6163 = vmatprep.mubr.bf16.mxu0 %v1683_v12  ;;  %6615 = vmatprep.mubr.bf16.mxu1 %v1683_v12  ;;  %v11602_v12 = vld [vmem:[%s10718_s27 + $0x3b0] sm:$0xff]  ;;  %13825 = vst [vmem:[#allocation89_spill] sm:$0xff] %v11605_v24 }
 0x2e7   : > { %13824 = vst [vmem:[#allocation88_spill] sm:$0xff] %v11602_v12  ;;  %v1690_v28 = vpack.c.bf16 %v11605_v24, %v11602_v12  ;;  %v9956_v24 = vld [vmem:[%s10727_s22 + $0x88] sm:$0xff] }
 0x2e8   : > { %v1277_v12 = vmul.f32 %v9956_v24, %v9956_v24  ;;  %v1300_v24 = vmul.f32 %v9963_v21, %v9963_v21  ;;  %v1324_v21 = vmul.f32 %v9970_v43, %v9970_v43  ;;  %v9978_v43 = vld [vmem:[%s10727_s22 + $0x300] sm:$0xff] }
 0x2e9   : > { %v1356_v22 = vmul.f32 %v9978_v43, %v9978_v43 }
 0x2ea   : > { %v1406_v15 = vadd.f32 %v1277_v12, %v1276_v13 }
 0x2ed   : > { %6164 = vmatmul.mubr.bf16.gmra.mrb[24].mxu0 %v1682_v46  ;;  %6616 = vmatmul.mubr.bf16.gmra.mrb[24].mxu1 %v1682_v46  ;;  %v9953_v46 = vld [vmem:[%s10718_s27 + $0x48] sm:$0xff] }
 0x2ee   : > { %6173 = vmatprep.mubr.bf16.mxu0 %v1691_v32  ;;  %6625 = vmatprep.mubr.bf16.mxu1 %v1691_v32  ;;  %v11613_v53 = vmul.f32 %v9953_v46, %v9953_v46  ;;  %v9954_v32 = vld [vmem:[%s10718_s27] sm:$0xff]  ;;  %v1284_v46 = vmul.f32 %v9959_v29, %v9959_v29  ;;  %v1308_v29 = vmul.f32 %v9966_v0, %v9966_v0 }
 0x2ef   : > { %v11616_v2 = vmul.f32 %v9954_v32, %v9954_v32  ;;  %v1349_v0 = vmul.f32 %v9973_v16, %v9973_v16  ;;  %v9982_v16 = vld [vmem:[%s10727_s22 + $0x380] sm:$0xff] }
 0x2f0   : > { %13827 = vst [vmem:[#allocation91_spill] sm:$0xff] %v11613_v53  ;;  %v9960_v53 = vld [vmem:[%s10727_s22 + $0x108] sm:$0xff]  ;;  %v1372_v62 = vmul.f32 %v9982_v16, %v9982_v16 }
 0x2f1   : > { %13828 = vst [vmem:[#allocation92_spill] sm:$0xff] %v11616_v2  ;;  %v1293_v32 = vmul.f32 %v9960_v53, %v9960_v53  ;;  %v9961_v2 = vld [vmem:[%s10727_s22 + $0x148] sm:$0xff]  ;;  %v1316_v53 = vmul.f32 %v9967_v33, %v9967_v33  ;;  %v1340_v33 = vmul.f32 %v9974_v56, %v9974_v56  ;;  %v9983_v56 = vld [vmem:[%s10727_s22 + $0x3c0] sm:$0xff] }
 0x2f2   : > { %v1301_v63 = vmul.f32 %v9961_v2, %v9961_v2  ;;  %v1325_v2 = vmul.f32 %v9968_v58, %v9968_v58  ;;  %v1348_v58 = vmul.f32 %v9975_v23, %v9975_v23  ;;  %v1380_v51 = vmul.f32 %v9983_v56, %v9983_v56  ;;  %v11715_v56 = vld [vmem:[%s10727_s22 + $0x158] sm:$0xff] }
 0x2f3   : > { %v1424_v57 = vadd.f32 %v1293_v32, %v1292_v35  ;;  %v1451_v7 = vadd.f32 %v1317_v20, %v1316_v53  ;;  %v11658_v16 = vadd.f32 %v1341_v60, %v1340_v33  ;;  %v11663_v35 = vadd.f32 %v1357_v38, %v1356_v22  ;;  %v9989_v53 = vld [vmem:[%s10727_s22 + $0x150] sm:$0xff] }
 0x2f4   : > { %v1433_v47 = vadd.f32 %v1301_v63, %v1300_v24  ;;  %v11649_v43 = vadd.f32 %v1325_v2, %v1324_v21  ;;  %v11660_v13 = vadd.f32 %v1349_v0, %v1348_v58  ;;  %v9985_v63 = vld [vmem:[%s10727_s22 + $0xd0] sm:$0xff]  ;;  %v11669_v32 = vadd.f32 %v1381_v55, %v1380_v51  ;;  %v9777_v24 = vld [vmem:[#allocation10 + $0x78] sm:$0xff]  }
 0x2f5   : > { %6174 = vmatmul.mubr.bf16.gmra.mrb[28].mxu0 %v1690_v28  ;;  %6626 = vmatmul.mubr.bf16.gmra.mrb[28].mxu1 %v1690_v28  ;;  %v9957_v28 = vld [vmem:[%s10727_s22 + $0xc8] sm:$0xff]  ;;  %v1302_v51 = vmul.f32 %v9989_v53, %v9989_v53  ;;  %v9778_v55 = vld [vmem:[#allocation10 + $0x38] sm:$0xff]   ;;  %v9992_v33 = vld [vmem:[%s10727_s22 + $0x190] sm:$0xff] }
 0x2f6   : > { %v1285_v34 = vmul.f32 %v9957_v28, %v9957_v28  ;;  %v1309_v28 = vmul.f32 %v9964_v5, %v9964_v5  ;;  %v1332_v5 = vmul.f32 %v9971_v8, %v9971_v8  ;;  %v1364_v8 = vmul.f32 %v9979_v48, %v9979_v48  ;;  %v11652_v48 = vld [vmem:[%s10727_s22 + $0x90] sm:$0xff]  ;;  %v11688_v2 = vld [vmem:[%s10727_s22 + $0x98] sm:$0xff]  ;;  %8379 = vmatprep.subr.bf16.mxu0 %v9777_v24 }
 0x2f7   : > { %v1278_v45 = vmul.f32 %v11652_v48, %v11652_v48  ;;  %v11695_v21 = vld [vmem:[%s10727_s22 + $0xd8] sm:$0xff]  ;;  %8436 = vmatprep.subr.bf16.mxu1 %v9777_v24  ;;  %v1310_v58 = vmul.f32 %v9992_v33, %v9992_v33  ;;  %v9993_v38 = vld [vmem:[%s10727_s22 + $0x1d0] sm:$0xff]  ;;  %8380 = vmatpush3.bf16.msra.mxu0 %v9778_v55  ;;  %v11725_v53 = vadd.f32 %v1433_v47, %v1302_v51 }
 0x2f8   : > { %v1415_v23 = vadd.f32 %v1285_v34, %v1284_v46  ;;  %v1442_v3 = vadd.f32 %v1309_v28, %v1308_v29  ;;  %v11656_v41 = vadd.f32 %v1333_v36, %v1332_v5  ;;  %v1286_v34 = vmul.f32 %v9985_v63, %v9985_v63  ;;  %v11672_v28 = vld [vmem:[%s10727_s22 + $0x18] sm:$0xff]  ;;  %8444 = vmatpush3.bf16.msra.mxu1 %v9778_v55  ;;  %v9998_v55 = vld [vmem:[%s10727_s22 + $0x290] sm:$0xff] }
 0x2f9   : > { %v11665_v12 = vadd.f32 %v1365_v25, %v1364_v8  ;;  %v11667_v46 = vadd.f32 %v1373_v18, %v1372_v62  ;;  %v11676_v20 = vmul.f32 %v11672_v28, %v11672_v28  ;;  %v11679_v29 = vld [vmem:[%s10727_s22 + $0x58] sm:$0xff]  ;;  %v9988_v25 = vld [vmem:[%s10727_s22 + $0x110] sm:$0xff]  ;;  %v11692_v36 = vmul.f32 %v11688_v2, %v11688_v2  ;;  %13839 = vst [vmem:[#allocation103_spill] sm:$0xff] %v11725_v53 }
 0x2fa   : > { %v11683_v22 = vmul.f32 %v11679_v29, %v11679_v29  ;;  %v1294_v62 = vmul.f32 %v9988_v25, %v9988_v25  ;;  %v11699_v5 = vmul.f32 %v11695_v21, %v11695_v21  ;;  %v11701_v60 = vadd.f32 %v1406_v15, %v1278_v45  ;;  %v11708_v18 = vld [vmem:[%s10727_s22 + $0x118] sm:$0xff]  ;;  %v9996_v45 = vld [vmem:[%s10727_s22 + $0x210] sm:$0xff] }
 0x2fb   : > { %13830 = vst [vmem:[#allocation94_spill] sm:$0xff] %v11676_v20  ;;  %13832 = vst [vmem:[#allocation96_spill] sm:$0xff] %v11692_v36  ;;  %v11703_v0 = vadd.f32 %v1415_v23, %v1286_v34  ;;  %v1318_v8 = vmul.f32 %v9993_v38, %v9993_v38  ;;  %v11712_v15 = vmul.f32 %v11708_v18, %v11708_v18  ;;  %v9997_v34 = vld [vmem:[%s10727_s22 + $0x250] sm:$0xff]  ;;  %v10030_v36 = vld [vmem:[%s10718_s27 + $0x98] sm:$0xff] }
 0x2fc   : > { %13831 = vst [vmem:[#allocation95_spill] sm:$0xff] %v11683_v22  ;;  %13833 = vst [vmem:[#allocation97_spill] sm:$0xff] %v11699_v5  ;;  %v11719_v23 = vmul.f32 %v11715_v56, %v11715_v56  ;;  %v1326_v63 = vmul.f32 %v9996_v45, %v9996_v45  ;;  %v1334_v24 = vmul.f32 %v9997_v34, %v9997_v34  ;;  %v9999_v38 = vld [vmem:[%s10727_s22 + $0x2d0] sm:$0xff]  ;;  %v11737_v45 = vld [vmem:[%s10727_s22 + $0x1d8] sm:$0xff] }
 0x2fd   : > { %13834 = vst [vmem:[#allocation98_spill] sm:$0xff] %v11701_v60  ;;  %13835 = vst [vmem:[#allocation99_spill] sm:$0xff] %v11703_v0  ;;  %v11723_v25 = vadd.f32 %v1424_v57, %v1294_v62  ;;  %v1342_v33 = vmul.f32 %v9998_v55, %v9998_v55  ;;  %v11730_v0 = vld [vmem:[%s10727_s22 + $0x198] sm:$0xff]  ;;  %v11741_v57 = vmul.f32 %v11737_v45, %v11737_v45  ;;  %v10002_v47 = vld [vmem:[%s10727_s22 + $0x310] sm:$0xff] }
 0x2fe   : > { %13836 = vst [vmem:[#allocation100_spill] sm:$0xff] %v11712_v15  ;;  %13837 = vst [vmem:[#allocation101_spill] sm:$0xff] %v11719_v23  ;;  %v1350_v15 = vmul.f32 %v9999_v38, %v9999_v38  ;;  %v11734_v23 = vmul.f32 %v11730_v0, %v11730_v0  ;;  %v1358_v62 = vmul.f32 %v10002_v47, %v10002_v47  ;;  %v10003_v51 = vld [vmem:[%s10727_s22 + $0x350] sm:$0xff]  ;;  %v11752_v22 = vld [vmem:[%s10727_s22 + $0x218] sm:$0xff] }
 0x2ff   : > { %13838 = vst [vmem:[#allocation102_spill] sm:$0xff] %v11723_v25  ;;  %13841 = vst [vmem:[#allocation105_spill] sm:$0xff] %v11741_v57  ;;  %v1366_v34 = vmul.f32 %v10003_v51, %v10003_v51  ;;  %v11745_v55 = vadd.f32 %v1442_v3, %v1310_v58  ;;  %v11747_v38 = vadd.f32 %v1451_v7, %v1318_v8  ;;  %v10004_v25 = vld [vmem:[%s10727_s22 + $0x390] sm:$0xff]  ;;  %v11759_v47 = vld [vmem:[%s10727_s22 + $0x258] sm:$0xff] }
 0x300   : > { %13840 = vst [vmem:[#allocation104_spill] sm:$0xff] %v11734_v23  ;;  %v1374_v53 = vmul.f32 %v10004_v25, %v10004_v25  ;;  %v10005_v23 = vld [vmem:[%s10727_s22 + $0x3d0] sm:$0xff]  ;;  %v11756_v57 = vmul.f32 %v11752_v22, %v11752_v22  ;;  %v11763_v3 = vmul.f32 %v11759_v47, %v11759_v47  ;;  %v11766_v7 = vadd.f32 %v11649_v43, %v1326_v63  ;;  %v11772_v8 = vld [vmem:[%s10727_s22 + $0x298] sm:$0xff] }
 0x301   : > { %13842 = vst [vmem:[#allocation106_spill] sm:$0xff] %v11745_v55  ;;  %13843 = vst [vmem:[#allocation107_spill] sm:$0xff] %v11747_v38  ;;  %v1382_v5 = vmul.f32 %v10005_v23, %v10005_v23  ;;  %v11769_v58 = vadd.f32 %v11656_v41, %v1334_v24  ;;  %v11776_v23 = vmul.f32 %v11772_v8, %v11772_v8  ;;  %v11779_v25 = vld [vmem:[%s10727_s22 + $0x2d8] sm:$0xff]  ;;  %v11867_v55 = vld [vmem:[%s10727_s22 + $0x1e0] sm:$0xff] }
 0x302   : > { %13844 = vst [vmem:[#allocation108_spill] sm:$0xff] %v11756_v57  ;;  %13845 = vst [vmem:[#allocation109_spill] sm:$0xff] %v11763_v3  ;;  %v11783_v51 = vmul.f32 %v11779_v25, %v11779_v25  ;;  %v11786_v43 = vadd.f32 %v11658_v16, %v1342_v33  ;;  %v11789_v41 = vadd.f32 %v11660_v13, %v1350_v15  ;;  %v11792_v63 = vld [vmem:[%s10727_s22 + $0x318] sm:$0xff] }
 0x303   : > { %13846 = vst [vmem:[#allocation110_spill] sm:$0xff] %v11766_v7  ;;  %13847 = vst [vmem:[#allocation111_spill] sm:$0xff] %v11769_v58  ;;  %v11796_v24 = vmul.f32 %v11792_v63, %v11792_v63  ;;  %v11806_v16 = vadd.f32 %v11663_v35, %v1358_v62  ;;  %v11809_v13 = vadd.f32 %v11665_v12, %v1366_v34  ;;  %v11812_v15 = vld [vmem:[%s10727_s22 + $0x398] sm:$0xff]  ;;  %v11832_v62 = vld [vmem:[%s10727_s22 + $0xa0] sm:$0xff] }
 0x304   : > { %13848 = vst [vmem:[#allocation112_spill] sm:$0xff] %v11776_v23  ;;  %13849 = vst [vmem:[#allocation113_spill] sm:$0xff] %v11783_v51  ;;  %v11799_v23 = vld [vmem:[%s10727_s22 + $0x358] sm:$0xff]  ;;  %v11816_v33 = vmul.f32 %v11812_v15, %v11812_v15  ;;  %v11826_v35 = vadd.f32 %v11667_v46, %v1374_v53  ;;  %v11829_v12 = vadd.f32 %v11669_v32, %v1382_v5  ;;  %v11846_v46 = vld [vmem:[%s10727_s22 + $0x120] sm:$0xff] }
 0x305   : > { %13850 = vst [vmem:[#allocation114_spill] sm:$0xff] %v11786_v43  ;;  %13851 = vst [vmem:[#allocation115_spill] sm:$0xff] %v11789_v41  ;;  %v11803_v7 = vmul.f32 %v11799_v23, %v11799_v23  ;;  %v11836_v34 = vmul.f32 %v11832_v62, %v11832_v62  ;;  %v11850_v32 = vmul.f32 %v11846_v46, %v11846_v46  ;;  %v11853_v5 = vld [vmem:[%s10727_s22 + $0x160] sm:$0xff] }
 0x306   : > { %13852 = vst [vmem:[#allocation116_spill] sm:$0xff] %v11796_v24  ;;  %13854 = vst [vmem:[#allocation118_spill] sm:$0xff] %v11806_v16  ;;  %v11819_v24 = vld [vmem:[%s10727_s22 + $0x3d8] sm:$0xff]  ;;  %v11857_v53 = vmul.f32 %v11853_v5, %v11853_v5  ;;  %v11895_v51 = vld [vmem:[%s10727_s22 + $0x2e0] sm:$0xff]  ;;  %v11943_v20 = vmul.f32 %v10030_v36, %v11688_v2 }
 0x307   : > { %13853 = vst [vmem:[#allocation117_spill] sm:$0xff] %v11803_v7  ;;  %13855 = vst [vmem:[#allocation119_spill] sm:$0xff] %v11809_v13  ;;  %v11823_v43 = vmul.f32 %v11819_v24, %v11819_v24  ;;  %v11881_v13 = vld [vmem:[%s10727_s22 + $0x260] sm:$0xff]  ;;  %v11899_v58 = vmul.f32 %v11895_v51, %v11895_v51  ;;  %v10034_v2 = vld [vmem:[%s10718_s27 + $0x158] sm:$0xff] }
 0x308   : > { %13856 = vst [vmem:[#allocation120_spill] sm:$0xff] %v11816_v33  ;;  %13858 = vst [vmem:[#allocation122_spill] sm:$0xff] %v11826_v35  ;;  %v11839_v33 = vld [vmem:[%s10727_s22 + $0xe0] sm:$0xff] }
 0x309   : > { %13857 = vst [vmem:[#allocation121_spill] sm:$0xff] %v11823_v43  ;;  %13859 = vst [vmem:[#allocation123_spill] sm:$0xff] %v11829_v12  ;;  %v11843_v16 = vmul.f32 %v11839_v33, %v11839_v33  ;;  %v11860_v35 = vld [vmem:[%s10727_s22 + $0x1a0] sm:$0xff] }
 0x30a   : > { %13860 = vst [vmem:[#allocation124_spill] sm:$0xff] %v11836_v34  ;;  %13862 = vst [vmem:[#allocation126_spill] sm:$0xff] %v11850_v32  ;;  %v11864_v57 = vmul.f32 %v11860_v35, %v11860_v35  ;;  %v11871_v32 = vmul.f32 %v11867_v55, %v11867_v55  ;;  %v11874_v12 = vld [vmem:[%s10727_s22 + $0x220] sm:$0xff] }
 0x30b   : > { %13861 = vst [vmem:[#allocation125_spill] sm:$0xff] %v11843_v16  ;;  %13863 = vst [vmem:[#allocation127_spill] sm:$0xff] %v11857_v53  ;;  %v11878_v43 = vmul.f32 %v11874_v12, %v11874_v12  ;;  %v11888_v7 = vld [vmem:[%s10727_s22 + $0x2a0] sm:$0xff] }
 0x30c   : > { %13864 = vst [vmem:[#allocation128_spill] sm:$0xff] %v11864_v57  ;;  %13865 = vst [vmem:[#allocation129_spill] sm:$0xff] %v11871_v32  ;;  %v11885_v57 = vmul.f32 %v11881_v13, %v11881_v13  ;;  %v11892_v41 = vmul.f32 %v11888_v7, %v11888_v7 }
 0x30d   : > { %13866 = vst [vmem:[#allocation130_spill] sm:$0xff] %v11878_v43  ;;  %13869 = vst [vmem:[#allocation133_spill] sm:$0xff] %v11899_v58  ;;  %v11902_v43 = vld [vmem:[%s10727_s22 + $0x320] sm:$0xff] }
 0x30e   : > { %13867 = vst [vmem:[#allocation131_spill] sm:$0xff] %v11885_v57  ;;  %13868 = vst [vmem:[#allocation132_spill] sm:$0xff] %v11892_v41  ;;  %v11906_v3 = vmul.f32 %v11902_v43, %v11902_v43  ;;  %v11909_v57 = vld [vmem:[%s10727_s22 + $0x360] sm:$0xff] }
 0x30f   : > { %v11913_v32 = vmul.f32 %v11909_v57, %v11909_v57  ;;  %v11916_v41 = vld [vmem:[%s10727_s22 + $0x3a0] sm:$0xff] }
 0x310   : > { %13870 = vst [vmem:[#allocation134_spill] sm:$0xff] %v11906_v3  ;;  %v11920_v38 = vmul.f32 %v11916_v41, %v11916_v41  ;;  %v11923_v58 = vld [vmem:[%s10727_s22 + $0x3e0] sm:$0xff]  ;;  %v10028_v3 = vld [vmem:[%s10718_s27 + $0x18] sm:$0xff] }
 0x311   : > { %13871 = vst [vmem:[#allocation135_spill] sm:$0xff] %v11913_v32  ;;  %v11927_v53 = vmul.f32 %v11923_v58, %v11923_v58  ;;  %v11931_v16 = vmul.f32 %v10028_v3, %v11672_v28  ;;  %v10029_v32 = vld [vmem:[%s10718_s27 + $0x58] sm:$0xff]  ;;  %v11937_v60 = vmul.f32 %v10028_v3, %v10028_v3  ;;  %v11949_v28 = vmul.f32 %v10030_v36, %v10030_v36 }
 0x312   : > { %13872 = vst [vmem:[#allocation136_spill] sm:$0xff] %v11920_v38  ;;  %v11935_v34 = vmul.f32 %v10029_v32, %v11679_v29  ;;  %v11939_v38 = vmul.f32 %v10029_v32, %v10029_v32  ;;  %v10032_v29 = vld [vmem:[%s10718_s27 + $0x90] sm:$0xff]  ;;  %v10033_v32 = vld [vmem:[%s10718_s27 + $0x118] sm:$0xff]  ;;  %v11967_v36 = vmul.f32 %v10034_v2, %v10034_v2 }
 0x313   : > { %13873 = vst [vmem:[#allocation137_spill] sm:$0xff] %v11927_v53  ;;  %13874 = vst [vmem:[#allocation138_spill] sm:$0xff] %v11937_v60  ;;  %v10031_v53 = vld [vmem:[%s10718_s27 + $0xd8] sm:$0xff]  ;;  %v11955_v3 = vmul.f32 %v10032_v29, %v11652_v48  ;;  %v11963_v60 = vmul.f32 %v10034_v2, %v11715_v56 }
 0x314   : > { %13875 = vst [vmem:[#allocation139_spill] sm:$0xff] %v11939_v38  ;;  %v11947_v6 = vmul.f32 %v10031_v53, %v11695_v21  ;;  %13876 = vst [vmem:[#allocation140_spill] sm:$0xff] %v11949_v28  ;;  %v11951_v54 = vmul.f32 %v10031_v53, %v10031_v53  ;;  %v11959_v38 = vmul.f32 %v10033_v32, %v11708_v18  ;;  %v10035_v53 = vld [vmem:[%s10718_s27 + $0x198] sm:$0xff] }
 0x315   : > { %v11965_v21 = vmul.f32 %v10033_v32, %v10033_v32  ;;  %13879 = vst [vmem:[#allocation143_spill] sm:$0xff] %v11967_v36  ;;  %v10036_v48 = vld [vmem:[%s10718_s27 + $0x1d8] sm:$0xff]  ;;  %v11977_v18 = vmul.f32 %v10035_v53, %v10035_v53 }
 0x316   : > { %13877 = vst [vmem:[#allocation141_spill] sm:$0xff] %v11951_v54  ;;  %v11971_v54 = vmul.f32 %v10035_v53, %v11730_v0  ;;  %v11975_v29 = vmul.f32 %v10036_v48, %v11737_v45  ;;  %v11979_v28 = vmul.f32 %v10036_v48, %v10036_v48  ;;  %v10037_v56 = vld [vmem:[%s10718_s27 + $0x218] sm:$0xff] }
 0x317   : > { %13878 = vst [vmem:[#allocation142_spill] sm:$0xff] %v11965_v21  ;;  %13880 = vst [vmem:[#allocation144_spill] sm:$0xff] %v11977_v18  ;;  %v11983_v32 = vmul.f32 %v10037_v56, %v11752_v22  ;;  %v10038_v2 = vld [vmem:[%s10718_s27 + $0x258] sm:$0xff]  ;;  %v11989_v0 = vmul.f32 %v10037_v56, %v10037_v56 }
 0x318   : > { %13881 = vst [vmem:[#allocation145_spill] sm:$0xff] %v11979_v28  ;;  %v11987_v36 = vmul.f32 %v10038_v2, %v11759_v47  ;;  %v11991_v21 = vmul.f32 %v10038_v2, %v10038_v2  ;;  %v10039_v45 = vld [vmem:[%s10718_s27 + $0x298] sm:$0xff] }
 0x319   : > { %13882 = vst [vmem:[#allocation146_spill] sm:$0xff] %v11983_v32  ;;  %13883 = vst [vmem:[#allocation147_spill] sm:$0xff] %v11989_v0  ;;  %v11995_v53 = vmul.f32 %v10039_v45, %v11772_v8  ;;  %v10040_v48 = vld [vmem:[%s10718_s27 + $0x2d8] sm:$0xff]  ;;  %v12001_v22 = vmul.f32 %v10039_v45, %v10039_v45 }
 0x31a   : > { %13884 = vst [vmem:[#allocation148_spill] sm:$0xff] %v11991_v21  ;;  %v11999_v28 = vmul.f32 %v10040_v48, %v11779_v25  ;;  %v12003_v18 = vmul.f32 %v10040_v48, %v10040_v48  ;;  %v10041_v32 = vld [vmem:[%s10718_s27 + $0x318] sm:$0xff] }
 0x31b   : > { %13885 = vst [vmem:[#allocation149_spill] sm:$0xff] %v12001_v22  ;;  %v12007_v47 = vmul.f32 %v10041_v32, %v11792_v63  ;;  %v10042_v56 = vld [vmem:[%s10718_s27 + $0x358] sm:$0xff]  ;;  %v12013_v21 = vmul.f32 %v10041_v32, %v10041_v32  ;;  %v12035_v32 = vmul.f32 %v11384_v52, %v11384_v52 }
 0x31c   : > { %13886 = vst [vmem:[#allocation150_spill] sm:$0xff] %v12003_v18  ;;  %v12011_v2 = vmul.f32 %v10042_v56, %v11799_v23  ;;  %v12015_v8 = vmul.f32 %v10042_v56, %v10042_v56  ;;  %v10043_v25 = vld [vmem:[%s10718_s27 + $0x398] sm:$0xff]  ;;  %v12031_v23 = vmul.f32 %v11839_v33, %v11387_v49  ;;  %v12051_v33 = vmul.f32 %v11397_v61, %v11397_v61 }
 0x31d   : > { %13887 = vst [vmem:[#allocation151_spill] sm:$0xff] %v12013_v21  ;;  %v12019_v45 = vmul.f32 %v10043_v25, %v11812_v15  ;;  %v10044_v48 = vld [vmem:[%s10718_s27 + $0x3d8] sm:$0xff]  ;;  %v12025_v63 = vmul.f32 %v10043_v25, %v10043_v25  ;;  %v12039_v15 = vmul.f32 %v11387_v49, %v11387_v49  ;;  %v12047_v25 = vmul.f32 %v11853_v5, %v11400_v4  ;;  %v12061_v49 = vld [vmem:[%s10718_s27 + $0x10] sm:$0xff] }
 0x31e   : > { %13888 = vst [vmem:[#allocation152_spill] sm:$0xff] %v12015_v8  ;;  %v12023_v18 = vmul.f32 %v10044_v48, %v11819_v24  ;;  %v12027_v22 = vmul.f32 %v10044_v48, %v10044_v48  ;;  %v12043_v24 = vmul.f32 %v11846_v46, %v11397_v61  ;;  %13891 = vst [vmem:[#allocation155_spill] sm:$0xff] %v12051_v33  ;;  %v13947_v33 = vld [vmem:[#allocation67_spill] sm:$0xff] }
 0x31f   : > { %13889 = vst [vmem:[#allocation153_spill] sm:$0xff] %v12025_v63  ;;  %v12055_v48 = vmul.f32 %v11400_v4, %v11400_v4  ;;  %v12067_v5 = vmul.f32 %v11860_v35, %v11410_v44  ;;  %v12071_v61 = vmul.f32 %v11867_v55, %v11413_v50  ;;  %v12075_v4 = vmul.f32 %v11410_v44, %v11410_v44  ;;  %v13897_v63 = vld [vmem:[#allocation23_spill] sm:$0xff] }
 0x320   : > { %13890 = vst [vmem:[#allocation154_spill] sm:$0xff] %v12027_v22  ;;  %v12058_v22 = vld [vmem:[%s10727_s22 + $0x10] sm:$0xff]  ;;  %v12079_v56 = vmul.f32 %v11413_v50, %v11413_v50  ;;  %v12087_v35 = vmul.f32 %v11881_v13, %v11429_v14  ;;  %v12091_v55 = vmul.f32 %v11426_v11, %v11426_v11  ;;  %v12096_v44 = vmul.f32 %v11429_v14, %v11429_v14 }
 0x321   : > { %13892 = vst [vmem:[#allocation156_spill] sm:$0xff] %v12055_v48  ;;  %13893 = vst [vmem:[#allocation157_spill] sm:$0xff] %v12058_v22  ;;  %v718_v46 = vmul.f32 %v12061_v49, %v12058_v22  ;;  %v12083_v22 = vmul.f32 %v11874_v12, %v11426_v11  ;;  %v12100_v50 = vmul.f32 %v11888_v7, %v11442_v40  ;;  %v13900_v12 = vlaneseq  ;;  %v12120_v7 = vld [vmem:[%s10727_s22 + $0x50] sm:$0xff]  ;;  %v12318_v48 = vld [vmem:[%s10727_s22 + $0x178] sm:$0xff] }
 0x322   : > { %13894 = vst [vmem:[#allocation158_spill] sm:$0xff] %v12075_v4  ;;  %13895 = vst [vmem:[#allocation159_spill] sm:$0xff] %v12079_v56  ;;  %v12104_v13 = vmul.f32 %v11442_v40, %v11442_v40  ;;  %v12111_v11 = vmul.f32 %v11895_v51, %v11445_v27  ;;  %v12133_v51 = vmul.f32 %v11902_v43, %v11458_v37  ;;  %v13906_v43 = vld [vmem:[#allocation27_spill] sm:$0xff]  ;;  %v12284_v56 = vld [vmem:[%s10727_s22 + $0x138] sm:$0xff] }
 0x323   : > { %13896 = vst [vmem:[#allocation160_spill] sm:$0xff] %v12091_v55  ;;  %v845_v8 = vadd.f32 %v13897_v63, %v718_v46  ;;  %13898 = vst [vmem:[#allocation23_spill] sm:$0xff] %v12096_v44  ;;  %v12107_v21 = vshrl.u32 %v13900_v12, 7  ;;  %v12114_v63 = vld [vmem:[%s10727_s22 + $0x20] sm:$0xff]  ;;  %v12123_v44 = vld [vmem:[%s10718_s27 + $0x50] sm:$0xff]  ;;  %v12129_v12 = vmul.f32 %v11445_v27, %v11445_v27  ;;  %v12156_v55 = vmul.f32 %v11461_v31, %v11461_v31 }
 0x324   : > { %13899 = vst [vmem:[#allocation161_spill] sm:$0xff] %v12104_v13  ;;  %13901 = vst [vmem:[#allocation162_spill] sm:$0xff] %v12114_v63  ;;  %v720_v14 = vmul.f32 %v12114_v63, %v11377_v1  ;;  %v726_v40 = vmul.f32 %v12123_v44, %v12120_v7  ;;  %v12137_v1 = vmul.f32 %v11909_v57, %v11461_v31  ;;  %v13907_v13 = vld [vmem:[#allocation24_spill] sm:$0xff]  ;;  %v12173_v31 = vld [vmem:[%s10727_s22 + $0x30] sm:$0xff] }
 0x325   : > { %v846_v46 = vadd.f32 %v845_v8, %v11931_v16  ;;  %13902 = vst [vmem:[#allocation163_spill] sm:$0xff] %v12120_v7  ;;  %13903 = vst [vmem:[#allocation164_spill] sm:$0xff] %v12129_v12  ;;  %v12141_v16 = vmul.f32 %v11458_v37, %v11458_v37  ;;  %v12144_v8 = vld [vmem:[%s10727_s22 + $0x28] sm:$0xff]  ;;  %v863_v12 = vadd.f32 %v13906_v43, %v11955_v3  ;;  %v12170_v3 = vld [vmem:[%s13571_s4] sm:$0xf]  ;;  %v6648_v43 = vsub.s32 2, %v12107_v21 }
 0x326   : > { %13905 = vst [vmem:[#allocation166_spill] sm:$0xff] %v12144_v8  ;;  %v12147_v7 = vld [vmem:[%s10718_s27 + $0x28] sm:$0xff]  ;;  %v854_v57 = vadd.f32 %v13907_v13, %v726_v40  ;;  %13908 = vst [vmem:[#allocation27_spill] sm:$0xff] %v12156_v55  ;;  %v12160_v37 = vmul.f32 %v11916_v41, %v11474_v17  ;;  %v722_v13 = vmul.f32 %v12173_v31, %v11490_v30  ;;  %v12186_v55 = vld [vmem:[%s10727_s22 + $0x60] sm:$0xff] }
 0x327   : > { %13904 = vst [vmem:[#allocation165_spill] sm:$0xff] %v12141_v16  ;;  %v721_v27 = vmul.f32 %v12147_v7, %v12144_v8  ;;  %v847_v63 = vadd.f32 %v846_v46, %v720_v14  ;;  %v12164_v8 = vmul.f32 %v11923_v58, %v11477_v10  ;;  %v6640_v14 = vsub.s32 0, %v12107_v21  ;;  %13909 = vst [vmem:[#allocation24_spill] sm:$0xff] %v12173_v31  ;;  %v12189_v16 = vld [vmem:[%s10718_s27 + $0x60] sm:$0xff] }
 0x328   : > { %v736_v46 = vmul.f32 %v11832_v62, %v11384_v52  ;;  %v864_v58 = vadd.f32 %v863_v12, %v11943_v20  ;;  %v12182_v40 = vmul.f32 %v11474_v17, %v11474_v17  ;;  %13911 = vst [vmem:[#allocation168_spill] sm:$0xff] %v12186_v55  ;;  %v855_v52 = vadd.f32 %v854_v57, %v11935_v34  ;;  %v12195_v62 = vld [vmem:[%s10727_s22 + $0x38] sm:$0xff]  ;;  %v12200_v12 = vld [vmem:[%s10727_s22 + $0xa8] sm:$0xff] }
 0x329   : > { %v848_v41 = vadd.f32 %v847_v63, %v721_v27  ;;  %v728_v63 = vmul.f32 %v12189_v16, %v12186_v55  ;;  %13912 = vst [vmem:[#allocation169_spill] sm:$0xff] %v12195_v62  ;;  %v723_v20 = vmul.f32 %v12195_v62, %v11482_v26  ;;  %13913 = vst [vmem:[#allocation170_spill] sm:$0xff] %v12200_v12  ;;  %v12203_v27 = vld [vmem:[%s10718_s27 + $0xa8] sm:$0xff] }
 0x32a   : > { %13910 = vst [vmem:[#allocation167_spill] sm:$0xff] %v12182_v40  ;;  %v737_v31 = vmul.f32 %v12203_v27, %v12200_v12  ;;  %v865_v40 = vadd.f32 %v864_v58, %v736_v46  ;;  %v12209_v55 = vmul.f32 %v11477_v10, %v11477_v10  ;;  %v12212_v34 = vrot.slane %v12170_v3, %v6640_v14  ;;  %v12215_v57 = vld [vmem:[%s10727_s22 + $0x68] sm:$0xff]  ;;  %v12223_v46 = vld [vmem:[%s10727_s22 + $0xb0] sm:$0xff] }
 0x32b   : > { %v849_v17 = vadd.f32 %v848_v41, %v722_v13  ;;  %13916 = vst [vmem:[#allocation173_spill] sm:$0xff] %v12215_v57  ;;  %v12218_v62 = vld [vmem:[%s10718_s27 + $0x68] sm:$0xff]  ;;  %v856_v41 = vadd.f32 %v855_v52, %v728_v63  ;;  %13917 = vst [vmem:[#allocation174_spill] sm:$0xff] %v12223_v46  ;;  %v738_v10 = vmul.f32 %v12223_v46, %v11506_v42  ;;  %v12228_v58 = vld [vmem:[%s10727_s22 + $0x70] sm:$0xff] }
 0x32c   : > { %13914 = vst [vmem:[#allocation171_spill] sm:$0xff] %v12209_v55  ;;  %13915 = vst [vmem:[#allocation172_spill] sm:$0xff] %v12212_v34  ;;  %v729_v13 = vmul.f32 %v12218_v62, %v12215_v57  ;;  %v866_v14 = vadd.f32 %v865_v40, %v737_v31  ;;  %v730_v34 = vmul.f32 %v12228_v58, %v11493_v59  ;;  %v12265_v46 = vld [vmem:[%s10727_s22 + $0xf0] sm:$0xff] }
 0x32d   : > { %v850_v0 = vadd.f32 %v849_v17, %v723_v20  ;;  %13918 = vst [vmem:[#allocation175_spill] sm:$0xff] %v12228_v58  ;;  %v12233_v12 = vrot.slane %v12170_v3, %v6648_v43  ;;  %v873_v63 = vadd.f32 %v11150_v39, %v11947_v6  ;;  %v882_v52 = vadd.f32 %v11177_v9, %v11959_v38  ;;  %v12240_v20 = vld [vmem:[%s10727_s22 + $0xb8] sm:$0xff]  ;;  %v13922_v43 = vld [vmem:[#allocation63_spill] sm:$0xff]  ;;  %v12253_v39 = vld [vmem:[%s10718_s27 + $0xe8] sm:$0xff] }
 0x32e   : > { %v857_v57 = vadd.f32 %v856_v41, %v729_v13  ;;  %13920 = vst [vmem:[#allocation177_spill] sm:$0xff] %v12240_v20  ;;  %v739_v31 = vmul.f32 %v12240_v20, %v11496_v19  ;;  %v867_v40 = vadd.f32 %v866_v14, %v738_v10  ;;  %v12245_v17 = vld [vmem:[%s10727_s22 + $0x78] sm:$0xff]  ;;  %v12250_v41 = vld [vmem:[%s10727_s22 + $0xe8] sm:$0xff] }
 0x32f   : > { %13919 = vst [vmem:[#allocation176_spill] sm:$0xff] %v12233_v12  ;;  %851 = vadd.xlane.f32.xlu0 %v850_v0  ;;  %13921 = vst [vmem:[#allocation178_spill] sm:$0xff] %v12245_v17  ;;  %v731_v13 = vmul.f32 %v12245_v17, %v13922_v43  ;;  %v745_v9 = vmul.f32 %v12253_v39, %v12250_v41  ;;  %v874_v38 = vadd.f32 %v873_v63, %v12031_v23  ;;  %v12259_v0 = vld [vmem:[%s10727_s22 + $0x128] sm:$0xff]  ;;  %v13925_v12 = vld [vmem:[#allocation31_spill] sm:$0xff] }
 0x330   : > { %13923 = vst [vmem:[#allocation63_spill] sm:$0xff] %v12250_v41  ;;  %v858_v6 = vadd.f32 %v857_v57, %v730_v34  ;;  %13924 = vst [vmem:[#allocation179_spill] sm:$0xff] %v12259_v0  ;;  %v753_v10 = vmul.f32 %v12259_v0, %v13925_v12  ;;  %v883_v14 = vadd.f32 %v882_v52, %v12043_v24  ;;  %v13927_v17 = vld [vmem:[#allocation65_spill] sm:$0xff]  ;;  %v13929_v57 = vld [vmem:[#allocation68_spill] sm:$0xff] }
 0x331   : > { %v868_v20 = vadd.f32 %v867_v40, %v739_v31  ;;  %13926 = vst [vmem:[#allocation31_spill] sm:$0xff] %v12265_v46  ;;  %v746_v41 = vmul.f32 %v12265_v46, %v13927_v17  ;;  %v12270_v34 = vld [vmem:[%s10727_s22 + $0x130] sm:$0xff]  ;;  %v875_v12 = vadd.f32 %v874_v38, %v745_v9  ;;  %v13931_v52 = vld [vmem:[#allocation44_spill] sm:$0xff]  ;;  %v12279_v40 = vld [vmem:[%s10727_s22 + $0xf8] sm:$0xff] }
 0x332   : > { %13928 = vst [vmem:[#allocation65_spill] sm:$0xff] %v12270_v34  ;;  %v754_v23 = vmul.f32 %v12270_v34, %v13929_v57  ;;  %v13930_v63 = vld [vmem:[#allocation41_spill] sm:$0xff]  ;;  %v859_v55 = vadd.f32 %v858_v6, %v731_v13  ;;  %v884_v24 = vadd.f32 %v883_v14, %v753_v10  ;;  %v900_v31 = vadd.f32 %v13931_v52, %v11971_v54  ;;  %v13933_v0 = vld [vmem:[#allocation64_spill] sm:$0xff]  ;;  %v13935_v34 = vld [vmem:[#allocation66_spill] sm:$0xff] }
 0x333   : > { %v891_v58 = vadd.f32 %v13930_v63, %v11963_v60  ;;  %869 = vadd.xlane.f32.xlu1 %v868_v20  ;;  %13932 = vst [vmem:[#allocation68_spill] sm:$0xff] %v12279_v40  ;;  %v747_v46 = vmul.f32 %v12279_v40, %v13933_v0  ;;  %13934 = vst [vmem:[#allocation41_spill] sm:$0xff] %v12284_v56  ;;  %v755_v60 = vmul.f32 %v12284_v56, %v13935_v34  ;;  %v12289_v13 = vld [vmem:[%s10727_s22 + $0x168] sm:$0xff]  ;;  %v12304_v56 = vld [vmem:[%s10727_s22 + $0x170] sm:$0xff] }
 0x334   : > { %13936 = vst [vmem:[#allocation44_spill] sm:$0xff] %v12289_v13  ;;  %v12292_v9 = vld [vmem:[%s10718_s27 + $0x168] sm:$0xff]  ;;  %860 = vadd.xlane.f32.xlu0 %v859_v55  ;;  %v876_v6 = vadd.f32 %v875_v12, %v746_v41  ;;  %v885_v38 = vadd.f32 %v884_v24, %v754_v23  ;;  %v901_v52 = vadd.f32 %v900_v31, %v12067_v5  ;;  %13939 = vst [vmem:[#allocation66_spill] sm:$0xff] %v12304_v56  ;;  %v13940_v40 = vld [vmem:[#allocation69_spill] sm:$0xff] }
 0x335   : > { %v761_v54 = vmul.f32 %v12292_v9, %v12289_v13  ;;  %v892_v20 = vadd.f32 %v891_v58, %v12047_v25  ;;  %v12298_v10 = vld [vmem:[%s10727_s22 + $0x1a8] sm:$0xff]  ;;  %v762_v13 = vmul.f32 %v12304_v56, %v13940_v40  ;;  %v12309_v55 = vld [vmem:[%s10727_s22 + $0x1b0] sm:$0xff]  ;;  %v13944_v31 = vld [vmem:[#allocation146_spill] sm:$0xff]  ;;  %13946 = vst [vmem:[#allocation69_spill] sm:$0xff] %v12318_v48 }
 0x336   : > { %13937 = vst [vmem:[#allocation64_spill] sm:$0xff] %v12298_v10  ;;  %v13938_v14 = vld [vmem:[#allocation32_spill] sm:$0xff]  ;;  %v13943_v23 = vld [vmem:[#allocation45_spill] sm:$0xff]  ;;  %v877_v24 = vadd.f32 %v876_v6, %v747_v46  ;;  %v12323_v56 = vld [vmem:[%s10727_s22 + $0x1b8] sm:$0xff] }
 0x337   : > { %v769_v63 = vmul.f32 %v12298_v10, %v13938_v14  ;;  %v893_v25 = vadd.f32 %v892_v20, %v761_v54  ;;  %13941 = vst [vmem:[#allocation32_spill] sm:$0xff] %v12309_v55  ;;  %v13942_v58 = vld [vmem:[#allocation72_spill] sm:$0xff]  ;;  %v909_v12 = vadd.f32 %v13943_v23, %v11975_v29  ;;  %v886_v14 = vadd.f32 %v885_v38, %v755_v60  ;;  %v12348_v38 = vld [vmem:[%s10727_s22 + $0x230] sm:$0xff] }
 0x338   : > { %v770_v41 = vmul.f32 %v12309_v55, %v13942_v58  ;;  %v13945_v10 = vld [vmem:[#allocation48_spill] sm:$0xff]  ;;  %v763_v54 = vmul.f32 %v12318_v48, %v13947_v33  ;;  %13948 = vst [vmem:[#allocation72_spill] sm:$0xff] %v12323_v56  ;;  %v13949_v55 = vld [vmem:[#allocation70_spill] sm:$0xff]  ;;  %878 = vadd.xlane.f32.xlu1 %v877_v24  ;;  %13955 = vst [vmem:[#allocation67_spill] sm:$0xff] %v12348_v38 }
 0x339   : > { %v902_v5 = vadd.f32 %v901_v52, %v769_v63  ;;  %v918_v4 = vadd.f32 %v13945_v10, %v13944_v31  ;;  %v894_v20 = vadd.f32 %v893_v25, %v762_v13  ;;  %v771_v29 = vmul.f32 %v12323_v56, %v13949_v55  ;;  %v12328_v46 = vld [vmem:[%s10727_s22 + $0x1e8] sm:$0xff]  ;;  %887 = vadd.xlane.f32.xlu0 %v886_v14  ;;  %v13952_v52 = vld [vmem:[#allocation33_spill] sm:$0xff] }
 0x33a   : > { %13950 = vst [vmem:[#allocation45_spill] sm:$0xff] %v12328_v46  ;;  %v12331_v60 = vld [vmem:[%s10718_s27 + $0x1e8] sm:$0xff]  ;;  %v910_v13 = vadd.f32 %v909_v12, %v12071_v61  ;;  %v12343_v31 = vld [vmem:[%s10727_s22 + $0x1f0] sm:$0xff] }
 0x33b   : > { %v777_v6 = vmul.f32 %v12331_v60, %v12328_v46  ;;  %v903_v10 = vadd.f32 %v902_v5, %v770_v41  ;;  %v12338_v63 = vld [vmem:[%s10727_s22 + $0x228] sm:$0xff]  ;;  %v895_v23 = vadd.f32 %v894_v20, %v763_v54  ;;  %13953 = vst [vmem:[#allocation48_spill] sm:$0xff] %v12343_v31  ;;  %v13954_v56 = vld [vmem:[#allocation73_spill] sm:$0xff]  ;;  %v919_v14 = vadd.f32 %v918_v4, %v12083_v22 }
 0x33c   : > { %13951 = vst [vmem:[#allocation146_spill] sm:$0xff] %v12338_v63  ;;  %v785_v25 = vmul.f32 %v12338_v63, %v13952_v52  ;;  %v778_v46 = vmul.f32 %v12343_v31, %v13954_v56  ;;  %v13956_v24 = vld [vmem:[#allocation76_spill] sm:$0xff]  ;;  %v13957_v5 = vld [vmem:[#allocation49_spill] sm:$0xff]  ;;  %v12358_v63 = vld [vmem:[%s10727_s22 + $0x1f8] sm:$0xff] }
 0x33d   : > { %v786_v41 = vmul.f32 %v12348_v38, %v13956_v24  ;;  %v904_v61 = vadd.f32 %v903_v10, %v771_v29  ;;  %v911_v12 = vadd.f32 %v910_v13, %v777_v6  ;;  %v927_v52 = vadd.f32 %v13957_v5, %v11987_v36  ;;  %v13958_v54 = vld [vmem:[#allocation52_spill] sm:$0xff]  ;;  %13959 = vst [vmem:[#allocation70_spill] sm:$0xff] %v12358_v63  ;;  %v13960_v31 = vld [vmem:[#allocation71_spill] sm:$0xff]  ;;  %v12363_v56 = vld [vmem:[%s10727_s22 + $0x238] sm:$0xff] }
 0x33e   : > { %v936_v20 = vadd.f32 %v13958_v54, %v11995_v53  ;;  %v779_v48 = vmul.f32 %v12358_v63, %v13960_v31  ;;  %13961 = vst [vmem:[#allocation33_spill] sm:$0xff] %v12363_v56  ;;  %v13962_v38 = vld [vmem:[#allocation74_spill] sm:$0xff]  ;;  %v920_v4 = vadd.f32 %v919_v14, %v785_v25  ;;  %v12368_v29 = vld [vmem:[%s10727_s22 + $0x268] sm:$0xff]  ;;  %896 = vadd.xlane.f32.xlu1 %v895_v23  ;;  %v13966_v54 = vld [vmem:[#allocation37_spill] sm:$0xff] }
 0x33f   : > { %v787_v22 = vmul.f32 %v12363_v56, %v13962_v38  ;;  %13963 = vst [vmem:[#allocation76_spill] sm:$0xff] %v12368_v29  ;;  %v13964_v6 = vld [vmem:[#allocation34_spill] sm:$0xff]  ;;  %905 = vadd.xlane.f32.xlu0 %v904_v61  ;;  %v912_v10 = vadd.f32 %v911_v12, %v778_v46  ;;  %v928_v13 = vadd.f32 %v927_v52, %v12087_v35  ;;  %v12375_v5 = vld [vmem:[%s10727_s22 + $0x2a8] sm:$0xff]  ;;  %v12380_v14 = vld [vmem:[%s10727_s22 + $0x270] sm:$0xff] }
 0x340   : > { %v793_v36 = vmul.f32 %v12368_v29, %v13964_v6  ;;  %13965 = vst [vmem:[#allocation49_spill] sm:$0xff] %v12375_v5  ;;  %v801_v56 = vmul.f32 %v12375_v5, %v13966_v54  ;;  %v921_v25 = vadd.f32 %v920_v4, %v786_v41  ;;  %13967 = vst [vmem:[#allocation52_spill] sm:$0xff] %v12380_v14  ;;  %v13968_v63 = vld [vmem:[#allocation77_spill] sm:$0xff]  ;;  %v13970_v23 = vld [vmem:[#allocation80_spill] sm:$0xff] }
 0x341   : > { %v794_v6 = vmul.f32 %v12380_v14, %v13968_v63  ;;  %v12385_v53 = vld [vmem:[%s10727_s22 + $0x2b0] sm:$0xff]  ;;  %v937_v35 = vadd.f32 %v936_v20, %v12100_v50  ;;  %v913_v61 = vadd.f32 %v912_v10, %v779_v48  ;;  %v13972_v41 = vld [vmem:[#allocation56_spill] sm:$0xff]  ;;  %v12395_v14 = vld [vmem:[%s10727_s22 + $0x278] sm:$0xff] }
 0x342   : > { %13969 = vst [vmem:[#allocation71_spill] sm:$0xff] %v12385_v53  ;;  %v802_v46 = vmul.f32 %v12385_v53, %v13970_v23  ;;  %v929_v12 = vadd.f32 %v928_v13, %v793_v36  ;;  %v13971_v52 = vld [vmem:[#allocation53_spill] sm:$0xff]  ;;  %v954_v4 = vadd.f32 %v13972_v41, %v12007_v47  ;;  %v922_v5 = vadd.f32 %v921_v25, %v787_v22  ;;  %v13974_v29 = vld [vmem:[#allocation75_spill] sm:$0xff]  ;;  %v12400_v53 = vld [vmem:[%s10727_s22 + $0x2b8] sm:$0xff] }
 0x343   : > { %v945_v54 = vadd.f32 %v13971_v52, %v11999_v28  ;;  %13973 = vst [vmem:[#allocation74_spill] sm:$0xff] %v12395_v14  ;;  %v795_v63 = vmul.f32 %v12395_v14, %v13974_v29  ;;  %13975 = vst [vmem:[#allocation34_spill] sm:$0xff] %v12400_v53  ;;  %v13976_v50 = vld [vmem:[#allocation78_spill] sm:$0xff]  ;;  %v938_v20 = vadd.f32 %v937_v35, %v801_v56  ;;  %914 = vadd.xlane.f32.xlu1 %v913_v61  ;;  %v12405_v28 = vld [vmem:[%s10727_s22 + $0x2e8] sm:$0xff] }
 0x344   : > { %v803_v48 = vmul.f32 %v12400_v53, %v13976_v50  ;;  %v930_v36 = vadd.f32 %v929_v12, %v794_v6  ;;  %13977 = vst [vmem:[#allocation37_spill] sm:$0xff] %v12405_v28  ;;  %v13978_v10 = vld [vmem:[#allocation38_spill] sm:$0xff]  ;;  %v12411_v13 = vld [vmem:[%s10727_s22 + $0x328] sm:$0xff]  ;;  %v13980_v25 = vld [vmem:[#allocation59_spill] sm:$0xff]  ;;  %923 = vadd.xlane.f32.xlu0 %v922_v5 }
 0x345   : > { %v809_v47 = vmul.f32 %v12405_v28, %v13978_v10  ;;  %v946_v22 = vadd.f32 %v945_v54, %v12111_v11  ;;  %13979 = vst [vmem:[#allocation80_spill] sm:$0xff] %v12411_v13  ;;  %v817_v52 = vmul.f32 %v12411_v13, %v13980_v25  ;;  %v939_v41 = vadd.f32 %v938_v20, %v802_v46  ;;  %v12416_v53 = vld [vmem:[%s10727_s22 + $0x2f0] sm:$0xff]  ;;  %v13984_v61 = vld [vmem:[#allocation84_spill] sm:$0xff]  ;;  %v13987_v28 = vld [vmem:[#allocation79_spill] sm:$0xff] }
 0x346   : > { %13981 = vst [vmem:[#allocation53_spill] sm:$0xff] %v12416_v53  ;;  %v13982_v56 = vld [vmem:[#allocation81_spill] sm:$0xff]  ;;  %v955_v11 = vadd.f32 %v954_v4, %v12133_v51  ;;  %v931_v54 = vadd.f32 %v930_v36, %v795_v63  ;;  %v13986_v46 = vld [vmem:[#allocation36_spill] sm:$0xff]  ;;  %v13989_v51 = vld [vmem:[#allocation82_spill] sm:$0xff] }
 0x347   : > { %v810_v6 = vmul.f32 %v12416_v53, %v13982_v56  ;;  %v12421_v35 = vld [vmem:[%s10727_s22 + $0x330] sm:$0xff]  ;;  %v947_v10 = vadd.f32 %v946_v22, %v809_v47  ;;  %v972_v20 = vadd.f32 %v13986_v46, %v12019_v45  ;;  %v940_v13 = vadd.f32 %v939_v41, %v803_v48  ;;  %v12431_v53 = vld [vmem:[%s10727_s22 + $0x2f8] sm:$0xff]  ;;  %v12441_v36 = vld [vmem:[%s10727_s22 + $0x368] sm:$0xff] }
 0x348   : > { %13983 = vst [vmem:[#allocation56_spill] sm:$0xff] %v12421_v35  ;;  %v818_v12 = vmul.f32 %v12421_v35, %v13984_v61  ;;  %v13985_v25 = vld [vmem:[#allocation57_spill] sm:$0xff]  ;;  %v811_v14 = vmul.f32 %v12431_v53, %v13987_v28  ;;  %v12436_v35 = vld [vmem:[%s10727_s22 + $0x338] sm:$0xff]  ;;  %v956_v4 = vadd.f32 %v955_v11, %v817_v52  ;;  %932 = vadd.xlane.f32.xlu1 %v931_v54  ;;  %13990 = vst [vmem:[#allocation78_spill] sm:$0xff] %v12441_v36 }
 0x349   : > { %v963_v5 = vadd.f32 %v13985_v25, %v12011_v2  ;;  %13988 = vst [vmem:[#allocation75_spill] sm:$0xff] %v12436_v35  ;;  %v819_v63 = vmul.f32 %v12436_v35, %v13989_v51  ;;  %v948_v2 = vadd.f32 %v947_v10, %v810_v6  ;;  %v13991_v45 = vld [vmem:[#allocation60_spill] sm:$0xff]  ;;  %v13993_v41 = vld [vmem:[#allocation61_spill] sm:$0xff]  ;;  %941 = vadd.xlane.f32.xlu0 %v940_v13 }
 0x34a   : > { %v825_v48 = vmul.f32 %v12441_v36, %v13991_v45  ;;  %v12447_v22 = vld [vmem:[%s10727_s22 + $0x3a8] sm:$0xff]  ;;  %v957_v46 = vadd.f32 %v956_v4, %v818_v12  ;;  %v12452_v35 = vld [vmem:[%s10727_s22 + $0x370] sm:$0xff]  ;;  %v12468_v12 = vld [vmem:[%s10727_s22 + $0x378] sm:$0xff] }
 0x34b   : > { %v964_v47 = vadd.f32 %v963_v5, %v12137_v1  ;;  %13992 = vst [vmem:[#allocation38_spill] sm:$0xff] %v12447_v22  ;;  %v833_v25 = vmul.f32 %v12447_v22, %v13993_v41  ;;  %13994 = vst [vmem:[#allocation59_spill] sm:$0xff] %v12452_v35  ;;  %v13995_v52 = vld [vmem:[#allocation85_spill] sm:$0xff]  ;;  %v13997_v54 = vld [vmem:[#allocation88_spill] sm:$0xff]  ;;  %v973_v1 = vadd.f32 %v972_v20, %v12160_v37  ;;  %v13998_v5 = vsub.s32 1, %v12107_v21 }
 0x34c   : > { %v826_v6 = vmul.f32 %v12452_v35, %v13995_v52  ;;  %v12457_v11 = vld [vmem:[%s10727_s22 + $0x3b0] sm:$0xff]  ;;  %v949_v13 = vadd.f32 %v948_v2, %v811_v14  ;;  %14000 = vst [vmem:[#allocation57_spill] sm:$0xff] %v12468_v12  ;;  %v14001_v4 = vld [vmem:[#allocation83_spill] sm:$0xff]  ;;  %v14002_v35 = vsub.s32 3, %v12107_v21  ;;  %v958_v37 = vadd.f32 %v957_v46, %v819_v63  ;;  %v12478_v20 = vld [vmem:[%s10727_s22 + $0x3b8] sm:$0xff] }
 0x34d   : > { %13996 = vst [vmem:[#allocation81_spill] sm:$0xff] %v12457_v11  ;;  %v834_v10 = vmul.f32 %v12457_v11, %v13997_v54  ;;  %v12465_v45 = vrot.slane %v12170_v3, %v13998_v5  ;;  %v827_v41 = vmul.f32 %v12468_v12, %v14001_v4  ;;  %v965_v22 = vadd.f32 %v964_v47, %v825_v48  ;;  %v14005_v5 = vld [vmem:[#allocation86_spill] sm:$0xff]  ;;  %v12483_v36 = vld [vmem:[%s10727_s22 + $0x3e8] sm:$0xff]  ;;  %v14007_v21 = vld [vmem:[#allocation29_spill] sm:$0xff] }
 0x34e   : > { %v12475_v11 = vrot.slane %v12170_v3, %v14002_v35  ;;  %14004 = vst [vmem:[#allocation79_spill] sm:$0xff] %v12478_v20  ;;  %v835_v14 = vmul.f32 %v12478_v20, %v14005_v5  ;;  %v974_v2 = vadd.f32 %v973_v1, %v833_v25  ;;  %950 = vadd.xlane.f32.xlu1 %v949_v13  ;;  %v14006_v12 = vld [vmem:[#allocation62_spill] sm:$0xff]  ;;  %v12492_v63 = vld [vmem:[%s10727_s22 + $0x3f0] sm:$0xff]  ;;  %v10106_v13 = vld [vmem:[%s10718_s27 + $0x20] sm:$0xff] }
 0x34f   : > { %13999 = vst [vmem:[#allocation84_spill] sm:$0xff] %v12465_v45  ;;  %v966_v45 = vadd.f32 %v965_v22, %v826_v6  ;;  %v841_v48 = vmul.f32 %v12483_v36, %v14006_v12  ;;  %v981_v47 = vadd.f32 %v14007_v21, %v12023_v18  ;;  %v990_v3 = vmul.f32 %v12061_v49, %v12061_v49  ;;  %v14009_v46 = vld [vmem:[#allocation89_spill] sm:$0xff]  ;;  %v12497_v1 = vld [vmem:[%s10727_s22 + $0x3f8] sm:$0xff]  ;;  %v14011_v22 = vld [vmem:[#allocation87_spill] sm:$0xff]  ;;  %s13355_s22 = scalar_lea.sflag [#allocation13], %s388_s2 }
 0x350   : > { %14003 = vst [vmem:[#allocation36_spill] sm:$0xff] %v12475_v11  ;;  %959 = vadd.xlane.f32.xlu0 %v958_v37  ;;  %v975_v35 = vadd.f32 %v974_v2, %v834_v10  ;;  %14008 = vst [vmem:[#allocation82_spill] sm:$0xff] %v12492_v63  ;;  %v842_v25 = vmul.f32 %v12492_v63, %v14009_v46  ;;  %v843_v6 = vmul.f32 %v12497_v1, %v14011_v22  ;;  %v14012_v37 = vld [vmem:[#allocation92_spill] sm:$0xff]  ;;  %v14013_v10 = vld [vmem:[#allocation90_spill] sm:$0xff] }
 0x351   : > { %14010 = vst [vmem:[#allocation60_spill] sm:$0xff] %v12497_v1  ;;  %v992_v12 = vmul.f32 %v10106_v13, %v10106_v13  ;;  %v967_v20 = vadd.f32 %v966_v45, %v827_v41  ;;  %v982_v18 = vadd.f32 %v981_v47, %v12164_v8  ;;  %v993_v49 = vmul.f32 %v12147_v7, %v12147_v7  ;;  %v14015_v47 = vld [vmem:[#allocation91_spill] sm:$0xff] }
 0x352   : > { %v1116_v2 = vadd.f32 %v14013_v10, %v14012_v37  ;;  %v976_v21 = vadd.f32 %v975_v35, %v835_v14  ;;  %v994_v11 = vmul.f32 %v11490_v30, %v11490_v30  ;;  %v995_v63 = vmul.f32 %v11482_v26, %v11482_v26  ;;  %v14014_v26 = vld [vmem:[#allocation93_spill] sm:$0xff]  ;;  %v14018_v13 = vld [vmem:[#allocation39_spill] sm:$0xff] }
 0x353   : > { %v998_v1 = vmul.f32 %v12123_v44, %v12123_v44  ;;  %968 = vadd.xlane.f32.xlu1 %v967_v20  ;;  %v983_v45 = vadd.f32 %v982_v18, %v841_v48  ;;  %v1000_v8 = vmul.f32 %v12189_v16, %v12189_v16  ;;  %v1001_v7 = vmul.f32 %v12218_v62, %v12218_v62  ;;  %v14016_v48 = vld [vmem:[#allocation138_spill] sm:$0xff]  ;;  %v14019_v10 = vld [vmem:[#allocation141_spill] sm:$0xff] }
 0x354   : > { %v1117_v41 = vadd.f32 %v1116_v2, %v990_v3  ;;  %977 = vadd.xlane.f32.xlu0 %v976_v21  ;;  %v1002_v14 = vmul.f32 %v11493_v59, %v11493_v59  ;;  %v1003_v30 = vmul.f32 %v13922_v43, %v13922_v43  ;;  %v1125_v35 = vadd.f32 %v14015_v47, %v14014_v26  ;;  %v14017_v3 = vld [vmem:[#allocation140_spill] sm:$0xff] }
 0x355   : > { %v1009_v44 = vmul.f32 %v12203_v27, %v12203_v27  ;;  %v984_v20 = vadd.f32 %v983_v45, %v842_v25  ;;  %v1010_v62 = vmul.f32 %v11506_v42, %v11506_v42  ;;  %v1136_v18 = vadd.f32 %v14018_v13, %v14017_v3  ;;  %v14020_v2 = vld [vmem:[#allocation40_spill] sm:$0xff] }
 0x356   : > { %v1118_v16 = vadd.f32 %v1117_v41, %v14016_v48  ;;  %v1126_v59 = vadd.f32 %v1125_v35, %v998_v1  ;;  %v1011_v43 = vmul.f32 %v11496_v19, %v11496_v19  ;;  %v1017_v37 = vmul.f32 %v12253_v39, %v12253_v39  ;;  %v14021_v41 = vld [vmem:[#allocation139_spill] sm:$0xff]  ;;  %v10107_v47 = vld [vmem:[%s10718_s27 + $0x128] sm:$0xff] }
 0x357   : > { %v1145_v27 = vadd.f32 %v14020_v2, %v14019_v10  ;;  %v985_v21 = vadd.f32 %v984_v20, %v843_v6  ;;  %v1137_v45 = vadd.f32 %v1136_v18, %v12035_v32  ;;  %v1018_v42 = vmul.f32 %v13927_v17, %v13927_v17  ;;  %v14023_v32 = vld [vmem:[#allocation42_spill] sm:$0xff]  ;;  %v14024_v18 = vld [vmem:[#allocation155_spill] sm:$0xff] }
 0x358   : > { %v1119_v25 = vadd.f32 %v1118_v16, %v992_v12  ;;  %v1127_v26 = vadd.f32 %v1126_v59, %v14021_v41  ;;  %v1019_v1 = vmul.f32 %v13933_v0, %v13933_v0  ;;  %v1025_v35 = vmul.f32 %v10107_v47, %v10107_v47  ;;  %v14022_v12 = vld [vmem:[#allocation142_spill] sm:$0xff]  ;;  %v14026_v59 = vld [vmem:[#allocation43_spill] sm:$0xff] }
 0x359   : > { %v1146_v19 = vadd.f32 %v1145_v27, %v12039_v15  ;;  %986 = vadd.xlane.f32.xlu1 %v985_v21  ;;  %v1138_v48 = vadd.f32 %v1137_v45, %v1009_v44  ;;  %v1026_v6 = vmul.f32 %v13929_v57, %v13929_v57  ;;  %v1154_v20 = vadd.f32 %v14023_v32, %v14022_v12  ;;  %v14025_v44 = vld [vmem:[#allocation143_spill] sm:$0xff]  ;;  %v14027_v21 = vld [vmem:[#allocation156_spill] sm:$0xff] }
 0x35a   : > { %v1120_v39 = vadd.f32 %v1119_v25, %v993_v49  ;;  %v1128_v17 = vadd.f32 %v1127_v26, %v1000_v8  ;;  %v1027_v3 = vmul.f32 %v13935_v34, %v13935_v34  ;;  %v1033_v15 = vmul.f32 %v12292_v9, %v12292_v9  ;;  %v10108_v9 = vld [vmem:[%s10718_s27 + $0x1a8] sm:$0xff] }
 0x35b   : > { %v1147_v16 = vadd.f32 %v1146_v19, %v1017_v37  ;;  %v1139_v13 = vadd.f32 %v1138_v48, %v1010_v62  ;;  %v1155_v49 = vadd.f32 %v1154_v20, %v14024_v18  ;;  %v1163_v10 = vadd.f32 %v14026_v59, %v14025_v44  ;;  %v14028_v26 = vld [vmem:[#allocation144_spill] sm:$0xff]  ;;  %v14032_v48 = vld [vmem:[#allocation47_spill] sm:$0xff]  ;;  %v14033_v20 = vld [vmem:[#allocation73_spill] sm:$0xff] }
 0x35c   : > { %v1121_v0 = vadd.f32 %v1120_v39, %v994_v11  ;;  %v1129_v57 = vadd.f32 %v1128_v17, %v1001_v7  ;;  %v1034_v27 = vmul.f32 %v13940_v40, %v13940_v40  ;;  %v1035_v8 = vmul.f32 %v13947_v33, %v13947_v33  ;;  %v14029_v7 = vld [vmem:[#allocation46_spill] sm:$0xff]  ;;  %v10110_v44 = vld [vmem:[%s10718_s27 + $0x268] sm:$0xff] }
 0x35d   : > { %v1148_v2 = vadd.f32 %v1147_v16, %v1018_v42  ;;  %v1156_v34 = vadd.f32 %v1155_v49, %v1025_v35  ;;  %v1164_v25 = vadd.f32 %v1163_v10, %v14027_v21  ;;  %v1041_v11 = vmul.f32 %v10108_v9, %v10108_v9  ;;  %v14030_v35 = vld [vmem:[#allocation158_spill] sm:$0xff]  ;;  %v10109_v16 = vld [vmem:[%s10718_s27 + $0x228] sm:$0xff]  ;;  %v14040_v21 = vld [vmem:[#allocation77_spill] sm:$0xff] }
 0x35e   : > { %v1122_v37 = vadd.f32 %v1121_v0, %v995_v63  ;;  %v1130_v62 = vadd.f32 %v1129_v57, %v1002_v14  ;;  %v1140_v45 = vadd.f32 %v1139_v13, %v1011_v43  ;;  %v1042_v41 = vmul.f32 %v13942_v58, %v13942_v58  ;;  %v14031_v43 = vld [vmem:[#allocation145_spill] sm:$0xff]  ;;  %v14036_v0 = vld [vmem:[#allocation50_spill] sm:$0xff]  ;;  %v14037_v57 = vld [vmem:[#allocation160_spill] sm:$0xff] }
 0x35f   : > { %v1172_v42 = vadd.f32 %v14029_v7, %v14028_v26  ;;  %v1149_v40 = vadd.f32 %v1148_v2, %v1019_v1  ;;  %v1157_v19 = vadd.f32 %v1156_v34, %v1026_v6  ;;  %v1165_v47 = vadd.f32 %v1164_v25, %v1033_v15  ;;  %v14043_v26 = vld [vmem:[#allocation23_spill] sm:$0xff] }
 0x360   : > { %1123 = vadd.xlane.f32.xlu0 %v1122_v37  ;;  %v1043_v33 = vmul.f32 %v13949_v55, %v13949_v55  ;;  %v1131_v63 = vadd.f32 %v1130_v62, %v1003_v30  ;;  %v1049_v14 = vmul.f32 %v12331_v60, %v12331_v60  ;;  %v1181_v58 = vadd.f32 %v14032_v48, %v14031_v43  ;;  %v14034_v30 = vld [vmem:[#allocation159_spill] sm:$0xff]  ;;  %v14045_v48 = vld [vmem:[#allocation150_spill] sm:$0xff] }
 0x361   : > { %v1173_v39 = vadd.f32 %v1172_v42, %v14030_v35  ;;  %v1158_v12 = vadd.f32 %v1157_v19, %v1027_v3  ;;  %v1166_v32 = vadd.f32 %v1165_v47, %v1034_v27  ;;  %v1050_v1 = vmul.f32 %v14033_v20, %v14033_v20  ;;  %v14035_v60 = vld [vmem:[#allocation147_spill] sm:$0xff]  ;;  %v14038_v27 = vld [vmem:[#allocation148_spill] sm:$0xff] }
 0x362   : > { %v1051_v6 = vmul.f32 %v13960_v31, %v13960_v31  ;;  %1132 = vadd.xlane.f32.xlu1 %v1131_v63  ;;  %v1182_v17 = vadd.f32 %v1181_v58, %v14034_v30  ;;  %v1057_v15 = vmul.f32 %v10109_v16, %v10109_v16  ;;  %v1190_v13 = vadd.f32 %v14036_v0, %v14035_v60  ;;  %v14039_v37 = vld [vmem:[#allocation51_spill] sm:$0xff]  ;;  %v10112_v35 = vld [vmem:[%s10718_s27 + $0x2e8] sm:$0xff] }
 0x363   : > { %v1174_v55 = vadd.f32 %v1173_v39, %v1041_v11  ;;  %v1167_v18 = vadd.f32 %v1166_v32, %v1035_v8  ;;  %v1058_v3 = vmul.f32 %v13956_v24, %v13956_v24  ;;  %v1059_v49 = vmul.f32 %v13962_v38, %v13962_v38  ;;  %v10111_v24 = vld [vmem:[%s10718_s27 + $0x2a8] sm:$0xff]  ;;  %v14041_v11 = vld [vmem:[#allocation149_spill] sm:$0xff]  ;;  %v14042_v38 = vld [vmem:[#allocation54_spill] sm:$0xff] }
 0x364   : > { %1141 = vadd.xlane.f32.xlu0 %v1140_v45  ;;  %v1065_v31 = vmul.f32 %v10110_v44, %v10110_v44  ;;  %v1183_v10 = vadd.f32 %v1182_v17, %v1049_v14  ;;  %v1191_v2 = vadd.f32 %v1190_v13, %v14037_v57  ;;  %v1199_v34 = vadd.f32 %v14039_v37, %v14038_v27  ;;  %v14046_v58 = vld [vmem:[#allocation55_spill] sm:$0xff]  ;;  %v14049_v16 = vld [vmem:[#allocation28_spill] sm:$0xff] }
 0x365   : > { %v1175_v59 = vadd.f32 %v1174_v55, %v1042_v41  ;;  %v1066_v25 = vmul.f32 %v14040_v21, %v14040_v21  ;;  %v1067_v8 = vmul.f32 %v13974_v29, %v13974_v29  ;;  %v1073_v9 = vmul.f32 %v10111_v24, %v10111_v24  ;;  %v14044_v29 = vld [vmem:[#allocation161_spill] sm:$0xff]  ;;  %v14047_v55 = vld [vmem:[#allocation164_spill] sm:$0xff]  ;;  %v14053_v21 = vld [vmem:[#allocation27_spill] sm:$0xff] }
 0x366   : > { %v1208_v62 = vadd.f32 %v14042_v38, %v14041_v11  ;;  %1150 = vadd.xlane.f32.xlu1 %v1149_v40  ;;  %v1184_v45 = vadd.f32 %v1183_v10, %v1050_v1  ;;  %v1192_v41 = vadd.f32 %v1191_v2, %v1057_v15  ;;  %v1200_v7 = vadd.f32 %v1199_v34, %v14043_v26  ;;  %v10115_v27 = vld [vmem:[%s10718_s27 + $0x3a8] sm:$0xff]  ;;  %v14054_v24 = vld [vmem:[#allocation153_spill] sm:$0xff] }
 0x367   : > { %v1074_v42 = vmul.f32 %v13970_v23, %v13970_v23  ;;  %v1176_v19 = vadd.f32 %v1175_v59, %v1043_v33  ;;  %v1075_v47 = vmul.f32 %v13976_v50, %v13976_v50  ;;  %v1081_v39 = vmul.f32 %v10112_v35, %v10112_v35  ;;  %v14051_v59 = vld [vmem:[#allocation152_spill] sm:$0xff] }
 0x368   : > { %1159 = vadd.xlane.f32.xlu0 %v1158_v12  ;;  %v1209_v63 = vadd.f32 %v1208_v62, %v14044_v29  ;;  %v1193_v14 = vadd.f32 %v1192_v41, %v1058_v3  ;;  %v1201_v43 = vadd.f32 %v1200_v7, %v1065_v31  ;;  %v1082_v40 = vmul.f32 %v13982_v56, %v13982_v56  ;;  %v10113_v12 = vld [vmem:[%s10718_s27 + $0x328] sm:$0xff]  ;;  %v14048_v56 = vld [vmem:[#allocation151_spill] sm:$0xff] }
 0x369   : > { %v1217_v32 = vadd.f32 %v14046_v58, %v14045_v48  ;;  %v1185_v20 = vadd.f32 %v1184_v45, %v1051_v6  ;;  %v1083_v33 = vmul.f32 %v13987_v28, %v13987_v28  ;;  %v1089_v50 = vmul.f32 %v10113_v12, %v10113_v12  ;;  %v10114_v28 = vld [vmem:[%s10718_s27 + $0x368] sm:$0xff]  ;;  %v14057_v45 = vld [vmem:[#allocation58_spill] sm:$0xff] }
 0x36a   : > { %v1210_v23 = vadd.f32 %v1209_v63, %v1073_v9  ;;  %1168 = vadd.xlane.f32.xlu1 %v1167_v18  ;;  %v1202_v1 = vadd.f32 %v1201_v43, %v1066_v25  ;;  %v1090_v17 = vmul.f32 %v13984_v61, %v13984_v61  ;;  %v1226_v15 = vadd.f32 %v14049_v16, %v14048_v56  ;;  %v14050_v18 = vld [vmem:[#allocation165_spill] sm:$0xff]  ;;  %v14052_v61 = vld [vmem:[#allocation35_spill] sm:$0xff]  ;;  %v14055_v9 = vld [vmem:[#allocation30_spill] sm:$0xff] }
 0x36b   : > { %v1218_v30 = vadd.f32 %v1217_v32, %v14047_v55  ;;  %v1194_v60 = vadd.f32 %v1193_v14, %v1059_v49  ;;  %v1091_v0 = vmul.f32 %v13989_v51, %v13989_v51  ;;  %v1097_v13 = vmul.f32 %v10114_v28, %v10114_v28  ;;  %v10116_v38 = vld [vmem:[%s10718_s27 + $0x3e8] sm:$0xff]  ;;  %v14062_v58 = vld [vmem:[#allocation166_spill] sm:$0xff]  ;;  %v14069_v28 = vld [vmem:[#allocation173_spill] sm:$0xff] }
 0x36c   : > { %1177 = vadd.xlane.f32.xlu0 %v1176_v19  ;;  %v1211_v6 = vadd.f32 %v1210_v23, %v1074_v42  ;;  %v1227_v44 = vadd.f32 %v1226_v15, %v14050_v18  ;;  %v1098_v31 = vmul.f32 %v13995_v52, %v13995_v52  ;;  %v1235_v10 = vadd.f32 %v14052_v61, %v14051_v59  ;;  %v14058_v42 = vld [vmem:[#allocation167_spill] sm:$0xff]  ;;  %v14063_v23 = vld [vmem:[#allocation25_spill] sm:$0xff]  ;;  %v14065_v55 = vld [vmem:[#allocation24_spill] sm:$0xff] }
 0x36d   : > { %v1219_v3 = vadd.f32 %v1218_v30, %v1081_v39  ;;  %v1203_v57 = vadd.f32 %v1202_v1, %v1067_v8  ;;  %v1099_v49 = vmul.f32 %v14001_v4, %v14001_v4  ;;  %v1105_v37 = vmul.f32 %v10115_v27, %v10115_v27  ;;  %v14056_v4 = vld [vmem:[#allocation154_spill] sm:$0xff]  ;;  %v14060_v39 = vld [vmem:[#allocation157_spill] sm:$0xff]  ;;  %v14070_v18 = vld [vmem:[#allocation175_spill] sm:$0xff] }
 0x36e   : > { %v1212_v2 = vadd.f32 %v1211_v6, %v1075_v47  ;;  %1186 = vadd.xlane.f32.xlu1 %v1185_v20  ;;  %v1228_v34 = vadd.f32 %v1227_v44, %v1089_v50  ;;  %v1236_v25 = vadd.f32 %v1235_v10, %v14053_v21  ;;  %v1244_v11 = vadd.f32 %v14055_v9, %v14054_v24  ;;  %v14067_v15 = vld [vmem:[#allocation94_spill] sm:$0xff]  ;;  %v14068_v6 = vld [vmem:[#allocation168_spill] sm:$0xff]  ;;  %v14077_v24 = vld [vmem:[#allocation95_spill] sm:$0xff] }
 0x36f   : > { %v1220_v51 = vadd.f32 %v1219_v3, %v1082_v40  ;;  %v1106_v52 = vmul.f32 %v13997_v54, %v13997_v54  ;;  %v1107_v8 = vmul.f32 %v14005_v5, %v14005_v5  ;;  %v1113_v62 = vmul.f32 %v10116_v38, %v10116_v38  ;;  %v14059_v54 = vld [vmem:[#allocation171_spill] sm:$0xff]  ;;  %v14061_v40 = vld [vmem:[#allocation162_spill] sm:$0xff] }
 0x370   : > { %1195 = vadd.xlane.f32.xlu0 %v1194_v60  ;;  %v1253_v41 = vadd.f32 %v14057_v45, %v14056_v4  ;;  %v1229_v26 = vadd.f32 %v1228_v34, %v1090_v17  ;;  %v1237_v7 = vadd.f32 %v1236_v25, %v1097_v13  ;;  %v1245_v19 = vadd.f32 %v1244_v11, %v14058_v42  ;;  %v14066_v17 = vld [vmem:[#allocation169_spill] sm:$0xff]  ;;  %v14072_v61 = vld [vmem:[#allocation26_spill] sm:$0xff]  ;;  %v14080_v4 = vld [vmem:[#allocation124_spill] sm:$0xff] }
 0x371   : > { %v1114_v47 = vmul.f32 %v14009_v46, %v14009_v46  ;;  %v1221_v29 = vadd.f32 %v1220_v51, %v1083_v33  ;;  %v1115_v63 = vmul.f32 %v14011_v22, %v14011_v22  ;;  %v1262_v5 = vmul.f32 %v14060_v39, %v14060_v39  ;;  %v14064_v22 = vld [vmem:[#allocation163_spill] sm:$0xff]  ;;  %v14074_v27 = vld [vmem:[#allocation174_spill] sm:$0xff]  ;;  %v14075_v51 = vld [vmem:[#allocation96_spill] sm:$0xff] }
 0x372   : > { %v1254_v35 = vadd.f32 %v1253_v41, %v14059_v54  ;;  %1204 = vadd.xlane.f32.xlu1 %v1203_v57  ;;  %v1238_v14 = vadd.f32 %v1237_v7, %v1098_v31  ;;  %v1246_v43 = vadd.f32 %v1245_v19, %v1105_v37  ;;  %v1264_v48 = vmul.f32 %v14061_v40, %v14061_v40  ;;  %v14071_v31 = vld [vmem:[#allocation178_spill] sm:$0xff]  ;;  %v14078_v11 = vld [vmem:[#allocation177_spill] sm:$0xff]  ;;  %v14081_v41 = vld [vmem:[#allocation31_spill] sm:$0xff] }
 0x373   : > { %v1265_v32 = vmul.f32 %v14062_v58, %v14062_v58  ;;  %v1230_v46 = vadd.f32 %v1229_v26, %v1091_v0  ;;  %v1389_v33 = vadd.f32 %v14063_v23, %v1262_v5  ;;  %v1270_v12 = vmul.f32 %v14064_v22, %v14064_v22  ;;  %v14076_v34 = vld [vmem:[#allocation98_spill] sm:$0xff]  ;;  %v14082_v7 = vld [vmem:[#allocation97_spill] sm:$0xff]  ;;  %v14083_v42 = vld [vmem:[#allocation99_spill] sm:$0xff] }
 0x374   : > { %1213 = vadd.xlane.f32.xlu0 %v1212_v2  ;;  %v1255_v20 = vadd.f32 %v1254_v35, %v1113_v62  ;;  %v1239_v50 = vadd.f32 %v1238_v14, %v1099_v49  ;;  %v1247_v1 = vadd.f32 %v1246_v43, %v1106_v52  ;;  %v1266_v30 = vmul.f32 %v14065_v55, %v14065_v55  ;;  %v14073_v2 = vld [vmem:[#allocation170_spill] sm:$0xff]  ;;  %v14085_v54 = vld [vmem:[#allocation44_spill] sm:$0xff]  ;;  %v14086_v39 = vld [vmem:[#allocation101_spill] sm:$0xff] }
 0x375   : > { %v1267_v56 = vmul.f32 %v14066_v17, %v14066_v17  ;;  %v1390_v60 = vadd.f32 %v1389_v33, %v14067_v15  ;;  %v1272_v0 = vmul.f32 %v14068_v6, %v14068_v6  ;;  %v1273_v13 = vmul.f32 %v14069_v28, %v14069_v28  ;;  %v14087_v5 = vld [vmem:[#allocation103_spill] sm:$0xff]  ;;  %v14090_v23 = vld [vmem:[#allocation69_spill] sm:$0xff]  ;;  %v14095_v28 = vld [vmem:[#allocation48_spill] sm:$0xff] }
 0x376   : > { %v1256_v16 = vadd.f32 %v1255_v20, %v1114_v47  ;;  %1222 = vadd.xlane.f32.xlu1 %v1221_v29  ;;  %v1248_v3 = vadd.f32 %v1247_v1, %v1107_v8  ;;  %v1274_v44 = vmul.f32 %v14070_v18, %v14070_v18  ;;  %v1275_v59 = vmul.f32 %v14071_v31, %v14071_v31  ;;  %v14079_v8 = vld [vmem:[#allocation63_spill] sm:$0xff]  ;;  %v14084_v29 = vld [vmem:[#allocation68_spill] sm:$0xff]  ;;  %v14093_v15 = vld [vmem:[#allocation105_spill] sm:$0xff] }
 0x377   : > { %v1398_v10 = vadd.f32 %v14072_v61, %v1270_v12  ;;  %v1391_v57 = vadd.f32 %v1390_v60, %v1264_v48  ;;  %v1281_v49 = vmul.f32 %v14073_v2, %v14073_v2  ;;  %v1282_v37 = vmul.f32 %v14074_v27, %v14074_v27  ;;  %v14088_v48 = vld [vmem:[#allocation125_spill] sm:$0xff]  ;;  %v14091_v22 = vld [vmem:[#allocation127_spill] sm:$0xff] }
 0x378   : > { %1231 = vadd.xlane.f32.xlu0 %v1230_v46  ;;  %v1408_v21 = vadd.f32 %v14076_v34, %v14075_v51  ;;  %v1257_v25 = vadd.f32 %v1256_v16, %v1115_v63  ;;  %v1283_v52 = vmul.f32 %v14078_v11, %v14078_v11  ;;  %v1289_v38 = vmul.f32 %v14079_v8, %v14079_v8  ;;  %v14100_v51 = vld [vmem:[#allocation109_spill] sm:$0xff]  ;;  %v14101_v34 = vld [vmem:[#allocation111_spill] sm:$0xff] }
 0x379   : > { %v1399_v9 = vadd.f32 %v1398_v10, %v14077_v24  ;;  %v1392_v62 = vadd.f32 %v1391_v57, %v1265_v32  ;;  %v1290_v26 = vmul.f32 %v14081_v41, %v14081_v41  ;;  %v1417_v19 = vadd.f32 %v14083_v42, %v14082_v7  ;;  %v14089_v32 = vld [vmem:[#allocation66_spill] sm:$0xff]  ;;  %v14097_v10 = vld [vmem:[#allocation129_spill] sm:$0xff] }
 0x37a   : > { %v1409_v45 = vadd.f32 %v1408_v21, %v14080_v4  ;;  %1240 = vadd.xlane.f32.xlu1 %v1239_v50  ;;  %v1291_v63 = vmul.f32 %v14084_v29, %v14084_v29  ;;  %v1305_v35 = vmul.f32 %v14085_v54, %v14085_v54  ;;  %v1435_v14 = vadd.f32 %v14087_v5, %v14086_v39  ;;  %v14092_v50 = vld [vmem:[#allocation45_spill] sm:$0xff]  ;;  %v14110_v54 = vld [vmem:[#allocation119_spill] sm:$0xff] }
 0x37b   : > { %v1400_v47 = vadd.f32 %v1399_v9, %v1272_v0  ;;  %v1393_v43 = vadd.f32 %v1392_v62, %v1266_v30  ;;  %v1418_v58 = vadd.f32 %v1417_v19, %v14088_v48  ;;  %v1306_v46 = vmul.f32 %v14089_v32, %v14089_v32  ;;  %v14094_v30 = vld [vmem:[#allocation107_spill] sm:$0xff]  ;;  %v14102_v9 = vld [vmem:[#allocation74_spill] sm:$0xff]  ;;  %v14105_v4 = vld [vmem:[#allocation53_spill] sm:$0xff] }
 0x37c   : > { %1249 = vadd.xlane.f32.xlu0 %v1248_v3  ;;  %v1410_v40 = vadd.f32 %v1409_v45, %v1281_v49  ;;  %v1307_v33 = vmul.f32 %v14090_v23, %v14090_v23  ;;  %v1436_v12 = vadd.f32 %v1435_v14, %v14091_v22  ;;  %v1321_v1 = vmul.f32 %v14092_v50, %v14092_v50  ;;  %v14096_v3 = vld [vmem:[#allocation70_spill] sm:$0xff]  ;;  %v14106_v41 = vld [vmem:[#allocation113_spill] sm:$0xff]  ;;  %v14117_v22 = vld [vmem:[#allocation123_spill] sm:$0xff] }
 0x37d   : > { %v1401_v20 = vadd.f32 %v1400_v47, %v1273_v13  ;;  %v1394_v55 = vadd.f32 %v1393_v43, %v1267_v56  ;;  %v1419_v16 = vadd.f32 %v1418_v58, %v1289_v38  ;;  %v1453_v60 = vadd.f32 %v14094_v30, %v14093_v15  ;;  %v14098_v56 = vld [vmem:[#allocation76_spill] sm:$0xff]  ;;  %v14104_v38 = vld [vmem:[#allocation131_spill] sm:$0xff]  ;;  %v14108_v47 = vld [vmem:[#allocation78_spill] sm:$0xff] }
 0x37e   : > { %v1411_v17 = vadd.f32 %v1410_v40, %v1282_v37  ;;  %1258 = vadd.xlane.f32.xlu1 %v1257_v25  ;;  %v1437_v0 = vadd.f32 %v1436_v12, %v1305_v35  ;;  %v1322_v13 = vmul.f32 %v14095_v28, %v14095_v28  ;;  %v1323_v18 = vmul.f32 %v14096_v3, %v14096_v3  ;;  %v14099_v37 = vld [vmem:[#allocation52_spill] sm:$0xff]  ;;  %v14111_v5 = vld [vmem:[#allocation133_spill] sm:$0xff]  ;;  %v14112_v43 = vld [vmem:[#allocation59_spill] sm:$0xff] }
 0x37f   : > { %v1402_v6 = vadd.f32 %v1401_v20, %v1274_v44  ;;  %v1420_v61 = vadd.f32 %v1419_v16, %v1290_v26  ;;  %v1454_v57 = vadd.f32 %v1453_v60, %v14097_v10  ;;  %v1337_v2 = vmul.f32 %v14098_v56, %v14098_v56  ;;  %v14107_v26 = vld [vmem:[#allocation115_spill] sm:$0xff]  ;;  %v14113_v48 = vld [vmem:[#allocation57_spill] sm:$0xff]  ;;  %v14115_v20 = vld [vmem:[#allocation82_spill] sm:$0xff] }
 0x380   : > { %1395 = vadd.xlane.f32.xlu0 %v1394_v55  ;;  %v1412_v31 = vadd.f32 %v1411_v17, %v1283_v52  ;;  %v1438_v27 = vadd.f32 %v1437_v0, %v1306_v46  ;;  %v1338_v44 = vmul.f32 %v14099_v37, %v14099_v37  ;;  %v1471_v21 = vadd.f32 %v14101_v34, %v14100_v51  ;;  %v14103_v52 = vld [vmem:[#allocation37_spill] sm:$0xff]  ;;  %v14114_v58 = vld [vmem:[#allocation135_spill] sm:$0xff]  ;;  %v14118_v17 = vld [vmem:[#allocation60_spill] sm:$0xff] }
 0x381   : > { %v1403_v49 = vadd.f32 %v1402_v6, %v1275_v59  ;;  %v1421_v25 = vadd.f32 %v1420_v61, %v1291_v63  ;;  %v1455_v24 = vadd.f32 %v1454_v57, %v1321_v1  ;;  %v1339_v11 = vmul.f32 %v14102_v9, %v14102_v9  ;;  %v14109_v63 = vld [vmem:[#allocation117_spill] sm:$0xff]  ;;  %v14120_v6 = vld [vmem:[#allocation179_spill] sm:$0xff]  ;;  %v14121_v0 = vld [vmem:[#allocation100_spill] sm:$0xff] }
 0x382   : > { %v1353_v8 = vmul.f32 %v14103_v52, %v14103_v52  ;;  %v1472_v62 = vadd.f32 %v1471_v21, %v14104_v38  ;;  %v1354_v59 = vmul.f32 %v14105_v4, %v14105_v4  ;;  %v1355_v45 = vmul.f32 %v12431_v53, %v12431_v53  ;;  %v14119_v30 = vld [vmem:[#allocation137_spill] sm:$0xff]  ;;  %v14122_v28 = vld [vmem:[#allocation102_spill] sm:$0xff]  ;;  %v14128_v9 = vld [vmem:[#allocation72_spill] sm:$0xff] }
 0x383   : > { %1404 = vadd.xlane.f32.xlu1 %v1403_v49  ;;  %v1489_v7 = vadd.f32 %v14107_v26, %v14106_v41  ;;  %v1439_v42 = vadd.f32 %v1438_v27, %v1307_v33  ;;  %v1456_v19 = vadd.f32 %v1455_v24, %v1322_v13  ;;  %v1369_v29 = vmul.f32 %v14108_v47, %v14108_v47  ;;  %v14116_v33 = vld [vmem:[#allocation121_spill] sm:$0xff]  ;;  %v14126_v27 = vld [vmem:[#allocation64_spill] sm:$0xff] }
 0x384   : > { %1413 = vadd.xlane.f32.xlu0 %v1412_v31  ;;  %v1507_v35 = vadd.f32 %v14110_v54, %v14109_v63  ;;  %v1473_v39 = vadd.f32 %v1472_v62, %v1337_v2  ;;  %v1370_v40 = vmul.f32 %v14112_v43, %v14112_v43  ;;  %v1371_v53 = vmul.f32 %v14113_v48, %v14113_v48  ;;  %v14123_v61 = vld [vmem:[#allocation65_spill] sm:$0xff]  ;;  %v14125_v2 = vld [vmem:[#allocation126_spill] sm:$0xff]  ;;  %v14129_v52 = vld [vmem:[#allocation104_spill] sm:$0xff] }
 0x385   : > { %v1490_v14 = vadd.f32 %v1489_v7, %v14111_v5  ;;  %v1385_v46 = vmul.f32 %v12483_v36, %v12483_v36  ;;  %v1386_v23 = vmul.f32 %v14115_v20, %v14115_v20  ;;  %v1525_v12 = vadd.f32 %v14117_v22, %v14116_v33  ;;  %v14131_v62 = vld [vmem:[#allocation172_spill] sm:$0xff] }
 0x386   : > { %v1508_v32 = vadd.f32 %v1507_v35, %v14114_v58  ;;  %v1457_v50 = vadd.f32 %v1456_v19, %v1323_v18  ;;  %v1474_v1 = vadd.f32 %v1473_v39, %v1338_v44  ;;  %v1387_v16 = vmul.f32 %v14118_v17, %v14118_v17  ;;  %v14124_v18 = vld [vmem:[#allocation41_spill] sm:$0xff]  ;;  %v14127_v44 = vld [vmem:[#allocation32_spill] sm:$0xff]  ;;  %v14133_v19 = vld [vmem:[#allocation146_spill] sm:$0xff] }
 0x387   : > { %1422 = vadd.xlane.f32.xlu1 %v1421_v25  ;;  %v1491_v55 = vadd.f32 %v1490_v14, %v1353_v8  ;;  %v1526_v60 = vadd.f32 %v1525_v12, %v14119_v30  ;;  %v1297_v36 = vmul.f32 %v14120_v6, %v14120_v6  ;;  %v1426_v13 = vadd.f32 %v14122_v28, %v14121_v0  ;;  %v14130_v8 = vld [vmem:[#allocation106_spill] sm:$0xff]  ;;  %v14136_v54 = vld [vmem:[#allocation36_spill] sm:$0xff] }
 0x388   : > { %v1509_v15 = vadd.f32 %v1508_v32, %v1369_v29  ;;  %v1475_v3 = vadd.f32 %v1474_v1, %v1339_v11  ;;  %v1298_v10 = vmul.f32 %v14123_v61, %v14123_v61  ;;  %v1299_v57 = vmul.f32 %v14124_v18, %v14124_v18  ;;  %v14135_v29 = vld [vmem:[#allocation84_spill] sm:$0xff] }
 0x389   : > { %v1492_v31 = vadd.f32 %v1491_v55, %v1354_v59  ;;  %v1527_v56 = vadd.f32 %v1526_v60, %v1385_v46  ;;  %v1427_v49 = vadd.f32 %v1426_v13, %v14125_v2  ;;  %v1313_v37 = vmul.f32 %v14126_v27, %v14126_v27  ;;  %v14132_v59 = vld [vmem:[#allocation176_spill] sm:$0xff] }
 0x38a   : > { %v1314_v51 = vmul.f32 %v14127_v44, %v14127_v44  ;;  %v1510_v24 = vadd.f32 %v1509_v15, %v1370_v40  ;;  %v1315_v11 = vmul.f32 %v14128_v9, %v14128_v9  ;;  %v1444_v38 = vadd.f32 %v14130_v8, %v14129_v52  ;;  %v14137_v43 = vld [vmem:[#allocation128_spill] sm:$0xff]  ;;  %v14141_v44 = vld [vmem:[#allocation49_spill] sm:$0xff]  ;;  %v14144_v8 = vld [vmem:[#allocation114_spill] sm:$0xff] }
 0x38b   : > { %1440 = vadd.xlane.f32.xlu1 %v1439_v42  ;;  %v12751_v25 = vadd.f32 %v1492_v31, %v1355_v45  ;;  %v12761_v47 = vmul.f32 %v14133_v19, %v14133_v19  ;;  %v14134_v42 = vld [vmem:[#allocation67_spill] sm:$0xff]  ;;  %v1428_v14 = vadd.f32 %v1427_v49, %v1297_v36  ;;  %v1528_v33 = vadd.f32 %v1527_v56, %v1386_v23  ;;  %v14138_v13 = vld [vmem:[#allocation108_spill] sm:$0xff]  ;;  %v14139_v31 = vld [vmem:[#allocation110_spill] sm:$0xff] }
 0x38c   : > { %v12765_v45 = vmul.f32 %v14134_v42, %v14134_v42  ;;  %v1445_v40 = vadd.f32 %v1444_v38, %v14137_v43  ;;  %v12774_v55 = vadd.f32 %v1510_v24, %v1371_v53  ;;  %v1462_v61 = vadd.f32 %v14139_v31, %v14138_v13  ;;  %v14142_v24 = vld [vmem:[#allocation130_spill] sm:$0xff]  ;;  %v14143_v52 = vld [vmem:[#allocation112_spill] sm:$0xff] }
 0x38d   : > { %v1429_v23 = vadd.f32 %v1428_v14, %v1298_v10  ;;  %v12783_v53 = vadd.f32 %v1528_v33, %v1387_v16  ;;  %v14140_v10 = vld [vmem:[#allocation33_spill] sm:$0xff]  ;;  %v1480_v38 = vadd.f32 %v14144_v8, %v14143_v52  ;;  %v14146_v14 = vld [vmem:[#allocation34_spill] sm:$0xff]  ;;  %v14147_v33 = vld [vmem:[#allocation132_spill] sm:$0xff] }
 0x38e   : > { %v1446_v0 = vadd.f32 %v1445_v40, %v1313_v37  ;;  %v1331_v27 = vmul.f32 %v14140_v10, %v14140_v10  ;;  %v1345_v37 = vmul.f32 %v14141_v44, %v14141_v44  ;;  %v1463_v9 = vadd.f32 %v1462_v61, %v14142_v24  ;;  %v14151_v13 = vld [vmem:[#allocation56_spill] sm:$0xff]  ;;  %v14152_v61 = vld [vmem:[#allocation75_spill] sm:$0xff]  ;;  %v14154_v24 = vld [vmem:[#allocation134_spill] sm:$0xff] }
 0x38f   : > { %1458 = vadd.xlane.f32.xlu1 %v1457_v50  ;;  %v1430_v28 = vadd.f32 %v1429_v23, %v1299_v57  ;;  %v1347_v43 = vmul.f32 %v14146_v14, %v14146_v14  ;;  %v1362_v31 = vmul.f32 %v14151_v13, %v14151_v13  ;;  %v14155_v52 = vld [vmem:[#allocation120_spill] sm:$0xff]  ;;  %v14156_v8 = vld [vmem:[#allocation122_spill] sm:$0xff] }
 0x390   : > { %v6105_v34 = vpop.f32.mrb[0].mxu0  ;;  %v6557_v21 = vpop.f32.mrb[0].mxu1  ;;  %v1447_v49 = vadd.f32 %v1446_v0, %v1314_v51 }
 0x391   : > { %v6658_v4 = vadd.f32 %v14131_v62, %v6105_v34  ;;  %v6660_v41 = vadd.f32 %v14132_v59, %v6557_v21  ;;  %v6107_v26 = vpop.f32.mrb[1].mxu0  ;;  %v6559_v7 = vpop.f32.mrb[1].mxu1  ;;  %1431 = vadd.xlane.f32.xlu0 %v1430_v28 }
 0x392   : > { %v6659_v63 = vadd.f32 %v14135_v29, %v6107_v26  ;;  %v6661_v35 = vadd.f32 %v14136_v54, %v6559_v7  ;;  %v6109_v39 = vpop.f32.mrb[2].mxu0  ;;  %v6561_v5 = vpop.f32.mrb[2].mxu1  ;;  %v1448_v26 = vadd.f32 %v1447_v49, %v1315_v11  ;;  %v14145_v7 = vld [vmem:[#allocation71_spill] sm:$0xff] }
 0x393   : > { %v6724_v48 = vmax.f32 %v6660_v41, 0.0  ;;  %v6662_v58 = vadd.f32 %v14131_v62, %v6109_v39  ;;  %v6664_v32 = vadd.f32 %v14132_v59, %v6561_v5  ;;  %v6111_v46 = vpop.f32.mrb[3].mxu0  ;;  %v6563_v20 = vpop.f32.mrb[3].mxu1  ;;  %v6722_v17 = vmax.f32 %v6658_v4, 0.0  ;;  %1476 = vadd.xlane.f32.xlu1 %v1475_v3 }
 0x394   : > { %v6725_v22 = vmax.f32 %v6661_v35, 0.0  ;;  %v6663_v12 = vadd.f32 %v14135_v29, %v6111_v46  ;;  %v6665_v1 = vadd.f32 %v14136_v54, %v6563_v20  ;;  %v6723_v60 = vmax.f32 %v6659_v63, 0.0 }
 0x395   : > { %6786 = vst [vmem:[%s12778_s14] sm:$0xff] %v6724_v48  ;;  %v6726_v15 = vmax.f32 %v6662_v58, 0.0  ;;  %v6728_v30 = vmax.f32 %v6664_v32, 0.0  ;;  %v1346_v19 = vmul.f32 %v14145_v7, %v14145_v7  ;;  %1449 = vadd.xlane.f32.xlu0 %v1448_v26  ;;  %v1464_v20 = vadd.f32 %v1463_v9, %v12761_v47  ;;  %v14157_v26 = vld [vmem:[#allocation81_spill] sm:$0xff] }
 0x396   : > { %6787 = vst [vmem:[%s12778_s14 + $0x8] sm:$0xff] %v6725_v22  ;;  %v6727_v6 = vmax.f32 %v6663_v12, 0.0  ;;  %v6729_v36 = vmax.f32 %v6665_v1, 0.0  ;;  %v1481_v22 = vadd.f32 %v1480_v38, %v14147_v33  ;;  %v1516_v38 = vadd.f32 %v14156_v8, %v14155_v52 }
 0x397   : > { %v6818_v50 = vpack.c.bf16 %v6726_v15, %v6722_v17  ;;  %6788 = vst [vmem:[%s12778_s14 + $0x10] sm:$0xff] %v6728_v30  ;;  %1494 = vadd.xlane.f32.xlu1 %v12751_v25  ;;  %v14148_v15 = vld [vmem:[#allocation80_spill] sm:$0xff]  ;;  %v1465_v25 = vadd.f32 %v1464_v20, %v12765_v45  ;;  %v1378_v7 = vmul.f32 %v14157_v26, %v14157_v26 }
 0x398   : > { %v6819_v18 = vpack.c.bf16 %v6727_v6, %v6723_v60  ;;  %6789 = vst [vmem:[%s12778_s14 + $0x18] sm:$0xff] %v6729_v36  ;;  %v6115_v56 = vpop.f32.mrb[4].mxu0  ;;  %v6567_v2 = vpop.f32.mrb[4].mxu1  ;;  %v1361_v30 = vmul.f32 %v14148_v15, %v14148_v15  ;;  %v1482_v60 = vadd.f32 %v1481_v22, %v1345_v37  ;;  %v14149_v6 = vld [vmem:[#allocation116_spill] sm:$0xff]  ;;  %v14150_v36 = vld [vmem:[#allocation118_spill] sm:$0xff] }
 0x399   : > { %v6666_v34 = vadd.f32 %v14131_v62, %v6115_v56  ;;  %v6668_v16 = vadd.f32 %v14132_v59, %v6567_v2  ;;  %v6117_v57 = vpop.f32.mrb[5].mxu0  ;;  %v6569_v21 = vpop.f32.mrb[5].mxu1  ;;  %v1498_v0 = vadd.f32 %v14150_v36, %v14149_v6  ;;  %v14153_v56 = vld [vmem:[#allocation38_spill] sm:$0xff]  ;;  %v1466_v37 = vadd.f32 %v1465_v25, %v1331_v27  ;;  %v14159_v25 = vld [vmem:[#allocation79_spill] sm:$0xff] }
 0x39a   : > { %v6667_v3 = vadd.f32 %v14135_v29, %v6117_v57  ;;  %v6669_v51 = vadd.f32 %v14136_v54, %v6569_v21  ;;  %v6119_v4 = vpop.f32.mrb[6].mxu0  ;;  %v6571_v41 = vpop.f32.mrb[6].mxu1  ;;  %7001 = vmatprep.mubr.bf16.mxu0 %v6819_v18  ;;  %v1363_v18 = vmul.f32 %v14152_v61, %v14152_v61  ;;  %v1377_v2 = vmul.f32 %v14153_v56, %v14153_v56 }
 0x39b   : > { %v6732_v42 = vmax.f32 %v6668_v16, 0.0  ;;  %v6670_v63 = vadd.f32 %v14131_v62, %v6119_v4  ;;  %v6672_v35 = vadd.f32 %v14132_v59, %v6571_v41  ;;  %v6121_v39 = vpop.f32.mrb[7].mxu0  ;;  %v6573_v5 = vpop.f32.mrb[7].mxu1  ;;  %7002 = vmatmul.mubr.bf16.vlgmr.msra.gmra.mrb[32].mxu0 %v6818_v50  ;;  %v6730_v40 = vmax.f32 %v6666_v34, 0.0  ;;  %1512 = vadd.xlane.f32.xlu1 %v12774_v55 }
 0x39c   : > { %v6733_v48 = vmax.f32 %v6669_v51, 0.0  ;;  %v6671_v11 = vadd.f32 %v14135_v29, %v6121_v39  ;;  %v6673_v58 = vadd.f32 %v14136_v54, %v6573_v5  ;;  %v6731_v12 = vmax.f32 %v6667_v3, 0.0  ;;  %1467 = vadd.xlane.f32.xlu0 %v1466_v37 }
 0x39d   : > { %6790 = vst [vmem:[%s12778_s14 + $0x20] sm:$0xff] %v6732_v42  ;;  %v6734_v32 = vmax.f32 %v6670_v63, 0.0  ;;  %v6736_v46 = vmax.f32 %v6672_v35, 0.0  ;;  %v1483_v34 = vadd.f32 %v1482_v60, %v1346_v19  ;;  %v1499_v9 = vadd.f32 %v1498_v0, %v14154_v24 }
 0x39e   : > { %6791 = vst [vmem:[%s12778_s14 + $0x28] sm:$0xff] %v6733_v48  ;;  %v6735_v1 = vmax.f32 %v6671_v11, 0.0  ;;  %v6737_v17 = vmax.f32 %v6673_v58, 0.0  ;;  %v1379_v60 = vmul.f32 %v14159_v25, %v14159_v25 }
 0x39f   : > { %v6820_v23 = vpack.c.bf16 %v6734_v32, %v6730_v40  ;;  %6792 = vst [vmem:[%s12778_s14 + $0x30] sm:$0xff] %v6736_v46  ;;  %1530 = vadd.xlane.f32.xlu1 %v12783_v53  ;;  %v1484_v14 = vadd.f32 %v1483_v34, %v1347_v43  ;;  %v1500_v40 = vadd.f32 %v1499_v9, %v1361_v30  ;;  %v14158_v32 = vld [vmem:[#allocation136_spill] sm:$0xff] }
 0x3a0   : > { %v6821_v50 = vpack.c.bf16 %v6735_v1, %v6731_v12  ;;  %6793 = vst [vmem:[%s12778_s14 + $0x38] sm:$0xff] %v6737_v17  ;;  %v6125_v47 = vpop.f32.mrb[8].mxu0  ;;  %v6577_v28 = vpop.f32.mrb[8].mxu1  ;;  %v1517_v46 = vadd.f32 %v1516_v38, %v14158_v32 }
 0x3a1   : > { %v6674_v45 = vadd.f32 %v14131_v62, %v6125_v47  ;;  %v6676_v49 = vadd.f32 %v14132_v59, %v6577_v28  ;;  %v6127_v10 = vpop.f32.mrb[9].mxu0  ;;  %v6579_v44 = vpop.f32.mrb[9].mxu1  ;;  %1485 = vadd.xlane.f32.xlu0 %v1484_v14  ;;  %v1501_v33 = vadd.f32 %v1500_v40, %v1362_v31 }
 0x3a2   : > { %v6675_v16 = vadd.f32 %v14135_v29, %v6127_v10  ;;  %v6677_v55 = vadd.f32 %v14136_v54, %v6579_v44  ;;  %v6129_v57 = vpop.f32.mrb[10].mxu0  ;;  %v6581_v21 = vpop.f32.mrb[10].mxu1  ;;  %7009 = vmatprep.mubr.bf16.mxu0 %v6821_v50  ;;  %v1518_v1 = vadd.f32 %v1517_v46, %v1377_v2 }
 0x3a3   : > { %v6740_v3 = vmax.f32 %v6676_v49, 0.0  ;;  %v6678_v51 = vadd.f32 %v14131_v62, %v6129_v57  ;;  %v6680_v4 = vadd.f32 %v14132_v59, %v6581_v21  ;;  %v6131_v27 = vpop.f32.mrb[11].mxu0  ;;  %v6583_v41 = vpop.f32.mrb[11].mxu1  ;;  %7010 = vmatmul.mubr.bf16.gmra.mrb[36].mxu0 %v6820_v23  ;;  %v6738_v19 = vmax.f32 %v6674_v45, 0.0 }
 0x3a4   : > { %v6741_v42 = vmax.f32 %v6677_v55, 0.0  ;;  %v6679_v63 = vadd.f32 %v14135_v29, %v6131_v27  ;;  %v6681_v35 = vadd.f32 %v14136_v54, %v6583_v41  ;;  %v6739_v48 = vmax.f32 %v6675_v16, 0.0 }
 0x3a5   : > { %6794 = vst [vmem:[%s12778_s14 + $0x40] sm:$0xff] %v6740_v3  ;;  %v6742_v39 = vmax.f32 %v6678_v51, 0.0  ;;  %v6744_v5 = vmax.f32 %v6680_v4, 0.0  ;;  %v1502_v23 = vadd.f32 %v1501_v33, %v1363_v18  ;;  %v1519_v47 = vadd.f32 %v1518_v1, %v1378_v7 }
 0x3a6   : > { %6795 = vst [vmem:[%s12778_s14 + $0x48] sm:$0xff] %v6741_v42  ;;  %v6743_v11 = vmax.f32 %v6679_v63, 0.0  ;;  %v6745_v58 = vmax.f32 %v6681_v35, 0.0 }
 0x3a7   : > { %v6822_v20 = vpack.c.bf16 %v6742_v39, %v6738_v19  ;;  %6796 = vst [vmem:[%s12778_s14 + $0x50] sm:$0xff] %v6744_v5  ;;  %1503 = vadd.xlane.f32.xlu0 %v1502_v23  ;;  %v1520_v37 = vadd.f32 %v1519_v47, %v1379_v60 }
 0x3a8   : > { %v6823_v22 = vpack.c.bf16 %v6743_v11, %v6739_v48  ;;  %6797 = vst [vmem:[%s12778_s14 + $0x58] sm:$0xff] %v6745_v58  ;;  %v6135_v12 = vpop.f32.mrb[12].mxu0  ;;  %v6587_v53 = vpop.f32.mrb[12].mxu1 }
 0x3a9   : > { %v6682_v17 = vadd.f32 %v14131_v62, %v6135_v12  ;;  %v6684_v43 = vadd.f32 %v14132_v59, %v6587_v53  ;;  %v6137_v15 = vpop.f32.mrb[13].mxu0  ;;  %v6589_v30 = vpop.f32.mrb[13].mxu1 }
 0x3aa   : > { %v6683_v6 = vadd.f32 %v14135_v29, %v6137_v15  ;;  %v6685_v36 = vadd.f32 %v14136_v54, %v6589_v30  ;;  %v6139_v0 = vpop.f32.mrb[14].mxu0  ;;  %v6591_v50 = vpop.f32.mrb[14].mxu1  ;;  %7017 = vmatprep.mubr.bf16.mxu0 %v6823_v22 }
 0x3ab   : > { %v6748_v28 = vmax.f32 %v6684_v43, 0.0  ;;  %v6686_v13 = vadd.f32 %v14131_v62, %v6139_v0  ;;  %v6688_v31 = vadd.f32 %v14132_v59, %v6591_v50  ;;  %v6141_v61 = vpop.f32.mrb[15].mxu0  ;;  %v6593_v18 = vpop.f32.mrb[15].mxu1  ;;  %7018 = vmatmul.mubr.bf16.gmra.mrb[40].mxu0 %v6822_v20  ;;  %v6746_v49 = vmax.f32 %v6682_v17, 0.0  ;;  %1521 = vadd.xlane.f32.xlu0 %v1520_v37 }
 0x3ac   : > { %v6749_v56 = vmax.f32 %v6685_v36, 0.0  ;;  %v6687_v2 = vadd.f32 %v14135_v29, %v6141_v61  ;;  %v6689_v45 = vadd.f32 %v14136_v54, %v6593_v18  ;;  %v6747_v34 = vmax.f32 %v6683_v6, 0.0 }
 0x3ad   : > { %6798 = vst [vmem:[%s12778_s14 + $0x60] sm:$0xff] %v6748_v28  ;;  %v6750_v10 = vmax.f32 %v6686_v13, 0.0  ;;  %v6752_v44 = vmax.f32 %v6688_v31, 0.0 }
 0x3ae   : > { %6799 = vst [vmem:[%s12778_s14 + $0x68] sm:$0xff] %v6749_v56  ;;  %v6751_v16 = vmax.f32 %v6687_v2, 0.0  ;;  %v6753_v55 = vmax.f32 %v6689_v45, 0.0 }
 0x3af   : > { %v6824_v57 = vpack.c.bf16 %v6750_v10, %v6746_v49  ;;  %6800 = vst [vmem:[%s12778_s14 + $0x70] sm:$0xff] %v6752_v44 }
 0x3b0   : > { %v6825_v21 = vpack.c.bf16 %v6751_v16, %v6747_v34  ;;  %6801 = vst [vmem:[%s12778_s14 + $0x78] sm:$0xff] %v6753_v55  ;;  %v6145_v24 = vpop.f32.mrb[16].mxu0  ;;  %v6597_v9 = vpop.f32.mrb[16].mxu1 }
 0x3b1   : > { %v6690_v52 = vadd.f32 %v14131_v62, %v6145_v24  ;;  %v6692_v8 = vadd.f32 %v14132_v59, %v6597_v9  ;;  %v6147_v38 = vpop.f32.mrb[17].mxu0  ;;  %v6599_v3 = vpop.f32.mrb[17].mxu1 }
 0x3b2   : > { %v6691_v51 = vadd.f32 %v14135_v29, %v6147_v38  ;;  %v6693_v4 = vadd.f32 %v14136_v54, %v6599_v3  ;;  %v6149_v27 = vpop.f32.mrb[18].mxu0  ;;  %v6601_v41 = vpop.f32.mrb[18].mxu1  ;;  %7025 = vmatprep.mubr.bf16.mxu0 %v6825_v21 }
 0x3b3   : > { %v6756_v26 = vmax.f32 %v6692_v8, 0.0  ;;  %v6694_v7 = vadd.f32 %v14131_v62, %v6149_v27  ;;  %v6696_v19 = vadd.f32 %v14132_v59, %v6601_v41  ;;  %v6151_v42 = vpop.f32.mrb[19].mxu0  ;;  %v6603_v63 = vpop.f32.mrb[19].mxu1  ;;  %7026 = vmatmul.mubr.bf16.gmra.mrb[44].mxu0 %v6824_v57  ;;  %v6754_v14 = vmax.f32 %v6690_v52, 0.0 }
 0x3b4   : > { %v6757_v35 = vmax.f32 %v6693_v4, 0.0  ;;  %v6695_v39 = vadd.f32 %v14135_v29, %v6151_v42  ;;  %v6697_v5 = vadd.f32 %v14136_v54, %v6603_v63  ;;  %v6755_v11 = vmax.f32 %v6691_v51, 0.0 }
 0x3b5   : > { %6802 = vst [vmem:[%s12778_s14 + $0x80] sm:$0xff] %v6756_v26  ;;  %v6758_v40 = vmax.f32 %v6694_v7, 0.0  ;;  %v6760_v48 = vmax.f32 %v6696_v19, 0.0 }
 0x3b6   : > { %6803 = vst [vmem:[%s12778_s14 + $0x88] sm:$0xff] %v6757_v35  ;;  %v6759_v58 = vmax.f32 %v6695_v39, 0.0  ;;  %v6761_v32 = vmax.f32 %v6697_v5, 0.0 }
 0x3b7   : > { %v6826_v46 = vpack.c.bf16 %v6758_v40, %v6754_v14  ;;  %6804 = vst [vmem:[%s12778_s14 + $0x90] sm:$0xff] %v6760_v48 }
 0x3b8   : > { %v6827_v20 = vpack.c.bf16 %v6759_v58, %v6755_v11  ;;  %6805 = vst [vmem:[%s12778_s14 + $0x98] sm:$0xff] %v6761_v32  ;;  %v6155_v33 = vpop.f32.mrb[20].mxu0  ;;  %v6607_v22 = vpop.f32.mrb[20].mxu1 }
 0x3b9   : > { %v6698_v12 = vadd.f32 %v14131_v62, %v6155_v33  ;;  %v6700_v53 = vadd.f32 %v14132_v59, %v6607_v22  ;;  %v6157_v1 = vpop.f32.mrb[21].mxu0  ;;  %v6609_v17 = vpop.f32.mrb[21].mxu1 }
 0x3ba   : > { %v6699_v43 = vadd.f32 %v14135_v29, %v6157_v1  ;;  %v6701_v15 = vadd.f32 %v14136_v54, %v6609_v17  ;;  %v6159_v30 = vpop.f32.mrb[22].mxu0  ;;  %v6611_v23 = vpop.f32.mrb[22].mxu1  ;;  %7033 = vmatprep.mubr.bf16.mxu1 %v6827_v20 }
 0x3bb   : > { %v6764_v25 = vmax.f32 %v6700_v53, 0.0  ;;  %v6702_v60 = vadd.f32 %v14131_v62, %v6159_v30  ;;  %v6704_v6 = vadd.f32 %v14132_v59, %v6611_v23  ;;  %v6161_v36 = vpop.f32.mrb[23].mxu0  ;;  %v6613_v0 = vpop.f32.mrb[23].mxu1  ;;  %7034 = vmatmul.mubr.bf16.vlgmr.msra.gmra.mrb[32].mxu1 %v6826_v46  ;;  %v6762_v13 = vmax.f32 %v6698_v12, 0.0 }
 0x3bc   : > { %v6765_v50 = vmax.f32 %v6701_v15, 0.0  ;;  %v6703_v47 = vadd.f32 %v14135_v29, %v6161_v36  ;;  %v6705_v28 = vadd.f32 %v14136_v54, %v6613_v0  ;;  %v6763_v18 = vmax.f32 %v6699_v43, 0.0 }
 0x3bd   : > { %6806 = vst [vmem:[%s12778_s14 + $0xa0] sm:$0xff] %v6764_v25  ;;  %v6766_v31 = vmax.f32 %v6702_v60, 0.0  ;;  %v6768_v61 = vmax.f32 %v6704_v6, 0.0  ;;  %v12903_v25 = vpop.xlane.xlu0 %851 }
 0x3be   : > { %6807 = vst [vmem:[%s12778_s14 + $0xa8] sm:$0xff] %v6765_v50  ;;  %v6767_v56 = vmax.f32 %v6703_v47, 0.0  ;;  %v6769_v2 = vmax.f32 %v6705_v28, 0.0 }
 0x3bf   : > { %v6828_v45 = vpack.c.bf16 %v6766_v31, %v6762_v13  ;;  %6808 = vst [vmem:[%s12778_s14 + $0xb0] sm:$0xff] %v6768_v61 }
 0x3c0   : > { %v6829_v49 = vpack.c.bf16 %v6767_v56, %v6763_v18  ;;  %6809 = vst [vmem:[%s12778_s14 + $0xb8] sm:$0xff] %v6769_v2  ;;  %v6165_v10 = vpop.f32.mrb[24].mxu0  ;;  %v6617_v44 = vpop.f32.mrb[24].mxu1 }
 0x3c1   : > { %v6706_v37 = vadd.f32 %v14131_v62, %v6165_v10  ;;  %v6708_v34 = vadd.f32 %v14132_v59, %v6617_v44  ;;  %v6167_v16 = vpop.f32.mrb[25].mxu0  ;;  %v6619_v55 = vpop.f32.mrb[25].mxu1 }
 0x3c2   : > { %v6707_v57 = vadd.f32 %v14135_v29, %v6167_v16  ;;  %v6709_v21 = vadd.f32 %v14136_v54, %v6619_v55  ;;  %v6169_v24 = vpop.f32.mrb[26].mxu0  ;;  %v6621_v9 = vpop.f32.mrb[26].mxu1  ;;  %7041 = vmatprep.mubr.bf16.mxu1 %v6829_v49 }
 0x3c3   : > { %v6772_v52 = vmax.f32 %v6708_v34, 0.0  ;;  %v6710_v8 = vadd.f32 %v14131_v62, %v6169_v24  ;;  %v6712_v38 = vadd.f32 %v14132_v59, %v6621_v9  ;;  %v6171_v3 = vpop.f32.mrb[27].mxu0  ;;  %v6623_v51 = vpop.f32.mrb[27].mxu1  ;;  %7042 = vmatmul.mubr.bf16.gmra.mrb[36].mxu1 %v6828_v45  ;;  %v6770_v26 = vmax.f32 %v6706_v37, 0.0 }
 0x3c4   : > { %v6773_v4 = vmax.f32 %v6709_v21, 0.0  ;;  %v6711_v27 = vadd.f32 %v14135_v29, %v6171_v3  ;;  %v6713_v41 = vadd.f32 %v14136_v54, %v6623_v51  ;;  %v6771_v42 = vmax.f32 %v6707_v57, 0.0  ;;  %v12909_v28 = vpop.xlane.xlu0 %860  ;;  %v870_v9 = vpop.xlane.xlu1 %869 }
 0x3c5   : > { %6810 = vst [vmem:[%s12778_s14 + $0xc0] sm:$0xff] %v6772_v52  ;;  %v6774_v7 = vmax.f32 %v6710_v8, 0.0  ;;  %v6776_v19 = vmax.f32 %v6712_v38, 0.0 }
 0x3c6   : > { %6811 = vst [vmem:[%s12778_s14 + $0xc8] sm:$0xff] %v6773_v4  ;;  %v6775_v63 = vmax.f32 %v6711_v27, 0.0  ;;  %v6777_v35 = vmax.f32 %v6713_v41, 0.0  ;;  %v12938_v4 = vld [vmem:[%s13573_s6] ss:$0 sm:$0xff] }
 0x3c7   : > { %v6830_v39 = vpack.c.bf16 %v6774_v7, %v6770_v26  ;;  %6812 = vst [vmem:[%s12778_s14 + $0xd0] sm:$0xff] %v6776_v19 }
 0x3c8   : > { %v6831_v5 = vpack.c.bf16 %v6775_v63, %v6771_v42  ;;  %6813 = vst [vmem:[%s12778_s14 + $0xd8] sm:$0xff] %v6777_v35  ;;  %v6175_v14 = vpop.f32.mrb[28].mxu0  ;;  %v6627_v40 = vpop.f32.mrb[28].mxu1 }
 0x3c9   : > { %v6714_v48 = vadd.f32 %v14131_v62, %v6175_v14  ;;  %v6716_v11 = vadd.f32 %v14132_v59, %v6627_v40  ;;  %v6177_v58 = vpop.f32.mrb[29].mxu0  ;;  %v6629_v32 = vpop.f32.mrb[29].mxu1 }
 0x3ca   : > { %v6715_v46 = vadd.f32 %v14135_v29, %v6177_v58  ;;  %v6717_v20 = vadd.f32 %v14136_v54, %v6629_v32  ;;  %v6179_v33 = vpop.f32.mrb[30].mxu0  ;;  %v6631_v22 = vpop.f32.mrb[30].mxu1  ;;  %7049 = vmatprep.mubr.bf16.mxu1 %v6831_v5 }
 0x3cb   : > { %v6780_v12 = vmax.f32 %v6716_v11, 0.0  ;;  %v6718_v53 = vadd.f32 %v14131_v62, %v6179_v33  ;;  %v6720_v1 = vadd.f32 %v14132_v59, %v6631_v22  ;;  %v6181_v17 = vpop.f32.mrb[31].mxu0  ;;  %v6633_v43 = vpop.f32.mrb[31].mxu1  ;;  %7050 = vmatmul.mubr.bf16.gmra.mrb[40].mxu1 %v6830_v39  ;;  %v6778_v60 = vmax.f32 %v6714_v48, 0.0 }
 0x3cc   : > { %v6781_v15 = vmax.f32 %v6717_v20, 0.0  ;;  %v6719_v30 = vadd.f32 %v14135_v29, %v6181_v17  ;;  %v6721_v23 = vadd.f32 %v14136_v54, %v6633_v43  ;;  %v6779_v0 = vmax.f32 %v6715_v46, 0.0  ;;  %v12911_v29 = vpop.xlane.xlu0 %887 }
 0x3cd   : > { %6814 = vst [vmem:[%s12778_s14 + $0xe0] sm:$0xff] %v6780_v12  ;;  %v6782_v6 = vmax.f32 %v6718_v53, 0.0  ;;  %v6784_v36 = vmax.f32 %v6720_v1, 0.0 }
 0x3ce   : > { %6815 = vst [vmem:[%s12778_s14 + $0xe8] sm:$0xff] %v6781_v15  ;;  %v6783_v62 = vmax.f32 %v6719_v30, 0.0  ;;  %v6785_v59 = vmax.f32 %v6721_v23, 0.0 }
 0x3cf   : > { %v6832_v50 = vpack.c.bf16 %v6782_v6, %v6778_v60  ;;  %6816 = vst [vmem:[%s12778_s14 + $0xf0] sm:$0xff] %v6784_v36 }
 0x3d0   : > { %v6833_v47 = vpack.c.bf16 %v6783_v62, %v6779_v0  ;;  %6817 = vst [vmem:[%s12778_s14 + $0xf8] sm:$0xff] %v6785_v59  ;;  %v12913_v54 = vpop.xlane.xlu0 %905 }
 0x3d2   : > { %7057 = vmatprep.mubr.bf16.mxu1 %v6833_v47 }
 0x3d3   : > { %7058 = vmatmul.mubr.bf16.gmra.mrb[44].mxu1 %v6832_v50 }
 0x3d4   : > { %v12915_v13 = vpop.xlane.xlu0 %923 }
 0x3d8   : > { %v12917_v31 = vpop.xlane.xlu0 %941 }
 0x3dd   : > { %v12919_v61 = vpop.xlane.xlu0 %959 }
 0x3e1   : > { %v12921_v18 = vpop.xlane.xlu0 %977 }
 0x3e2   : > { %14160 = vst [vmem:[#allocation61_spill] sm:$0xff] %v12921_v18 }
 0x3ed   : > { %v12923_v56 = vpop.xlane.xlu0 %1123 }
 0x3f1   : > { %v1142_v2 = vpop.xlane.xlu0 %1141 }
 0x3f2   : > { %v1534_v16 = vmax.f32 %v1142_v2, 1e-16 }
 0x3f4   : > { %9779 = vrsqrt.f32 %v1534_v16 }
 0x3f5   : > { %v1160_v45 = vpop.xlane.xlu0 %1159 }
 0x3f6   : > { %v1536_v63 = vmax.f32 %v1160_v45, 1e-16 }
 0x3f9   : > { %v1178_v49 = vpop.xlane.xlu0 %1177 }
 0x3fa   : > { %v1538_v14 = vmax.f32 %v1178_v49, 1e-16 }
 0x3fd   : > { %v1196_v10 = vpop.xlane.xlu0 %1195 }
 0x3fe   : > { %v9780_v24 = vpop.eup %9779  ;;  %v1540_v12 = vmax.f32 %v1196_v10, 1e-16 }
 0x3ff   : > { %v1566_v52 = vmul.f32 %v9780_v24, %v870_v9 }
 0x401   : > { %v12925_v44 = vpop.xlane.xlu0 %1213 }
 0x402   : > { %v1542_v60 = vmax.f32 %v12925_v44, 1e-16 }
 0x405   : > { %v12927_v37 = vpop.xlane.xlu0 %1231 }
 0x406   : > { %v1544_v49 = vmax.f32 %v12927_v37, 1e-16 }
 0x409   : > { %v12929_v34 = vpop.xlane.xlu0 %1249 }
 0x40d   : > { %v12931_v55 = vpop.xlane.xlu0 %1395 }
 0x411   : > { %v1414_v57 = vpop.xlane.xlu0 %1413 }
 0x412   : > { %v1582_v21 = vmax.f32 %v1414_v57, 1e-16 }
 0x414   : > { %9781 = vrsqrt.f32 %v1582_v21 }
 0x415   : > { %9783 = vrsqrt.f32 %v1536_v63 }
 0x416   : > { %9785 = vrsqrt.f32 %v1538_v14 }
 0x41e   : > { %v9782_v8 = vpop.eup %9781  ;;  %v1432_v51 = vpop.xlane.xlu0 %1431 }
 0x41f   : > { %v12933_v38 = vmul.f32 %v9782_v8, %v1566_v52  ;;  %v1584_v58 = vmax.f32 %v1432_v51, 1e-16  ;;  %v9784_v50 = vpop.eup %9783 }
 0x420   : > { %v9786_v10 = vpop.eup %9785  ;;  %v1568_v16 = vmul.f32 %v9784_v50, %v12911_v29 }
 0x421   : > { %9787 = vrsqrt.f32 %v1584_v58 }
 0x422   : > { %v1450_v5 = vpop.xlane.xlu0 %1449  ;;  %9789 = vrsqrt.f32 %v1540_v12 }
 0x423   : > { %v1586_v17 = vmax.f32 %v1450_v5, 1e-16 }
 0x425   : > { %9791 = vrsqrt.f32 %v1586_v17 }
 0x426   : > { %9793 = vrsqrt.f32 %v1542_v60 }
 0x429   : > { %v1468_v1 = vpop.xlane.xlu0 %1467 }
 0x42a   : > { %v1588_v36 = vmax.f32 %v1468_v1, 1e-16 }
 0x42b   : > { %v9788_v24 = vpop.eup %9787 }
 0x42c   : > { %9795 = vrsqrt.f32 %v1588_v36  ;;  %v9790_v51 = vpop.eup %9789 }
 0x42d   : > { %9797 = vrsqrt.f32 %v1544_v49  ;;  %v1572_v5 = vmul.f32 %v9790_v51, %v12915_v13 }
 0x42e   : > { %v1486_v59 = vpop.xlane.xlu0 %1485 }
 0x42f   : > { %v1590_v44 = vmax.f32 %v1486_v59, 1e-16 }
 0x431   : > { %9799 = vrsqrt.f32 %v1590_v44 }
 0x434   : > { %v1504_v8 = vpop.xlane.xlu0 %1503 }
 0x435   : > { %v1592_v37 = vmax.f32 %v1504_v8, 1e-16 }
 0x437   : > { %9801 = vrsqrt.f32 %v1592_v37 }
 0x46e   : > { %v8381_v3 = vpop.f32.mrb[32].mxu0 }
 0x46f   : > { %v8382_v27 = vpop.f32.mrb[33].mxu0 }
 0x470   : > { %v8383_v41 = vadd.f32 %v8382_v27, %v8381_v3  ;;  %v8384_v26 = vpop.f32.mrb[34].mxu0  ;;  %v1570_v27 = vmul.f32 %v9786_v10, %v12913_v54 }
 0x471   : > { %v8385_v7 = vpop.f32.mrb[35].mxu0 }
 0x472   : > { %v7004_v19 = vadd.f32 %v8383_v41, %v12938_v4  ;;  %v8386_v42 = vadd.f32 %v8385_v7, %v8384_v26  ;;  %v12989_v26 = vmul.f32 %v9788_v24, %v1568_v16  ;;  %v9792_v7 = vpop.eup %9791 }
 0x474   : > { %v12942_v35 = vmax.f32 %v7004_v19, 0.0  ;;  %v7007_v39 = vadd.f32 %v8386_v42, %v12938_v4 }
 0x476   : > { %7082 = vst [vmem:[%s12947_s0] sm:$0xff] %v12942_v35  ;;  %v12951_v40 = vmax.f32 %v7007_v39, 0.0  ;;  %v8387_v48 = vpop.f32.mrb[36].mxu0  ;;  %7114 = vrot.lane.b32.xlu0 %v12942_v35, %s10411_s24  ;;  %v12962_v53 = vmul.f32 %v12942_v35, %v12942_v35  ;;  %v9794_v39 = vpop.eup %9793 }
 0x477   : > { %v8388_v11 = vpop.f32.mrb[37].mxu0  ;;  %v1574_v13 = vmul.f32 %v9794_v39, %v12917_v31 }
 0x478   : > { %7083 = vst [vmem:[%s12947_s0 + $0x8] sm:$0xff] %v12951_v40  ;;  %v8389_v32 = vadd.f32 %v8388_v11, %v8387_v48  ;;  %v8390_v46 = vpop.f32.mrb[38].mxu0  ;;  %7116 = vrot.lane.b32.xlu1 %v12951_v40, %s10411_s24  ;;  %v12996_v48 = vmul.f32 %v9792_v7, %v1570_v27  ;;  %v9796_v11 = vpop.eup %9795  ;;  %v7243_v27 = vsel %vm7178_vm0, %v12962_v53, 0.0 }
 0x479   : > { %v8391_v20 = vpop.f32.mrb[39].mxu0  ;;  %v13009_v1 = vmul.f32 %v9796_v11, %v1572_v5 }
 0x47a   : > { %v7012_v33 = vadd.f32 %v8389_v32, %v12938_v4  ;;  %v8392_v22 = vadd.f32 %v8391_v20, %v8390_v46  ;;  %v13004_v20 = vmul.f32 %v12951_v40, %v12951_v40 }
 0x47c   : > { %v12964_v43 = vmax.f32 %v7012_v33, 0.0  ;;  %v7015_v15 = vadd.f32 %v8392_v22, %v12938_v4  ;;  %7307 = vrot.lane.b32.xlu1 %v12962_v53, %s10411_s24  ;;  %v9798_v33 = vpop.eup %9797  ;;  %v7246_v36 = vsel %vm7178_vm0, %v13004_v20, 0.0 }
 0x47d   : > { %v9800_v17 = vpop.eup %9799 }
 0x47e   : > { %7084 = vst [vmem:[%s12947_s0 + $0x10] sm:$0xff] %v12964_v43  ;;  %v12971_v30 = vmax.f32 %v7015_v15, 0.0  ;;  %v8393_v23 = vpop.f32.mrb[40].mxu0  ;;  %v13020_v59 = vmul.f32 %v9800_v17, %v1574_v13  ;;  %v9802_v50 = vpop.eup %9801 }
 0x47f   : > { %v8394_v6 = vpop.f32.mrb[41].mxu0 }
 0x480   : > { %7085 = vst [vmem:[%s12947_s0 + $0x18] sm:$0xff] %v12971_v30  ;;  %v8395_v0 = vadd.f32 %v8394_v6, %v8393_v23  ;;  %v8396_v62 = vpop.f32.mrb[42].mxu0  ;;  %v1576_v6 = vmul.f32 %v9798_v33, %v12919_v61  ;;  %14161 = vst [vmem:[#allocation85_spill] sm:$0xff] %v13020_v59 }
 0x481   : > { %v8397_v47 = vpop.f32.mrb[43].mxu0 }
 0x482   : > { %v7020_v2 = vadd.f32 %v8395_v0, %v12938_v4  ;;  %v8398_v45 = vadd.f32 %v8397_v47, %v8396_v62  ;;  %v7229_v62 = vmul.f32 %v12964_v43, %v12964_v43  ;;  %v13029_v44 = vmul.f32 %v9802_v50, %v1576_v6 }
 0x484   : > { %v12979_v57 = vmax.f32 %v7020_v2, 0.0  ;;  %v7023_v21 = vadd.f32 %v8398_v45, %v12938_v4  ;;  %v7249_v10 = vsel %vm7178_vm0, %v7229_v62, 0.0  ;;  %14162 = vst [vmem:[#allocation88_spill] sm:$0xff] %v13029_v44 }
 0x486   : > { %7086 = vst [vmem:[%s12947_s0 + $0x20] sm:$0xff] %v12979_v57  ;;  %v12984_v9 = vmax.f32 %v7023_v21, 0.0  ;;  %v8399_v52 = vpop.f32.mrb[44].mxu0 }
 0x487   : > { %v8400_v3 = vpop.f32.mrb[45].mxu0 }
 0x488   : > { %7087 = vst [vmem:[%s12947_s0 + $0x28] sm:$0xff] %v12984_v9  ;;  %v8401_v29 = vadd.f32 %v8400_v3, %v8399_v52  ;;  %v8402_v41 = vpop.f32.mrb[46].mxu0 }
 0x489   : > { %v8403_v19 = vpop.f32.mrb[47].mxu0 }
 0x48a   : > { %v7028_v42 = vadd.f32 %v8401_v29, %v12938_v4  ;;  %v8404_v63 = vadd.f32 %v8403_v19, %v8402_v41 }
 0x48c   : > { %v12993_v14 = vmax.f32 %v7028_v42, 0.0  ;;  %v7031_v54 = vadd.f32 %v8404_v63, %v12938_v4 }
 0x48e   : > { %7088 = vst [vmem:[%s12947_s0 + $0x30] sm:$0xff] %v12993_v14  ;;  %v13000_v58 = vmax.f32 %v7031_v54, 0.0  ;;  %v8405_v32 = vpop.f32.mrb[32].mxu1  ;;  %v7233_v6 = vmul.f32 %v12993_v14, %v12993_v14 }
 0x48f   : > { %v8406_v46 = vpop.f32.mrb[33].mxu1 }
 0x490   : > { %7089 = vst [vmem:[%s12947_s0 + $0x38] sm:$0xff] %v13000_v58  ;;  %v8407_v22 = vadd.f32 %v8406_v46, %v8405_v32  ;;  %v8408_v12 = vpop.f32.mrb[34].mxu1 }
 0x491   : > { %v8409_v15 = vpop.f32.mrb[35].mxu1 }
 0x492   : > { %v7036_v23 = vadd.f32 %v8407_v22, %v12938_v4  ;;  %v8410_v60 = vadd.f32 %v8409_v15, %v8408_v12  ;;  %v7231_v15 = vmul.f32 %v12979_v57, %v12979_v57 }
 0x494   : > { %v13015_v31 = vmax.f32 %v7036_v23, 0.0  ;;  %v7039_v0 = vadd.f32 %v8410_v60, %v12938_v4  ;;  %v7255_v23 = vsel %vm7178_vm0, %v7231_v15, 0.0  ;;  %v7232_v60 = vmul.f32 %v12984_v9, %v12984_v9 }
 0x495   : > { %7247 = vadd.xlane.f32.xlu0 %v7246_v36  ;;  %v7261_v36 = vsel %vm7178_vm0, %v7233_v6, 0.0 }
 0x496   : > { %7090 = vst [vmem:[%s12947_s0 + $0x40] sm:$0xff] %v13015_v31  ;;  %v13024_v47 = vmax.f32 %v7039_v0, 0.0  ;;  %v8411_v61 = vpop.f32.mrb[36].mxu1  ;;  %v7234_v0 = vmul.f32 %v13000_v58, %v13000_v58  ;;  %v7258_v50 = vsel %vm7178_vm0, %v7232_v60, 0.0 }
 0x497   : > { %v8412_v2 = vpop.f32.mrb[37].mxu1 }
 0x498   : > { %7091 = vst [vmem:[%s12947_s0 + $0x48] sm:$0xff] %v13024_v47  ;;  %v8413_v45 = vadd.f32 %v8412_v2, %v8411_v61  ;;  %v8414_v49 = vpop.f32.mrb[38].mxu1 }
 0x499   : > { %v8415_v16 = vpop.f32.mrb[39].mxu1  ;;  %7250 = vadd.xlane.f32.xlu0 %v7249_v10  ;;  %v7235_v10 = vmul.f32 %v13015_v31, %v13015_v31 }
 0x49a   : > { %v7044_v21 = vadd.f32 %v8413_v45, %v12938_v4  ;;  %v8416_v24 = vadd.f32 %v8415_v16, %v8414_v49 }
 0x49c   : > { %v13032_v52 = vmax.f32 %v7044_v21, 0.0  ;;  %v7047_v8 = vadd.f32 %v8416_v24, %v12938_v4  ;;  %v7267_v21 = vsel %vm7178_vm0, %v7235_v10, 0.0 }
 0x49e   : > { %7092 = vst [vmem:[%s12947_s0 + $0x50] sm:$0xff] %v13032_v52  ;;  %v13037_v3 = vmax.f32 %v7047_v8, 0.0  ;;  %v8417_v37 = vpop.f32.mrb[40].mxu1 }
 0x49f   : > { %v8418_v51 = vpop.f32.mrb[41].mxu1 }
 0x4a0   : > { %7093 = vst [vmem:[%s12947_s0 + $0x58] sm:$0xff] %v13037_v3  ;;  %v8419_v29 = vadd.f32 %v8418_v51, %v8417_v37  ;;  %v8420_v41 = vpop.f32.mrb[42].mxu1  ;;  %7244 = vadd.xlane.f32.xlu1 %v7243_v27 }
 0x4a1   : > { %v8421_v7 = vpop.f32.mrb[43].mxu1 }
 0x4a2   : > { %v7052_v19 = vadd.f32 %v8419_v29, %v12938_v4  ;;  %v8422_v42 = vadd.f32 %v8421_v7, %v8420_v41  ;;  %v7264_v29 = vsel %vm7178_vm0, %v7234_v0, 0.0 }
 0x4a4   : > { %v13044_v63 = vmax.f32 %v7052_v19, 0.0  ;;  %v7055_v39 = vadd.f32 %v8422_v42, %v12938_v4  ;;  %v7237_v42 = vmul.f32 %v13032_v52, %v13032_v52 }
 0x4a6   : > { %7094 = vst [vmem:[%s12947_s0 + $0x60] sm:$0xff] %v13044_v63  ;;  %v13049_v5 = vmax.f32 %v7055_v39, 0.0  ;;  %v8423_v53 = vpop.f32.mrb[44].mxu1  ;;  %v7273_v39 = vsel %vm7178_vm0, %v7237_v42, 0.0 }
 0x4a7   : > { %v8424_v54 = vpop.f32.mrb[45].mxu1 }
 0x4a8   : > { %7095 = vst [vmem:[%s12947_s0 + $0x68] sm:$0xff] %v13049_v5  ;;  %v8425_v11 = vadd.f32 %v8424_v54, %v8423_v53  ;;  %v8426_v32 = vpop.f32.mrb[46].mxu1  ;;  %v7236_v54 = vmul.f32 %v13024_v47, %v13024_v47 }
 0x4a9   : > { %v8427_v46 = vpop.f32.mrb[47].mxu1 }
 0x4aa   : > { %v7060_v33 = vadd.f32 %v8425_v11, %v12938_v4  ;;  %v8428_v13 = vadd.f32 %v8427_v46, %v8426_v32 }
 0x4ac   : > { %v13054_v22 = vmax.f32 %v7060_v33, 0.0  ;;  %v7063_v12 = vadd.f32 %v8428_v13, %v12938_v4  ;;  %v7230_v4 = vmul.f32 %v12971_v30, %v12971_v30 }
 0x4ae   : > { %7096 = vst [vmem:[%s12947_s0 + $0x70] sm:$0xff] %v13054_v22  ;;  %v13059_v17 = vmax.f32 %v7063_v12, 0.0 }
 0x4af   : > { %7122 = vrot.lane.b32.xlu0 %v12979_v57, %s10411_s24 }
 0x4b0   : > { %7097 = vst [vmem:[%s12947_s0 + $0x78] sm:$0xff] %v13059_v17 }
 0x4b1   : > { %7309 = vrot.lane.b32.xlu1 %v13004_v20, %s10411_s24  ;;  %v7252_v20 = vsel %vm7178_vm0, %v7230_v4, 0.0 }
 0x4b5   : > { %7118 = vrot.lane.b32.xlu1 %v12964_v43, %s10411_s24 }
 0x4b9   : > { %7120 = vrot.lane.b32.xlu1 %v12971_v30, %s10411_s24 }
 0x4bd   : > { %7311 = vrot.lane.b32.xlu1 %v7229_v62, %s10411_s24  ;;  %v13093_v62 = vpop.xlane.xlu1 %878 }
 0x4c1   : > { %7313 = vrot.lane.b32.xlu1 %v7230_v4, %s10411_s24  ;;  %v13098_v61 = vpop.xlane.xlu1 %896  ;;  %v7270_v4 = vsel %vm7178_vm0, %v7236_v54, 0.0 }
 0x4c5   : > { %v13100_v2 = vpop.xlane.xlu1 %914 }
 0x4c9   : > { %v13102_v45 = vpop.xlane.xlu1 %932 }
 0x4ca   : > { %14163 = vst [vmem:[#allocation83_spill] sm:$0xff] %v13102_v45 }
 0x4cd   : > { %v13106_v49 = vpop.xlane.xlu1 %950 }
 0x4ce   : > { %7256 = vadd.xlane.f32.xlu0 %v7255_v23  ;;  %14164 = vst [vmem:[#allocation86_spill] sm:$0xff] %v13106_v49 }
 0x4d1   : > { %v13111_v16 = vpop.xlane.xlu1 %968 }
 0x4d2   : > { %14165 = vst [vmem:[#allocation62_spill] sm:$0xff] %v13111_v16 }
 0x4d5   : > { %v13114_v24 = vpop.xlane.xlu1 %986 }
 0x4d6   : > { %14166 = vst [vmem:[#allocation29_spill] sm:$0xff] %v13114_v24 }
 0x4d9   : > { %v13116_v8 = vpop.xlane.xlu1 %1132 }
 0x4dd   : > { %v13118_v37 = vpop.xlane.xlu1 %1150 }
 0x4e1   : > { %v13122_v51 = vpop.xlane.xlu1 %1168 }
 0x4e4   : > { %7126 = vrot.lane.b32.xlu0 %v12993_v14, %s10411_s24 }
 0x4e5   : > { %7253 = vadd.xlane.f32.xlu1 %v7252_v20  ;;  %v13124_v27 = vpop.xlane.xlu1 %1186  ;;  %v7239_v20 = vmul.f32 %v13044_v63, %v13044_v63 }
 0x4e9   : > { %v13127_v41 = vpop.xlane.xlu1 %1204 }
 0x4ed   : > { %v13129_v7 = vpop.xlane.xlu1 %1222 }
 0x4ee   : > { %14167 = vst [vmem:[#allocation89_spill] sm:$0xff] %v13129_v7 }
 0x4f1   : > { %v13131_v19 = vpop.xlane.xlu1 %1240 }
 0x4f2   : > { %14168 = vst [vmem:[#allocation87_spill] sm:$0xff] %v13131_v19 }
 0x4f5   : > { %v13139_v53 = vpop.xlane.xlu1 %1258 }
 0x4f6   : > { %7124 = vrot.lane.b32.xlu1 %v12984_v9, %s10411_s24  ;;  %14169 = vst [vmem:[#allocation92_spill] sm:$0xff] %v13139_v53 }
 0x4f9   : > { %v13144_v11 = vpop.xlane.xlu1 %1404 }
 0x4fa   : > { %7315 = vrot.lane.b32.xlu1 %v7231_v15, %s10411_s24 }
 0x4fd   : > { %v13146_v32 = vpop.xlane.xlu1 %1422 }
 0x4fe   : > { %7317 = vrot.lane.b32.xlu1 %v7232_v60, %s10411_s24 }
 0x501   : > { %v13148_v46 = vpop.xlane.xlu1 %1440 }
 0x503   : > { %7262 = vadd.xlane.f32.xlu0 %v7261_v36 }
 0x505   : > { %v13152_v33 = vpop.xlane.xlu1 %1458 }
 0x509   : > { %v13154_v13 = vpop.xlane.xlu1 %1476 }
 0x50d   : > { %v13156_v12 = vpop.xlane.xlu1 %1494 }
 0x50e   : > { %14170 = vst [vmem:[#allocation90_spill] sm:$0xff] %v13156_v12 }
 0x511   : > { %v13159_v15 = vpop.xlane.xlu1 %1512 }
 0x512   : > { %14171 = vst [vmem:[#allocation93_spill] sm:$0xff] %v13159_v15 }
 0x515   : > { %v13161_v23 = vpop.xlane.xlu1 %1530 }
 0x516   : > { %14172 = vst [vmem:[#allocation91_spill] sm:$0xff] %v13161_v23 }
 0x519   : > { %7321 = vrot.lane.b32.xlu0 %v7234_v0, %s10411_s24  ;;  %v7117_v60 = vpop.permute.xlu1 %7116 }
 0x51d   : > { %7130 = vrot.lane.b32.xlu0 %v13015_v31, %s10411_s24  ;;  %v7308_v36 = vpop.permute.xlu1 %7307 }
 0x522   : > { %7259 = vadd.xlane.f32.xlu1 %v7258_v50  ;;  %v7238_v50 = vmul.f32 %v13037_v3, %v13037_v3 }
 0x524   : > { %v7276_v24 = vsel %vm7178_vm0, %v7238_v50, 0.0 }
 0x52d   : > { %v13169_v0 = vpop.xlane.xlu1 %7244 }
 0x533   : > { %7128 = vrot.lane.b32.xlu1 %v13000_v58, %s10411_s24 }
 0x537   : > { %7319 = vrot.lane.b32.xlu1 %v7233_v6, %s10411_s24  ;;  %v7279_v6 = vsel %vm7178_vm0, %v7239_v20, 0.0 }
 0x53c   : > { %7268 = vadd.xlane.f32.xlu0 %v7267_v21 }
 0x552   : > { %7134 = vrot.lane.b32.xlu0 %v13032_v52, %s10411_s24 }
 0x55b   : > { %7265 = vadd.xlane.f32.xlu1 %v7264_v29  ;;  %v7241_v29 = vmul.f32 %v13054_v22, %v13054_v22 }
 0x55d   : > { %v7285_v12 = vsel %vm7178_vm0, %v7241_v29, 0.0 }
 0x56c   : > { %7132 = vrot.lane.b32.xlu1 %v13024_v47, %s10411_s24 }
 0x570   : > { %7323 = vrot.lane.b32.xlu1 %v7235_v10, %s10411_s24  ;;  %v13174_v10 = vpop.permute.xlu1 %7309 }
 0x571   : > { %7274 = vadd.xlane.f32.xlu0 %v7273_v39 }
 0x574   : > { %7325 = vrot.lane.b32.xlu1 %v7236_v54, %s10411_s24  ;;  %v7119_v21 = vpop.permute.xlu1 %7118 }
 0x578   : > { %v13181_v39 = vpop.permute.xlu1 %7120 }
 0x587   : > { %7138 = vrot.lane.b32.xlu0 %v13044_v63, %s10411_s24 }
 0x598   : > { %7271 = vadd.xlane.f32.xlu1 %v7270_v4 }
 0x5a6   : > { %7280 = vadd.xlane.f32.xlu0 %v7279_v6  ;;  %v13187_v6 = vpop.xlane.xlu0 %1521 }
 0x5a9   : > { %7136 = vrot.lane.b32.xlu1 %v13037_v3, %s10411_s24 }
 0x5aa   : > { %v7115_v49 = vpop.permute.xlu0 %7114 }
 0x5ab   : > { %v7162_v53 = vmul.f32 %v7115_v49, %v12942_v35 }
 0x5ad   : > { %7327 = vrot.lane.b32.xlu1 %v7237_v42, %s10411_s24  ;;  %v7312_v42 = vpop.permute.xlu1 %7311  ;;  %v7179_v19 = vsel %vm7178_vm0, %v7162_v53, 0.0  ;;  %v7240_v53 = vmul.f32 %v13049_v5, %v13049_v5 }
 0x5ae   : > { %v13192_v23 = vpop.xlane.xlu0 %7247 }
 0x5b1   : > { %7329 = vrot.lane.b32.xlu1 %v7238_v50, %s10411_s24  ;;  %v13183_v54 = vpop.permute.xlu1 %7313  ;;  %v7355_v50 = vsel %vm7178_vm0, %v7308_v36, 0.0 }
 0x5b2   : > { %v13197_v7 = vpop.xlane.xlu0 %7250 }
 0x5b5   : > { %v13185_v4 = vpop.xlane.xlu1 %7253 }
 0x5b6   : > { %v7123_v35 = vpop.permute.xlu0 %7122 }
 0x5b9   : > { %v13190_v16 = vpop.permute.xlu1 %7124 }
 0x5bc   : > { %7142 = vrot.lane.b32.xlu0 %v13054_v22, %s10411_s24 }
 0x5bd   : > { %v7316_v15 = vpop.permute.xlu1 %7315 }
 0x5c0   : > { %7335 = vrot.lane.b32.xlu0 %v7241_v29, %s10411_s24 }
 0x5c1   : > { %v13199_v44 = vpop.permute.xlu1 %7317 }
 0x5c5   : > { %v13205_v18 = vpop.xlane.xlu1 %7259 }
 0x5d5   : > { %7277 = vadd.xlane.f32.xlu1 %v7276_v24  ;;  %v7163_v24 = vmul.f32 %v7117_v60, %v12951_v40  ;;  %v7129_v40 = vpop.permute.xlu1 %7128  ;;  %v7361_v60 = vsel %vm7178_vm0, %v7312_v42, 0.0 }
 0x5d7   : > { %v7182_v49 = vsel %vm7178_vm0, %v7163_v24, 0.0  ;;  %v7166_v24 = vmul.f32 %v7123_v35, %v12979_v57 }
 0x5df   : > { %7286 = vadd.xlane.f32.xlu0 %v7285_v12  ;;  %v7164_v12 = vmul.f32 %v7119_v21, %v12964_v43  ;;  %v7191_v43 = vsel %vm7178_vm0, %v7166_v24, 0.0 }
 0x5e1   : > { %v7185_v36 = vsel %vm7178_vm0, %v7164_v12, 0.0 }
 0x5e3   : > { %7180 = vadd.xlane.f32.xlu0 %v7179_v19  ;;  %v13211_v19 = vpop.xlane.xlu0 %7256 }
 0x5e6   : > { %7140 = vrot.lane.b32.xlu1 %v13049_v5, %s10411_s24 }
 0x5e7   : > { %7356 = vadd.xlane.f32.xlu0 %v7355_v50  ;;  %v7127_v29 = vpop.permute.xlu0 %7126  ;;  %v7367_v50 = vsel %vm7178_vm0, %v7316_v15, 0.0 }
 0x5ea   : > { %7331 = vrot.lane.b32.xlu1 %v7239_v20, %s10411_s24  ;;  %v7320_v20 = vpop.permute.xlu1 %7319 }
 0x5eb   : > { %7183 = vadd.xlane.f32.xlu0 %v7182_v49  ;;  %v13219_v49 = vpop.xlane.xlu0 %7262  ;;  %v7373_v12 = vsel %vm7178_vm0, %v7320_v20, 0.0  ;;  %v7242_v20 = vmul.f32 %v13059_v17, %v13059_v17 }
 0x5ee   : > { %7333 = vrot.lane.b32.xlu1 %v7240_v53, %s10411_s24  ;;  %v13221_v59 = vpop.xlane.xlu1 %7265 }
 0x5ef   : > { %7362 = vadd.xlane.f32.xlu0 %v7361_v60  ;;  %v7322_v21 = vpop.permute.xlu0 %7321  ;;  %v7168_v60 = vmul.f32 %v7127_v29, %v12993_v14 }
 0x5f2   : > { %v7133_v42 = vpop.permute.xlu1 %7132 }
 0x5f3   : > { %7186 = vadd.xlane.f32.xlu0 %v7185_v36  ;;  %v7197_v36 = vsel %vm7178_vm0, %v7168_v60, 0.0  ;;  %v7131_v57 = vpop.permute.xlu0 %7130 }
 0x5f4   : > { %v7170_v15 = vmul.f32 %v7131_v57, %v13015_v31  ;;  %v7165_v57 = vmul.f32 %v13181_v39, %v12971_v30 }
 0x5f6   : > { %v7324_v35 = vpop.permute.xlu1 %7323  ;;  %v7203_v24 = vsel %vm7178_vm0, %v7170_v15, 0.0 }
 0x5f7   : > { %7368 = vadd.xlane.f32.xlu0 %v7367_v50  ;;  %v7379_v45 = vsel %vm7178_vm0, %v7324_v35, 0.0  ;;  %v7282_v50 = vsel %vm7178_vm0, %v7240_v53, 0.0  ;;  %v13241_v60 = vpop.xlane.xlu0 %7268  ;;  %v7288_v53 = vsel %vm7178_vm0, %v7242_v20, 0.0  ;;  %v7364_v35 = vsel %vm7178_vm0, %v13183_v54, 0.0 }
 0x5f8   : > { %v7376_v54 = vsel %vm7178_vm0, %v7322_v21, 0.0 }
 0x5fa   : > { %v7326_v14 = vpop.permute.xlu1 %7325 }
 0x5fb   : > { %7192 = vadd.xlane.f32.xlu0 %v7191_v43 }
 0x5ff   : > { %7374 = vadd.xlane.f32.xlu0 %v7373_v12  ;;  %v7358_v12 = vsel %vm7178_vm0, %v13174_v10, 0.0  ;;  %v7370_v10 = vsel %vm7178_vm0, %v13199_v44, 0.0 }
 0x603   : > { %7198 = vadd.xlane.f32.xlu0 %v7197_v36  ;;  %v7135_v36 = vpop.permute.xlu0 %7134 }
 0x607   : > { %7380 = vadd.xlane.f32.xlu0 %v7379_v45  ;;  %v13250_v15 = vpop.xlane.xlu0 %7274 }
 0x60b   : > { %7204 = vadd.xlane.f32.xlu0 %v7203_v24  ;;  %v7188_v24 = vsel %vm7178_vm0, %v7165_v57, 0.0 }
 0x612   : > { %7283 = vadd.xlane.f32.xlu1 %v7282_v50  ;;  %v7139_v50 = vpop.permute.xlu0 %7138 }
 0x623   : > { %7144 = vrot.lane.b32.xlu1 %v13059_v17, %s10411_s24 }
 0x625   : > { %v13233_v29 = vpop.xlane.xlu1 %7271 }
 0x627   : > { %7337 = vrot.lane.b32.xlu1 %v7242_v20, %s10411_s24  ;;  %v7167_v20 = vmul.f32 %v13190_v16, %v12984_v9  ;;  %v7404_v16 = vmax.f32 %v13192_v23, 1e-16 }
 0x629   : > { %v13238_v31 = vpop.permute.xlu1 %7136  ;;  %v7194_v39 = vsel %vm7178_vm0, %v7167_v20, 0.0  ;;  %9803 = vrsqrt.f32 %v7404_v16 }
 0x62d   : > { %v7328_v45 = vpop.permute.xlu1 %7327 }
 0x62e   : > { %v7385_v43 = vsel %vm7178_vm0, %v7328_v45, 0.0 }
 0x62f   : > { %7386 = vadd.xlane.f32.xlu0 %v7385_v43  ;;  %v7169_v43 = vmul.f32 %v7129_v40, %v13000_v58  ;;  %v1532_v40 = vmax.f32 %v12923_v56, 1e-16 }
 0x631   : > { %v7330_v30 = vpop.permute.xlu1 %7329  ;;  %v7200_v9 = vsel %vm7178_vm0, %v7169_v43, 0.0  ;;  %9805 = vrsqrt.f32 %v1532_v40  ;;  %v7174_v43 = vmul.f32 %v7139_v50, %v13044_v63  ;;  %v7405_v50 = vmax.f32 %v13197_v7, 1e-16 }
 0x633   : > { %v13257_v45 = vpop.xlane.xlu0 %7280 }
 0x64b   : > { %7289 = vadd.xlane.f32.xlu1 %v7288_v53  ;;  %v7143_v53 = vpop.permute.xlu0 %7142 }
 0x64f   : > { %7359 = vadd.xlane.f32.xlu1 %v7358_v12  ;;  %v7336_v44 = vpop.permute.xlu0 %7335 }
 0x650   : > { %v7397_v23 = vsel %vm7178_vm0, %v7336_v44, 0.0 }
 0x653   : > { %7365 = vadd.xlane.f32.xlu1 %v7364_v35  ;;  %v7171_v35 = vmul.f32 %v7133_v42, %v13024_v47  ;;  %v7403_v42 = vmax.f32 %v13169_v0, 1e-16  ;;  %v7176_v0 = vmul.f32 %v7143_v53, %v13054_v22 }
 0x655   : > { %9807 = vrsqrt.f32 %v7403_v42 }
 0x657   : > { %7189 = vadd.xlane.f32.xlu1 %v7188_v24  ;;  %v7382_v24 = vsel %vm7178_vm0, %v7326_v14, 0.0  ;;  %v1580_v14 = vmax.f32 %v12931_v55, 1e-16  ;;  %v7215_v55 = vsel %vm7178_vm0, %v7174_v43, 0.0 }
 0x659   : > { %9809 = vrsqrt.f32 %v1580_v14  ;;  %v7407_v14 = vmax.f32 %v13211_v19, 1e-16 }
 0x65b   : > { %7371 = vadd.xlane.f32.xlu1 %v7370_v10  ;;  %v7206_v10 = vsel %vm7178_vm0, %v7171_v35, 0.0  ;;  %v7221_v35 = vsel %vm7178_vm0, %v7176_v0, 0.0  ;;  %v7409_v0 = vmax.f32 %v13219_v49, 1e-16  ;;  %v7411_v49 = vmax.f32 %v13241_v60, 1e-16 }
 0x65f   : > { %7195 = vadd.xlane.f32.xlu1 %v7194_v39  ;;  %v7172_v39 = vmul.f32 %v7135_v36, %v13032_v52 }
 0x662   : > { %v13262_v12 = vpop.xlane.xlu1 %7277 }
 0x663   : > { %7377 = vadd.xlane.f32.xlu1 %v7376_v54  ;;  %v7388_v54 = vsel %vm7178_vm0, %v7330_v30, 0.0  ;;  %v9804_v30 = vpop.eup %9803 }
 0x666   : > { %v13264_v57 = vpop.permute.xlu1 %7140 }
 0x667   : > { %7201 = vadd.xlane.f32.xlu1 %v7200_v9  ;;  %v7209_v9 = vsel %vm7178_vm0, %v7172_v39, 0.0 }
 0x66a   : > { %v7332_v20 = vpop.permute.xlu1 %7331 }
 0x66b   : > { %v7391_v21 = vsel %vm7178_vm0, %v7332_v20, 0.0  ;;  %7383 = vadd.xlane.f32.xlu1 %v7382_v24  ;;  %v9806_v24 = vpop.eup %9805 }
 0x66c   : > { %7392 = vadd.xlane.f32.xlu0 %v7391_v21  ;;  %v13271_v58 = vpop.xlane.xlu0 %7286  ;;  %v14173_v21 = vlaneseq  ;;  %v9808_v53 = vpop.eup %9807 }
 0x66d   : > { %v9810_v39 = vpop.eup %9809 }
 0x66e   : > { %v7334_v56 = vpop.permute.xlu1 %7333  ;;  %v13290_v40 = vand.u32 127, %v14173_v21 }
 0x66f   : > { %7207 = vadd.xlane.f32.xlu1 %v7206_v10  ;;  %v7394_v44 = vsel %vm7178_vm0, %v7334_v56, 0.0  ;;  %v1564_v10 = vmul.f32 %v9806_v24, %v12903_v25 }
 0x670   : > { %7398 = vadd.xlane.f32.xlu0 %v7397_v23  ;;  %v7181_v47 = vpop.xlane.xlu0 %7180  ;;  %vm7502_vm1 = vcmp.eq.s32.totalorder %v13290_v40, 1  ;;  %vm7501_vm2 = vcmp.eq.s32.totalorder %v13290_v40, 0 }
 0x671   : > { %v7435_v23 = vmul.f32 %v9808_v53, %v7181_v47  ;;  %v1612_v43 = vmul.f32 %v9810_v39, %v1564_v10 }
 0x673   : > { %7389 = vadd.xlane.f32.xlu1 %v7388_v54 }
 0x674   : > { %7210 = vadd.xlane.f32.xlu0 %v7209_v9  ;;  %v7357_v52 = vpop.xlane.xlu0 %7356 }
 0x675   : > { %v7451_v36 = vmax.f32 %v7357_v52, 1e-16 }
 0x677   : > { %9811 = vrsqrt.f32 %v7451_v36  ;;  %7395 = vadd.xlane.f32.xlu1 %v7394_v44 }
 0x678   : > { %7216 = vadd.xlane.f32.xlu0 %v7215_v55  ;;  %v7184_v63 = vpop.xlane.xlu0 %7183  ;;  %9813 = vrsqrt.f32 %v7405_v50 }
 0x679   : > { %v13286_v16 = vmul.f32 %v9804_v30, %v7184_v63 }
 0x67c   : > { %7222 = vadd.xlane.f32.xlu0 %v7221_v35  ;;  %v7363_v20 = vpop.xlane.xlu0 %7362 }
 0x67d   : > { %v7453_v22 = vmax.f32 %v7363_v20, 1e-16 }
 0x67f   : > { %9815 = vrsqrt.f32 %v7453_v22 }
 0x680   : > { %v7187_v7 = vpop.xlane.xlu0 %7186  ;;  %9817 = vrsqrt.f32 %v7407_v14 }
 0x681   : > { %v9812_v42 = vpop.eup %9811 }
 0x682   : > { %v7483_v54 = vmul.f32 %v9812_v42, %v7435_v23  ;;  %v9814_v19 = vpop.eup %9813 }
 0x683   : > { %v7437_v47 = vmul.f32 %v9814_v19, %v7187_v7 }
 0x684   : > { %v7503_v56 = vsel %vm7502_vm1, %v7483_v54, 0.0  ;;  %v7369_v9 = vpop.xlane.xlu0 %7368 }
 0x685   : > { %v7519_v25 = vsel %vm7501_vm2, %v1612_v43, %v7503_v56  ;;  %v7455_v52 = vmax.f32 %v7369_v9, 1e-16 }
 0x686   : > { %7535 = vst [vmem:[%s13302_s28] sm:$0xff] %v7519_v25 }
 0x687   : > { %9819 = vrsqrt.f32 %v7455_v52 }
 0x688   : > { %v7193_v36 = vpop.xlane.xlu0 %7192  ;;  %9821 = vrsqrt.f32 %v7409_v0  ;;  %v7173_v0 = vmul.f32 %v13238_v31, %v13037_v3 }
 0x689   : > { %v9816_v44 = vpop.eup %9815 }
 0x68a   : > { %v7485_v55 = vmul.f32 %v9816_v44, %v7437_v47  ;;  %v9818_v24 = vpop.eup %9817 }
 0x68b   : > { %v7439_v20 = vmul.f32 %v9818_v24, %v7193_v36 }
 0x68c   : > { %v7505_v30 = vsel %vm7502_vm1, %v7485_v55, 0.0  ;;  %v7375_v63 = vpop.xlane.xlu0 %7374 }
 0x68d   : > { %v7521_v50 = vsel %vm7501_vm2, %v12933_v38, %v7505_v30  ;;  %v7457_v35 = vmax.f32 %v7375_v63, 1e-16  ;;  %v7175_v30 = vmul.f32 %v13264_v57, %v13049_v5  ;;  %v7212_v63 = vsel %vm7178_vm0, %v7173_v0, 0.0 }
 0x68e   : > { %7537 = vst [vmem:[%s13302_s28 + $0x10] sm:$0xff] %v7521_v50 }
 0x68f   : > { %9823 = vrsqrt.f32 %v7457_v35 }
 0x690   : > { %v7199_v21 = vpop.xlane.xlu0 %7198  ;;  %9825 = vrsqrt.f32 %v7411_v49 }
 0x691   : > { %v9820_v22 = vpop.eup %9819 }
 0x692   : > { %v7487_v53 = vmul.f32 %v9820_v22, %v7439_v20  ;;  %v9822_v7 = vpop.eup %9821 }
 0x693   : > { %v7441_v42 = vmul.f32 %v9822_v7, %v7199_v21 }
 0x694   : > { %v7507_v10 = vsel %vm7502_vm1, %v7487_v53, 0.0  ;;  %v7381_v39 = vpop.xlane.xlu0 %7380 }
 0x695   : > { %v7523_v38 = vsel %vm7501_vm2, %v12989_v26, %v7507_v10  ;;  %v7459_v23 = vmax.f32 %v7381_v39, 1e-16 }
 0x696   : > { %7539 = vst [vmem:[%s13302_s28 + $0x20] sm:$0xff] %v7523_v38 }
 0x697   : > { %9827 = vrsqrt.f32 %v7459_v23 }
 0x698   : > { %v7205_v56 = vpop.xlane.xlu0 %7204 }
 0x699   : > { %v9824_v14 = vpop.eup %9823 }
 0x69a   : > { %v7489_v54 = vmul.f32 %v9824_v14, %v7441_v42  ;;  %v9826_v9 = vpop.eup %9825 }
 0x69b   : > { %v7443_v26 = vmul.f32 %v9826_v9, %v7205_v56 }
 0x69c   : > { %v7509_v60 = vsel %vm7502_vm1, %v7489_v54, 0.0 }
 0x69d   : > { %v7525_v43 = vsel %vm7501_vm2, %v12996_v48, %v7509_v60 }
 0x69e   : > { %7541 = vst [vmem:[%s13302_s28 + $0x30] sm:$0xff] %v7525_v43 }
 0x69f   : > { %v13325_v25 = vpop.xlane.xlu1 %7283 }
 0x6a1   : > { %v9828_v52 = vpop.eup %9827 }
 0x6a2   : > { %v7491_v19 = vmul.f32 %v9828_v52, %v7443_v26 }
 0x6a3   : > { %v7145_v47 = vpop.permute.xlu1 %7144 }
 0x6a4   : > { %v7511_v36 = vsel %vm7502_vm1, %v7491_v19, 0.0  ;;  %v7177_v50 = vmul.f32 %v7145_v47, %v13059_v17 }
 0x6a5   : > { %v7527_v44 = vsel %vm7501_vm2, %v13009_v1, %v7511_v36  ;;  %v7218_v1 = vsel %vm7178_vm0, %v7175_v30, 0.0 }
 0x6a6   : > { %7543 = vst [vmem:[%s13302_s28 + $0x40] sm:$0xff] %v7527_v44  ;;  %v7224_v35 = vsel %vm7178_vm0, %v7177_v50, 0.0 }
 0x6a7   : > { %v7338_v48 = vpop.permute.xlu1 %7337 }
 0x6a8   : > { %v7400_v55 = vsel %vm7178_vm0, %v7338_v48, 0.0 }
 0x6a9   : > { %7401 = vadd.xlane.f32.xlu1 %v7400_v55 }
 0x6ad   : > { %7213 = vadd.xlane.f32.xlu1 %v7212_v63 }
 0x6b1   : > { %7219 = vadd.xlane.f32.xlu1 %v7218_v1 }
 0x6b5   : > { %7225 = vadd.xlane.f32.xlu1 %v7224_v35 }
 0x6b6   : > { %10274 = shalt.err (!%p10271_p3)
}
 0x6b7   : > { %s10275_s2 = scalar_lea.hbm %s13349_s17, 2048  ;;  %s10279_s0 = scalar_lea.hbm %s13575_s8, 4096 }
 0x6b8   : > { %p10276_p9 = scmp.ne.s32.totalorder %s13349_s17, %s10275_s2  ;;  %p10280_p7 = scmp.lt.u32.totalorder %s13349_s17, %s13575_s8 }
 0x6b9   : > { %p10281_p12 = scmp.lt.u32.totalorder %s10279_s0, %s10275_s2  ;;  %p10283_p1 = scmp.lt.u32.totalorder %s10275_s2, %s13349_s17 }
 0x6ba   : > { %p10277_p13 = pnand %p10276_p9, %p10618_p5 }
 0x6bb   : > { %p10282_p2 = por %p10281_p12, %p10280_p7 }
 0x6bc   : > { %p10278_p11 = pneg %p10277_p13 }
 0x6bd   : > { %p10284_p4 = por %p10283_p1, %p10282_p2 }
 0x6bf   : > { %p10285_p0 = pnand %p10284_p4, %p10278_p11 }
 0x6c1   : > { %10288 = shalt.err (!%p10285_p0)
}
 0x6c2   : > { %s10413_s27 = smov 128   ;;  %s10414_s15 = smov 8  }
 0x6c3   : > { %8910 = dma.vmem_to_hbm [thread:$0]  (%p10618_p5), %s13351_s25, 2048, %s13349_s17, %s13355_s22, %s10413_s27, %s10413_s27, %s10414_s15  }
 0x6c4   : > { %s8362_s26 = sshll.u32 %s10490_s13, 12  ;;  %s7576_s23 = sshll.u32 %s12778_s14, 4  ;;  %s13389_s23 = int_to_ptr.vmem [resolvable:$true] %s7576_s23 }
 0x6c5   : > { %s13386_s2 = scalar_lea.hbm %s13574_s7, %s8362_s26  ;;  %s7552_s19 = scalar_lea.sflag [#allocation4], %s10714_s3 }
 0x6c6   : > { %s10289_s0 = scalar_lea.vmem %s13389_s23, 4096  ;;  %s10415_s24 = smov [#allocation11]  }
 0x6c7   : > { %p10290_p8 = scmp.ne.s32.totalorder %s13389_s23, %s10289_s0  ;;  %s10293_s25 = sshll.u32 %s10415_s24, 4  ;;  %s10294_s25 = int_to_ptr.vmem [resolvable:$false] %s10293_s25 }
 0x6c8   : > { %s10295_s17 = scalar_lea.vmem %s10294_s25, 8192  ;;  %p10296_p3 = scmp.lt.s32.totalorder %s13389_s23, %s10294_s25 }
 0x6c9   : > { %p10291_p6 = pnand %p10290_p8, %p10618_p5  ;;  %p10297_p9 = scmp.lt.s32.totalorder %s10295_s17, %s10289_s0 }
 0x6cb   : > { %p10292_p10 = pneg %p10291_p6  ;;  %p10298_p13 = por %p10297_p9, %p10296_p3 }
 0x6cd   : > { %p10299_p11 = pnand %p10298_p13, %p10292_p10 }
 0x6cf   : > { %10302 = shalt.err (!%p10299_p11)
}
 0x6d0   : > { %s10303_s14 = scalar_lea.hbm %s13386_s2, 4096  ;;  %s10307_s30 = scalar_lea.hbm %s13574_s7, 8192 }
 0x6d1   : > { %p10304_p7 = scmp.ne.s32.totalorder %s13386_s2, %s10303_s14  ;;  %p10308_p1 = scmp.lt.u32.totalorder %s13386_s2, %s13574_s7 }
 0x6d2   : > { %p10309_p4 = scmp.lt.u32.totalorder %s10307_s30, %s10303_s14  ;;  %p10311_p8 = scmp.lt.u32.totalorder %s10303_s14, %s13386_s2 }
 0x6d3   : > { %p10305_p12 = pnand %p10304_p7, %p10618_p5 }
 0x6d4   : > { %p10310_p0 = por %p10309_p4, %p10308_p1 }
 0x6d5   : > { %p10306_p2 = pneg %p10305_p12 }
 0x6d6   : > { %p10312_p6 = por %p10311_p8, %p10310_p0 }
 0x6d8   : > { %p10313_p10 = pnand %p10312_p6, %p10306_p2 }
 0x6da   : > { %10316 = shalt.err (!%p10313_p10)
}
 0x6db   : > { %s10416_s0 = smov 256   ;;  %s10417_s25 = smov 16   ;;  %v1533_v3 = vmax.f32 %v13116_v8, 1e-16  ;;  %v13416_v5 = vpop.xlane.xlu1 %7289  ;;  %v1535_v17 = vmax.f32 %v13118_v37, 1e-16  ;;  %v7387_v0 = vpop.xlane.xlu0 %7386 }
 0x6dc   : > { %8909 = dma.vmem_to_hbm [thread:$0]  (%p10618_p5), %s13389_s23, 4096, %s13386_s2, %s7552_s19, %s10416_s0, %s10416_s0, %s10417_s25   ;;  %v1581_v31 = vmax.f32 %v13144_v11, 1e-16  ;;  %v7406_v24 = vmax.f32 %v13185_v4, 1e-16 }
 0x6dd   : > { %9829 = vrsqrt.f32 %v1533_v3  ;;  %v1583_v21 = vmax.f32 %v13146_v32, 1e-16  ;;  %v1537_v8 = vmax.f32 %v13122_v51, 1e-16  ;;  %v7408_v11 = vmax.f32 %v13205_v18, 1e-16 }
 0x6de   : > { %9831 = vrsqrt.f32 %v1535_v17  ;;  %v1585_v10 = vmax.f32 %v13148_v46, 1e-16  ;;  %v1539_v42 = vmax.f32 %v13124_v27, 1e-16  ;;  %v7410_v9 = vmax.f32 %v13221_v59, 1e-16 }
 0x6df   : > { %v7360_v57 = vpop.xlane.xlu1 %7359  ;;  %9833 = vrsqrt.f32 %v1581_v31  ;;  %v1541_v19 = vmax.f32 %v13127_v41, 1e-16  ;;  %v1546_v44 = vmax.f32 %v12929_v34, 1e-16  ;;  %v7413_v30 = vmax.f32 %v13250_v15, 1e-16 }
 0x6e0   : > { %v7452_v20 = vmax.f32 %v7360_v57, 1e-16  ;;  %v7412_v34 = vmax.f32 %v13233_v29, 1e-16  ;;  %v7461_v3 = vmax.f32 %v7387_v0, 1e-16 }
 0x6e1   : > { %v14176_v0 = vld [vmem:[#allocation61_spill] sm:$0xff]  ;;  %s7608_s3 = sshll.u32 %s13302_s28, 4  ;;  %s14187_s19 = sld [smem:[#allocation183_spill]]  ;;  %s13517_s3 = int_to_ptr.vmem [resolvable:$true] %s7608_s3 }
 0x6e2   : > { %9835 = vrsqrt.f32 %v7452_v20  ;;  %s10317_s14 = scalar_lea.vmem %s13517_s3, 2048  ;;  %s10418_s13 = smov [#allocation14]  }
 0x6e3   : > { %v7366_v22 = vpop.xlane.xlu1 %7365  ;;  %9837 = vrsqrt.f32 %v7406_v24  ;;  %p10318_p3 = scmp.ne.s32.totalorder %s13517_s3, %s10317_s14  ;;  %s10321_s18 = sshll.u32 %s10418_s13, 4  ;;  %s10322_s18 = int_to_ptr.vmem [resolvable:$false] %s10321_s18 }
 0x6e4   : > { %v7454_v49 = vmax.f32 %v7366_v22, 1e-16  ;;  %9839 = vrsqrt.f32 %v1583_v21  ;;  %v1594_v21 = vmax.f32 %v13187_v6, 1e-16  ;;  %s10323_s26 = scalar_lea.vmem %s10322_s18, 4096  ;;  %p10324_p11 = scmp.lt.s32.totalorder %s13517_s3, %s10322_s18 }
 0x6e5   : > { %p10319_p9 = pnand %p10318_p3, %p10618_p5  ;;  %p10325_p7 = scmp.lt.s32.totalorder %s10323_s26, %s10317_s14 }
 0x6e6   : > { %9841 = vrsqrt.f32 %v7454_v49  ;;  %v7417_v49 = vmax.f32 %v13271_v58, 1e-16 }
 0x6e7   : > { %v9830_v37 = vpop.eup %9829  ;;  %v7190_v53 = vpop.xlane.xlu1 %7189  ;;  %9843 = vrsqrt.f32 %v1537_v8  ;;  %s13515_s17 = scalar_lea.hbm %s14187_s19, %s8363_s21  ;;  %p10320_p13 = pneg %p10319_p9 }
 0x6e8   : > { %v9832_v4 = vpop.eup %9831  ;;  %v1565_v39 = vmul.f32 %v9830_v37, %v12909_v28  ;;  %9845 = vrsqrt.f32 %v7408_v11  ;;  %p10326_p12 = por %p10325_p7, %p10324_p11 }
 0x6e9   : > { %v9834_v38 = vpop.eup %9833  ;;  %9847 = vrsqrt.f32 %v1585_v10  ;;  %v1567_v18 = vmul.f32 %v9832_v4, %v13093_v62 }
 0x6ea   : > { %v1613_v54 = vmul.f32 %v9834_v38, %v1565_v39  ;;  %p10327_p2 = pnand %p10326_p12, %p10320_p13 }
 0x6eb   : > { %v7372_v32 = vpop.xlane.xlu1 %7371 }
 0x6ec   : > { %v9836_v23 = vpop.eup %9835  ;;  %v7456_v7 = vmax.f32 %v7372_v32, 1e-16 }
 0x6ed   : > { %v7484_v51 = vmul.f32 %v9836_v23, %v13286_v16  ;;  %v9838_v14 = vpop.eup %9837  ;;  %v1587_v16 = vmax.f32 %v13152_v33, 1e-16  ;;  %v1589_v33 = vmax.f32 %v13154_v13, 1e-16  ;;  %v7415_v13 = vmax.f32 %v13257_v45, 1e-16 }
 0x6ee   : > { %9849 = vrsqrt.f32 %v7456_v7  ;;  %v9840_v46 = vpop.eup %9839  ;;  %v7438_v60 = vmul.f32 %v9838_v14, %v7190_v53 }
 0x6ef   : > { %v7504_v28 = vsel %vm7502_vm1, %v7484_v51, 0.0  ;;  %v7196_v43 = vpop.xlane.xlu1 %7195  ;;  %9851 = vrsqrt.f32 %v1539_v42  ;;  %v1615_v62 = vmul.f32 %v9840_v46, %v1567_v18  ;;  %v14174_v46 = vld [vmem:[#allocation83_spill] sm:$0xff] }
 0x6f0   : > { %v9842_v56 = vpop.eup %9841  ;;  %v7520_v27 = vsel %vm7501_vm2, %v1613_v54, %v7504_v28  ;;  %9853 = vrsqrt.f32 %v7410_v9 }
 0x6f1   : > { %7536 = vst [vmem:[%s13302_s28 + $0x8] sm:$0xff] %v7520_v27  ;;  %v7486_v26 = vmul.f32 %v9842_v56, %v7438_v60  ;;  %v9844_v52 = vpop.eup %9843  ;;  %9855 = vrsqrt.f32 %v1587_v16 }
 0x6f2   : > { %v9846_v55 = vpop.eup %9845  ;;  %v1569_v41 = vmul.f32 %v9844_v52, %v13098_v61 }
 0x6f3   : > { %v7506_v47 = vsel %vm7502_vm1, %v7486_v26, 0.0  ;;  %v7378_v36 = vpop.xlane.xlu1 %7377  ;;  %v9848_v63 = vpop.eup %9847  ;;  %v7440_v50 = vmul.f32 %v9846_v55, %v7196_v43 }
 0x6f4   : > { %v7522_v59 = vsel %vm7501_vm2, %v1615_v62, %v7506_v47  ;;  %v7458_v48 = vmax.f32 %v7378_v36, 1e-16  ;;  %v1617_v31 = vmul.f32 %v9848_v63, %v1569_v41  ;;  %v14175_v47 = vld [vmem:[#allocation85_spill] sm:$0xff] }
 0x6f5   : > { %7538 = vst [vmem:[%s13302_s28 + $0x18] sm:$0xff] %v7522_v59 }
 0x6f6   : > { %9857 = vrsqrt.f32 %v7458_v48 }
 0x6f7   : > { %9859 = vrsqrt.f32 %v1541_v19  ;;  %v7202_v1 = vpop.xlane.xlu1 %7201 }
 0x6f8   : > { %v9850_v35 = vpop.eup %9849  ;;  %9861 = vrsqrt.f32 %v1546_v44 }
 0x6f9   : > { %9863 = vrsqrt.f32 %v1589_v33  ;;  %v7488_v17 = vmul.f32 %v9850_v35, %v7440_v50  ;;  %v9852_v15 = vpop.eup %9851  ;;  %v7393_v20 = vpop.xlane.xlu0 %7392 }
 0x6fa   : > { %9865 = vrsqrt.f32 %v7413_v30  ;;  %v7463_v45 = vmax.f32 %v7393_v20, 1e-16  ;;  %v9854_v22 = vpop.eup %9853  ;;  %v1571_v8 = vmul.f32 %v9852_v15, %v13100_v2  ;;  %v14178_v15 = vld [vmem:[#allocation89_spill] sm:$0xff]  ;;  %v7414_v20 = vmax.f32 %v13262_v12, 1e-16 }
 0x6fb   : > { %9867 = vrsqrt.f32 %v7412_v34  ;;  %v7508_v61 = vsel %vm7502_vm1, %v7488_v17, 0.0  ;;  %v7384_v57 = vpop.xlane.xlu1 %7383  ;;  %v9856_v37 = vpop.eup %9855  ;;  %v7442_v53 = vmul.f32 %v9854_v22, %v7202_v1  ;;  %v14177_v1 = vld [vmem:[#allocation88_spill] sm:$0xff]  ;;  %v7418_v12 = vmax.f32 %v13416_v5, 1e-16 }
 0x6fc   : > { %9869 = vrsqrt.f32 %v7461_v3  ;;  %v7524_v29 = vsel %vm7501_vm2, %v1617_v31, %v7508_v61  ;;  %v7460_v24 = vmax.f32 %v7384_v57, 1e-16  ;;  %v1619_v32 = vmul.f32 %v9856_v37, %v1571_v8 }
 0x6fd   : > { %9871 = vrsqrt.f32 %v7415_v13  ;;  %7540 = vst [vmem:[%s13302_s28 + $0x28] sm:$0xff] %v7524_v29  ;;  %v7399_v10 = vpop.xlane.xlu0 %7398  ;;  %v1543_v61 = vmax.f32 %v14178_v15, 1e-16  ;;  %v14179_v29 = vld [vmem:[#allocation87_spill] sm:$0xff] }
 0x6fe   : > { %9873 = vrsqrt.f32 %v7460_v24  ;;  %v7465_v38 = vmax.f32 %v7399_v10, 1e-16  ;;  %v1545_v24 = vmax.f32 %v14179_v29, 1e-16 }
 0x6ff   : > { %9875 = vrsqrt.f32 %v7463_v45  ;;  %v7208_v42 = vpop.xlane.xlu1 %7207 }
 0x700   : > { %v9858_v11 = vpop.eup %9857  ;;  %9877 = vrsqrt.f32 %v1594_v21  ;;  %v14180_v21 = vld [vmem:[#allocation90_spill] sm:$0xff] }
 0x701   : > { %v9860_v4 = vpop.eup %9859  ;;  %v7490_v39 = vmul.f32 %v9858_v11, %v7442_v53  ;;  %9879 = vrsqrt.f32 %v7417_v49  ;;  %v7211_v51 = vpop.xlane.xlu0 %7210  ;;  %v1591_v45 = vmax.f32 %v14180_v21, 1e-16  ;;  %v14181_v49 = vld [vmem:[#allocation92_spill] sm:$0xff]  ;;  %v7416_v53 = vmax.f32 %v13325_v25, 1e-16  ;;  %v14182_v11 = vld [vmem:[#allocation93_spill] sm:$0xff] }
 0x702   : > { %v9862_v6 = vpop.eup %9861  ;;  %9881 = vrsqrt.f32 %v7465_v38  ;;  %v1573_v28 = vmul.f32 %v9860_v4, %v14174_v46  ;;  %v1547_v8 = vmax.f32 %v14181_v49, 1e-16  ;;  %v1593_v10 = vmax.f32 %v14182_v11, 1e-16 }
 0x703   : > { %v9864_v23 = vpop.eup %9863  ;;  %v7510_v58 = vsel %vm7502_vm1, %v7490_v39, 0.0  ;;  %v1578_v55 = vmul.f32 %v9862_v6, %v14176_v0  ;;  %v7390_v57 = vpop.xlane.xlu1 %7389  ;;  %9883 = vrsqrt.f32 %v1543_v61  ;;  %v14183_v39 = vld [vmem:[#allocation91_spill] sm:$0xff] }
 0x704   : > { %v9866_v2 = vpop.eup %9865  ;;  %v7526_v7 = vsel %vm7501_vm2, %v1619_v32, %v7510_v58  ;;  %v1621_v19 = vmul.f32 %v9864_v23, %v1573_v28  ;;  %v7462_v22 = vmax.f32 %v7390_v57, 1e-16  ;;  %9885 = vrsqrt.f32 %v1545_v24 }
 0x705   : > { %v9868_v14 = vpop.eup %9867  ;;  %7542 = vst [vmem:[%s13302_s28 + $0x38] sm:$0xff] %v7526_v7  ;;  %v7445_v54 = vmul.f32 %v9866_v2, %v7211_v51  ;;  %v7217_v27 = vpop.xlane.xlu0 %7216  ;;  %9887 = vrsqrt.f32 %v7414_v20  ;;  %v1595_v38 = vmax.f32 %v14183_v39, 1e-16  ;;  %v14184_v2 = vld [vmem:[#allocation86_spill] sm:$0xff] }
 0x706   : > { %v9870_v18 = vpop.eup %9869  ;;  %v7444_v43 = vmul.f32 %v9868_v14, %v7208_v42  ;;  %9889 = vrsqrt.f32 %v1591_v45 }
 0x707   : > { %v9872_v60 = vpop.eup %9871  ;;  %v7493_v56 = vmul.f32 %v9870_v18, %v7445_v54  ;;  %v7396_v37 = vpop.xlane.xlu1 %7395  ;;  %9891 = vrsqrt.f32 %v7462_v22 }
 0x708   : > { %v9874_v9 = vpop.eup %9873  ;;  %v7447_v52 = vmul.f32 %v9872_v60, %v7217_v27  ;;  %v7464_v4 = vmax.f32 %v7396_v37, 1e-16  ;;  %9893 = vrsqrt.f32 %v1547_v8  ;;  %v14185_v60 = vld [vmem:[#allocation62_spill] sm:$0xff] }
 0x709   : > { %v9876_v16 = vpop.eup %9875  ;;  %v7492_v26 = vmul.f32 %v9874_v9, %v7444_v43  ;;  %v7513_v62 = vsel %vm7502_vm1, %v7493_v56, 0.0  ;;  %v7223_v41 = vpop.xlane.xlu0 %7222  ;;  %9895 = vrsqrt.f32 %v7416_v53 }
 0x70a   : > { %v7529_v36 = vsel %vm7501_vm2, %v14175_v47, %v7513_v62  ;;  %v9878_v44 = vpop.eup %9877  ;;  %v7495_v48 = vmul.f32 %v9876_v16, %v7447_v52  ;;  %9897 = vrsqrt.f32 %v1593_v10 }
 0x70b   : > { %v7512_v59 = vsel %vm7502_vm1, %v7492_v26, 0.0  ;;  %7545 = vst [vmem:[%s13302_s28 + $0x50] sm:$0xff] %v7529_v36  ;;  %v9880_v33 = vpop.eup %9879  ;;  %v1626_v13 = vmul.f32 %v9878_v44, %v1578_v55  ;;  %9899 = vrsqrt.f32 %v7464_v4  ;;  %v14186_v44 = vld [vmem:[#allocation29_spill] sm:$0xff] }
 0x70c   : > { %v7528_v30 = vsel %vm7501_vm2, %v1621_v19, %v7512_v59  ;;  %v9882_v63 = vpop.eup %9881  ;;  %v7515_v34 = vsel %vm7502_vm1, %v7495_v48, 0.0  ;;  %v7449_v50 = vmul.f32 %v9880_v33, %v7223_v41  ;;  %9901 = vrsqrt.f32 %v1595_v38 }
 0x70d   : > { %7544 = vst [vmem:[%s13302_s28 + $0x48] sm:$0xff] %v7528_v30  ;;  %v7531_v35 = vsel %vm7501_vm2, %v14177_v1, %v7515_v34  ;;  %v9884_v32 = vpop.eup %9883  ;;  %9903 = vrsqrt.f32 %v7418_v12 }
 0x70e   : > { %7547 = vst [vmem:[%s13302_s28 + $0x60] sm:$0xff] %v7531_v35  ;;  %v7497_v3 = vmul.f32 %v9882_v63, %v7449_v50  ;;  %v9886_v58 = vpop.eup %9885  ;;  %v1575_v7 = vmul.f32 %v9884_v32, %v14184_v2 }
 0x70f   : > { %v9888_v25 = vpop.eup %9887  ;;  %v1577_v43 = vmul.f32 %v9886_v58, %v14185_v60 }
 0x710   : > { %v7517_v17 = vsel %vm7502_vm1, %v7497_v3, 0.0  ;;  %v9890_v51 = vpop.eup %9889 }
 0x711   : > { %v7533_v31 = vsel %vm7501_vm2, %v1626_v13, %v7517_v17  ;;  %v9892_v54 = vpop.eup %9891  ;;  %v1623_v28 = vmul.f32 %v9890_v51, %v1575_v7 }
 0x712   : > { %7549 = vst [vmem:[%s13302_s28 + $0x70] sm:$0xff] %v7533_v31  ;;  %v9894_v18 = vpop.eup %9893 }
 0x713   : > { %v9896_v5 = vpop.eup %9895  ;;  %v1579_v59 = vmul.f32 %v9894_v18, %v14186_v44 }
 0x714   : > { %v9898_v9 = vpop.eup %9897 }
 0x715   : > { %v9900_v26 = vpop.eup %9899  ;;  %v1625_v36 = vmul.f32 %v9898_v9, %v1577_v43 }
 0x716   : > { %v9902_v52 = vpop.eup %9901 }
 0x717   : > { %v9904_v47 = vpop.eup %9903  ;;  %v1627_v63 = vmul.f32 %v9902_v52, %v1579_v59 }
 0x736   : > { %v7402_v6 = vpop.xlane.xlu1 %7401 }
 0x737   : > { %v7466_v23 = vmax.f32 %v7402_v6, 1e-16 }
 0x739   : > { %9905 = vrsqrt.f32 %v7466_v23 }
 0x73a   : > { %v7214_v42 = vpop.xlane.xlu1 %7213 }
 0x73b   : > { %v7446_v14 = vmul.f32 %v9888_v25, %v7214_v42 }
 0x73d   : > { %v7494_v46 = vmul.f32 %v9892_v54, %v7446_v14 }
 0x73e   : > { %v7220_v56 = vpop.xlane.xlu1 %7219 }
 0x73f   : > { %v7514_v27 = vsel %vm7502_vm1, %v7494_v46, 0.0  ;;  %v7448_v16 = vmul.f32 %v9896_v5, %v7220_v56 }
 0x740   : > { %v7530_v62 = vsel %vm7501_vm2, %v1623_v28, %v7514_v27 }
 0x741   : > { %7546 = vst [vmem:[%s13302_s28 + $0x58] sm:$0xff] %v7530_v62  ;;  %v7496_v19 = vmul.f32 %v9900_v26, %v7448_v16 }
 0x742   : > { %v7226_v48 = vpop.xlane.xlu1 %7225 }
 0x743   : > { %v9906_v33 = vpop.eup %9905  ;;  %v7516_v0 = vsel %vm7502_vm1, %v7496_v19, 0.0  ;;  %v7450_v55 = vmul.f32 %v9904_v47, %v7226_v48 }
 0x744   : > { %v7532_v30 = vsel %vm7501_vm2, %v1625_v36, %v7516_v0 }
 0x745   : > { %7548 = vst [vmem:[%s13302_s28 + $0x68] sm:$0xff] %v7532_v30  ;;  %v7498_v41 = vmul.f32 %v9906_v33, %v7450_v55 }
 0x747   : > { %v7518_v34 = vsel %vm7502_vm1, %v7498_v41, 0.0 }
 0x748   : > { %v7534_v50 = vsel %vm7501_vm2, %v1627_v63, %v7518_v34 }
 0x749   : > { %7550 = vst [vmem:[%s13302_s28 + $0x78] sm:$0xff] %v7534_v50 }
 0x74a   : > { %10330 = shalt.err (!%p10327_p2)
}
 0x74b   : > { %s10331_s28 = scalar_lea.hbm %s13515_s17, 2048  ;;  %s10335_s29 = scalar_lea.hbm %s14187_s19, 4096 }
 0x74c   : > { %p10332_p1 = scmp.ne.s32.totalorder %s13515_s17, %s10331_s28  ;;  %p10336_p8 = scmp.lt.u32.totalorder %s13515_s17, %s14187_s19 }
 0x74d   : > { %p10337_p6 = scmp.lt.u32.totalorder %s10335_s29, %s10331_s28  ;;  %p10339_p3 = scmp.lt.u32.totalorder %s10331_s28, %s13515_s17 }
 0x74e   : > { %p10333_p4 = pnand %p10332_p1, %p10618_p5 }
 0x74f   : > { %p10338_p10 = por %p10337_p6, %p10336_p8 }
 0x750   : > { %p10334_p0 = pneg %p10333_p4 }
 0x751   : > { %p10340_p9 = por %p10339_p3, %p10338_p10 }
 0x753   : > { %p10341_p13 = pnand %p10340_p9, %p10334_p0 }
 0x755   : > { %10344 = shalt.err (!%p10341_p13)
}
 0x756   : > { %8911 = dma.vmem_to_hbm [thread:$0]  (%p10618_p5), %s13517_s3, 2048, %s13515_s17, %s13355_s22, %s10413_s27, %s10413_s27, %s10414_s15  }
 0x757 PF: > { %s14188_s25 = sld [smem:[#allocation21_spill]]  ;;  %s14189_s2 = sld [smem:[#allocation22_spill]] }
 0x758   : > { %p14191_p7 = scmp.ge.s32.totalorder %s10399_s12, 2 }
 0x75d   : > { %s7623_s23 = sand.u32 1, %s14188_s25   ;;  %p14190_p11 = scmp.ne.s32.totalorder %s14189_s2, 0 }
 0x75e   : > { %s7624_s14 = scalar_lea.sflag [#allocation4], %s7623_s23 }
 0x75f   : > { %p8933_p12 = pnand %p14191_p7, %p14190_p11 }
 0x761   : > { %10378 = dma.done.wait (!%p8933_p12), %s7624_s14, 4096  }
 0x762   : > { %10380 = vsyncadd (!%p8933_p12), %s7624_s14, 4294963200  ;;  %s14192_s20 = sadd.s32 4294967294, %s10399_s12  }
 0x763   : > { %s7632_s13 = sand.u32 1, %s14192_s20  }
 0x764   : > { %s7633_s18 = scalar_lea.sflag [#allocation13], %s7632_s13 }
 0x765   : > { %10382 = dma.done.wait (!%p8933_p12), %s7633_s18, 4096  }
 0x766   : > { %10384 = vsyncadd (!%p8933_p12), %s7633_s18, 4294963200  ;;  %p30_p5 = scmp.ge.s32.totalorder %s10604_s9, 4   ;;  %s14193_s30 = smov %s10391_s10 }
 0x767   : > { %s14194_s10 = smov %s10395_s11  ;;  %s14195_s11 = smov %s10614_s16 }
 0x768   : > { %s14196_s12 = smov %s10604_s9  ;;  %32 = sbr.rel (!%p30_p5) target bundleno = 15 (0xf), region = 150 }
 0x76f   :  { %7647 = vsyncpa [#allocation3], 1 }
 0x770   :  { %7649 = vsyncpa [#allocation3 + $0x1], 1 }
 0x771   :  { %7650 = vsyncpa [#allocation6], 1 }
 0x772   :  { %7652 = vsyncpa [#allocation6 + $0x1], 1 }
 0x773   :  { %7653 = vsyncpa [#allocation9], 1 }
 0x774   :  { %7654 = vsyncpa [#allocation4], 1 }
 0x775   :  { %7656 = vsyncpa [#allocation4 + $0x1], 1 }
 0x776   :  { %7657 = vsyncpa [#allocation13], 1 }
 0x777   :  { %7659 = vsyncpa [#allocation13 + $0x1], 1 }

</bundles_post_ra>
